<compile_context>
chip_gen: v5e
topology: v5e:2x2
jax: 0.10.0
libtpu: 0.0.40
codegen_flags: <defaults>
</compile_context>

<pallas_src>
import functools
import math

import jax
import jax.numpy as jnp
from jax.experimental import pallas as pl
from jax.experimental.pallas import tpu as pltpu

_VMEM_LIMIT = 32 * 1024 * 1024      # scoped-VMEM budget safe on v5e/v6e/v7x
_TM, _TN, _TK = 256, 512, 1024      # tile caps (bf16 operands, f32 accumulate)


def _vspec():
    return pl.BlockSpec(memory_space=pltpu.MemorySpace.VMEM)


def _round_up(n, m):
    return (n + m - 1) // m * m


def _tiles(dim, align, cap):
    """Pad `dim` to `align`; pick the largest tile <= cap that divides the
    padded dim exactly (minimal padding, exact grids, lane-dense tiles)."""
    p = _round_up(dim, align)
    if p <= cap:
        return p, p
    t = cap - (cap % align)
    while p % t:
        t -= align
    return p, t


def _pad2(a, m, n):
    am, an = a.shape
    if am == m and an == n:
        return a
    return jnp.pad(a, ((0, m - am), (0, n - an)))


# ------------------------- tiled matmul (+epilogue) -------------------------

def _matmul_kernel(*refs, act, has_res):
    if has_res:
        x_ref, w_ref, b_ref, res_ref, o_ref, acc_ref = refs
    else:
        x_ref, w_ref, b_ref, o_ref, acc_ref = refs
        res_ref = None
    k = pl.program_id(2)

    @pl.when(k == 0)
    def _():
        acc_ref[...] = jnp.zeros_like(acc_ref)

    acc_ref[...] += jnp.dot(x_ref[...], w_ref[...],
                            preferred_element_type=jnp.float32)

    @pl.when(k == pl.num_programs(2) - 1)
    def _():
        y = acc_ref[...] + b_ref[...]
        if act == "gelu":
            # TODO(synk): torch nn.GELU is erf-exact; tanh approximation used here.
            y = jax.nn.gelu(y, approximate=True)
        if res_ref is not None:
            y = y + res_ref[...].astype(jnp.float32)
        o_ref[...] = y.astype(o_ref.dtype)


def matmul_bias(x, w, b, *, act="none", residual=None, out_dtype=jnp.bfloat16):
    """(M,K) @ (K,N) + b [+GELU] [+residual]; K-tiled with f32 VMEM accumulator.

    Activations travel HBM<->HBM in bf16; accumulation stays f32 in VMEM."""
    M, K = x.shape
    N = w.shape[1]
    Mp, tm = _tiles(M, 8, _TM)
    Np, tn = _tiles(N, 128, _TN)      # lane-dense outputs (multiple of 128)
    Kp, tk = _tiles(K, 128, _TK)
    xp = _pad2(x.astype(jnp.bfloat16), Mp, Kp)
    wp = _pad2(w.astype(jnp.bfloat16), Kp, Np)
    bp = _pad2(b.astype(jnp.float32).reshape(1, N), 1, Np)
    in_specs = [pl.BlockSpec((tm, tk), lambda i, j, k: (i, k)),
                pl.BlockSpec((tk, tn), lambda i, j, k: (k, j)),
                pl.BlockSpec((1, tn), lambda i, j, k: (0, j))]
    args = [xp, wp, bp]
    bytes_acc = 2 * (Mp * Kp + Kp * Np + Mp * Np)
    if residual is not None:
        in_specs.append(pl.BlockSpec((tm, tn), lambda i, j, k: (i, j)))
        args.append(_pad2(residual.astype(jnp.bfloat16), Mp, Np))
        bytes_acc += 2 * Mp * Np
    out = pl.pallas_call(
        functools.partial(_matmul_kernel, act=act, has_res=residual is not None),
        out_shape=jax.ShapeDtypeStruct((Mp, Np), out_dtype),
        grid_spec=pltpu.PrefetchScalarGridSpec(
            num_scalar_prefetch=0,
            grid=(Mp // tm, Np // tn, Kp // tk),
            in_specs=in_specs,
            out_specs=pl.BlockSpec((tm, tn), lambda i, j, k: (i, j)),
            scratch_shapes=[pltpu.VMEM((tm, tn), jnp.float32)]),
        compiler_params=pltpu.CompilerParams(
            dimension_semantics=("parallel", "parallel", "arbitrary"),
            vmem_limit_bytes=_VMEM_LIMIT),
        cost_estimate=pl.CostEstimate(
            flops=2 * Mp * Np * Kp,
            transcendentals=Mp * Np if act == "gelu" else 0,
            bytes_accessed=bytes_acc),
    )(*args)
    return out[:M, :N]


# ---------------------- fused LayerNorm -> matmul ---------------------------

def _ln_matmul_kernel(x_ref, g_ref, beta_ref, w_ref, b_ref, o_ref, h_sc,
                      *, act, eps):
    # LayerNorm is computed once per row tile (at j == 0) into a bf16 VMEM
    # scratch and reused for every output tile along the N (j) axis.
    @pl.when(pl.program_id(1) == 0)
    def _():
        x = x_ref[...].astype(jnp.float32)
        mu = jnp.mean(x, axis=-1, keepdims=True)
        xc = x - mu
        var = jnp.mean(xc * xc, axis=-1, keepdims=True)
        h = xc * jax.lax.rsqrt(var + eps) * g_ref[...] + beta_ref[...]
        h_sc[...] = h.astype(jnp.bfloat16)

    y = jnp.dot(h_sc[...], w_ref[...],
                preferred_element_type=jnp.float32) + b_ref[...]
    if act == "gelu":
        # TODO(synk): torch nn.GELU is erf-exact; tanh approximation used here.
        y = jax.nn.gelu(y, approximate=True)
    o_ref[...] = y.astype(o_ref.dtype)


def ln_matmul(x, g, beta, w, b, *, act="none", eps=1e-5):
    """LayerNorm(x) @ w + b [+ GELU]; K (=C) kept whole per tile (LN needs full row)."""
    M, K = x.shape
    N = w.shape[1]
    Mp, tm = _tiles(M, 8, _TM)
    Np, tn = _tiles(N, 128, _TN)
    xp = _pad2(x.astype(jnp.bfloat16), Mp, K)
    wp = _pad2(w.astype(jnp.bfloat16), K, Np)
    bp = _pad2(b.astype(jnp.float32).reshape(1, N), 1, Np)
    out = pl.pallas_call(
        functools.partial(_ln_matmul_kernel, act=act, eps=eps),
        out_shape=jax.ShapeDtypeStruct((Mp, Np), jnp.bfloat16),
        grid_spec=pltpu.PrefetchScalarGridSpec(
            num_scalar_prefetch=0,
            grid=(Mp // tm, Np // tn),
            in_specs=[pl.BlockSpec((tm, K), lambda i, j: (i, 0)),
                      pl.BlockSpec((1, K), lambda i, j: (0, 0)),
                      pl.BlockSpec((1, K), lambda i, j: (0, 0)),
                      pl.BlockSpec((K, tn), lambda i, j: (0, j)),
                      pl.BlockSpec((1, tn), lambda i, j: (0, j))],
            out_specs=pl.BlockSpec((tm, tn), lambda i, j: (i, j)),
            scratch_shapes=[pltpu.VMEM((tm, K), jnp.bfloat16)]),
        compiler_params=pltpu.CompilerParams(
            # j stays sequential per row tile so the cached LN result is valid.
            dimension_semantics=("parallel", "arbitrary"),
            vmem_limit_bytes=_VMEM_LIMIT),
        cost_estimate=pl.CostEstimate(
            flops=2 * Mp * Np * K + 8 * Mp * K,
            transcendentals=(Mp * Np if act == "gelu" else 0) + Mp,
            bytes_accessed=2 * Mp * K + 2 * K * Np + 2 * Mp * Np),
    )(xp, g.astype(jnp.float32).reshape(1, K),
      beta.astype(jnp.float32).reshape(1, K), wp, bp)
    return out[:M, :N]


# -------------------------- flash-style attention ---------------------------

def _flash_kernel(q_ref, k_ref, v_ref, o_ref, m_sc, l_sc, acc_sc,
                  *, scale, kv_len, blk_kv, masked):
    j = pl.program_id(2)

    @pl.when(j == 0)
    def _():
        m_sc[...] = jnp.full_like(m_sc, -jnp.inf)
        l_sc[...] = jnp.zeros_like(l_sc)
        acc_sc[...] = jnp.zeros_like(acc_sc)

    # Softmax scale folded into the (blk, hd) q tile (cheaper than scaling the
    # (blk, blk) score matrix on every kv step).
    q = q_ref[0] * scale
    s = jax.lax.dot_general(q, k_ref[0], (((1,), (1,)), ((), ())),
                            preferred_element_type=jnp.float32)
    if masked:  # only emitted when the kv length was actually padded
        col = jax.lax.broadcasted_iota(jnp.int32, s.shape, 1) + j * blk_kv
        s = jnp.where(col < kv_len, s, -jnp.inf)
    m_prev = m_sc[...]
    m_new = jnp.maximum(m_prev, jnp.max(s, axis=-1, keepdims=True))
    alpha = jnp.exp(m_prev - m_new)
    p = jnp.exp(s - m_new)
    l_sc[...] = alpha * l_sc[...] + jnp.sum(p, axis=-1, keepdims=True)
    acc_sc[...] = alpha * acc_sc[...] + jnp.dot(
        p.astype(v_ref.dtype), v_ref[0], preferred_element_type=jnp.float32)
    m_sc[...] = m_new

    @pl.when(j == pl.num_programs(2) - 1)
    def _():
        inv_l = pl.reciprocal(l_sc[...], approx=True)
        o_ref[0] = (acc_sc[...] * inv_l).astype(o_ref.dtype)


def flash_attention(q, k, v, scale):
    """q, k, v: (B*H, T, hd) -> (B*H, T, hd) bf16.  Online softmax over kv tiles."""
    BH, T, hd = q.shape
    Tp, blk = _tiles(T, 8, 256)
    masked = Tp != T

    def _pad(a):
        return a if not masked else jnp.pad(a, ((0, 0), (0, Tp - T), (0, 0)))

    qp, kp, vp = (_pad(a).astype(jnp.bfloat16) for a in (q, k, v))
    nt = Tp // blk
    out = pl.pallas_call(
        functools.partial(_flash_kernel, scale=scale, kv_len=T, blk_kv=blk,
                          masked=masked),
        out_shape=jax.ShapeDtypeStruct((BH, Tp, hd), jnp.bfloat16),
        grid_spec=pltpu.PrefetchScalarGridSpec(
            num_scalar_prefetch=0,
            grid=(BH, nt, nt),
            in_specs=[pl.BlockSpec((1, blk, hd), lambda b, i, j: (b, i, 0)),
                      pl.BlockSpec((1, blk, hd), lambda b, i, j: (b, j, 0)),
                      pl.BlockSpec((1, blk, hd), lambda b, i, j: (b, j, 0))],
            out_specs=pl.BlockSpec((1, blk, hd), lambda b, i, j: (b, i, 0)),
            scratch_shapes=[pltpu.VMEM((blk, 1), jnp.float32),
                            pltpu.VMEM((blk, 1), jnp.float32),
                            pltpu.VMEM((blk, hd), jnp.float32)]),
        compiler_params=pltpu.CompilerParams(
            dimension_semantics=("parallel", "parallel", "arbitrary"),
            vmem_limit_bytes=_VMEM_LIMIT),
        cost_estimate=pl.CostEstimate(
            flops=4 * BH * Tp * Tp * hd,
            transcendentals=BH * Tp * Tp,
            bytes_accessed=2 * BH * Tp * hd * (2 * nt + 2)),
    )(qp, kp, vp)
    return out if not masked else out[:, :T, :]


# ------------------------------ layernorm -----------------------------------

def _layernorm_kernel(x_ref, g_ref, b_ref, o_ref, *, eps):
    x = x_ref[...].astype(jnp.float32)
    mu = jnp.mean(x, axis=-1, keepdims=True)
    xc = x - mu
    var = jnp.mean(xc * xc, axis=-1, keepdims=True)
    o_ref[...] = (xc * jax.lax.rsqrt(var + eps) * g_ref[...]
                  + b_ref[...]).astype(o_ref.dtype)


def layernorm(x, g, b, eps=1e-5):
    """x: (M, C) bf16; normalize over last dim with affine (C,) params (f32 stats)."""
    M, C = x.shape
    Mp, tm = _tiles(M, 8, 256)
    xp = _pad2(x.astype(jnp.bfloat16), Mp, C)
    out = pl.pallas_call(
        functools.partial(_layernorm_kernel, eps=eps),
        out_shape=jax.ShapeDtypeStruct((Mp, C), jnp.bfloat16),
        grid_spec=pltpu.PrefetchScalarGridSpec(
            num_scalar_prefetch=0,
            grid=(Mp // tm,),
            in_specs=[pl.BlockSpec((tm, C), lambda i: (i, 0)),
                      pl.BlockSpec((1, C), lambda i: (0, 0)),
                      pl.BlockSpec((1, C), lambda i: (0, 0))],
            out_specs=pl.BlockSpec((tm, C), lambda i: (i, 0))),
        compiler_params=pltpu.CompilerParams(
            dimension_semantics=("parallel",),
            vmem_limit_bytes=_VMEM_LIMIT),
        cost_estimate=pl.CostEstimate(
            flops=8 * Mp * C, transcendentals=Mp,
            bytes_accessed=4 * Mp * C + 8 * C),
    )(xp, g.astype(jnp.float32).reshape(1, C), b.astype(jnp.float32).reshape(1, C))
    return out[:M]


# --------------------- 3x3 conv (NHWC, 9 shifted matmuls) -------------------

def _conv3x3_kernel(x_ref, w_ref, o_ref, *, H, W):
    ci = x_ref.shape[-1]
    co = o_ref.shape[-1]
    acc = jnp.zeros((H * W, co), jnp.float32)
    for kh in range(3):
        for kw in range(3):
            patch = x_ref[0, kh:kh + H, kw:kw + W, :]          # (H, W, ci)
            acc = acc + jnp.dot(patch.reshape(H * W, ci), w_ref[kh * 3 + kw],
                                preferred_element_type=jnp.float32)
    o_ref[0] = acc.reshape(H, W, co).astype(o_ref.dtype)


def conv3x3(x_nhwc, w):
    """Conv2d(k=3, s=1, p=1, no bias).  x: (B,H,W,Cin); w: (Cout,Cin,3,3) torch."""
    B, H, W, Ci = x_nhwc.shape
    Co = w.shape[0]
    xp = jnp.pad(x_nhwc.astype(jnp.bfloat16), ((0, 0), (1, 1), (1, 1), (0, 0)))
    wt = jnp.transpose(w, (2, 3, 1, 0)).reshape(9, Ci, Co).astype(jnp.bfloat16)
    return pl.pallas_call(
        functools.partial(_conv3x3_kernel, H=H, W=W),
        out_shape=jax.ShapeDtypeStruct((B, H, W, Co), jnp.bfloat16),
        grid_spec=pltpu.PrefetchScalarGridSpec(
            num_scalar_prefetch=0,
            grid=(B,),
            in_specs=[pl.BlockSpec((1, H + 2, W + 2, Ci), lambda b: (b, 0, 0, 0)),
                      pl.BlockSpec((9, Ci, Co), lambda b: (0, 0, 0))],
            out_specs=pl.BlockSpec((1, H, W, Co), lambda b: (b, 0, 0, 0))),
        compiler_params=pltpu.CompilerParams(
            dimension_semantics=("parallel",),
            vmem_limit_bytes=_VMEM_LIMIT),
        cost_estimate=pl.CostEstimate(
            flops=2 * B * H * W * 9 * Ci * Co,
            transcendentals=0,
            bytes_accessed=2 * (B * (H + 2) * (W + 2) * Ci + 9 * Ci * Co
                                + B * H * W * Co)),
    )(xp, wt)


# --------------------- TokenLearner pooling & final head --------------------

def _tl_pool_kernel(sel_ref, feat_ref, o_ref):
    w = jax.nn.sigmoid(sel_ref[0].astype(jnp.float32))           # (P, S)
    o = jax.lax.dot_general(w.astype(jnp.bfloat16), feat_ref[0],
                            (((0,), (0,)), ((), ())),
                            preferred_element_type=jnp.float32)  # (S, C)
    o_ref[0] = o.astype(o_ref.dtype)


def tokenlearner_pool(sel_pfirst, feat):
    """sel_pfirst: (B, P, S) pre-sigmoid logits; feat: (B, P, C) -> (B, S, C)."""
    B, P, S = sel_pfirst.shape
    C = feat.shape[-1]
    return pl.pallas_call(
        _tl_pool_kernel,
        out_shape=jax.ShapeDtypeStruct((B, S, C), jnp.bfloat16),
        grid_spec=pltpu.PrefetchScalarGridSpec(
            num_scalar_prefetch=0,
            grid=(B,),
            in_specs=[pl.BlockSpec((1, P, S), lambda b: (b, 0, 0)),
                      pl.BlockSpec((1, P, C), lambda b: (b, 0, 0))],
            out_specs=pl.BlockSpec((1, S, C), lambda b: (b, 0, 0))),
        compiler_params=pltpu.CompilerParams(
            dimension_semantics=("parallel",),
            vmem_limit_bytes=_VMEM_LIMIT),
        cost_estimate=pl.CostEstimate(
            flops=2 * B * P * S * C,
            transcendentals=B * P * S,
            bytes_accessed=2 * B * P * (S + C) + 2 * B * S * C),
    )(sel_pfirst.astype(jnp.bfloat16), feat.astype(jnp.bfloat16))


def _head_kernel(x_ref, g_ref, beta_ref, w_ref, b_ref, o_ref, *, eps, inv_t):
    x = x_ref[...].astype(jnp.float32)                           # (B, T, C)
    mu = jnp.mean(x, axis=-1, keepdims=True)
    xc = x - mu
    var = jnp.mean(xc * xc, axis=-1, keepdims=True)
    y = xc * jax.lax.rsqrt(var + eps) * g_ref[...] + beta_ref[...]
    pooled = jnp.sum(y, axis=1) * inv_t                          # (B, C) token mean
    logits = jnp.dot(pooled.astype(jnp.bfloat16), w_ref[...],
                     preferred_element_type=jnp.float32) + b_ref[...]
    o_ref[...] = logits.astype(o_ref.dtype)


def final_head(x, ln_g, ln_b, head_w, head_b, eps=1e-5):
    """Fused LayerNorm + token-mean + classifier; classes padded to 128 lanes."""
    B, T, C = x.shape
    NC = head_w.shape[1]
    NCp = _round_up(NC, 128)
    wp = _pad2(head_w.astype(jnp.bfloat16), C, NCp)
    bp = _pad2(head_b.astype(jnp.float32).reshape(1, NC), 1, NCp)
    out = pl.pallas_call(
        functools.partial(_head_kernel, eps=eps, inv_t=1.0 / T),
        out_shape=jax.ShapeDtypeStruct((B, NCp), jnp.float32),
        in_specs=[_vspec()] * 5,
        out_specs=_vspec(),
        compiler_params=pltpu.CompilerParams(vmem_limit_bytes=_VMEM_LIMIT),
    )(x.astype(jnp.bfloat16), ln_g.astype(jnp.float32).reshape(1, C),
      ln_b.astype(jnp.float32).reshape(1, C), wp, bp)
    return out[:, :NC]


# ------------------------------ JAX glue ------------------------------------

def patchify(img, w, b, patch):
    """Conv2d(3, C, patch, stride=patch) as patch-extract + tiled Pallas matmul.

    img: (B, 3, H, W) NCHW; w: (C, 3, p, p) torch layout; returns (B, T, C) bf16
    with token index t = gy * gw + gx (matches 'b c h w -> b (h w) c')."""
    # TODO(synk): patch extraction still materializes an im2col tensor via an
    # XLA reshape/transpose (now in bf16, half the previous traffic).
    B, Ci, H, W = img.shape
    C = w.shape[0]
    gh, gw = H // patch, W // patch
    x = img.astype(jnp.bfloat16).reshape(B, Ci, gh, patch, gw, patch)
    x = x.transpose(0, 2, 4, 1, 3, 5).reshape(B * gh * gw, Ci * patch * patch)
    wm = w.reshape(C, Ci * patch * patch).T
    y = matmul_bias(x, wm, b)
    return y.reshape(B, gh * gw, C)


def vit_block(x, p, num_heads):
    """Pre-norm ViT block (timm-style). x: (B, T, C) bf16."""
    B, T, C = x.shape
    hd = C // num_heads
    x2 = x.reshape(B * T, C)
    # LN1 fused into the qkv projection (LN cached across the N axis in-kernel).
    qkv = ln_matmul(x2, p["ln1_g"], p["ln1_b"], p["qkv_w"], p["qkv_b"])
    # TODO(synk): head split/merge remains two XLA transposes (bf16 now); a
    # head-sliced BlockSpec variant would need sub-128-lane output blocks.
    qkv = qkv.reshape(B, T, 3, num_heads, hd).transpose(2, 0, 3, 1, 4)
    q = qkv[0].reshape(B * num_heads, T, hd)
    k = qkv[1].reshape(B * num_heads, T, hd)
    v = qkv[2].reshape(B * num_heads, T, hd)
    o = flash_attention(q, k, v, hd ** -0.5)
    o = o.reshape(B, num_heads, T, hd).transpose(0, 2, 1, 3).reshape(B * T, C)
    # Attention output projection with the residual add fused in.
    x2 = matmul_bias(o, p["proj_w"], p["proj_b"], residual=x2)
    # LN2 + fc1 + GELU fused; fc2 with residual fused.
    h = ln_matmul(x2, p["ln2_g"], p["ln2_b"], p["fc1_w"], p["fc1_b"], act="gelu")
    x2 = matmul_bias(h, p["fc2_w"], p["fc2_b"], residual=x2)
    return x2.reshape(B, T, C)


def token_learner(inputs, p):
    """TokenLearnerModule.forward.  inputs: (B, C, h, h) (raw-reshaped feats).

    conv_mid exists in torch __init__ but is NOT used in forward; faithfully skipped."""
    B, C, H, W = inputs.shape
    normed = layernorm(inputs.reshape(B, C * H * W), p["ln_g"], p["ln_b"])
    normed_nhwc = normed.reshape(B, C, H, W).transpose(0, 2, 3, 1)
    # TODO(synk): the LN->conv->conv->sigmoid->pool chain could be fused into a
    # single kernel; it runs once per forward on tiny tensors, so kept separate.
    sel = conv3x3(normed_nhwc, p["conv_init_w"])            # (B, H, W, S)
    sel = conv3x3(sel, p["conv_end_w"])                     # (B, H, W, S)
    sel_pfirst = sel.reshape(B, H * W, -1)                  # (B, P, S) == permute(0,2,1)
    feat = inputs.reshape(B, H * W, C)                      # raw reshape (as torch)
    return tokenlearner_pool(sel_pfirst, feat)              # (B, S, C)


def vit_classifier_forward(img, params, cfg):
    x = patchify(img, params["patch_w"], params["patch_b"], cfg["patch_size"])
    pos = params["pos_emb"][:, 0, :][None, :, :]            # (1, T, C) f32
    x = (x + pos).astype(jnp.bfloat16)
    for p in params["blocks_first"]:
        x = vit_block(x, p, cfg["num_head"])
    bs, n_token, c = x.shape
    h = int(math.sqrt(n_token))
    feats = x.reshape(bs, c, h, h)                          # raw reshape (as torch)
    x = token_learner(feats, params["tokenlearner"])        # (B, S, C)
    for p in params["blocks_second"]:
        x = vit_block(x, p, cfg["num_head"])
    return final_head(x, params["ln_g"], params["ln_b"],
                      params["head_w"], params["head_b"])


# --------------------------- parameter init ---------------------------------

def init_params(key, cfg):
    C = cfg["emb_dim"]
    p = cfg["patch_size"]
    hgrid = cfg["image_size"] // p
    T = hgrid * hgrid
    S = cfg["token_learner_units"]
    hidden = 4 * C
    keys = iter(jax.random.split(key, 256))

    def nrm(shape, std=0.02, dtype=jnp.bfloat16):
        return (jax.random.normal(next(keys), shape, jnp.float32) * std).astype(dtype)

    def block_params():
        return dict(
            ln1_g=jnp.ones((C,), jnp.float32), ln1_b=jnp.zeros((C,), jnp.float32),
            qkv_w=nrm((C, 3 * C)), qkv_b=jnp.zeros((3 * C,), jnp.float32),
            proj_w=nrm((C, C)), proj_b=jnp.zeros((C,), jnp.float32),
            ln2_g=jnp.ones((C,), jnp.float32), ln2_b=jnp.zeros((C,), jnp.float32),
            fc1_w=nrm((C, hidden)), fc1_b=jnp.zeros((hidden,), jnp.float32),
            fc2_w=nrm((hidden, C)), fc2_b=jnp.zeros((C,), jnp.float32),
        )

    return dict(
        pos_emb=nrm((T, 1, C), std=0.02, dtype=jnp.float32),
        patch_w=nrm((C, 3, p, p)), patch_b=jnp.zeros((C,), jnp.float32),
        blocks_first=[block_params() for _ in range(cfg["token_learner_layer"])],
        blocks_second=[block_params()
                       for _ in range(cfg["num_layer"] - cfg["token_learner_layer"])],
        tokenlearner=dict(
            ln_g=jnp.ones((C * hgrid * hgrid,), jnp.float32),
            ln_b=jnp.zeros((C * hgrid * hgrid,), jnp.float32),
            conv_init_w=nrm((S, C, 3, 3)),
            conv_end_w=nrm((S, S, 3, 3)),
        ),
        ln_g=jnp.ones((C,), jnp.float32), ln_b=jnp.zeros((C,), jnp.float32),
        head_w=nrm((C, cfg["num_classes"])),
        head_b=jnp.zeros((cfg["num_classes"],), jnp.float32),
    )


# --------------------------------- main -------------------------------------

if __name__ == "__main__":
    cfg = dict(image_size=16, patch_size=2, emb_dim=32, num_layer=4, num_head=2,
               token_learner_units=8, token_learner_layer=2, num_classes=10)
    key = jax.random.PRNGKey(0)
    kp, kx = jax.random.split(key)
    params = init_params(kp, cfg)
    img = jax.random.normal(kx, (2, 3, cfg["image_size"], cfg["image_size"]),
                            jnp.float32)

    fwd = jax.jit(functools.partial(vit_classifier_forward, cfg=cfg))
    logits = fwd(img, params)
    jax.block_until_ready(logits)
    assert logits.shape == (2, cfg["num_classes"])
    assert bool(jnp.all(jnp.isfinite(logits)))
    print("KERNEL_OK")
</pallas_src>

<mosaic_0001>
module attributes {stable_mosaic.version = 11 : i64} {
  func.func @_matmul_kernel(%arg0: i32, %arg1: i32, %arg2: i32, %arg3: memref<128x128xbf16, #tpu.memory_space<vmem>>, %arg4: memref<128x128xbf16, #tpu.memory_space<vmem>>, %arg5: memref<1x128xf32, #tpu.memory_space<vmem>>, %arg6: memref<128x128xbf16, #tpu.memory_space<vmem>>, %arg7: memref<128x128xf32, #tpu.memory_space<vmem>>) attributes {dimension_semantics = [#tpu.dimension_semantics<parallel>, #tpu.dimension_semantics<parallel>, #tpu.dimension_semantics<arbitrary>], iteration_bounds = array<i64: 1, 1, 1>, scalar_prefetch = 0 : i64, scratch_operands = 1 : i64, tpu.core_type = #tpu.core_type<tc>, window_params = [{transform_indices = @transform_0, window_bounds = array<i64: 128, 128>}, {transform_indices = @transform_1, window_bounds = array<i64: 128, 128>}, {transform_indices = @transform_2, window_bounds = array<i64: 1, 128>}, {transform_indices = @transform_3, window_bounds = array<i64: 128, 128>}]} {
    %c0_i32 = arith.constant 0 : i32
    %0 = arith.cmpi eq, %arg2, %c0_i32 : i32
    %1 = arith.extui %0 : i1 to i32
    %c0_i32_0 = arith.constant 0 : i32
    %2 = arith.cmpi ne, %1, %c0_i32_0 : i32
    scf.if %2 {
      %cst_10 = arith.constant 0.000000e+00 : f32
      %12 = vector.broadcast %cst_10 : f32 to vector<128x128xf32>
      %c0_11 = arith.constant 0 : index
      %c0_12 = arith.constant 0 : index
      %13 = vector.load %arg7[%c0_11, %c0_12] : memref<128x128xf32, #tpu.memory_space<vmem>>, vector<128x128xf32>
      tpu.vector_store %arg7[%c0_11, %c0_12], %12 {strides = array<i32>} : memref<128x128xf32, #tpu.memory_space<vmem>>, vector<128x128xf32>,
    } else {
    }
    %c0 = arith.constant 0 : index
    %c0_1 = arith.constant 0 : index
    %3 = vector.load %arg7[%c0, %c0_1] : memref<128x128xf32, #tpu.memory_space<vmem>>, vector<128x128xf32>
    %c0_2 = arith.constant 0 : index
    %c0_3 = arith.constant 0 : index
    %4 = vector.load %arg3[%c0_2, %c0_3] : memref<128x128xbf16, #tpu.memory_space<vmem>>, vector<128x128xbf16>
    %c0_4 = arith.constant 0 : index
    %c0_5 = arith.constant 0 : index
    %5 = vector.load %arg4[%c0_4, %c0_5] : memref<128x128xbf16, #tpu.memory_space<vmem>>, vector<128x128xbf16>
    %cst = arith.constant dense<0.000000e+00> : vector<128x128xf32>
    %6 = tpu.matmul %4, %5, %cst {dimension_numbers = #tpu.dot_dimension_numbers<[1], [0], [0], [1], [0, 0, 1, 1], [], []>} : vector<128x128xbf16>, vector<128x128xbf16>, vector<128x128xf32> -> vector<128x128xf32>
    %7 = arith.addf %3, %6 : vector<128x128xf32>
    %c0_6 = arith.constant 0 : index
    %c0_7 = arith.constant 0 : index
    %8 = vector.load %arg7[%c0_6, %c0_7] : memref<128x128xf32, #tpu.memory_space<vmem>>, vector<128x128xf32>
    tpu.vector_store %arg7[%c0_6, %c0_7], %7 {strides = array<i32>} : memref<128x128xf32, #tpu.memory_space<vmem>>, vector<128x128xf32>,
    %c0_i32_8 = arith.constant 0 : i32
    %9 = arith.cmpi eq, %arg2, %c0_i32_8 : i32
    %10 = arith.extui %9 : i1 to i32
    %c0_i32_9 = arith.constant 0 : i32
    %11 = arith.cmpi ne, %10, %c0_i32_9 : i32
    scf.if %11 {
      %c0_10 = arith.constant 0 : index
      %c0_11 = arith.constant 0 : index
      %12 = vector.load %arg7[%c0_10, %c0_11] : memref<128x128xf32, #tpu.memory_space<vmem>>, vector<128x128xf32>
      %c0_12 = arith.constant 0 : index
      %c0_13 = arith.constant 0 : index
      %13 = vector.load %arg5[%c0_12, %c0_13] : memref<1x128xf32, #tpu.memory_space<vmem>>, vector<1x128xf32>
      %14 = vector.broadcast %13 : vector<1x128xf32> to vector<128x128xf32>
      %15 = arith.addf %12, %14 : vector<128x128xf32>
      %16 = arith.truncf %15 : vector<128x128xf32> to vector<128x128xbf16>
      %c0_14 = arith.constant 0 : index
      %c0_15 = arith.constant 0 : index
      %17 = vector.load %arg6[%c0_14, %c0_15] : memref<128x128xbf16, #tpu.memory_space<vmem>>, vector<128x128xbf16>
      tpu.vector_store %arg6[%c0_14, %c0_15], %16 {strides = array<i32>} : memref<128x128xbf16, #tpu.memory_space<vmem>>, vector<128x128xbf16>,
    } else {
    }
    return
  }
  func.func @transform_0(%arg0: i32, %arg1: i32, %arg2: i32) -> (i32, i32) {
    %c0_i32 = arith.constant 0 : i32
    return %arg0, %arg2 : i32, i32
  }
  func.func @transform_1(%arg0: i32, %arg1: i32, %arg2: i32) -> (i32, i32) {
    %c0_i32 = arith.constant 0 : i32
    return %arg2, %arg1 : i32, i32
  }
  func.func @transform_2(%arg0: i32, %arg1: i32, %arg2: i32) -> (i32, i32) {
    %c0_i32 = arith.constant 0 : i32
    %c0_i32_0 = arith.constant 0 : i32
    return %c0_i32, %arg1 : i32, i32
  }
  func.func @transform_3(%arg0: i32, %arg1: i32, %arg2: i32) -> (i32, i32) {
    %c0_i32 = arith.constant 0 : i32
    return %arg0, %arg1 : i32, i32
  }
}

module attributes {stable_mosaic.version = 11 : i64} {
  func.func @_ln_matmul_kernel(%arg0: i32, %arg1: i32, %arg2: memref<128x32xbf16, #tpu.memory_space<vmem>>, %arg3: memref<1x32xf32, #tpu.memory_space<vmem>>, %arg4: memref<1x32xf32, #tpu.memory_space<vmem>>, %arg5: memref<32x128xbf16, #tpu.memory_space<vmem>>, %arg6: memref<1x128xf32, #tpu.memory_space<vmem>>, %arg7: memref<128x128xbf16, #tpu.memory_space<vmem>>, %arg8: memref<128x32xbf16, #tpu.memory_space<vmem>>) attributes {dimension_semantics = [#tpu.dimension_semantics<parallel>, #tpu.dimension_semantics<arbitrary>], iteration_bounds = array<i64: 1, 1>, scalar_prefetch = 0 : i64, scratch_operands = 1 : i64, tpu.core_type = #tpu.core_type<tc>, window_params = [{transform_indices = @transform_0, window_bounds = array<i64: 128, 32>}, {pipeline_mode = #tpu.pipeline_mode<synchronous>, transform_indices = @transform_1, window_bounds = array<i64: 1, 32>}, {pipeline_mode = #tpu.pipeline_mode<synchronous>, transform_indices = @transform_2, window_bounds = array<i64: 1, 32>}, {transform_indices = @transform_3, window_bounds = array<i64: 32, 128>}, {transform_indices = @transform_4, window_bounds = array<i64: 1, 128>}, {transform_indices = @transform_5, window_bounds = array<i64: 128, 128>}]} {
    %c0_i32 = arith.constant 0 : i32
    %0 = arith.cmpi eq, %arg1, %c0_i32 : i32
    %1 = arith.extui %0 : i1 to i32
    %c0_i32_0 = arith.constant 0 : i32
    %2 = arith.cmpi ne, %1, %c0_i32_0 : i32
    scf.if %2 {
      %c0_8 = arith.constant 0 : index
      %c0_9 = arith.constant 0 : index
      %11 = vector.load %arg2[%c0_8, %c0_9] : memref<128x32xbf16, #tpu.memory_space<vmem>>, vector<128x32xbf16>
      %12 = arith.extf %11 : vector<128x32xbf16> to vector<128x32xf32>
      %cst_10 = arith.constant dense<0.000000e+00> : vector<128xf32>
      %13 = vector.multi_reduction <add>, %12, %cst_10 [1] : vector<128x32xf32> to vector<128xf32>
      %14 = vector.shape_cast %13 : vector<128xf32> to vector<128x1xf32>
      %cst_11 = arith.constant 3.200000e+01 : f32
      %15 = vector.broadcast %cst_11 : f32 to vector<128x1xf32>
      %16 = arith.divf %14, %15 : vector<128x1xf32>
      %17 = vector.broadcast %16 : vector<128x1xf32> to vector<128x32xf32>
      %18 = arith.subf %12, %17 : vector<128x32xf32>
      %19 = arith.mulf %18, %18 : vector<128x32xf32>
      %cst_12 = arith.constant dense<0.000000e+00> : vector<128xf32>
      %20 = vector.multi_reduction <add>, %19, %cst_12 [1] : vector<128x32xf32> to vector<128xf32>
      %21 = vector.shape_cast %20 : vector<128xf32> to vector<128x1xf32>
      %cst_13 = arith.constant 3.200000e+01 : f32
      %22 = vector.broadcast %cst_13 : f32 to vector<128x1xf32>
      %23 = arith.divf %21, %22 : vector<128x1xf32>
      %cst_14 = arith.constant 9.99999974E-6 : f32
      %24 = vector.broadcast %cst_14 : f32 to vector<128x1xf32>
      %25 = arith.addf %23, %24 : vector<128x1xf32>
      %26 = math.rsqrt %25 : vector<128x1xf32>
      %27 = vector.broadcast %26 : vector<128x1xf32> to vector<128x32xf32>
      %28 = arith.mulf %18, %27 : vector<128x32xf32>
      %c0_15 = arith.constant 0 : index
      %c0_16 = arith.constant 0 : index
      %29 = vector.load %arg3[%c0_15, %c0_16] : memref<1x32xf32, #tpu.memory_space<vmem>>, vector<1x32xf32>
      %30 = vector.broadcast %29 : vector<1x32xf32> to vector<128x32xf32>
      %31 = arith.mulf %28, %30 : vector<128x32xf32>
      %c0_17 = arith.constant 0 : index
      %c0_18 = arith.constant 0 : index
      %32 = vector.load %arg4[%c0_17, %c0_18] : memref<1x32xf32, #tpu.memory_space<vmem>>, vector<1x32xf32>
      %33 = vector.broadcast %32 : vector<1x32xf32> to vector<128x32xf32>
      %34 = arith.addf %31, %33 : vector<128x32xf32>
      %35 = arith.truncf %34 : vector<128x32xf32> to vector<128x32xbf16>
      %c0_19 = arith.constant 0 : index
      %c0_20 = arith.constant 0 : index
      %36 = vector.load %arg8[%c0_19, %c0_20] : memref<128x32xbf16, #tpu.memory_space<vmem>>, vector<128x32xbf16>
      tpu.vector_store %arg8[%c0_19, %c0_20], %35 {strides = array<i32>} : memref<128x32xbf16, #tpu.memory_space<vmem>>, vector<128x32xbf16>,
    } else {
    }
    %c0 = arith.constant 0 : index
    %c0_1 = arith.constant 0 : index
    %3 = vector.load %arg8[%c0, %c0_1] : memref<128x32xbf16, #tpu.memory_space<vmem>>, vector<128x32xbf16>
    %c0_2 = arith.constant 0 : index
    %c0_3 = arith.constant 0 : index
    %4 = vector.load %arg5[%c0_2, %c0_3] : memref<32x128xbf16, #tpu.memory_space<vmem>>, vector<32x128xbf16>
    %cst = arith.constant dense<0.000000e+00> : vector<128x128xf32>
    %5 = tpu.matmul %3, %4, %cst {dimension_numbers = #tpu.dot_dimension_numbers<[1], [0], [0], [1], [0, 0, 1, 1], [], []>} : vector<128x32xbf16>, vector<32x128xbf16>, vector<128x128xf32> -> vector<128x128xf32>
    %c0_4 = arith.constant 0 : index
    %c0_5 = arith.constant 0 : index
    %6 = vector.load %arg6[%c0_4, %c0_5] : memref<1x128xf32, #tpu.memory_space<vmem>>, vector<1x128xf32>
    %7 = vector.broadcast %6 : vector<1x128xf32> to vector<128x128xf32>
    %8 = arith.addf %5, %7 : vector<128x128xf32>
    %9 = arith.truncf %8 : vector<128x128xf32> to vector<128x128xbf16>
    %c0_6 = arith.constant 0 : index
    %c0_7 = arith.constant 0 : index
    %10 = vector.load %arg7[%c0_6, %c0_7] : memref<128x128xbf16, #tpu.memory_space<vmem>>, vector<128x128xbf16>
    tpu.vector_store %arg7[%c0_6, %c0_7], %9 {strides = array<i32>} : memref<128x128xbf16, #tpu.memory_space<vmem>>, vector<128x128xbf16>,
    return
  }
  func.func @transform_0(%arg0: i32, %arg1: i32) -> (i32, i32) {
    %c0_i32 = arith.constant 0 : i32
    %c0_i32_0 = arith.constant 0 : i32
    return %arg0, %c0_i32 : i32, i32
  }
  func.func @transform_1(%arg0: i32, %arg1: i32) -> (i32, i32) {
    %c0_i32 = arith.constant 0 : i32
    %c0_i32_0 = arith.constant 0 : i32
    %c0_i32_1 = arith.constant 0 : i32
    return %c0_i32, %c0_i32_0 : i32, i32
  }
  func.func @transform_2(%arg0: i32, %arg1: i32) -> (i32, i32) {
    %c0_i32 = arith.constant 0 : i32
    %c0_i32_0 = arith.constant 0 : i32
    %c0_i32_1 = arith.constant 0 : i32
    return %c0_i32, %c0_i32_0 : i32, i32
  }
  func.func @transform_3(%arg0: i32, %arg1: i32) -> (i32, i32) {
    %c0_i32 = arith.constant 0 : i32
    %c0_i32_0 = arith.constant 0 : i32
    return %c0_i32, %arg1 : i32, i32
  }
  func.func @transform_4(%arg0: i32, %arg1: i32) -> (i32, i32) {
    %c0_i32 = arith.constant 0 : i32
    %c0_i32_0 = arith.constant 0 : i32
    return %c0_i32, %arg1 : i32, i32
  }
  func.func @transform_5(%arg0: i32, %arg1: i32) -> (i32, i32) {
    %c0_i32 = arith.constant 0 : i32
    return %arg0, %arg1 : i32, i32
  }
}

module attributes {stable_mosaic.version = 11 : i64} {
  func.func @_flash_kernel(%arg0: i32, %arg1: i32, %arg2: i32, %arg3: memref<1x64x16xbf16, #tpu.memory_space<vmem>>, %arg4: memref<1x64x16xbf16, #tpu.memory_space<vmem>>, %arg5: memref<1x64x16xbf16, #tpu.memory_space<vmem>>, %arg6: memref<1x64x16xbf16, #tpu.memory_space<vmem>>, %arg7: memref<64x1xf32, #tpu.memory_space<vmem>>, %arg8: memref<64x1xf32, #tpu.memory_space<vmem>>, %arg9: memref<64x16xf32, #tpu.memory_space<vmem>>) attributes {dimension_semantics = [#tpu.dimension_semantics<parallel>, #tpu.dimension_semantics<parallel>, #tpu.dimension_semantics<arbitrary>], iteration_bounds = array<i64: 4, 1, 1>, scalar_prefetch = 0 : i64, scratch_operands = 3 : i64, tpu.core_type = #tpu.core_type<tc>, window_params = [{transform_indices = @transform_0, window_bounds = array<i64: 1, 64, 16>}, {transform_indices = @transform_1, window_bounds = array<i64: 1, 64, 16>}, {transform_indices = @transform_2, window_bounds = array<i64: 1, 64, 16>}, {transform_indices = @transform_3, window_bounds = array<i64: 1, 64, 16>}]} {
    %c0_i32 = arith.constant 0 : i32
    %0 = arith.cmpi eq, %arg2, %c0_i32 : i32
    %1 = arith.extui %0 : i1 to i32
    %c0_i32_0 = arith.constant 0 : i32
    %2 = arith.cmpi ne, %1, %c0_i32_0 : i32
    scf.if %2 {
      %cst_27 = arith.constant 0xFF800000 : f32
      %38 = vector.broadcast %cst_27 : f32 to vector<64x1xf32>
      %c0_28 = arith.constant 0 : index
      %c0_29 = arith.constant 0 : index
      %39 = vector.load %arg7[%c0_28, %c0_29] : memref<64x1xf32, #tpu.memory_space<vmem>>, vector<64x1xf32>
      tpu.vector_store %arg7[%c0_28, %c0_29], %38 {strides = array<i32>} : memref<64x1xf32, #tpu.memory_space<vmem>>, vector<64x1xf32>,
      %cst_30 = arith.constant 0.000000e+00 : f32
      %40 = vector.broadcast %cst_30 : f32 to vector<64x1xf32>
      %c0_31 = arith.constant 0 : index
      %c0_32 = arith.constant 0 : index
      %41 = vector.load %arg8[%c0_31, %c0_32] : memref<64x1xf32, #tpu.memory_space<vmem>>, vector<64x1xf32>
      tpu.vector_store %arg8[%c0_31, %c0_32], %40 {strides = array<i32>} : memref<64x1xf32, #tpu.memory_space<vmem>>, vector<64x1xf32>,
      %cst_33 = arith.constant 0.000000e+00 : f32
      %42 = vector.broadcast %cst_33 : f32 to vector<64x16xf32>
      %c0_34 = arith.constant 0 : index
      %c0_35 = arith.constant 0 : index
      %43 = vector.load %arg9[%c0_34, %c0_35] : memref<64x16xf32, #tpu.memory_space<vmem>>, vector<64x16xf32>
      tpu.vector_store %arg9[%c0_34, %c0_35], %42 {strides = array<i32>} : memref<64x16xf32, #tpu.memory_space<vmem>>, vector<64x16xf32>,
    } else {
    }
    %c0 = arith.constant 0 : index
    %c0_1 = arith.constant 0 : index
    %c0_2 = arith.constant 0 : index
    %3 = vector.load %arg3[%c0, %c0_1, %c0_2] : memref<1x64x16xbf16, #tpu.memory_space<vmem>>, vector<1x64x16xbf16>
    %4 = vector.shape_cast %3 : vector<1x64x16xbf16> to vector<64x16xbf16>
    %cst = arith.constant 2.500000e-01 : bf16
    %5 = vector.broadcast %cst : bf16 to vector<64x16xbf16>
    %6 = arith.mulf %4, %5 : vector<64x16xbf16>
    %c0_3 = arith.constant 0 : index
    %c0_4 = arith.constant 0 : index
    %c0_5 = arith.constant 0 : index
    %7 = vector.load %arg4[%c0_3, %c0_4, %c0_5] : memref<1x64x16xbf16, #tpu.memory_space<vmem>>, vector<1x64x16xbf16>
    %8 = vector.shape_cast %7 : vector<1x64x16xbf16> to vector<64x16xbf16>
    %cst_6 = arith.constant dense<0.000000e+00> : vector<64x64xf32>
    %9 = tpu.matmul %6, %8, %cst_6 {dimension_numbers = #tpu.dot_dimension_numbers<[1], [1], [0], [0], [0, 0, 1, 0], [], []>} : vector<64x16xbf16>, vector<64x16xbf16>, vector<64x64xf32> -> vector<64x64xf32>
    %c0_7 = arith.constant 0 : index
    %c0_8 = arith.constant 0 : index
    %10 = vector.load %arg7[%c0_7, %c0_8] : memref<64x1xf32, #tpu.memory_space<vmem>>, vector<64x1xf32>
    %cst_9 = arith.constant dense<0xFF800000> : vector<64xf32>
    %11 = vector.multi_reduction <maximumf>, %9, %cst_9 [1] : vector<64x64xf32> to vector<64xf32>
    %12 = vector.shape_cast %11 : vector<64xf32> to vector<64x1xf32>
    %13 = arith.maximumf %10, %12 : vector<64x1xf32>
    %14 = arith.subf %10, %13 : vector<64x1xf32>
    %15 = math.exp %14 : vector<64x1xf32>
    %16 = vector.broadcast %13 : vector<64x1xf32> to vector<64x64xf32>
    %17 = arith.subf %9, %16 : vector<64x64xf32>
    %18 = math.exp %17 : vector<64x64xf32>
    %c0_10 = arith.constant 0 : index
    %c0_11 = arith.constant 0 : index
    %19 = vector.load %arg8[%c0_10, %c0_11] : memref<64x1xf32, #tpu.memory_space<vmem>>, vector<64x1xf32>
    %20 = arith.mulf %15, %19 : vector<64x1xf32>
    %cst_12 = arith.constant dense<0.000000e+00> : vector<64xf32>
    %21 = vector.multi_reduction <add>, %18, %cst_12 [1] : vector<64x64xf32> to vector<64xf32>
    %22 = vector.shape_cast %21 : vector<64xf32> to vector<64x1xf32>
    %23 = arith.addf %20, %22 : vector<64x1xf32>
    %c0_13 = arith.constant 0 : index
    %c0_14 = arith.constant 0 : index
    %24 = vector.load %arg8[%c0_13, %c0_14] : memref<64x1xf32, #tpu.memory_space<vmem>>, vector<64x1xf32>
    tpu.vector_store %arg8[%c0_13, %c0_14], %23 {strides = array<i32>} : memref<64x1xf32, #tpu.memory_space<vmem>>, vector<64x1xf32>,
    %c0_15 = arith.constant 0 : index
    %c0_16 = arith.constant 0 : index
    %25 = vector.load %arg9[%c0_15, %c0_16] : memref<64x16xf32, #tpu.memory_space<vmem>>, vector<64x16xf32>
    %26 = vector.broadcast %15 : vector<64x1xf32> to vector<64x16xf32>
    %27 = arith.mulf %26, %25 : vector<64x16xf32>
    %28 = arith.truncf %18 : vector<64x64xf32> to vector<64x64xbf16>
    %c0_17 = arith.constant 0 : index
    %c0_18 = arith.constant 0 : index
    %c0_19 = arith.constant 0 : index
    %29 = vector.load %arg5[%c0_17, %c0_18, %c0_19] : memref<1x64x16xbf16, #tpu.memory_space<vmem>>, vector<1x64x16xbf16>
    %30 = vector.shape_cast %29 : vector<1x64x16xbf16> to vector<64x16xbf16>
    %cst_20 = arith.constant dense<0.000000e+00> : vector<64x16xf32>
    %31 = tpu.matmul %28, %30, %cst_20 {dimension_numbers = #tpu.dot_dimension_numbers<[1], [0], [0], [1], [0, 0, 1, 1], [], []>} : vector<64x64xbf16>, vector<64x16xbf16>, vector<64x16xf32> -> vector<64x16xf32>
    %32 = arith.addf %27, %31 : vector<64x16xf32>
    %c0_21 = arith.constant 0 : index
    %c0_22 = arith.constant 0 : index
    %33 = vector.load %arg9[%c0_21, %c0_22] : memref<64x16xf32, #tpu.memory_space<vmem>>, vector<64x16xf32>
    tpu.vector_store %arg9[%c0_21, %c0_22], %32 {strides = array<i32>} : memref<64x16xf32, #tpu.memory_space<vmem>>, vector<64x16xf32>,
    %c0_23 = arith.constant 0 : index
    %c0_24 = arith.constant 0 : index
    %34 = vector.load %arg7[%c0_23, %c0_24] : memref<64x1xf32, #tpu.memory_space<vmem>>, vector<64x1xf32>
    tpu.vector_store %arg7[%c0_23, %c0_24], %13 {strides = array<i32>} : memref<64x1xf32, #tpu.memory_space<vmem>>, vector<64x1xf32>,
    %c0_i32_25 = arith.constant 0 : i32
    %35 = arith.cmpi eq, %arg2, %c0_i32_25 : i32
    %36 = arith.extui %35 : i1 to i32
    %c0_i32_26 = arith.constant 0 : i32
    %37 = arith.cmpi ne, %36, %c0_i32_26 : i32
    scf.if %37 {
      %c0_27 = arith.constant 0 : index
      %c0_28 = arith.constant 0 : index
      %38 = vector.load %arg8[%c0_27, %c0_28] : memref<64x1xf32, #tpu.memory_space<vmem>>, vector<64x1xf32>
      %39 = tpu.reciprocal %38 {approx = true} : vector<64x1xf32> -> vector<64x1xf32>
      %c0_29 = arith.constant 0 : index
      %c0_30 = arith.constant 0 : index
      %40 = vector.load %arg9[%c0_29, %c0_30] : memref<64x16xf32, #tpu.memory_space<vmem>>, vector<64x16xf32>
      %41 = vector.broadcast %39 : vector<64x1xf32> to vector<64x16xf32>
      %42 = arith.mulf %40, %41 : vector<64x16xf32>
      %43 = arith.truncf %42 : vector<64x16xf32> to vector<64x16xbf16>
      %c0_31 = arith.constant 0 : index
      %c0_32 = arith.constant 0 : index
      %c0_33 = arith.constant 0 : index
      %44 = vector.load %arg6[%c0_31, %c0_32, %c0_33] : memref<1x64x16xbf16, #tpu.memory_space<vmem>>, vector<1x64x16xbf16>
      %45 = vector.shape_cast %44 : vector<1x64x16xbf16> to vector<64x16xbf16>
      %46 = vector.shape_cast %43 : vector<64x16xbf16> to vector<1x64x16xbf16>
      tpu.vector_store %arg6[%c0_31, %c0_32, %c0_33], %46 {strides = array<i32>} : memref<1x64x16xbf16, #tpu.memory_space<vmem>>, vector<1x64x16xbf16>,
    } else {
    }
    return
  }
  func.func @transform_0(%arg0: i32, %arg1: i32, %arg2: i32) -> (i32, i32, i32) {
    %c0_i32 = arith.constant 0 : i32
    %c0_i32_0 = arith.constant 0 : i32
    return %arg0, %arg1, %c0_i32 : i32, i32, i32
  }
  func.func @transform_1(%arg0: i32, %arg1: i32, %arg2: i32) -> (i32, i32, i32) {
    %c0_i32 = arith.constant 0 : i32
    %c0_i32_0 = arith.constant 0 : i32
    return %arg0, %arg2, %c0_i32 : i32, i32, i32
  }
  func.func @transform_2(%arg0: i32, %arg1: i32, %arg2: i32) -> (i32, i32, i32) {
    %c0_i32 = arith.constant 0 : i32
    %c0_i32_0 = arith.constant 0 : i32
    return %arg0, %arg2, %c0_i32 : i32, i32, i32
  }
  func.func @transform_3(%arg0: i32, %arg1: i32, %arg2: i32) -> (i32, i32, i32) {
    %c0_i32 = arith.constant 0 : i32
    %c0_i32_0 = arith.constant 0 : i32
    return %arg0, %arg1, %c0_i32 : i32, i32, i32
  }
}

module attributes {stable_mosaic.version = 11 : i64} {
  func.func @_matmul_kernel(%arg0: i32, %arg1: i32, %arg2: i32, %arg3: memref<128x128xbf16, #tpu.memory_space<vmem>>, %arg4: memref<128x128xbf16, #tpu.memory_space<vmem>>, %arg5: memref<1x128xf32, #tpu.memory_space<vmem>>, %arg6: memref<128x128xbf16, #tpu.memory_space<vmem>>, %arg7: memref<128x128xbf16, #tpu.memory_space<vmem>>, %arg8: memref<128x128xf32, #tpu.memory_space<vmem>>) attributes {dimension_semantics = [#tpu.dimension_semantics<parallel>, #tpu.dimension_semantics<parallel>, #tpu.dimension_semantics<arbitrary>], iteration_bounds = array<i64: 1, 1, 1>, scalar_prefetch = 0 : i64, scratch_operands = 1 : i64, tpu.core_type = #tpu.core_type<tc>, window_params = [{transform_indices = @transform_0, window_bounds = array<i64: 128, 128>}, {transform_indices = @transform_1, window_bounds = array<i64: 128, 128>}, {transform_indices = @transform_2, window_bounds = array<i64: 1, 128>}, {transform_indices = @transform_3, window_bounds = array<i64: 128, 128>}, {transform_indices = @transform_4, window_bounds = array<i64: 128, 128>}]} {
    %c0_i32 = arith.constant 0 : i32
    %0 = arith.cmpi eq, %arg2, %c0_i32 : i32
    %1 = arith.extui %0 : i1 to i32
    %c0_i32_0 = arith.constant 0 : i32
    %2 = arith.cmpi ne, %1, %c0_i32_0 : i32
    scf.if %2 {
      %cst_10 = arith.constant 0.000000e+00 : f32
      %12 = vector.broadcast %cst_10 : f32 to vector<128x128xf32>
      %c0_11 = arith.constant 0 : index
      %c0_12 = arith.constant 0 : index
      %13 = vector.load %arg8[%c0_11, %c0_12] : memref<128x128xf32, #tpu.memory_space<vmem>>, vector<128x128xf32>
      tpu.vector_store %arg8[%c0_11, %c0_12], %12 {strides = array<i32>} : memref<128x128xf32, #tpu.memory_space<vmem>>, vector<128x128xf32>,
    } else {
    }
    %c0 = arith.constant 0 : index
    %c0_1 = arith.constant 0 : index
    %3 = vector.load %arg8[%c0, %c0_1] : memref<128x128xf32, #tpu.memory_space<vmem>>, vector<128x128xf32>
    %c0_2 = arith.constant 0 : index
    %c0_3 = arith.constant 0 : index
    %4 = vector.load %arg3[%c0_2, %c0_3] : memref<128x128xbf16, #tpu.memory_space<vmem>>, vector<128x128xbf16>
    %c0_4 = arith.constant 0 : index
    %c0_5 = arith.constant 0 : index
    %5 = vector.load %arg4[%c0_4, %c0_5] : memref<128x128xbf16, #tpu.memory_space<vmem>>, vector<128x128xbf16>
    %cst = arith.constant dense<0.000000e+00> : vector<128x128xf32>
    %6 = tpu.matmul %4, %5, %cst {dimension_numbers = #tpu.dot_dimension_numbers<[1], [0], [0], [1], [0, 0, 1, 1], [], []>} : vector<128x128xbf16>, vector<128x128xbf16>, vector<128x128xf32> -> vector<128x128xf32>
    %7 = arith.addf %3, %6 : vector<128x128xf32>
    %c0_6 = arith.constant 0 : index
    %c0_7 = arith.constant 0 : index
    %8 = vector.load %arg8[%c0_6, %c0_7] : memref<128x128xf32, #tpu.memory_space<vmem>>, vector<128x128xf32>
    tpu.vector_store %arg8[%c0_6, %c0_7], %7 {strides = array<i32>} : memref<128x128xf32, #tpu.memory_space<vmem>>, vector<128x128xf32>,
    %c0_i32_8 = arith.constant 0 : i32
    %9 = arith.cmpi eq, %arg2, %c0_i32_8 : i32
    %10 = arith.extui %9 : i1 to i32
    %c0_i32_9 = arith.constant 0 : i32
    %11 = arith.cmpi ne, %10, %c0_i32_9 : i32
    scf.if %11 {
      %c0_10 = arith.constant 0 : index
      %c0_11 = arith.constant 0 : index
      %12 = vector.load %arg8[%c0_10, %c0_11] : memref<128x128xf32, #tpu.memory_space<vmem>>, vector<128x128xf32>
      %c0_12 = arith.constant 0 : index
      %c0_13 = arith.constant 0 : index
      %13 = vector.load %arg5[%c0_12, %c0_13] : memref<1x128xf32, #tpu.memory_space<vmem>>, vector<1x128xf32>
      %14 = vector.broadcast %13 : vector<1x128xf32> to vector<128x128xf32>
      %15 = arith.addf %12, %14 : vector<128x128xf32>
      %c0_14 = arith.constant 0 : index
      %c0_15 = arith.constant 0 : index
      %16 = vector.load %arg6[%c0_14, %c0_15] : memref<128x128xbf16, #tpu.memory_space<vmem>>, vector<128x128xbf16>
      %17 = arith.extf %16 : vector<128x128xbf16> to vector<128x128xf32>
      %18 = arith.addf %15, %17 : vector<128x128xf32>
      %19 = arith.truncf %18 : vector<128x128xf32> to vector<128x128xbf16>
      %c0_16 = arith.constant 0 : index
      %c0_17 = arith.constant 0 : index
      %20 = vector.load %arg7[%c0_16, %c0_17] : memref<128x128xbf16, #tpu.memory_space<vmem>>, vector<128x128xbf16>
      tpu.vector_store %arg7[%c0_16, %c0_17], %19 {strides = array<i32>} : memref<128x128xbf16, #tpu.memory_space<vmem>>, vector<128x128xbf16>,
    } else {
    }
    return
  }
  func.func @transform_0(%arg0: i32, %arg1: i32, %arg2: i32) -> (i32, i32) {
    %c0_i32 = arith.constant 0 : i32
    return %arg0, %arg2 : i32, i32
  }
  func.func @transform_1(%arg0: i32, %arg1: i32, %arg2: i32) -> (i32, i32) {
    %c0_i32 = arith.constant 0 : i32
    return %arg2, %arg1 : i32, i32
  }
  func.func @transform_2(%arg0: i32, %arg1: i32, %arg2: i32) -> (i32, i32) {
    %c0_i32 = arith.constant 0 : i32
    %c0_i32_0 = arith.constant 0 : i32
    return %c0_i32, %arg1 : i32, i32
  }
  func.func @transform_3(%arg0: i32, %arg1: i32, %arg2: i32) -> (i32, i32) {
    %c0_i32 = arith.constant 0 : i32
    return %arg0, %arg1 : i32, i32
  }
  func.func @transform_4(%arg0: i32, %arg1: i32, %arg2: i32) -> (i32, i32) {
    %c0_i32 = arith.constant 0 : i32
    return %arg0, %arg1 : i32, i32
  }
}

module attributes {stable_mosaic.version = 11 : i64} {
  func.func @_ln_matmul_kernel(%arg0: i32, %arg1: i32, %arg2: memref<128x32xbf16, #tpu.memory_space<vmem>>, %arg3: memref<1x32xf32, #tpu.memory_space<vmem>>, %arg4: memref<1x32xf32, #tpu.memory_space<vmem>>, %arg5: memref<32x128xbf16, #tpu.memory_space<vmem>>, %arg6: memref<1x128xf32, #tpu.memory_space<vmem>>, %arg7: memref<128x128xbf16, #tpu.memory_space<vmem>>, %arg8: memref<128x32xbf16, #tpu.memory_space<vmem>>) attributes {dimension_semantics = [#tpu.dimension_semantics<parallel>, #tpu.dimension_semantics<arbitrary>], iteration_bounds = array<i64: 1, 1>, scalar_prefetch = 0 : i64, scratch_operands = 1 : i64, tpu.core_type = #tpu.core_type<tc>, window_params = [{transform_indices = @transform_0, window_bounds = array<i64: 128, 32>}, {pipeline_mode = #tpu.pipeline_mode<synchronous>, transform_indices = @transform_1, window_bounds = array<i64: 1, 32>}, {pipeline_mode = #tpu.pipeline_mode<synchronous>, transform_indices = @transform_2, window_bounds = array<i64: 1, 32>}, {transform_indices = @transform_3, window_bounds = array<i64: 32, 128>}, {transform_indices = @transform_4, window_bounds = array<i64: 1, 128>}, {transform_indices = @transform_5, window_bounds = array<i64: 128, 128>}]} {
    %c0_i32 = arith.constant 0 : i32
    %0 = arith.cmpi eq, %arg1, %c0_i32 : i32
    %1 = arith.extui %0 : i1 to i32
    %c0_i32_0 = arith.constant 0 : i32
    %2 = arith.cmpi ne, %1, %c0_i32_0 : i32
    scf.if %2 {
      %c0_12 = arith.constant 0 : index
      %c0_13 = arith.constant 0 : index
      %24 = vector.load %arg2[%c0_12, %c0_13] : memref<128x32xbf16, #tpu.memory_space<vmem>>, vector<128x32xbf16>
      %25 = arith.extf %24 : vector<128x32xbf16> to vector<128x32xf32>
      %cst_14 = arith.constant dense<0.000000e+00> : vector<128xf32>
      %26 = vector.multi_reduction <add>, %25, %cst_14 [1] : vector<128x32xf32> to vector<128xf32>
      %27 = vector.shape_cast %26 : vector<128xf32> to vector<128x1xf32>
      %cst_15 = arith.constant 3.200000e+01 : f32
      %28 = vector.broadcast %cst_15 : f32 to vector<128x1xf32>
      %29 = arith.divf %27, %28 : vector<128x1xf32>
      %30 = vector.broadcast %29 : vector<128x1xf32> to vector<128x32xf32>
      %31 = arith.subf %25, %30 : vector<128x32xf32>
      %32 = arith.mulf %31, %31 : vector<128x32xf32>
      %cst_16 = arith.constant dense<0.000000e+00> : vector<128xf32>
      %33 = vector.multi_reduction <add>, %32, %cst_16 [1] : vector<128x32xf32> to vector<128xf32>
      %34 = vector.shape_cast %33 : vector<128xf32> to vector<128x1xf32>
      %cst_17 = arith.constant 3.200000e+01 : f32
      %35 = vector.broadcast %cst_17 : f32 to vector<128x1xf32>
      %36 = arith.divf %34, %35 : vector<128x1xf32>
      %cst_18 = arith.constant 9.99999974E-6 : f32
      %37 = vector.broadcast %cst_18 : f32 to vector<128x1xf32>
      %38 = arith.addf %36, %37 : vector<128x1xf32>
      %39 = math.rsqrt %38 : vector<128x1xf32>
      %40 = vector.broadcast %39 : vector<128x1xf32> to vector<128x32xf32>
      %41 = arith.mulf %31, %40 : vector<128x32xf32>
      %c0_19 = arith.constant 0 : index
      %c0_20 = arith.constant 0 : index
      %42 = vector.load %arg3[%c0_19, %c0_20] : memref<1x32xf32, #tpu.memory_space<vmem>>, vector<1x32xf32>
      %43 = vector.broadcast %42 : vector<1x32xf32> to vector<128x32xf32>
      %44 = arith.mulf %41, %43 : vector<128x32xf32>
      %c0_21 = arith.constant 0 : index
      %c0_22 = arith.constant 0 : index
      %45 = vector.load %arg4[%c0_21, %c0_22] : memref<1x32xf32, #tpu.memory_space<vmem>>, vector<1x32xf32>
      %46 = vector.broadcast %45 : vector<1x32xf32> to vector<128x32xf32>
      %47 = arith.addf %44, %46 : vector<128x32xf32>
      %48 = arith.truncf %47 : vector<128x32xf32> to vector<128x32xbf16>
      %c0_23 = arith.constant 0 : index
      %c0_24 = arith.constant 0 : index
      %49 = vector.load %arg8[%c0_23, %c0_24] : memref<128x32xbf16, #tpu.memory_space<vmem>>, vector<128x32xbf16>
      tpu.vector_store %arg8[%c0_23, %c0_24], %48 {strides = array<i32>} : memref<128x32xbf16, #tpu.memory_space<vmem>>, vector<128x32xbf16>,
    } else {
    }
    %c0 = arith.constant 0 : index
    %c0_1 = arith.constant 0 : index
    %3 = vector.load %arg8[%c0, %c0_1] : memref<128x32xbf16, #tpu.memory_space<vmem>>, vector<128x32xbf16>
    %c0_2 = arith.constant 0 : index
    %c0_3 = arith.constant 0 : index
    %4 = vector.load %arg5[%c0_2, %c0_3] : memref<32x128xbf16, #tpu.memory_space<vmem>>, vector<32x128xbf16>
    %cst = arith.constant dense<0.000000e+00> : vector<128x128xf32>
    %5 = tpu.matmul %3, %4, %cst {dimension_numbers = #tpu.dot_dimension_numbers<[1], [0], [0], [1], [0, 0, 1, 1], [], []>} : vector<128x32xbf16>, vector<32x128xbf16>, vector<128x128xf32> -> vector<128x128xf32>
    %c0_4 = arith.constant 0 : index
    %c0_5 = arith.constant 0 : index
    %6 = vector.load %arg6[%c0_4, %c0_5] : memref<1x128xf32, #tpu.memory_space<vmem>>, vector<1x128xf32>
    %7 = vector.broadcast %6 : vector<1x128xf32> to vector<128x128xf32>
    %8 = arith.addf %5, %7 : vector<128x128xf32>
    %9 = arith.mulf %8, %8 : vector<128x128xf32>
    %10 = arith.mulf %8, %9 : vector<128x128xf32>
    %cst_6 = arith.constant 4.471500e-02 : f32
    %11 = vector.broadcast %cst_6 : f32 to vector<128x128xf32>
    %12 = arith.mulf %11, %10 : vector<128x128xf32>
    %13 = arith.addf %8, %12 : vector<128x128xf32>
    %cst_7 = arith.constant 0.797884583 : f32
    %14 = vector.broadcast %cst_7 : f32 to vector<128x128xf32>
    %15 = arith.mulf %14, %13 : vector<128x128xf32>
    %16 = math.tanh %15 : vector<128x128xf32>
    %cst_8 = arith.constant 1.000000e+00 : f32
    %17 = vector.broadcast %cst_8 : f32 to vector<128x128xf32>
    %18 = arith.addf %17, %16 : vector<128x128xf32>
    %cst_9 = arith.constant 5.000000e-01 : f32
    %19 = vector.broadcast %cst_9 : f32 to vector<128x128xf32>
    %20 = arith.mulf %19, %18 : vector<128x128xf32>
    %21 = arith.mulf %8, %20 : vector<128x128xf32>
    %22 = arith.truncf %21 : vector<128x128xf32> to vector<128x128xbf16>
    %c0_10 = arith.constant 0 : index
    %c0_11 = arith.constant 0 : index
    %23 = vector.load %arg7[%c0_10, %c0_11] : memref<128x128xbf16, #tpu.memory_space<vmem>>, vector<128x128xbf16>
    tpu.vector_store %arg7[%c0_10, %c0_11], %22 {strides = array<i32>} : memref<128x128xbf16, #tpu.memory_space<vmem>>, vector<128x128xbf16>,
    return
  }
  func.func @transform_0(%arg0: i32, %arg1: i32) -> (i32, i32) {
    %c0_i32 = arith.constant 0 : i32
    %c0_i32_0 = arith.constant 0 : i32
    return %arg0, %c0_i32 : i32, i32
  }
  func.func @transform_1(%arg0: i32, %arg1: i32) -> (i32, i32) {
    %c0_i32 = arith.constant 0 : i32
    %c0_i32_0 = arith.constant 0 : i32
    %c0_i32_1 = arith.constant 0 : i32
    return %c0_i32, %c0_i32_0 : i32, i32
  }
  func.func @transform_2(%arg0: i32, %arg1: i32) -> (i32, i32) {
    %c0_i32 = arith.constant 0 : i32
    %c0_i32_0 = arith.constant 0 : i32
    %c0_i32_1 = arith.constant 0 : i32
    return %c0_i32, %c0_i32_0 : i32, i32
  }
  func.func @transform_3(%arg0: i32, %arg1: i32) -> (i32, i32) {
    %c0_i32 = arith.constant 0 : i32
    %c0_i32_0 = arith.constant 0 : i32
    return %c0_i32, %arg1 : i32, i32
  }
  func.func @transform_4(%arg0: i32, %arg1: i32) -> (i32, i32) {
    %c0_i32 = arith.constant 0 : i32
    %c0_i32_0 = arith.constant 0 : i32
    return %c0_i32, %arg1 : i32, i32
  }
  func.func @transform_5(%arg0: i32, %arg1: i32) -> (i32, i32) {
    %c0_i32 = arith.constant 0 : i32
    return %arg0, %arg1 : i32, i32
  }
}

module attributes {stable_mosaic.version = 11 : i64} {
  func.func @_layernorm_kernel(%arg0: i32, %arg1: memref<8x2048xbf16, #tpu.memory_space<vmem>>, %arg2: memref<1x2048xf32, #tpu.memory_space<vmem>>, %arg3: memref<1x2048xf32, #tpu.memory_space<vmem>>, %arg4: memref<8x2048xbf16, #tpu.memory_space<vmem>>) attributes {dimension_semantics = [#tpu.dimension_semantics<parallel>], iteration_bounds = array<i64: 1>, scalar_prefetch = 0 : i64, scratch_operands = 0 : i64, tpu.core_type = #tpu.core_type<tc>, window_params = [{transform_indices = @transform_0, window_bounds = array<i64: 8, 2048>}, {pipeline_mode = #tpu.pipeline_mode<synchronous>, transform_indices = @transform_1, window_bounds = array<i64: 1, 2048>}, {pipeline_mode = #tpu.pipeline_mode<synchronous>, transform_indices = @transform_2, window_bounds = array<i64: 1, 2048>}, {transform_indices = @transform_3, window_bounds = array<i64: 8, 2048>}]} {
    %c0 = arith.constant 0 : index
    %c0_0 = arith.constant 0 : index
    %0 = vector.load %arg1[%c0, %c0_0] : memref<8x2048xbf16, #tpu.memory_space<vmem>>, vector<8x2048xbf16>
    %1 = arith.extf %0 : vector<8x2048xbf16> to vector<8x2048xf32>
    %cst = arith.constant dense<0.000000e+00> : vector<8xf32>
    %2 = vector.multi_reduction <add>, %1, %cst [1] : vector<8x2048xf32> to vector<8xf32>
    %3 = vector.shape_cast %2 : vector<8xf32> to vector<8x1xf32>
    %cst_1 = arith.constant 2.048000e+03 : f32
    %4 = vector.broadcast %cst_1 : f32 to vector<8x1xf32>
    %5 = arith.divf %3, %4 : vector<8x1xf32>
    %6 = vector.broadcast %5 : vector<8x1xf32> to vector<8x2048xf32>
    %7 = arith.subf %1, %6 : vector<8x2048xf32>
    %8 = arith.mulf %7, %7 : vector<8x2048xf32>
    %cst_2 = arith.constant dense<0.000000e+00> : vector<8xf32>
    %9 = vector.multi_reduction <add>, %8, %cst_2 [1] : vector<8x2048xf32> to vector<8xf32>
    %10 = vector.shape_cast %9 : vector<8xf32> to vector<8x1xf32>
    %cst_3 = arith.constant 2.048000e+03 : f32
    %11 = vector.broadcast %cst_3 : f32 to vector<8x1xf32>
    %12 = arith.divf %10, %11 : vector<8x1xf32>
    %cst_4 = arith.constant 9.99999974E-6 : f32
    %13 = vector.broadcast %cst_4 : f32 to vector<8x1xf32>
    %14 = arith.addf %12, %13 : vector<8x1xf32>
    %15 = math.rsqrt %14 : vector<8x1xf32>
    %16 = vector.broadcast %15 : vector<8x1xf32> to vector<8x2048xf32>
    %17 = arith.mulf %7, %16 : vector<8x2048xf32>
    %c0_5 = arith.constant 0 : index
    %c0_6 = arith.constant 0 : index
    %18 = vector.load %arg2[%c0_5, %c0_6] : memref<1x2048xf32, #tpu.memory_space<vmem>>, vector<1x2048xf32>
    %19 = vector.broadcast %18 : vector<1x2048xf32> to vector<8x2048xf32>
    %20 = arith.mulf %17, %19 : vector<8x2048xf32>
    %c0_7 = arith.constant 0 : index
    %c0_8 = arith.constant 0 : index
    %21 = vector.load %arg3[%c0_7, %c0_8] : memref<1x2048xf32, #tpu.memory_space<vmem>>, vector<1x2048xf32>
    %22 = vector.broadcast %21 : vector<1x2048xf32> to vector<8x2048xf32>
    %23 = arith.addf %20, %22 : vector<8x2048xf32>
    %24 = arith.truncf %23 : vector<8x2048xf32> to vector<8x2048xbf16>
    %c0_9 = arith.constant 0 : index
    %c0_10 = arith.constant 0 : index
    %25 = vector.load %arg4[%c0_9, %c0_10] : memref<8x2048xbf16, #tpu.memory_space<vmem>>, vector<8x2048xbf16>
    tpu.vector_store %arg4[%c0_9, %c0_10], %24 {strides = array<i32>} : memref<8x2048xbf16, #tpu.memory_space<vmem>>, vector<8x2048xbf16>,
    return
  }
  func.func @transform_0(%arg0: i32) -> (i32, i32) {
    %c0_i32 = arith.constant 0 : i32
    %c0_i32_0 = arith.constant 0 : i32
    return %arg0, %c0_i32 : i32, i32
  }
  func.func @transform_1(%arg0: i32) -> (i32, i32) {
    %c0_i32 = arith.constant 0 : i32
    %c0_i32_0 = arith.constant 0 : i32
    %c0_i32_1 = arith.constant 0 : i32
    return %c0_i32, %c0_i32_0 : i32, i32
  }
  func.func @transform_2(%arg0: i32) -> (i32, i32) {
    %c0_i32 = arith.constant 0 : i32
    %c0_i32_0 = arith.constant 0 : i32
    %c0_i32_1 = arith.constant 0 : i32
    return %c0_i32, %c0_i32_0 : i32, i32
  }
  func.func @transform_3(%arg0: i32) -> (i32, i32) {
    %c0_i32 = arith.constant 0 : i32
    %c0_i32_0 = arith.constant 0 : i32
    return %arg0, %c0_i32 : i32, i32
  }
}

module attributes {stable_mosaic.version = 11 : i64} {
  func.func @_conv3x3_kernel(%arg0: i32, %arg1: memref<1x10x10x32xbf16, #tpu.memory_space<vmem>>, %arg2: memref<9x32x8xbf16, #tpu.memory_space<vmem>>, %arg3: memref<1x8x8x8xbf16, #tpu.memory_space<vmem>>) attributes {dimension_semantics = [#tpu.dimension_semantics<parallel>], iteration_bounds = array<i64: 2>, scalar_prefetch = 0 : i64, scratch_operands = 0 : i64, tpu.core_type = #tpu.core_type<tc>, window_params = [{transform_indices = @transform_0, window_bounds = array<i64: 1, 10, 10, 32>}, {pipeline_mode = #tpu.pipeline_mode<synchronous>, transform_indices = @transform_1, window_bounds = array<i64: 9, 32, 8>}, {transform_indices = @transform_2, window_bounds = array<i64: 1, 8, 8, 8>}]} {
    %cst = arith.constant 0.000000e+00 : f32
    %0 = vector.broadcast %cst : f32 to vector<64x8xf32>
    %c0 = arith.constant 0 : index
    %c0_0 = arith.constant 0 : index
    %c0_1 = arith.constant 0 : index
    %c0_2 = arith.constant 0 : index
    %1 = vector.load %arg1[%c0, %c0_0, %c0_1, %c0_2] : memref<1x10x10x32xbf16, #tpu.memory_space<vmem>>, vector<1x8x8x32xbf16>
    %2 = vector.shape_cast %1 : vector<1x8x8x32xbf16> to vector<8x8x32xbf16>
    %3 = vector.shape_cast %2 : vector<8x8x32xbf16> to vector<64x32xbf16>
    %c0_3 = arith.constant 0 : index
    %c0_4 = arith.constant 0 : index
    %c0_5 = arith.constant 0 : index
    %4 = vector.load %arg2[%c0_3, %c0_4, %c0_5] : memref<9x32x8xbf16, #tpu.memory_space<vmem>>, vector<1x32x8xbf16>
    %5 = vector.shape_cast %4 : vector<1x32x8xbf16> to vector<32x8xbf16>
    %cst_6 = arith.constant dense<0.000000e+00> : vector<64x8xf32>
    %6 = tpu.matmul %3, %5, %cst_6 {dimension_numbers = #tpu.dot_dimension_numbers<[1], [0], [0], [1], [0, 0, 1, 1], [], []>} : vector<64x32xbf16>, vector<32x8xbf16>, vector<64x8xf32> -> vector<64x8xf32>
    %7 = arith.addf %0, %6 : vector<64x8xf32>
    %c0_7 = arith.constant 0 : index
    %c0_8 = arith.constant 0 : index
    %c1 = arith.constant 1 : index
    %c0_9 = arith.constant 0 : index
    %8 = vector.load %arg1[%c0_7, %c0_8, %c1, %c0_9] : memref<1x10x10x32xbf16, #tpu.memory_space<vmem>>, vector<1x8x8x32xbf16>
    %9 = vector.shape_cast %8 : vector<1x8x8x32xbf16> to vector<8x8x32xbf16>
    %10 = vector.shape_cast %9 : vector<8x8x32xbf16> to vector<64x32xbf16>
    %c1_10 = arith.constant 1 : index
    %c0_11 = arith.constant 0 : index
    %c0_12 = arith.constant 0 : index
    %11 = vector.load %arg2[%c1_10, %c0_11, %c0_12] : memref<9x32x8xbf16, #tpu.memory_space<vmem>>, vector<1x32x8xbf16>
    %12 = vector.shape_cast %11 : vector<1x32x8xbf16> to vector<32x8xbf16>
    %cst_13 = arith.constant dense<0.000000e+00> : vector<64x8xf32>
    %13 = tpu.matmul %10, %12, %cst_13 {dimension_numbers = #tpu.dot_dimension_numbers<[1], [0], [0], [1], [0, 0, 1, 1], [], []>} : vector<64x32xbf16>, vector<32x8xbf16>, vector<64x8xf32> -> vector<64x8xf32>
    %14 = arith.addf %7, %13 : vector<64x8xf32>
    %c0_14 = arith.constant 0 : index
    %c0_15 = arith.constant 0 : index
    %c2 = arith.constant 2 : index
    %c0_16 = arith.constant 0 : index
    %15 = vector.load %arg1[%c0_14, %c0_15, %c2, %c0_16] : memref<1x10x10x32xbf16, #tpu.memory_space<vmem>>, vector<1x8x8x32xbf16>
    %16 = vector.shape_cast %15 : vector<1x8x8x32xbf16> to vector<8x8x32xbf16>
    %17 = vector.shape_cast %16 : vector<8x8x32xbf16> to vector<64x32xbf16>
    %c2_17 = arith.constant 2 : index
    %c0_18 = arith.constant 0 : index
    %c0_19 = arith.constant 0 : index
    %18 = vector.load %arg2[%c2_17, %c0_18, %c0_19] : memref<9x32x8xbf16, #tpu.memory_space<vmem>>, vector<1x32x8xbf16>
    %19 = vector.shape_cast %18 : vector<1x32x8xbf16> to vector<32x8xbf16>
    %cst_20 = arith.constant dense<0.000000e+00> : vector<64x8xf32>
    %20 = tpu.matmul %17, %19, %cst_20 {dimension_numbers = #tpu.dot_dimension_numbers<[1], [0], [0], [1], [0, 0, 1, 1], [], []>} : vector<64x32xbf16>, vector<32x8xbf16>, vector<64x8xf32> -> vector<64x8xf32>
    %21 = arith.addf %14, %20 : vector<64x8xf32>
    %c0_21 = arith.constant 0 : index
    %c1_22 = arith.constant 1 : index
    %c0_23 = arith.constant 0 : index
    %c0_24 = arith.constant 0 : index
    %22 = vector.load %arg1[%c0_21, %c1_22, %c0_23, %c0_24] : memref<1x10x10x32xbf16, #tpu.memory_space<vmem>>, vector<1x8x8x32xbf16>
    %23 = vector.shape_cast %22 : vector<1x8x8x32xbf16> to vector<8x8x32xbf16>
    %24 = vector.shape_cast %23 : vector<8x8x32xbf16> to vector<64x32xbf16>
    %c3 = arith.constant 3 : index
    %c0_25 = arith.constant 0 : index
    %c0_26 = arith.constant 0 : index
    %25 = vector.load %arg2[%c3, %c0_25, %c0_26] : memref<9x32x8xbf16, #tpu.memory_space<vmem>>, vector<1x32x8xbf16>
    %26 = vector.shape_cast %25 : vector<1x32x8xbf16> to vector<32x8xbf16>
    %cst_27 = arith.constant dense<0.000000e+00> : vector<64x8xf32>
    %27 = tpu.matmul %24, %26, %cst_27 {dimension_numbers = #tpu.dot_dimension_numbers<[1], [0], [0], [1], [0, 0, 1, 1], [], []>} : vector<64x32xbf16>, vector<32x8xbf16>, vector<64x8xf32> -> vector<64x8xf32>
    %28 = arith.addf %21, %27 : vector<64x8xf32>
    %c0_28 = arith.constant 0 : index
    %c1_29 = arith.constant 1 : index
    %c1_30 = arith.constant 1 : index
    %c0_31 = arith.constant 0 : index
    %29 = vector.load %arg1[%c0_28, %c1_29, %c1_30, %c0_31] : memref<1x10x10x32xbf16, #tpu.memory_space<vmem>>, vector<1x8x8x32xbf16>
    %30 = vector.shape_cast %29 : vector<1x8x8x32xbf16> to vector<8x8x32xbf16>
    %31 = vector.shape_cast %30 : vector<8x8x32xbf16> to vector<64x32xbf16>
    %c4 = arith.constant 4 : index
    %c0_32 = arith.constant 0 : index
    %c0_33 = arith.constant 0 : index
    %32 = vector.load %arg2[%c4, %c0_32, %c0_33] : memref<9x32x8xbf16, #tpu.memory_space<vmem>>, vector<1x32x8xbf16>
    %33 = vector.shape_cast %32 : vector<1x32x8xbf16> to vector<32x8xbf16>
    %cst_34 = arith.constant dense<0.000000e+00> : vector<64x8xf32>
    %34 = tpu.matmul %31, %33, %cst_34 {dimension_numbers = #tpu.dot_dimension_numbers<[1], [0], [0], [1], [0, 0, 1, 1], [], []>} : vector<64x32xbf16>, vector<32x8xbf16>, vector<64x8xf32> -> vector<64x8xf32>
    %35 = arith.addf %28, %34 : vector<64x8xf32>
    %c0_35 = arith.constant 0 : index
    %c1_36 = arith.constant 1 : index
    %c2_37 = arith.constant 2 : index
    %c0_38 = arith.constant 0 : index
    %36 = vector.load %arg1[%c0_35, %c1_36, %c2_37, %c0_38] : memref<1x10x10x32xbf16, #tpu.memory_space<vmem>>, vector<1x8x8x32xbf16>
    %37 = vector.shape_cast %36 : vector<1x8x8x32xbf16> to vector<8x8x32xbf16>
    %38 = vector.shape_cast %37 : vector<8x8x32xbf16> to vector<64x32xbf16>
    %c5 = arith.constant 5 : index
    %c0_39 = arith.constant 0 : index
    %c0_40 = arith.constant 0 : index
    %39 = vector.load %arg2[%c5, %c0_39, %c0_40] : memref<9x32x8xbf16, #tpu.memory_space<vmem>>, vector<1x32x8xbf16>
    %40 = vector.shape_cast %39 : vector<1x32x8xbf16> to vector<32x8xbf16>
    %cst_41 = arith.constant dense<0.000000e+00> : vector<64x8xf32>
    %41 = tpu.matmul %38, %40, %cst_41 {dimension_numbers = #tpu.dot_dimension_numbers<[1], [0], [0], [1], [0, 0, 1, 1], [], []>} : vector<64x32xbf16>, vector<32x8xbf16>, vector<64x8xf32> -> vector<64x8xf32>
    %42 = arith.addf %35, %41 : vector<64x8xf32>
    %c0_42 = arith.constant 0 : index
    %c2_43 = arith.constant 2 : index
    %c0_44 = arith.constant 0 : index
    %c0_45 = arith.constant 0 : index
    %43 = vector.load %arg1[%c0_42, %c2_43, %c0_44, %c0_45] : memref<1x10x10x32xbf16, #tpu.memory_space<vmem>>, vector<1x8x8x32xbf16>
    %44 = vector.shape_cast %43 : vector<1x8x8x32xbf16> to vector<8x8x32xbf16>
    %45 = vector.shape_cast %44 : vector<8x8x32xbf16> to vector<64x32xbf16>
    %c6 = arith.constant 6 : index
    %c0_46 = arith.constant 0 : index
    %c0_47 = arith.constant 0 : index
    %46 = vector.load %arg2[%c6, %c0_46, %c0_47] : memref<9x32x8xbf16, #tpu.memory_space<vmem>>, vector<1x32x8xbf16>
    %47 = vector.shape_cast %46 : vector<1x32x8xbf16> to vector<32x8xbf16>
    %cst_48 = arith.constant dense<0.000000e+00> : vector<64x8xf32>
    %48 = tpu.matmul %45, %47, %cst_48 {dimension_numbers = #tpu.dot_dimension_numbers<[1], [0], [0], [1], [0, 0, 1, 1], [], []>} : vector<64x32xbf16>, vector<32x8xbf16>, vector<64x8xf32> -> vector<64x8xf32>
    %49 = arith.addf %42, %48 : vector<64x8xf32>
    %c0_49 = arith.constant 0 : index
    %c2_50 = arith.constant 2 : index
    %c1_51 = arith.constant 1 : index
    %c0_52 = arith.constant 0 : index
    %50 = vector.load %arg1[%c0_49, %c2_50, %c1_51, %c0_52] : memref<1x10x10x32xbf16, #tpu.memory_space<vmem>>, vector<1x8x8x32xbf16>
    %51 = vector.shape_cast %50 : vector<1x8x8x32xbf16> to vector<8x8x32xbf16>
    %52 = vector.shape_cast %51 : vector<8x8x32xbf16> to vector<64x32xbf16>
    %c7 = arith.constant 7 : index
    %c0_53 = arith.constant 0 : index
    %c0_54 = arith.constant 0 : index
    %53 = vector.load %arg2[%c7, %c0_53, %c0_54] : memref<9x32x8xbf16, #tpu.memory_space<vmem>>, vector<1x32x8xbf16>
    %54 = vector.shape_cast %53 : vector<1x32x8xbf16> to vector<32x8xbf16>
    %cst_55 = arith.constant dense<0.000000e+00> : vector<64x8xf32>
    %55 = tpu.matmul %52, %54, %cst_55 {dimension_numbers = #tpu.dot_dimension_numbers<[1], [0], [0], [1], [0, 0, 1, 1], [], []>} : vector<64x32xbf16>, vector<32x8xbf16>, vector<64x8xf32> -> vector<64x8xf32>
    %56 = arith.addf %49, %55 : vector<64x8xf32>
    %c0_56 = arith.constant 0 : index
    %c2_57 = arith.constant 2 : index
    %c2_58 = arith.constant 2 : index
    %c0_59 = arith.constant 0 : index
    %57 = vector.load %arg1[%c0_56, %c2_57, %c2_58, %c0_59] : memref<1x10x10x32xbf16, #tpu.memory_space<vmem>>, vector<1x8x8x32xbf16>
    %58 = vector.shape_cast %57 : vector<1x8x8x32xbf16> to vector<8x8x32xbf16>
    %59 = vector.shape_cast %58 : vector<8x8x32xbf16> to vector<64x32xbf16>
    %c8 = arith.constant 8 : index
    %c0_60 = arith.constant 0 : index
    %c0_61 = arith.constant 0 : index
    %60 = vector.load %arg2[%c8, %c0_60, %c0_61] : memref<9x32x8xbf16, #tpu.memory_space<vmem>>, vector<1x32x8xbf16>
    %61 = vector.shape_cast %60 : vector<1x32x8xbf16> to vector<32x8xbf16>
    %cst_62 = arith.constant dense<0.000000e+00> : vector<64x8xf32>
    %62 = tpu.matmul %59, %61, %cst_62 {dimension_numbers = #tpu.dot_dimension_numbers<[1], [0], [0], [1], [0, 0, 1, 1], [], []>} : vector<64x32xbf16>, vector<32x8xbf16>, vector<64x8xf32> -> vector<64x8xf32>
    %63 = arith.addf %56, %62 : vector<64x8xf32>
    %64 = vector.shape_cast %63 : vector<64x8xf32> to vector<8x8x8xf32>
    %65 = arith.truncf %64 : vector<8x8x8xf32> to vector<8x8x8xbf16>
    %c0_63 = arith.constant 0 : index
    %c0_64 = arith.constant 0 : index
    %c0_65 = arith.constant 0 : index
    %c0_66 = arith.constant 0 : index
    %66 = vector.load %arg3[%c0_63, %c0_64, %c0_65, %c0_66] : memref<1x8x8x8xbf16, #tpu.memory_space<vmem>>, vector<1x8x8x8xbf16>
    %67 = vector.shape_cast %66 : vector<1x8x8x8xbf16> to vector<8x8x8xbf16>
    %68 = vector.shape_cast %65 : vector<8x8x8xbf16> to vector<1x8x8x8xbf16>
    tpu.vector_store %arg3[%c0_63, %c0_64, %c0_65, %c0_66], %68 {strides = array<i32>} : memref<1x8x8x8xbf16, #tpu.memory_space<vmem>>, vector<1x8x8x8xbf16>,
    return
  }
  func.func @transform_0(%arg0: i32) -> (i32, i32, i32, i32) {
    %c0_i32 = arith.constant 0 : i32
    %c0_i32_0 = arith.constant 0 : i32
    %c0_i32_1 = arith.constant 0 : i32
    %c0_i32_2 = arith.constant 0 : i32
    return %arg0, %c0_i32, %c0_i32_0, %c0_i32_1 : i32, i32, i32, i32
  }
  func.func @transform_1(%arg0: i32) -> (i32, i32, i32) {
    %c0_i32 = arith.constant 0 : i32
    %c0_i32_0 = arith.constant 0 : i32
    %c0_i32_1 = arith.constant 0 : i32
    %c0_i32_2 = arith.constant 0 : i32
    return %c0_i32, %c0_i32_0, %c0_i32_1 : i32, i32, i32
  }
  func.func @transform_2(%arg0: i32) -> (i32, i32, i32, i32) {
    %c0_i32 = arith.constant 0 : i32
    %c0_i32_0 = arith.constant 0 : i32
    %c0_i32_1 = arith.constant 0 : i32
    %c0_i32_2 = arith.constant 0 : i32
    return %arg0, %c0_i32, %c0_i32_0, %c0_i32_1 : i32, i32, i32, i32
  }
}

module attributes {stable_mosaic.version = 11 : i64} {
  func.func @_conv3x3_kernel(%arg0: i32, %arg1: memref<1x10x10x8xbf16, #tpu.memory_space<vmem>>, %arg2: memref<9x8x8xbf16, #tpu.memory_space<vmem>>, %arg3: memref<1x8x8x8xbf16, #tpu.memory_space<vmem>>) attributes {dimension_semantics = [#tpu.dimension_semantics<parallel>], iteration_bounds = array<i64: 2>, scalar_prefetch = 0 : i64, scratch_operands = 0 : i64, tpu.core_type = #tpu.core_type<tc>, window_params = [{transform_indices = @transform_0, window_bounds = array<i64: 1, 10, 10, 8>}, {pipeline_mode = #tpu.pipeline_mode<synchronous>, transform_indices = @transform_1, window_bounds = array<i64: 9, 8, 8>}, {transform_indices = @transform_2, window_bounds = array<i64: 1, 8, 8, 8>}]} {
    %cst = arith.constant 0.000000e+00 : f32
    %0 = vector.broadcast %cst : f32 to vector<64x8xf32>
    %c0 = arith.constant 0 : index
    %c0_0 = arith.constant 0 : index
    %c0_1 = arith.constant 0 : index
    %c0_2 = arith.constant 0 : index
    %1 = vector.load %arg1[%c0, %c0_0, %c0_1, %c0_2] : memref<1x10x10x8xbf16, #tpu.memory_space<vmem>>, vector<1x8x8x8xbf16>
    %2 = vector.shape_cast %1 : vector<1x8x8x8xbf16> to vector<8x8x8xbf16>
    %3 = vector.shape_cast %2 : vector<8x8x8xbf16> to vector<64x8xbf16>
    %c0_3 = arith.constant 0 : index
    %c0_4 = arith.constant 0 : index
    %c0_5 = arith.constant 0 : index
    %4 = vector.load %arg2[%c0_3, %c0_4, %c0_5] : memref<9x8x8xbf16, #tpu.memory_space<vmem>>, vector<1x8x8xbf16>
    %5 = vector.shape_cast %4 : vector<1x8x8xbf16> to vector<8x8xbf16>
    %cst_6 = arith.constant dense<0.000000e+00> : vector<64x8xf32>
    %6 = tpu.matmul %3, %5, %cst_6 {dimension_numbers = #tpu.dot_dimension_numbers<[1], [0], [0], [1], [0, 0, 1, 1], [], []>} : vector<64x8xbf16>, vector<8x8xbf16>, vector<64x8xf32> -> vector<64x8xf32>
    %7 = arith.addf %0, %6 : vector<64x8xf32>
    %c0_7 = arith.constant 0 : index
    %c0_8 = arith.constant 0 : index
    %c1 = arith.constant 1 : index
    %c0_9 = arith.constant 0 : index
    %8 = vector.load %arg1[%c0_7, %c0_8, %c1, %c0_9] : memref<1x10x10x8xbf16, #tpu.memory_space<vmem>>, vector<1x8x8x8xbf16>
    %9 = vector.shape_cast %8 : vector<1x8x8x8xbf16> to vector<8x8x8xbf16>
    %10 = vector.shape_cast %9 : vector<8x8x8xbf16> to vector<64x8xbf16>
    %c1_10 = arith.constant 1 : index
    %c0_11 = arith.constant 0 : index
    %c0_12 = arith.constant 0 : index
    %11 = vector.load %arg2[%c1_10, %c0_11, %c0_12] : memref<9x8x8xbf16, #tpu.memory_space<vmem>>, vector<1x8x8xbf16>
    %12 = vector.shape_cast %11 : vector<1x8x8xbf16> to vector<8x8xbf16>
    %cst_13 = arith.constant dense<0.000000e+00> : vector<64x8xf32>
    %13 = tpu.matmul %10, %12, %cst_13 {dimension_numbers = #tpu.dot_dimension_numbers<[1], [0], [0], [1], [0, 0, 1, 1], [], []>} : vector<64x8xbf16>, vector<8x8xbf16>, vector<64x8xf32> -> vector<64x8xf32>
    %14 = arith.addf %7, %13 : vector<64x8xf32>
    %c0_14 = arith.constant 0 : index
    %c0_15 = arith.constant 0 : index
    %c2 = arith.constant 2 : index
    %c0_16 = arith.constant 0 : index
    %15 = vector.load %arg1[%c0_14, %c0_15, %c2, %c0_16] : memref<1x10x10x8xbf16, #tpu.memory_space<vmem>>, vector<1x8x8x8xbf16>
    %16 = vector.shape_cast %15 : vector<1x8x8x8xbf16> to vector<8x8x8xbf16>
    %17 = vector.shape_cast %16 : vector<8x8x8xbf16> to vector<64x8xbf16>
    %c2_17 = arith.constant 2 : index
    %c0_18 = arith.constant 0 : index
    %c0_19 = arith.constant 0 : index
    %18 = vector.load %arg2[%c2_17, %c0_18, %c0_19] : memref<9x8x8xbf16, #tpu.memory_space<vmem>>, vector<1x8x8xbf16>
    %19 = vector.shape_cast %18 : vector<1x8x8xbf16> to vector<8x8xbf16>
    %cst_20 = arith.constant dense<0.000000e+00> : vector<64x8xf32>
    %20 = tpu.matmul %17, %19, %cst_20 {dimension_numbers = #tpu.dot_dimension_numbers<[1], [0], [0], [1], [0, 0, 1, 1], [], []>} : vector<64x8xbf16>, vector<8x8xbf16>, vector<64x8xf32> -> vector<64x8xf32>
    %21 = arith.addf %14, %20 : vector<64x8xf32>
    %c0_21 = arith.constant 0 : index
    %c1_22 = arith.constant 1 : index
    %c0_23 = arith.constant 0 : index
    %c0_24 = arith.constant 0 : index
    %22 = vector.load %arg1[%c0_21, %c1_22, %c0_23, %c0_24] : memref<1x10x10x8xbf16, #tpu.memory_space<vmem>>, vector<1x8x8x8xbf16>
    %23 = vector.shape_cast %22 : vector<1x8x8x8xbf16> to vector<8x8x8xbf16>
    %24 = vector.shape_cast %23 : vector<8x8x8xbf16> to vector<64x8xbf16>
    %c3 = arith.constant 3 : index
    %c0_25 = arith.constant 0 : index
    %c0_26 = arith.constant 0 : index
    %25 = vector.load %arg2[%c3, %c0_25, %c0_26] : memref<9x8x8xbf16, #tpu.memory_space<vmem>>, vector<1x8x8xbf16>
    %26 = vector.shape_cast %25 : vector<1x8x8xbf16> to vector<8x8xbf16>
    %cst_27 = arith.constant dense<0.000000e+00> : vector<64x8xf32>
    %27 = tpu.matmul %24, %26, %cst_27 {dimension_numbers = #tpu.dot_dimension_numbers<[1], [0], [0], [1], [0, 0, 1, 1], [], []>} : vector<64x8xbf16>, vector<8x8xbf16>, vector<64x8xf32> -> vector<64x8xf32>
    %28 = arith.addf %21, %27 : vector<64x8xf32>
    %c0_28 = arith.constant 0 : index
    %c1_29 = arith.constant 1 : index
    %c1_30 = arith.constant 1 : index
    %c0_31 = arith.constant 0 : index
    %29 = vector.load %arg1[%c0_28, %c1_29, %c1_30, %c0_31] : memref<1x10x10x8xbf16, #tpu.memory_space<vmem>>, vector<1x8x8x8xbf16>
    %30 = vector.shape_cast %29 : vector<1x8x8x8xbf16> to vector<8x8x8xbf16>
    %31 = vector.shape_cast %30 : vector<8x8x8xbf16> to vector<64x8xbf16>
    %c4 = arith.constant 4 : index
    %c0_32 = arith.constant 0 : index
    %c0_33 = arith.constant 0 : index
    %32 = vector.load %arg2[%c4, %c0_32, %c0_33] : memref<9x8x8xbf16, #tpu.memory_space<vmem>>, vector<1x8x8xbf16>
    %33 = vector.shape_cast %32 : vector<1x8x8xbf16> to vector<8x8xbf16>
    %cst_34 = arith.constant dense<0.000000e+00> : vector<64x8xf32>
    %34 = tpu.matmul %31, %33, %cst_34 {dimension_numbers = #tpu.dot_dimension_numbers<[1], [0], [0], [1], [0, 0, 1, 1], [], []>} : vector<64x8xbf16>, vector<8x8xbf16>, vector<64x8xf32> -> vector<64x8xf32>
    %35 = arith.addf %28, %34 : vector<64x8xf32>
    %c0_35 = arith.constant 0 : index
    %c1_36 = arith.constant 1 : index
    %c2_37 = arith.constant 2 : index
    %c0_38 = arith.constant 0 : index
    %36 = vector.load %arg1[%c0_35, %c1_36, %c2_37, %c0_38] : memref<1x10x10x8xbf16, #tpu.memory_space<vmem>>, vector<1x8x8x8xbf16>
    %37 = vector.shape_cast %36 : vector<1x8x8x8xbf16> to vector<8x8x8xbf16>
    %38 = vector.shape_cast %37 : vector<8x8x8xbf16> to vector<64x8xbf16>
    %c5 = arith.constant 5 : index
    %c0_39 = arith.constant 0 : index
    %c0_40 = arith.constant 0 : index
    %39 = vector.load %arg2[%c5, %c0_39, %c0_40] : memref<9x8x8xbf16, #tpu.memory_space<vmem>>, vector<1x8x8xbf16>
    %40 = vector.shape_cast %39 : vector<1x8x8xbf16> to vector<8x8xbf16>
    %cst_41 = arith.constant dense<0.000000e+00> : vector<64x8xf32>
    %41 = tpu.matmul %38, %40, %cst_41 {dimension_numbers = #tpu.dot_dimension_numbers<[1], [0], [0], [1], [0, 0, 1, 1], [], []>} : vector<64x8xbf16>, vector<8x8xbf16>, vector<64x8xf32> -> vector<64x8xf32>
    %42 = arith.addf %35, %41 : vector<64x8xf32>
    %c0_42 = arith.constant 0 : index
    %c2_43 = arith.constant 2 : index
    %c0_44 = arith.constant 0 : index
    %c0_45 = arith.constant 0 : index
    %43 = vector.load %arg1[%c0_42, %c2_43, %c0_44, %c0_45] : memref<1x10x10x8xbf16, #tpu.memory_space<vmem>>, vector<1x8x8x8xbf16>
    %44 = vector.shape_cast %43 : vector<1x8x8x8xbf16> to vector<8x8x8xbf16>
    %45 = vector.shape_cast %44 : vector<8x8x8xbf16> to vector<64x8xbf16>
    %c6 = arith.constant 6 : index
    %c0_46 = arith.constant 0 : index
    %c0_47 = arith.constant 0 : index
    %46 = vector.load %arg2[%c6, %c0_46, %c0_47] : memref<9x8x8xbf16, #tpu.memory_space<vmem>>, vector<1x8x8xbf16>
    %47 = vector.shape_cast %46 : vector<1x8x8xbf16> to vector<8x8xbf16>
    %cst_48 = arith.constant dense<0.000000e+00> : vector<64x8xf32>
    %48 = tpu.matmul %45, %47, %cst_48 {dimension_numbers = #tpu.dot_dimension_numbers<[1], [0], [0], [1], [0, 0, 1, 1], [], []>} : vector<64x8xbf16>, vector<8x8xbf16>, vector<64x8xf32> -> vector<64x8xf32>
    %49 = arith.addf %42, %48 : vector<64x8xf32>
    %c0_49 = arith.constant 0 : index
    %c2_50 = arith.constant 2 : index
    %c1_51 = arith.constant 1 : index
    %c0_52 = arith.constant 0 : index
    %50 = vector.load %arg1[%c0_49, %c2_50, %c1_51, %c0_52] : memref<1x10x10x8xbf16, #tpu.memory_space<vmem>>, vector<1x8x8x8xbf16>
    %51 = vector.shape_cast %50 : vector<1x8x8x8xbf16> to vector<8x8x8xbf16>
    %52 = vector.shape_cast %51 : vector<8x8x8xbf16> to vector<64x8xbf16>
    %c7 = arith.constant 7 : index
    %c0_53 = arith.constant 0 : index
    %c0_54 = arith.constant 0 : index
    %53 = vector.load %arg2[%c7, %c0_53, %c0_54] : memref<9x8x8xbf16, #tpu.memory_space<vmem>>, vector<1x8x8xbf16>
    %54 = vector.shape_cast %53 : vector<1x8x8xbf16> to vector<8x8xbf16>
    %cst_55 = arith.constant dense<0.000000e+00> : vector<64x8xf32>
    %55 = tpu.matmul %52, %54, %cst_55 {dimension_numbers = #tpu.dot_dimension_numbers<[1], [0], [0], [1], [0, 0, 1, 1], [], []>} : vector<64x8xbf16>, vector<8x8xbf16>, vector<64x8xf32> -> vector<64x8xf32>
    %56 = arith.addf %49, %55 : vector<64x8xf32>
    %c0_56 = arith.constant 0 : index
    %c2_57 = arith.constant 2 : index
    %c2_58 = arith.constant 2 : index
    %c0_59 = arith.constant 0 : index
    %57 = vector.load %arg1[%c0_56, %c2_57, %c2_58, %c0_59] : memref<1x10x10x8xbf16, #tpu.memory_space<vmem>>, vector<1x8x8x8xbf16>
    %58 = vector.shape_cast %57 : vector<1x8x8x8xbf16> to vector<8x8x8xbf16>
    %59 = vector.shape_cast %58 : vector<8x8x8xbf16> to vector<64x8xbf16>
    %c8 = arith.constant 8 : index
    %c0_60 = arith.constant 0 : index
    %c0_61 = arith.constant 0 : index
    %60 = vector.load %arg2[%c8, %c0_60, %c0_61] : memref<9x8x8xbf16, #tpu.memory_space<vmem>>, vector<1x8x8xbf16>
    %61 = vector.shape_cast %60 : vector<1x8x8xbf16> to vector<8x8xbf16>
    %cst_62 = arith.constant dense<0.000000e+00> : vector<64x8xf32>
    %62 = tpu.matmul %59, %61, %cst_62 {dimension_numbers = #tpu.dot_dimension_numbers<[1], [0], [0], [1], [0, 0, 1, 1], [], []>} : vector<64x8xbf16>, vector<8x8xbf16>, vector<64x8xf32> -> vector<64x8xf32>
    %63 = arith.addf %56, %62 : vector<64x8xf32>
    %64 = vector.shape_cast %63 : vector<64x8xf32> to vector<8x8x8xf32>
    %65 = arith.truncf %64 : vector<8x8x8xf32> to vector<8x8x8xbf16>
    %c0_63 = arith.constant 0 : index
    %c0_64 = arith.constant 0 : index
    %c0_65 = arith.constant 0 : index
    %c0_66 = arith.constant 0 : index
    %66 = vector.load %arg3[%c0_63, %c0_64, %c0_65, %c0_66] : memref<1x8x8x8xbf16, #tpu.memory_space<vmem>>, vector<1x8x8x8xbf16>
    %67 = vector.shape_cast %66 : vector<1x8x8x8xbf16> to vector<8x8x8xbf16>
    %68 = vector.shape_cast %65 : vector<8x8x8xbf16> to vector<1x8x8x8xbf16>
    tpu.vector_store %arg3[%c0_63, %c0_64, %c0_65, %c0_66], %68 {strides = array<i32>} : memref<1x8x8x8xbf16, #tpu.memory_space<vmem>>, vector<1x8x8x8xbf16>,
    return
  }
  func.func @transform_0(%arg0: i32) -> (i32, i32, i32, i32) {
    %c0_i32 = arith.constant 0 : i32
    %c0_i32_0 = arith.constant 0 : i32
    %c0_i32_1 = arith.constant 0 : i32
    %c0_i32_2 = arith.constant 0 : i32
    return %arg0, %c0_i32, %c0_i32_0, %c0_i32_1 : i32, i32, i32, i32
  }
  func.func @transform_1(%arg0: i32) -> (i32, i32, i32) {
    %c0_i32 = arith.constant 0 : i32
    %c0_i32_0 = arith.constant 0 : i32
    %c0_i32_1 = arith.constant 0 : i32
    %c0_i32_2 = arith.constant 0 : i32
    return %c0_i32, %c0_i32_0, %c0_i32_1 : i32, i32, i32
  }
  func.func @transform_2(%arg0: i32) -> (i32, i32, i32, i32) {
    %c0_i32 = arith.constant 0 : i32
    %c0_i32_0 = arith.constant 0 : i32
    %c0_i32_1 = arith.constant 0 : i32
    %c0_i32_2 = arith.constant 0 : i32
    return %arg0, %c0_i32, %c0_i32_0, %c0_i32_1 : i32, i32, i32, i32
  }
}

module attributes {stable_mosaic.version = 11 : i64} {
  func.func @_tl_pool_kernel(%arg0: i32, %arg1: memref<1x64x8xbf16, #tpu.memory_space<vmem>>, %arg2: memref<1x64x32xbf16, #tpu.memory_space<vmem>>, %arg3: memref<1x8x32xbf16, #tpu.memory_space<vmem>>) attributes {dimension_semantics = [#tpu.dimension_semantics<parallel>], iteration_bounds = array<i64: 2>, scalar_prefetch = 0 : i64, scratch_operands = 0 : i64, tpu.core_type = #tpu.core_type<tc>, window_params = [{transform_indices = @transform_0, window_bounds = array<i64: 1, 64, 8>}, {transform_indices = @transform_1, window_bounds = array<i64: 1, 64, 32>}, {transform_indices = @transform_2, window_bounds = array<i64: 1, 8, 32>}]} {
    %c0 = arith.constant 0 : index
    %c0_0 = arith.constant 0 : index
    %c0_1 = arith.constant 0 : index
    %0 = vector.load %arg1[%c0, %c0_0, %c0_1] : memref<1x64x8xbf16, #tpu.memory_space<vmem>>, vector<1x64x8xbf16>
    %1 = vector.shape_cast %0 : vector<1x64x8xbf16> to vector<64x8xbf16>
    %2 = arith.extf %1 : vector<64x8xbf16> to vector<64x8xf32>
    %3 = arith.negf %2 : vector<64x8xf32>
    %4 = math.exp %3 : vector<64x8xf32>
    %cst = arith.constant 1.000000e+00 : f32
    %5 = vector.broadcast %cst : f32 to vector<64x8xf32>
    %6 = arith.addf %5, %4 : vector<64x8xf32>
    %7 = arith.divf %5, %6 : vector<64x8xf32>
    %8 = arith.truncf %7 : vector<64x8xf32> to vector<64x8xbf16>
    %c0_2 = arith.constant 0 : index
    %c0_3 = arith.constant 0 : index
    %c0_4 = arith.constant 0 : index
    %9 = vector.load %arg2[%c0_2, %c0_3, %c0_4] : memref<1x64x32xbf16, #tpu.memory_space<vmem>>, vector<1x64x32xbf16>
    %10 = vector.shape_cast %9 : vector<1x64x32xbf16> to vector<64x32xbf16>
    %cst_5 = arith.constant dense<0.000000e+00> : vector<8x32xf32>
    %11 = tpu.matmul %8, %10, %cst_5 {dimension_numbers = #tpu.dot_dimension_numbers<[0], [0], [1], [1], [0, 1, 1, 1], [], []>} : vector<64x8xbf16>, vector<64x32xbf16>, vector<8x32xf32> -> vector<8x32xf32>
    %12 = arith.truncf %11 : vector<8x32xf32> to vector<8x32xbf16>
    %c0_6 = arith.constant 0 : index
    %c0_7 = arith.constant 0 : index
    %c0_8 = arith.constant 0 : index
    %13 = vector.load %arg3[%c0_6, %c0_7, %c0_8] : memref<1x8x32xbf16, #tpu.memory_space<vmem>>, vector<1x8x32xbf16>
    %14 = vector.shape_cast %13 : vector<1x8x32xbf16> to vector<8x32xbf16>
    %15 = vector.shape_cast %12 : vector<8x32xbf16> to vector<1x8x32xbf16>
    tpu.vector_store %arg3[%c0_6, %c0_7, %c0_8], %15 {strides = array<i32>} : memref<1x8x32xbf16, #tpu.memory_space<vmem>>, vector<1x8x32xbf16>,
    return
  }
  func.func @transform_0(%arg0: i32) -> (i32, i32, i32) {
    %c0_i32 = arith.constant 0 : i32
    %c0_i32_0 = arith.constant 0 : i32
    %c0_i32_1 = arith.constant 0 : i32
    return %arg0, %c0_i32, %c0_i32_0 : i32, i32, i32
  }
  func.func @transform_1(%arg0: i32) -> (i32, i32, i32) {
    %c0_i32 = arith.constant 0 : i32
    %c0_i32_0 = arith.constant 0 : i32
    %c0_i32_1 = arith.constant 0 : i32
    return %arg0, %c0_i32, %c0_i32_0 : i32, i32, i32
  }
  func.func @transform_2(%arg0: i32) -> (i32, i32, i32) {
    %c0_i32 = arith.constant 0 : i32
    %c0_i32_0 = arith.constant 0 : i32
    %c0_i32_1 = arith.constant 0 : i32
    return %arg0, %c0_i32, %c0_i32_0 : i32, i32, i32
  }
}

module attributes {stable_mosaic.version = 11 : i64} {
  func.func @_ln_matmul_kernel(%arg0: i32, %arg1: i32, %arg2: memref<16x32xbf16, #tpu.memory_space<vmem>>, %arg3: memref<1x32xf32, #tpu.memory_space<vmem>>, %arg4: memref<1x32xf32, #tpu.memory_space<vmem>>, %arg5: memref<32x128xbf16, #tpu.memory_space<vmem>>, %arg6: memref<1x128xf32, #tpu.memory_space<vmem>>, %arg7: memref<16x128xbf16, #tpu.memory_space<vmem>>, %arg8: memref<16x32xbf16, #tpu.memory_space<vmem>>) attributes {dimension_semantics = [#tpu.dimension_semantics<parallel>, #tpu.dimension_semantics<arbitrary>], iteration_bounds = array<i64: 1, 1>, scalar_prefetch = 0 : i64, scratch_operands = 1 : i64, tpu.core_type = #tpu.core_type<tc>, window_params = [{transform_indices = @transform_0, window_bounds = array<i64: 16, 32>}, {pipeline_mode = #tpu.pipeline_mode<synchronous>, transform_indices = @transform_1, window_bounds = array<i64: 1, 32>}, {pipeline_mode = #tpu.pipeline_mode<synchronous>, transform_indices = @transform_2, window_bounds = array<i64: 1, 32>}, {transform_indices = @transform_3, window_bounds = array<i64: 32, 128>}, {transform_indices = @transform_4, window_bounds = array<i64: 1, 128>}, {transform_indices = @transform_5, window_bounds = array<i64: 16, 128>}]} {
    %c0_i32 = arith.constant 0 : i32
    %0 = arith.cmpi eq, %arg1, %c0_i32 : i32
    %1 = arith.extui %0 : i1 to i32
    %c0_i32_0 = arith.constant 0 : i32
    %2 = arith.cmpi ne, %1, %c0_i32_0 : i32
    scf.if %2 {
      %c0_8 = arith.constant 0 : index
      %c0_9 = arith.constant 0 : index
      %11 = vector.load %arg2[%c0_8, %c0_9] : memref<16x32xbf16, #tpu.memory_space<vmem>>, vector<16x32xbf16>
      %12 = arith.extf %11 : vector<16x32xbf16> to vector<16x32xf32>
      %cst_10 = arith.constant dense<0.000000e+00> : vector<16xf32>
      %13 = vector.multi_reduction <add>, %12, %cst_10 [1] : vector<16x32xf32> to vector<16xf32>
      %14 = vector.shape_cast %13 : vector<16xf32> to vector<16x1xf32>
      %cst_11 = arith.constant 3.200000e+01 : f32
      %15 = vector.broadcast %cst_11 : f32 to vector<16x1xf32>
      %16 = arith.divf %14, %15 : vector<16x1xf32>
      %17 = vector.broadcast %16 : vector<16x1xf32> to vector<16x32xf32>
      %18 = arith.subf %12, %17 : vector<16x32xf32>
      %19 = arith.mulf %18, %18 : vector<16x32xf32>
      %cst_12 = arith.constant dense<0.000000e+00> : vector<16xf32>
      %20 = vector.multi_reduction <add>, %19, %cst_12 [1] : vector<16x32xf32> to vector<16xf32>
      %21 = vector.shape_cast %20 : vector<16xf32> to vector<16x1xf32>
      %cst_13 = arith.constant 3.200000e+01 : f32
      %22 = vector.broadcast %cst_13 : f32 to vector<16x1xf32>
      %23 = arith.divf %21, %22 : vector<16x1xf32>
      %cst_14 = arith.constant 9.99999974E-6 : f32
      %24 = vector.broadcast %cst_14 : f32 to vector<16x1xf32>
      %25 = arith.addf %23, %24 : vector<16x1xf32>
      %26 = math.rsqrt %25 : vector<16x1xf32>
      %27 = vector.broadcast %26 : vector<16x1xf32> to vector<16x32xf32>
      %28 = arith.mulf %18, %27 : vector<16x32xf32>
      %c0_15 = arith.constant 0 : index
      %c0_16 = arith.constant 0 : index
      %29 = vector.load %arg3[%c0_15, %c0_16] : memref<1x32xf32, #tpu.memory_space<vmem>>, vector<1x32xf32>
      %30 = vector.broadcast %29 : vector<1x32xf32> to vector<16x32xf32>
      %31 = arith.mulf %28, %30 : vector<16x32xf32>
      %c0_17 = arith.constant 0 : index
      %c0_18 = arith.constant 0 : index
      %32 = vector.load %arg4[%c0_17, %c0_18] : memref<1x32xf32, #tpu.memory_space<vmem>>, vector<1x32xf32>
      %33 = vector.broadcast %32 : vector<1x32xf32> to vector<16x32xf32>
      %34 = arith.addf %31, %33 : vector<16x32xf32>
      %35 = arith.truncf %34 : vector<16x32xf32> to vector<16x32xbf16>
      %c0_19 = arith.constant 0 : index
      %c0_20 = arith.constant 0 : index
      %36 = vector.load %arg8[%c0_19, %c0_20] : memref<16x32xbf16, #tpu.memory_space<vmem>>, vector<16x32xbf16>
      tpu.vector_store %arg8[%c0_19, %c0_20], %35 {strides = array<i32>} : memref<16x32xbf16, #tpu.memory_space<vmem>>, vector<16x32xbf16>,
    } else {
    }
    %c0 = arith.constant 0 : index
    %c0_1 = arith.constant 0 : index
    %3 = vector.load %arg8[%c0, %c0_1] : memref<16x32xbf16, #tpu.memory_space<vmem>>, vector<16x32xbf16>
    %c0_2 = arith.constant 0 : index
    %c0_3 = arith.constant 0 : index
    %4 = vector.load %arg5[%c0_2, %c0_3] : memref<32x128xbf16, #tpu.memory_space<vmem>>, vector<32x128xbf16>
    %cst = arith.constant dense<0.000000e+00> : vector<16x128xf32>
    %5 = tpu.matmul %3, %4, %cst {dimension_numbers = #tpu.dot_dimension_numbers<[1], [0], [0], [1], [0, 0, 1, 1], [], []>} : vector<16x32xbf16>, vector<32x128xbf16>, vector<16x128xf32> -> vector<16x128xf32>
    %c0_4 = arith.constant 0 : index
    %c0_5 = arith.constant 0 : index
    %6 = vector.load %arg6[%c0_4, %c0_5] : memref<1x128xf32, #tpu.memory_space<vmem>>, vector<1x128xf32>
    %7 = vector.broadcast %6 : vector<1x128xf32> to vector<16x128xf32>
    %8 = arith.addf %5, %7 : vector<16x128xf32>
    %9 = arith.truncf %8 : vector<16x128xf32> to vector<16x128xbf16>
    %c0_6 = arith.constant 0 : index
    %c0_7 = arith.constant 0 : index
    %10 = vector.load %arg7[%c0_6, %c0_7] : memref<16x128xbf16, #tpu.memory_space<vmem>>, vector<16x128xbf16>
    tpu.vector_store %arg7[%c0_6, %c0_7], %9 {strides = array<i32>} : memref<16x128xbf16, #tpu.memory_space<vmem>>, vector<16x128xbf16>,
    return
  }
  func.func @transform_0(%arg0: i32, %arg1: i32) -> (i32, i32) {
    %c0_i32 = arith.constant 0 : i32
    %c0_i32_0 = arith.constant 0 : i32
    return %arg0, %c0_i32 : i32, i32
  }
  func.func @transform_1(%arg0: i32, %arg1: i32) -> (i32, i32) {
    %c0_i32 = arith.constant 0 : i32
    %c0_i32_0 = arith.constant 0 : i32
    %c0_i32_1 = arith.constant 0 : i32
    return %c0_i32, %c0_i32_0 : i32, i32
  }
  func.func @transform_2(%arg0: i32, %arg1: i32) -> (i32, i32) {
    %c0_i32 = arith.constant 0 : i32
    %c0_i32_0 = arith.constant 0 : i32
    %c0_i32_1 = arith.constant 0 : i32
    return %c0_i32, %c0_i32_0 : i32, i32
  }
  func.func @transform_3(%arg0: i32, %arg1: i32) -> (i32, i32) {
    %c0_i32 = arith.constant 0 : i32
    %c0_i32_0 = arith.constant 0 : i32
    return %c0_i32, %arg1 : i32, i32
  }
  func.func @transform_4(%arg0: i32, %arg1: i32) -> (i32, i32) {
    %c0_i32 = arith.constant 0 : i32
    %c0_i32_0 = arith.constant 0 : i32
    return %c0_i32, %arg1 : i32, i32
  }
  func.func @transform_5(%arg0: i32, %arg1: i32) -> (i32, i32) {
    %c0_i32 = arith.constant 0 : i32
    return %arg0, %arg1 : i32, i32
  }
}

module attributes {stable_mosaic.version = 11 : i64} {
  func.func @_flash_kernel(%arg0: i32, %arg1: i32, %arg2: i32, %arg3: memref<1x8x16xbf16, #tpu.memory_space<vmem>>, %arg4: memref<1x8x16xbf16, #tpu.memory_space<vmem>>, %arg5: memref<1x8x16xbf16, #tpu.memory_space<vmem>>, %arg6: memref<1x8x16xbf16, #tpu.memory_space<vmem>>, %arg7: memref<8x1xf32, #tpu.memory_space<vmem>>, %arg8: memref<8x1xf32, #tpu.memory_space<vmem>>, %arg9: memref<8x16xf32, #tpu.memory_space<vmem>>) attributes {dimension_semantics = [#tpu.dimension_semantics<parallel>, #tpu.dimension_semantics<parallel>, #tpu.dimension_semantics<arbitrary>], iteration_bounds = array<i64: 4, 1, 1>, scalar_prefetch = 0 : i64, scratch_operands = 3 : i64, tpu.core_type = #tpu.core_type<tc>, window_params = [{transform_indices = @transform_0, window_bounds = array<i64: 1, 8, 16>}, {transform_indices = @transform_1, window_bounds = array<i64: 1, 8, 16>}, {transform_indices = @transform_2, window_bounds = array<i64: 1, 8, 16>}, {transform_indices = @transform_3, window_bounds = array<i64: 1, 8, 16>}]} {
    %c0_i32 = arith.constant 0 : i32
    %0 = arith.cmpi eq, %arg2, %c0_i32 : i32
    %1 = arith.extui %0 : i1 to i32
    %c0_i32_0 = arith.constant 0 : i32
    %2 = arith.cmpi ne, %1, %c0_i32_0 : i32
    scf.if %2 {
      %cst_27 = arith.constant 0xFF800000 : f32
      %38 = vector.broadcast %cst_27 : f32 to vector<8x1xf32>
      %c0_28 = arith.constant 0 : index
      %c0_29 = arith.constant 0 : index
      %39 = vector.load %arg7[%c0_28, %c0_29] : memref<8x1xf32, #tpu.memory_space<vmem>>, vector<8x1xf32>
      tpu.vector_store %arg7[%c0_28, %c0_29], %38 {strides = array<i32>} : memref<8x1xf32, #tpu.memory_space<vmem>>, vector<8x1xf32>,
      %cst_30 = arith.constant 0.000000e+00 : f32
      %40 = vector.broadcast %cst_30 : f32 to vector<8x1xf32>
      %c0_31 = arith.constant 0 : index
      %c0_32 = arith.constant 0 : index
      %41 = vector.load %arg8[%c0_31, %c0_32] : memref<8x1xf32, #tpu.memory_space<vmem>>, vector<8x1xf32>
      tpu.vector_store %arg8[%c0_31, %c0_32], %40 {strides = array<i32>} : memref<8x1xf32, #tpu.memory_space<vmem>>, vector<8x1xf32>,
      %cst_33 = arith.constant 0.000000e+00 : f32
      %42 = vector.broadcast %cst_33 : f32 to vector<8x16xf32>
      %c0_34 = arith.constant 0 : index
      %c0_35 = arith.constant 0 : index
      %43 = vector.load %arg9[%c0_34, %c0_35] : memref<8x16xf32, #tpu.memory_space<vmem>>, vector<8x16xf32>
      tpu.vector_store %arg9[%c0_34, %c0_35], %42 {strides = array<i32>} : memref<8x16xf32, #tpu.memory_space<vmem>>, vector<8x16xf32>,
    } else {
    }
    %c0 = arith.constant 0 : index
    %c0_1 = arith.constant 0 : index
    %c0_2 = arith.constant 0 : index
    %3 = vector.load %arg3[%c0, %c0_1, %c0_2] : memref<1x8x16xbf16, #tpu.memory_space<vmem>>, vector<1x8x16xbf16>
    %4 = vector.shape_cast %3 : vector<1x8x16xbf16> to vector<8x16xbf16>
    %cst = arith.constant 2.500000e-01 : bf16
    %5 = vector.broadcast %cst : bf16 to vector<8x16xbf16>
    %6 = arith.mulf %4, %5 : vector<8x16xbf16>
    %c0_3 = arith.constant 0 : index
    %c0_4 = arith.constant 0 : index
    %c0_5 = arith.constant 0 : index
    %7 = vector.load %arg4[%c0_3, %c0_4, %c0_5] : memref<1x8x16xbf16, #tpu.memory_space<vmem>>, vector<1x8x16xbf16>
    %8 = vector.shape_cast %7 : vector<1x8x16xbf16> to vector<8x16xbf16>
    %cst_6 = arith.constant dense<0.000000e+00> : vector<8x8xf32>
    %9 = tpu.matmul %6, %8, %cst_6 {dimension_numbers = #tpu.dot_dimension_numbers<[1], [1], [0], [0], [0, 0, 1, 0], [], []>} : vector<8x16xbf16>, vector<8x16xbf16>, vector<8x8xf32> -> vector<8x8xf32>
    %c0_7 = arith.constant 0 : index
    %c0_8 = arith.constant 0 : index
    %10 = vector.load %arg7[%c0_7, %c0_8] : memref<8x1xf32, #tpu.memory_space<vmem>>, vector<8x1xf32>
    %cst_9 = arith.constant dense<0xFF800000> : vector<8xf32>
    %11 = vector.multi_reduction <maximumf>, %9, %cst_9 [1] : vector<8x8xf32> to vector<8xf32>
    %12 = vector.shape_cast %11 : vector<8xf32> to vector<8x1xf32>
    %13 = arith.maximumf %10, %12 : vector<8x1xf32>
    %14 = arith.subf %10, %13 : vector<8x1xf32>
    %15 = math.exp %14 : vector<8x1xf32>
    %16 = vector.broadcast %13 : vector<8x1xf32> to vector<8x8xf32>
    %17 = arith.subf %9, %16 : vector<8x8xf32>
    %18 = math.exp %17 : vector<8x8xf32>
    %c0_10 = arith.constant 0 : index
    %c0_11 = arith.constant 0 : index
    %19 = vector.load %arg8[%c0_10, %c0_11] : memref<8x1xf32, #tpu.memory_space<vmem>>, vector<8x1xf32>
    %20 = arith.mulf %15, %19 : vector<8x1xf32>
    %cst_12 = arith.constant dense<0.000000e+00> : vector<8xf32>
    %21 = vector.multi_reduction <add>, %18, %cst_12 [1] : vector<8x8xf32> to vector<8xf32>
    %22 = vector.shape_cast %21 : vector<8xf32> to vector<8x1xf32>
    %23 = arith.addf %20, %22 : vector<8x1xf32>
    %c0_13 = arith.constant 0 : index
    %c0_14 = arith.constant 0 : index
    %24 = vector.load %arg8[%c0_13, %c0_14] : memref<8x1xf32, #tpu.memory_space<vmem>>, vector<8x1xf32>
    tpu.vector_store %arg8[%c0_13, %c0_14], %23 {strides = array<i32>} : memref<8x1xf32, #tpu.memory_space<vmem>>, vector<8x1xf32>,
    %c0_15 = arith.constant 0 : index
    %c0_16 = arith.constant 0 : index
    %25 = vector.load %arg9[%c0_15, %c0_16] : memref<8x16xf32, #tpu.memory_space<vmem>>, vector<8x16xf32>
    %26 = vector.broadcast %15 : vector<8x1xf32> to vector<8x16xf32>
    %27 = arith.mulf %26, %25 : vector<8x16xf32>
    %28 = arith.truncf %18 : vector<8x8xf32> to vector<8x8xbf16>
    %c0_17 = arith.constant 0 : index
    %c0_18 = arith.constant 0 : index
    %c0_19 = arith.constant 0 : index
    %29 = vector.load %arg5[%c0_17, %c0_18, %c0_19] : memref<1x8x16xbf16, #tpu.memory_space<vmem>>, vector<1x8x16xbf16>
    %30 = vector.shape_cast %29 : vector<1x8x16xbf16> to vector<8x16xbf16>
    %cst_20 = arith.constant dense<0.000000e+00> : vector<8x16xf32>
    %31 = tpu.matmul %28, %30, %cst_20 {dimension_numbers = #tpu.dot_dimension_numbers<[1], [0], [0], [1], [0, 0, 1, 1], [], []>} : vector<8x8xbf16>, vector<8x16xbf16>, vector<8x16xf32> -> vector<8x16xf32>
    %32 = arith.addf %27, %31 : vector<8x16xf32>
    %c0_21 = arith.constant 0 : index
    %c0_22 = arith.constant 0 : index
    %33 = vector.load %arg9[%c0_21, %c0_22] : memref<8x16xf32, #tpu.memory_space<vmem>>, vector<8x16xf32>
    tpu.vector_store %arg9[%c0_21, %c0_22], %32 {strides = array<i32>} : memref<8x16xf32, #tpu.memory_space<vmem>>, vector<8x16xf32>,
    %c0_23 = arith.constant 0 : index
    %c0_24 = arith.constant 0 : index
    %34 = vector.load %arg7[%c0_23, %c0_24] : memref<8x1xf32, #tpu.memory_space<vmem>>, vector<8x1xf32>
    tpu.vector_store %arg7[%c0_23, %c0_24], %13 {strides = array<i32>} : memref<8x1xf32, #tpu.memory_space<vmem>>, vector<8x1xf32>,
    %c0_i32_25 = arith.constant 0 : i32
    %35 = arith.cmpi eq, %arg2, %c0_i32_25 : i32
    %36 = arith.extui %35 : i1 to i32
    %c0_i32_26 = arith.constant 0 : i32
    %37 = arith.cmpi ne, %36, %c0_i32_26 : i32
    scf.if %37 {
      %c0_27 = arith.constant 0 : index
      %c0_28 = arith.constant 0 : index
      %38 = vector.load %arg8[%c0_27, %c0_28] : memref<8x1xf32, #tpu.memory_space<vmem>>, vector<8x1xf32>
      %39 = tpu.reciprocal %38 {approx = true} : vector<8x1xf32> -> vector<8x1xf32>
      %c0_29 = arith.constant 0 : index
      %c0_30 = arith.constant 0 : index
      %40 = vector.load %arg9[%c0_29, %c0_30] : memref<8x16xf32, #tpu.memory_space<vmem>>, vector<8x16xf32>
      %41 = vector.broadcast %39 : vector<8x1xf32> to vector<8x16xf32>
      %42 = arith.mulf %40, %41 : vector<8x16xf32>
      %43 = arith.truncf %42 : vector<8x16xf32> to vector<8x16xbf16>
      %c0_31 = arith.constant 0 : index
      %c0_32 = arith.constant 0 : index
      %c0_33 = arith.constant 0 : index
      %44 = vector.load %arg6[%c0_31, %c0_32, %c0_33] : memref<1x8x16xbf16, #tpu.memory_space<vmem>>, vector<1x8x16xbf16>
      %45 = vector.shape_cast %44 : vector<1x8x16xbf16> to vector<8x16xbf16>
      %46 = vector.shape_cast %43 : vector<8x16xbf16> to vector<1x8x16xbf16>
      tpu.vector_store %arg6[%c0_31, %c0_32, %c0_33], %46 {strides = array<i32>} : memref<1x8x16xbf16, #tpu.memory_space<vmem>>, vector<1x8x16xbf16>,
    } else {
    }
    return
  }
  func.func @transform_0(%arg0: i32, %arg1: i32, %arg2: i32) -> (i32, i32, i32) {
    %c0_i32 = arith.constant 0 : i32
    %c0_i32_0 = arith.constant 0 : i32
    return %arg0, %arg1, %c0_i32 : i32, i32, i32
  }
  func.func @transform_1(%arg0: i32, %arg1: i32, %arg2: i32) -> (i32, i32, i32) {
    %c0_i32 = arith.constant 0 : i32
    %c0_i32_0 = arith.constant 0 : i32
    return %arg0, %arg2, %c0_i32 : i32, i32, i32
  }
  func.func @transform_2(%arg0: i32, %arg1: i32, %arg2: i32) -> (i32, i32, i32) {
    %c0_i32 = arith.constant 0 : i32
    %c0_i32_0 = arith.constant 0 : i32
    return %arg0, %arg2, %c0_i32 : i32, i32, i32
  }
  func.func @transform_3(%arg0: i32, %arg1: i32, %arg2: i32) -> (i32, i32, i32) {
    %c0_i32 = arith.constant 0 : i32
    %c0_i32_0 = arith.constant 0 : i32
    return %arg0, %arg1, %c0_i32 : i32, i32, i32
  }
}

module attributes {stable_mosaic.version = 11 : i64} {
  func.func @_matmul_kernel(%arg0: i32, %arg1: i32, %arg2: i32, %arg3: memref<16x128xbf16, #tpu.memory_space<vmem>>, %arg4: memref<128x128xbf16, #tpu.memory_space<vmem>>, %arg5: memref<1x128xf32, #tpu.memory_space<vmem>>, %arg6: memref<16x128xbf16, #tpu.memory_space<vmem>>, %arg7: memref<16x128xbf16, #tpu.memory_space<vmem>>, %arg8: memref<16x128xf32, #tpu.memory_space<vmem>>) attributes {dimension_semantics = [#tpu.dimension_semantics<parallel>, #tpu.dimension_semantics<parallel>, #tpu.dimension_semantics<arbitrary>], iteration_bounds = array<i64: 1, 1, 1>, scalar_prefetch = 0 : i64, scratch_operands = 1 : i64, tpu.core_type = #tpu.core_type<tc>, window_params = [{transform_indices = @transform_0, window_bounds = array<i64: 16, 128>}, {transform_indices = @transform_1, window_bounds = array<i64: 128, 128>}, {transform_indices = @transform_2, window_bounds = array<i64: 1, 128>}, {transform_indices = @transform_3, window_bounds = array<i64: 16, 128>}, {transform_indices = @transform_4, window_bounds = array<i64: 16, 128>}]} {
    %c0_i32 = arith.constant 0 : i32
    %0 = arith.cmpi eq, %arg2, %c0_i32 : i32
    %1 = arith.extui %0 : i1 to i32
    %c0_i32_0 = arith.constant 0 : i32
    %2 = arith.cmpi ne, %1, %c0_i32_0 : i32
    scf.if %2 {
      %cst_10 = arith.constant 0.000000e+00 : f32
      %12 = vector.broadcast %cst_10 : f32 to vector<16x128xf32>
      %c0_11 = arith.constant 0 : index
      %c0_12 = arith.constant 0 : index
      %13 = vector.load %arg8[%c0_11, %c0_12] : memref<16x128xf32, #tpu.memory_space<vmem>>, vector<16x128xf32>
      tpu.vector_store %arg8[%c0_11, %c0_12], %12 {strides = array<i32>} : memref<16x128xf32, #tpu.memory_space<vmem>>, vector<16x128xf32>,
    } else {
    }
    %c0 = arith.constant 0 : index
    %c0_1 = arith.constant 0 : index
    %3 = vector.load %arg8[%c0, %c0_1] : memref<16x128xf32, #tpu.memory_space<vmem>>, vector<16x128xf32>
    %c0_2 = arith.constant 0 : index
    %c0_3 = arith.constant 0 : index
    %4 = vector.load %arg3[%c0_2, %c0_3] : memref<16x128xbf16, #tpu.memory_space<vmem>>, vector<16x128xbf16>
    %c0_4 = arith.constant 0 : index
    %c0_5 = arith.constant 0 : index
    %5 = vector.load %arg4[%c0_4, %c0_5] : memref<128x128xbf16, #tpu.memory_space<vmem>>, vector<128x128xbf16>
    %cst = arith.constant dense<0.000000e+00> : vector<16x128xf32>
    %6 = tpu.matmul %4, %5, %cst {dimension_numbers = #tpu.dot_dimension_numbers<[1], [0], [0], [1], [0, 0, 1, 1], [], []>} : vector<16x128xbf16>, vector<128x128xbf16>, vector<16x128xf32> -> vector<16x128xf32>
    %7 = arith.addf %3, %6 : vector<16x128xf32>
    %c0_6 = arith.constant 0 : index
    %c0_7 = arith.constant 0 : index
    %8 = vector.load %arg8[%c0_6, %c0_7] : memref<16x128xf32, #tpu.memory_space<vmem>>, vector<16x128xf32>
    tpu.vector_store %arg8[%c0_6, %c0_7], %7 {strides = array<i32>} : memref<16x128xf32, #tpu.memory_space<vmem>>, vector<16x128xf32>,
    %c0_i32_8 = arith.constant 0 : i32
    %9 = arith.cmpi eq, %arg2, %c0_i32_8 : i32
    %10 = arith.extui %9 : i1 to i32
    %c0_i32_9 = arith.constant 0 : i32
    %11 = arith.cmpi ne, %10, %c0_i32_9 : i32
    scf.if %11 {
      %c0_10 = arith.constant 0 : index
      %c0_11 = arith.constant 0 : index
      %12 = vector.load %arg8[%c0_10, %c0_11] : memref<16x128xf32, #tpu.memory_space<vmem>>, vector<16x128xf32>
      %c0_12 = arith.constant 0 : index
      %c0_13 = arith.constant 0 : index
      %13 = vector.load %arg5[%c0_12, %c0_13] : memref<1x128xf32, #tpu.memory_space<vmem>>, vector<1x128xf32>
      %14 = vector.broadcast %13 : vector<1x128xf32> to vector<16x128xf32>
      %15 = arith.addf %12, %14 : vector<16x128xf32>
      %c0_14 = arith.constant 0 : index
      %c0_15 = arith.constant 0 : index
      %16 = vector.load %arg6[%c0_14, %c0_15] : memref<16x128xbf16, #tpu.memory_space<vmem>>, vector<16x128xbf16>
      %17 = arith.extf %16 : vector<16x128xbf16> to vector<16x128xf32>
      %18 = arith.addf %15, %17 : vector<16x128xf32>
      %19 = arith.truncf %18 : vector<16x128xf32> to vector<16x128xbf16>
      %c0_16 = arith.constant 0 : index
      %c0_17 = arith.constant 0 : index
      %20 = vector.load %arg7[%c0_16, %c0_17] : memref<16x128xbf16, #tpu.memory_space<vmem>>, vector<16x128xbf16>
      tpu.vector_store %arg7[%c0_16, %c0_17], %19 {strides = array<i32>} : memref<16x128xbf16, #tpu.memory_space<vmem>>, vector<16x128xbf16>,
    } else {
    }
    return
  }
  func.func @transform_0(%arg0: i32, %arg1: i32, %arg2: i32) -> (i32, i32) {
    %c0_i32 = arith.constant 0 : i32
    return %arg0, %arg2 : i32, i32
  }
  func.func @transform_1(%arg0: i32, %arg1: i32, %arg2: i32) -> (i32, i32) {
    %c0_i32 = arith.constant 0 : i32
    return %arg2, %arg1 : i32, i32
  }
  func.func @transform_2(%arg0: i32, %arg1: i32, %arg2: i32) -> (i32, i32) {
    %c0_i32 = arith.constant 0 : i32
    %c0_i32_0 = arith.constant 0 : i32
    return %c0_i32, %arg1 : i32, i32
  }
  func.func @transform_3(%arg0: i32, %arg1: i32, %arg2: i32) -> (i32, i32) {
    %c0_i32 = arith.constant 0 : i32
    return %arg0, %arg1 : i32, i32
  }
  func.func @transform_4(%arg0: i32, %arg1: i32, %arg2: i32) -> (i32, i32) {
    %c0_i32 = arith.constant 0 : i32
    return %arg0, %arg1 : i32, i32
  }
}

module attributes {stable_mosaic.version = 11 : i64} {
  func.func @_ln_matmul_kernel(%arg0: i32, %arg1: i32, %arg2: memref<16x32xbf16, #tpu.memory_space<vmem>>, %arg3: memref<1x32xf32, #tpu.memory_space<vmem>>, %arg4: memref<1x32xf32, #tpu.memory_space<vmem>>, %arg5: memref<32x128xbf16, #tpu.memory_space<vmem>>, %arg6: memref<1x128xf32, #tpu.memory_space<vmem>>, %arg7: memref<16x128xbf16, #tpu.memory_space<vmem>>, %arg8: memref<16x32xbf16, #tpu.memory_space<vmem>>) attributes {dimension_semantics = [#tpu.dimension_semantics<parallel>, #tpu.dimension_semantics<arbitrary>], iteration_bounds = array<i64: 1, 1>, scalar_prefetch = 0 : i64, scratch_operands = 1 : i64, tpu.core_type = #tpu.core_type<tc>, window_params = [{transform_indices = @transform_0, window_bounds = array<i64: 16, 32>}, {pipeline_mode = #tpu.pipeline_mode<synchronous>, transform_indices = @transform_1, window_bounds = array<i64: 1, 32>}, {pipeline_mode = #tpu.pipeline_mode<synchronous>, transform_indices = @transform_2, window_bounds = array<i64: 1, 32>}, {transform_indices = @transform_3, window_bounds = array<i64: 32, 128>}, {transform_indices = @transform_4, window_bounds = array<i64: 1, 128>}, {transform_indices = @transform_5, window_bounds = array<i64: 16, 128>}]} {
    %c0_i32 = arith.constant 0 : i32
    %0 = arith.cmpi eq, %arg1, %c0_i32 : i32
    %1 = arith.extui %0 : i1 to i32
    %c0_i32_0 = arith.constant 0 : i32
    %2 = arith.cmpi ne, %1, %c0_i32_0 : i32
    scf.if %2 {
      %c0_12 = arith.constant 0 : index
      %c0_13 = arith.constant 0 : index
      %24 = vector.load %arg2[%c0_12, %c0_13] : memref<16x32xbf16, #tpu.memory_space<vmem>>, vector<16x32xbf16>
      %25 = arith.extf %24 : vector<16x32xbf16> to vector<16x32xf32>
      %cst_14 = arith.constant dense<0.000000e+00> : vector<16xf32>
      %26 = vector.multi_reduction <add>, %25, %cst_14 [1] : vector<16x32xf32> to vector<16xf32>
      %27 = vector.shape_cast %26 : vector<16xf32> to vector<16x1xf32>
      %cst_15 = arith.constant 3.200000e+01 : f32
      %28 = vector.broadcast %cst_15 : f32 to vector<16x1xf32>
      %29 = arith.divf %27, %28 : vector<16x1xf32>
      %30 = vector.broadcast %29 : vector<16x1xf32> to vector<16x32xf32>
      %31 = arith.subf %25, %30 : vector<16x32xf32>
      %32 = arith.mulf %31, %31 : vector<16x32xf32>
      %cst_16 = arith.constant dense<0.000000e+00> : vector<16xf32>
      %33 = vector.multi_reduction <add>, %32, %cst_16 [1] : vector<16x32xf32> to vector<16xf32>
      %34 = vector.shape_cast %33 : vector<16xf32> to vector<16x1xf32>
      %cst_17 = arith.constant 3.200000e+01 : f32
      %35 = vector.broadcast %cst_17 : f32 to vector<16x1xf32>
      %36 = arith.divf %34, %35 : vector<16x1xf32>
      %cst_18 = arith.constant 9.99999974E-6 : f32
      %37 = vector.broadcast %cst_18 : f32 to vector<16x1xf32>
      %38 = arith.addf %36, %37 : vector<16x1xf32>
      %39 = math.rsqrt %38 : vector<16x1xf32>
      %40 = vector.broadcast %39 : vector<16x1xf32> to vector<16x32xf32>
      %41 = arith.mulf %31, %40 : vector<16x32xf32>
      %c0_19 = arith.constant 0 : index
      %c0_20 = arith.constant 0 : index
      %42 = vector.load %arg3[%c0_19, %c0_20] : memref<1x32xf32, #tpu.memory_space<vmem>>, vector<1x32xf32>
      %43 = vector.broadcast %42 : vector<1x32xf32> to vector<16x32xf32>
      %44 = arith.mulf %41, %43 : vector<16x32xf32>
      %c0_21 = arith.constant 0 : index
      %c0_22 = arith.constant 0 : index
      %45 = vector.load %arg4[%c0_21, %c0_22] : memref<1x32xf32, #tpu.memory_space<vmem>>, vector<1x32xf32>
      %46 = vector.broadcast %45 : vector<1x32xf32> to vector<16x32xf32>
      %47 = arith.addf %44, %46 : vector<16x32xf32>
      %48 = arith.truncf %47 : vector<16x32xf32> to vector<16x32xbf16>
      %c0_23 = arith.constant 0 : index
      %c0_24 = arith.constant 0 : index
      %49 = vector.load %arg8[%c0_23, %c0_24] : memref<16x32xbf16, #tpu.memory_space<vmem>>, vector<16x32xbf16>
      tpu.vector_store %arg8[%c0_23, %c0_24], %48 {strides = array<i32>} : memref<16x32xbf16, #tpu.memory_space<vmem>>, vector<16x32xbf16>,
    } else {
    }
    %c0 = arith.constant 0 : index
    %c0_1 = arith.constant 0 : index
    %3 = vector.load %arg8[%c0, %c0_1] : memref<16x32xbf16, #tpu.memory_space<vmem>>, vector<16x32xbf16>
    %c0_2 = arith.constant 0 : index
    %c0_3 = arith.constant 0 : index
    %4 = vector.load %arg5[%c0_2, %c0_3] : memref<32x128xbf16, #tpu.memory_space<vmem>>, vector<32x128xbf16>
    %cst = arith.constant dense<0.000000e+00> : vector<16x128xf32>
    %5 = tpu.matmul %3, %4, %cst {dimension_numbers = #tpu.dot_dimension_numbers<[1], [0], [0], [1], [0, 0, 1, 1], [], []>} : vector<16x32xbf16>, vector<32x128xbf16>, vector<16x128xf32> -> vector<16x128xf32>
    %c0_4 = arith.constant 0 : index
    %c0_5 = arith.constant 0 : index
    %6 = vector.load %arg6[%c0_4, %c0_5] : memref<1x128xf32, #tpu.memory_space<vmem>>, vector<1x128xf32>
    %7 = vector.broadcast %6 : vector<1x128xf32> to vector<16x128xf32>
    %8 = arith.addf %5, %7 : vector<16x128xf32>
    %9 = arith.mulf %8, %8 : vector<16x128xf32>
    %10 = arith.mulf %8, %9 : vector<16x128xf32>
    %cst_6 = arith.constant 4.471500e-02 : f32
    %11 = vector.broadcast %cst_6 : f32 to vector<16x128xf32>
    %12 = arith.mulf %11, %10 : vector<16x128xf32>
    %13 = arith.addf %8, %12 : vector<16x128xf32>
    %cst_7 = arith.constant 0.797884583 : f32
    %14 = vector.broadcast %cst_7 : f32 to vector<16x128xf32>
    %15 = arith.mulf %14, %13 : vector<16x128xf32>
    %16 = math.tanh %15 : vector<16x128xf32>
    %cst_8 = arith.constant 1.000000e+00 : f32
    %17 = vector.broadcast %cst_8 : f32 to vector<16x128xf32>
    %18 = arith.addf %17, %16 : vector<16x128xf32>
    %cst_9 = arith.constant 5.000000e-01 : f32
    %19 = vector.broadcast %cst_9 : f32 to vector<16x128xf32>
    %20 = arith.mulf %19, %18 : vector<16x128xf32>
    %21 = arith.mulf %8, %20 : vector<16x128xf32>
    %22 = arith.truncf %21 : vector<16x128xf32> to vector<16x128xbf16>
    %c0_10 = arith.constant 0 : index
    %c0_11 = arith.constant 0 : index
    %23 = vector.load %arg7[%c0_10, %c0_11] : memref<16x128xbf16, #tpu.memory_space<vmem>>, vector<16x128xbf16>
    tpu.vector_store %arg7[%c0_10, %c0_11], %22 {strides = array<i32>} : memref<16x128xbf16, #tpu.memory_space<vmem>>, vector<16x128xbf16>,
    return
  }
  func.func @transform_0(%arg0: i32, %arg1: i32) -> (i32, i32) {
    %c0_i32 = arith.constant 0 : i32
    %c0_i32_0 = arith.constant 0 : i32
    return %arg0, %c0_i32 : i32, i32
  }
  func.func @transform_1(%arg0: i32, %arg1: i32) -> (i32, i32) {
    %c0_i32 = arith.constant 0 : i32
    %c0_i32_0 = arith.constant 0 : i32
    %c0_i32_1 = arith.constant 0 : i32
    return %c0_i32, %c0_i32_0 : i32, i32
  }
  func.func @transform_2(%arg0: i32, %arg1: i32) -> (i32, i32) {
    %c0_i32 = arith.constant 0 : i32
    %c0_i32_0 = arith.constant 0 : i32
    %c0_i32_1 = arith.constant 0 : i32
    return %c0_i32, %c0_i32_0 : i32, i32
  }
  func.func @transform_3(%arg0: i32, %arg1: i32) -> (i32, i32) {
    %c0_i32 = arith.constant 0 : i32
    %c0_i32_0 = arith.constant 0 : i32
    return %c0_i32, %arg1 : i32, i32
  }
  func.func @transform_4(%arg0: i32, %arg1: i32) -> (i32, i32) {
    %c0_i32 = arith.constant 0 : i32
    %c0_i32_0 = arith.constant 0 : i32
    return %c0_i32, %arg1 : i32, i32
  }
  func.func @transform_5(%arg0: i32, %arg1: i32) -> (i32, i32) {
    %c0_i32 = arith.constant 0 : i32
    return %arg0, %arg1 : i32, i32
  }
}

module attributes {stable_mosaic.version = 11 : i64} {
  func.func @_head_kernel(%arg0: memref<2x8x32xbf16, #tpu.memory_space<vmem>>, %arg1: memref<1x32xf32, #tpu.memory_space<vmem>>, %arg2: memref<1x32xf32, #tpu.memory_space<vmem>>, %arg3: memref<32x128xbf16, #tpu.memory_space<vmem>>, %arg4: memref<1x128xf32, #tpu.memory_space<vmem>>, %arg5: memref<2x128xf32, #tpu.memory_space<vmem>>) attributes {dimension_semantics = [], scalar_prefetch = 0 : i64, scratch_operands = 0 : i64, tpu.core_type = #tpu.core_type<tc>} {
    %c0 = arith.constant 0 : index
    %c0_0 = arith.constant 0 : index
    %c0_1 = arith.constant 0 : index
    %0 = vector.load %arg0[%c0, %c0_0, %c0_1] : memref<2x8x32xbf16, #tpu.memory_space<vmem>>, vector<2x8x32xbf16>
    %1 = arith.extf %0 : vector<2x8x32xbf16> to vector<2x8x32xf32>
    %cst = arith.constant dense<0.000000e+00> : vector<2x8xf32>
    %2 = vector.multi_reduction <add>, %1, %cst [2] : vector<2x8x32xf32> to vector<2x8xf32>
    %3 = vector.shape_cast %2 : vector<2x8xf32> to vector<2x8x1xf32>
    %cst_2 = arith.constant 3.200000e+01 : f32
    %4 = vector.broadcast %cst_2 : f32 to vector<2x8x1xf32>
    %5 = arith.divf %3, %4 : vector<2x8x1xf32>
    %6 = vector.broadcast %5 : vector<2x8x1xf32> to vector<2x8x32xf32>
    %7 = arith.subf %1, %6 : vector<2x8x32xf32>
    %8 = arith.mulf %7, %7 : vector<2x8x32xf32>
    %cst_3 = arith.constant dense<0.000000e+00> : vector<2x8xf32>
    %9 = vector.multi_reduction <add>, %8, %cst_3 [2] : vector<2x8x32xf32> to vector<2x8xf32>
    %10 = vector.shape_cast %9 : vector<2x8xf32> to vector<2x8x1xf32>
    %cst_4 = arith.constant 3.200000e+01 : f32
    %11 = vector.broadcast %cst_4 : f32 to vector<2x8x1xf32>
    %12 = arith.divf %10, %11 : vector<2x8x1xf32>
    %cst_5 = arith.constant 9.99999974E-6 : f32
    %13 = vector.broadcast %cst_5 : f32 to vector<2x8x1xf32>
    %14 = arith.addf %12, %13 : vector<2x8x1xf32>
    %15 = math.rsqrt %14 : vector<2x8x1xf32>
    %16 = vector.broadcast %15 : vector<2x8x1xf32> to vector<2x8x32xf32>
    %17 = arith.mulf %7, %16 : vector<2x8x32xf32>
    %c0_6 = arith.constant 0 : index
    %c0_7 = arith.constant 0 : index
    %18 = vector.load %arg1[%c0_6, %c0_7] : memref<1x32xf32, #tpu.memory_space<vmem>>, vector<1x32xf32>
    %19 = vector.shape_cast %18 : vector<1x32xf32> to vector<1x1x32xf32>
    %20 = vector.broadcast %19 : vector<1x1x32xf32> to vector<2x8x32xf32>
    %21 = arith.mulf %17, %20 : vector<2x8x32xf32>
    %c0_8 = arith.constant 0 : index
    %c0_9 = arith.constant 0 : index
    %22 = vector.load %arg2[%c0_8, %c0_9] : memref<1x32xf32, #tpu.memory_space<vmem>>, vector<1x32xf32>
    %23 = vector.shape_cast %22 : vector<1x32xf32> to vector<1x1x32xf32>
    %24 = vector.broadcast %23 : vector<1x1x32xf32> to vector<2x8x32xf32>
    %25 = arith.addf %21, %24 : vector<2x8x32xf32>
    %cst_10 = arith.constant dense<0.000000e+00> : vector<2x32xf32>
    %26 = vector.multi_reduction <add>, %25, %cst_10 [1] : vector<2x8x32xf32> to vector<2x32xf32>
    %cst_11 = arith.constant 1.250000e-01 : f32
    %27 = vector.broadcast %cst_11 : f32 to vector<2x32xf32>
    %28 = arith.mulf %26, %27 : vector<2x32xf32>
    %29 = arith.truncf %28 : vector<2x32xf32> to vector<2x32xbf16>
    %c0_12 = arith.constant 0 : index
    %c0_13 = arith.constant 0 : index
    %30 = vector.load %arg3[%c0_12, %c0_13] : memref<32x128xbf16, #tpu.memory_space<vmem>>, vector<32x128xbf16>
    %cst_14 = arith.constant dense<0.000000e+00> : vector<2x128xf32>
    %31 = tpu.matmul %29, %30, %cst_14 {dimension_numbers = #tpu.dot_dimension_numbers<[1], [0], [0], [1], [0, 0, 1, 1], [], []>} : vector<2x32xbf16>, vector<32x128xbf16>, vector<2x128xf32> -> vector<2x128xf32>
    %c0_15 = arith.constant 0 : index
    %c0_16 = arith.constant 0 : index
    %32 = vector.load %arg4[%c0_15, %c0_16] : memref<1x128xf32, #tpu.memory_space<vmem>>, vector<1x128xf32>
    %33 = vector.broadcast %32 : vector<1x128xf32> to vector<2x128xf32>
    %34 = arith.addf %31, %33 : vector<2x128xf32>
    %c0_17 = arith.constant 0 : index
    %c0_18 = arith.constant 0 : index
    %35 = vector.load %arg5[%c0_17, %c0_18] : memref<2x128xf32, #tpu.memory_space<vmem>>, vector<2x128xf32>
    tpu.vector_store %arg5[%c0_17, %c0_18], %34 {strides = array<i32>} : memref<2x128xf32, #tpu.memory_space<vmem>>, vector<2x128xf32>,
    return
  }
}

</mosaic_0001>

<bundles_post_ra>
// kernel: vit_classifier_forward.26
= control target key start
LH: loop header
LB: loop body
LE: loop exit
PB: predicated region body
PF: predicated region fallthrough
CT: control target
= control target key end

     0   :  { %s581_s1 = inlined_call_operand.vmem [shape: bf16[128,128], index: 1, kind: input, shape index: {}]   ;;  %s582_s2 = inlined_call_operand.vmem [shape: f32[1,128], index: 2, kind: input, shape index: {}]   ;;  %s583_s0 = inlined_call_operand.vmem [shape: bf16[128,128], index: 0, kind: input, shape index: {}]   ;;  %s584_s3 = inlined_call_operand.vmem [shape: bf16[128,128], index: 3, kind: output, shape index: {}]  }
   0x1   :  { %v413_v0 = vld [vmem:[%s581_s1 + $0x38] sm:$0xff]  ;;  %v412_v1 = vld [vmem:[%s581_s1 + $0x30] sm:$0xff]  ;;  %v411_v2 = vld [vmem:[%s581_s1 + $0x28] sm:$0xff] }
   0x2   :  { %178 = vmatpush.bf16.msra.mxu0 %v413_v0  ;;  %461 = vmatpush.bf16.msra.mxu1 %v413_v0  ;;  %v410_v3 = vld [vmem:[%s581_s1 + $0x20] sm:$0xff]  ;;  %v409_v4 = vld [vmem:[%s581_s1 + $0x18] sm:$0xff]  ;;  %v408_v5 = vld [vmem:[%s581_s1 + $0x10] sm:$0xff] }
   0x3   :  { %462 = vmatpush.bf16.msra.mxu2 %v413_v0  ;;  %463 = vmatpush.bf16.msra.mxu3 %v413_v0  ;;  %v407_v6 = vld [vmem:[%s581_s1 + $0x8] sm:$0xff]  ;;  %v406_v7 = vld [vmem:[%s581_s1] sm:$0xff]  ;;  %v400_v9 = vld [vmem:[%s583_s0 + $0x10] sm:$0xff] }
   0x4   :  { %v398_v8 = vld [vmem:[%s583_s0] sm:$0xff]  ;;  %v404_v11 = vld [vmem:[%s583_s0 + $0x30] sm:$0xff]  ;;  %v399_v12 = vld [vmem:[%s583_s0 + $0x8] sm:$0xff] }
   0x5   :  { %v402_v10 = vld [vmem:[%s583_s0 + $0x20] sm:$0xff]  ;;  %v401_v13 = vld [vmem:[%s583_s0 + $0x18] sm:$0xff]  ;;  %v403_v14 = vld [vmem:[%s583_s0 + $0x28] sm:$0xff] }
   0x6   :  { %179 = vmatpush.bf16.msra.mxu0 %v412_v1  ;;  %464 = vmatpush.bf16.msra.mxu1 %v412_v1  ;;  %v405_v15 = vld [vmem:[%s583_s0 + $0x38] sm:$0xff]  ;;  %v485_v18 = vld [vmem:[%s582_s2] ss:$0 sm:$0xff] }
   0x7   :  { %465 = vmatpush.bf16.msra.mxu2 %v412_v1  ;;  %466 = vmatpush.bf16.msra.mxu3 %v412_v1 }
   0xa   :  { %180 = vmatpush.bf16.msra.mxu0 %v411_v2  ;;  %467 = vmatpush.bf16.msra.mxu1 %v411_v2 }
   0xb   :  { %468 = vmatpush.bf16.msra.mxu2 %v411_v2  ;;  %469 = vmatpush.bf16.msra.mxu3 %v411_v2 }
   0xe   :  { %181 = vmatpush.bf16.msra.mxu0 %v410_v3  ;;  %470 = vmatpush.bf16.msra.mxu1 %v410_v3 }
   0xf   :  { %471 = vmatpush.bf16.msra.mxu2 %v410_v3  ;;  %472 = vmatpush.bf16.msra.mxu3 %v410_v3 }
  0x12   :  { %182 = vmatpush.bf16.msra.mxu0 %v409_v4  ;;  %473 = vmatpush.bf16.msra.mxu1 %v409_v4 }
  0x13   :  { %474 = vmatpush.bf16.msra.mxu2 %v409_v4  ;;  %475 = vmatpush.bf16.msra.mxu3 %v409_v4 }
  0x16   :  { %183 = vmatpush.bf16.msra.mxu0 %v408_v5  ;;  %476 = vmatpush.bf16.msra.mxu1 %v408_v5 }
  0x17   :  { %477 = vmatpush.bf16.msra.mxu2 %v408_v5  ;;  %478 = vmatpush.bf16.msra.mxu3 %v408_v5 }
  0x1a   :  { %184 = vmatpush.bf16.msra.mxu0 %v407_v6  ;;  %479 = vmatpush.bf16.msra.mxu1 %v407_v6 }
  0x1b   :  { %480 = vmatpush.bf16.msra.mxu2 %v407_v6  ;;  %481 = vmatpush.bf16.msra.mxu3 %v407_v6 }
  0x1e   :  { %185 = vmatpush.bf16.msra.mxu0 %v406_v7  ;;  %482 = vmatpush.bf16.msra.mxu1 %v406_v7 }
  0x1f   :  { %483 = vmatpush.bf16.msra.mxu2 %v406_v7  ;;  %484 = vmatpush.bf16.msra.mxu3 %v406_v7 }
  0x21   :  { %186 = vmatmul.bf16.vlgmr.msra.gmra.mxu0 %v398_v8  ;;  %196 = vmatmul.bf16.vlgmr.msra.gmra.mxu1 %v400_v9 }
  0x22   :  { %206 = vmatmul.bf16.vlgmr.msra.gmra.mxu2 %v402_v10  ;;  %216 = vmatmul.bf16.vlgmr.msra.gmra.mxu3 %v404_v11 }
  0x31   :  { %191 = vmatmul.bf16.gmra.mxu0 %v399_v12  ;;  %201 = vmatmul.bf16.gmra.mxu1 %v401_v13 }
  0x32   :  { %211 = vmatmul.bf16.gmra.mxu2 %v403_v14  ;;  %221 = vmatmul.bf16.gmra.mxu3 %v405_v15 }
  0x9e   :  { %v187_v16 = vpop.f32.mrf.mxu0  ;;  %v197_v17 = vpop.f32.mrf.mxu1 }
  0x9f   :  { %v282_v23 = vadd.f32 %v485_v18, %v187_v16  ;;  %v286_v24 = vadd.f32 %v485_v18, %v197_v17 }
  0xa5   :  { %v207_v19 = vpop.f32.mrf.mxu2  ;;  %v217_v20 = vpop.f32.mrf.mxu3 }
  0xa6   :  { %v189_v21 = vpop.f32.mrf.mxu0  ;;  %v199_v22 = vpop.f32.mrf.mxu1  ;;  %v290_v31 = vadd.f32 %v485_v18, %v207_v19  ;;  %v294_v32 = vadd.f32 %v485_v18, %v217_v20 }
  0xa7   :  { %v283_v25 = vadd.f32 %v485_v18, %v189_v21  ;;  %v287_v26 = vadd.f32 %v485_v18, %v199_v22 }
  0xa9   :  { %v417_v27 = vpack.c.bf16 %v283_v25, %v282_v23  ;;  %v427_v28 = vpack.c.bf16 %v287_v26, %v286_v24 }
  0xab   :  { %418 = vst [vmem:[%s584_s3] sm:$0xff] %v417_v27  }
  0xac   :  { %455 = vst [vmem:[%s584_s3 + $0x10] sm:$0xff] %v427_v28  }
  0xad   :  { %v209_v29 = vpop.f32.mrf.mxu2  ;;  %v219_v30 = vpop.f32.mrf.mxu3 }
  0xae   :  { %v291_v33 = vadd.f32 %v485_v18, %v209_v29  ;;  %v295_v34 = vadd.f32 %v485_v18, %v219_v30  ;;  %v192_v35 = vpop.f32.mrf.mxu0  ;;  %v202_v36 = vpop.f32.mrf.mxu1 }
  0xaf   :  { %v284_v43 = vadd.f32 %v485_v18, %v192_v35  ;;  %v288_v44 = vadd.f32 %v485_v18, %v202_v36 }
  0xb0   :  { %v437_v37 = vpack.c.bf16 %v291_v33, %v290_v31  ;;  %v447_v38 = vpack.c.bf16 %v295_v34, %v294_v32 }
  0xb2   :  { %457 = vst [vmem:[%s584_s3 + $0x20] sm:$0xff] %v437_v37  }
  0xb3   :  { %459 = vst [vmem:[%s584_s3 + $0x30] sm:$0xff] %v447_v38  }
  0xb5   :  { %v212_v39 = vpop.f32.mrf.mxu2  ;;  %v222_v40 = vpop.f32.mrf.mxu3 }
  0xb6   :  { %v194_v41 = vpop.f32.mrf.mxu0  ;;  %v204_v42 = vpop.f32.mrf.mxu1  ;;  %v292_v51 = vadd.f32 %v485_v18, %v212_v39  ;;  %v296_v52 = vadd.f32 %v485_v18, %v222_v40 }
  0xb7   :  { %v285_v45 = vadd.f32 %v485_v18, %v194_v41  ;;  %v289_v46 = vadd.f32 %v485_v18, %v204_v42 }
  0xb9   :  { %v422_v47 = vpack.c.bf16 %v285_v45, %v284_v43  ;;  %v432_v48 = vpack.c.bf16 %v289_v46, %v288_v44 }
  0xbb   :  { %454 = vst [vmem:[%s584_s3 + $0x8] sm:$0xff] %v422_v47  }
  0xbc   :  { %456 = vst [vmem:[%s584_s3 + $0x18] sm:$0xff] %v432_v48  }
  0xbd   :  { %v214_v49 = vpop.f32.mrf.mxu2  ;;  %v224_v50 = vpop.f32.mrf.mxu3 }
  0xbe   :  { %v293_v53 = vadd.f32 %v485_v18, %v214_v49  ;;  %v297_v54 = vadd.f32 %v485_v18, %v224_v50 }
  0xc0   :  { %v442_v55 = vpack.c.bf16 %v293_v53, %v292_v51  ;;  %v452_v56 = vpack.c.bf16 %v297_v54, %v296_v52 }
  0xc2   :  { %458 = vst [vmem:[%s584_s3 + $0x28] sm:$0xff] %v442_v55  }
  0xc3   :  { %460 = vst [vmem:[%s584_s3 + $0x38] sm:$0xff] %v452_v56  }

// kernel: vit_classifier_forward.27
= control target key start
LH: loop header
LB: loop body
LE: loop exit
PB: predicated region body
PF: predicated region fallthrough
CT: control target
= control target key end

     0   :  { %vm57_vm0 = vcmask 261120   ;;  %v864_v40 = vmov 32.0   ;;  %vm473_vm6 = vcmask 257024   ;;  %s1439_s0 = inlined_call_operand.vmem [shape: bf16[128,32], index: 0, kind: input, shape index: {}]   ;;  %s1440_s1 = inlined_call_operand.vmem [shape: f32[1,32], index: 1, kind: input, shape index: {}]   ;;  %s1441_s2 = inlined_call_operand.vmem [shape: f32[1,32], index: 2, kind: input, shape index: {}]   ;;  %s1442_s4 = inlined_call_operand.vmem [shape: f32[1,128], index: 4, kind: input, shape index: {}]   ;;  %s1443_s3 = inlined_call_operand.vmem [shape: bf16[32,128], index: 3, kind: input, shape index: {}]   ;;  %s1444_s5 = inlined_call_operand.vmem [shape: bf16[128,128], index: 5, kind: output, shape index: {}]  }
   0x1   :  { %v898_v0 = vld [vmem:[%s1439_s0 + $0x30] sm:$0xff]   ;;  %v903_v1 = vld [vmem:[%s1439_s0 + $0x20] sm:$0xff]   ;;  %v942_v16 = vld [vmem:[%s1439_s0 + $0x28] sm:$0xff]   ;;  %830 = vrcp.f32 %v864_v40 }
   0x2   :  { %v908_v2 = vld [vmem:[%s1439_s0] sm:$0xff]   ;;  %v760_v3 = vunpack.c.l.bf16 %v898_v0  ;;  %v752_v4 = vunpack.c.l.bf16 %v903_v1  ;;  %v761_v9 = vunpack.c.h.bf16 %v898_v0  ;;  %v753_v10 = vunpack.c.h.bf16 %v903_v1  ;;  %v937_v15 = vld [vmem:[%s1439_s0 + $0x10] sm:$0xff]   ;;  %v959_v23 = vld [vmem:[%s1439_s0 + $0x38] sm:$0xff]  }
   0x3   :  { %v736_v5 = vunpack.c.l.bf16 %v908_v2  ;;  %v737_v11 = vunpack.c.h.bf16 %v908_v2  ;;  %v744_v17 = vunpack.c.l.bf16 %v937_v15  ;;  %v745_v18 = vunpack.c.h.bf16 %v937_v15  ;;  %v976_v30 = vld [vmem:[%s1439_s0 + $0x8] sm:$0xff]   ;;  %v981_v31 = vld [vmem:[%s1439_s0 + $0x18] sm:$0xff]  }
   0x4   :  { %v94_v6 = vsel %vm57_vm0, %v760_v3, 0.0  ;;  %v82_v7 = vsel %vm57_vm0, %v752_v4, 0.0  ;;  %v97_v12 = vsel %vm57_vm0, %v761_v9, 0.0  ;;  %v85_v13 = vsel %vm57_vm0, %v753_v10, 0.0 }
   0x5   :  { %v58_v8 = vsel %vm57_vm0, %v736_v5, 0.0  ;;  %95 = vadd.xlane.f32.xlu1 %v94_v6  ;;  %83 = vadd.xlane.f32.xlu0 %v82_v7  ;;  %v61_v14 = vsel %vm57_vm0, %v737_v11, 0.0  ;;  %v756_v19 = vunpack.c.l.bf16 %v942_v16  ;;  %v70_v20 = vsel %vm57_vm0, %v744_v17, 0.0 }
   0x6   :  { %59 = vadd.xlane.f32.xlu2 %v58_v8  ;;  %v73_v21 = vsel %vm57_vm0, %v745_v18, 0.0  ;;  %v757_v24 = vunpack.c.h.bf16 %v942_v16  ;;  %v764_v25 = vunpack.c.l.bf16 %v959_v23  ;;  %v765_v26 = vunpack.c.h.bf16 %v959_v23 }
   0x7   :  { %v88_v22 = vsel %vm57_vm0, %v756_v19, 0.0  ;;  %v740_v32 = vunpack.c.l.bf16 %v976_v30  ;;  %v741_v33 = vunpack.c.h.bf16 %v976_v30  ;;  %v748_v34 = vunpack.c.l.bf16 %v981_v31  ;;  %v831_v41 = vpop.eup %830 }
   0x8   :  { %v91_v27 = vsel %vm57_vm0, %v757_v24, 0.0  ;;  %v100_v28 = vsel %vm57_vm0, %v764_v25, 0.0  ;;  %v103_v29 = vsel %vm57_vm0, %v765_v26, 0.0  ;;  %v749_v38 = vunpack.c.h.bf16 %v981_v31 }
   0x9   :  { %v64_v35 = vsel %vm57_vm0, %v740_v32, 0.0  ;;  %v67_v36 = vsel %vm57_vm0, %v741_v33, 0.0  ;;  %v76_v37 = vsel %vm57_vm0, %v748_v34, 0.0  ;;  %v107_v42 = vmul.f32 32.0, %v831_v41 }
   0xa   :  { %v79_v39 = vsel %vm57_vm0, %v749_v38, 0.0  ;;  %vm111_vm1 = vweird.f32 %v831_v41 }
   0xb   :  { %v108_v43 = vsub.f32 1.0, %v107_v42 }
   0xd   :  { %98 = vadd.xlane.f32.xlu1 %v97_v12  ;;  %86 = vadd.xlane.f32.xlu0 %v85_v13  ;;  %v109_v44 = vmul.f32 %v831_v41, %v108_v43 }
   0xe   :  { %62 = vadd.xlane.f32.xlu2 %v61_v14 }
   0xf   :  { %v110_v45 = vadd.f32 %v831_v41, %v109_v44 }
  0x11   :  { %v999_v46 = vsel %vm111_vm1, %v831_v41, %v110_v45 }
  0x15   :  { %71 = vadd.xlane.f32.xlu0 %v70_v20  ;;  %74 = vadd.xlane.f32.xlu1 %v73_v21 }
  0x16   :  { %89 = vadd.xlane.f32.xlu2 %v88_v22 }
  0x1d   :  { %92 = vadd.xlane.f32.xlu0 %v91_v27  ;;  %101 = vadd.xlane.f32.xlu1 %v100_v28 }
  0x1e   :  { %104 = vadd.xlane.f32.xlu2 %v103_v29 }
  0x25   :  { %65 = vadd.xlane.f32.xlu0 %v64_v35  ;;  %68 = vadd.xlane.f32.xlu1 %v67_v36 }
  0x26   :  { %77 = vadd.xlane.f32.xlu2 %v76_v37 }
  0x2d   :  { %80 = vadd.xlane.f32.xlu0 %v79_v39 }
  0x78   :  { %v96_v47 = vpop.xlane.xlu1 %95  ;;  %v84_v48 = vpop.xlane.xlu0 %83 }
  0x79   :  { %v125_v49 = vmul.f32 %v999_v46, %v96_v47  ;;  %v121_v50 = vmul.f32 %v999_v46, %v84_v48  ;;  %v60_v51 = vpop.xlane.xlu2 %59 }
  0x7b   :  { %v1005_v52 = vsub.f32 %v760_v3, %v125_v49  ;;  %v1009_v53 = vsub.f32 %v752_v4, %v121_v50  ;;  %v113_v3 = vmul.f32 %v999_v46, %v60_v51 }
  0x7d   :  { %v153_v54 = vmul.f32 %v1009_v53, %v1009_v53  ;;  %v157_v55 = vmul.f32 %v1005_v52, %v1005_v52  ;;  %v1041_v0 = vsub.f32 %v736_v5, %v113_v3 }
  0x7f   :  { %v185_v56 = vsel %vm57_vm0, %v153_v54, 0.0  ;;  %v197_v57 = vsel %vm57_vm0, %v157_v55, 0.0  ;;  %v145_v27 = vmul.f32 %v1041_v0, %v1041_v0 }
  0x80   :  { %v99_v58 = vpop.xlane.xlu1 %98  ;;  %v87_v59 = vpop.xlane.xlu0 %86  ;;  %186 = vadd.xlane.f32.xlu1 %v185_v56  ;;  %198 = vadd.xlane.f32.xlu0 %v197_v57 }
  0x81   :  { %v126_v60 = vmul.f32 %v999_v46, %v99_v58  ;;  %v122_v61 = vmul.f32 %v999_v46, %v87_v59  ;;  %v63_v62 = vpop.xlane.xlu2 %62  ;;  %v161_v37 = vsel %vm57_vm0, %v145_v27, 0.0 }
  0x82   :  { %v114_v63 = vmul.f32 %v999_v46, %v63_v62 }
  0x83   :  { %v1023_v4 = vsub.f32 %v761_v9, %v126_v60  ;;  %v1027_v6 = vsub.f32 %v753_v10, %v122_v61 }
  0x84   :  { %v1031_v7 = vsub.f32 %v737_v11, %v114_v63 }
  0x85   :  { %v158_v8 = vmul.f32 %v1023_v4, %v1023_v4  ;;  %v154_v12 = vmul.f32 %v1027_v6, %v1027_v6 }
  0x86   :  { %v146_v13 = vmul.f32 %v1031_v7, %v1031_v7 }
  0x87   :  { %v200_v1 = vsel %vm57_vm0, %v158_v8, 0.0  ;;  %v188_v9 = vsel %vm57_vm0, %v154_v12, 0.0 }
  0x88   :  { %v72_v10 = vpop.xlane.xlu0 %71  ;;  %201 = vadd.xlane.f32.xlu1 %v200_v1  ;;  %189 = vadd.xlane.f32.xlu2 %v188_v9  ;;  %v164_v11 = vsel %vm57_vm0, %v146_v13, 0.0  ;;  %v75_v14 = vpop.xlane.xlu1 %74 }
  0x89   :  { %v117_v20 = vmul.f32 %v999_v46, %v72_v10  ;;  %165 = vadd.xlane.f32.xlu0 %v164_v11  ;;  %v90_v21 = vpop.xlane.xlu2 %89  ;;  %v118_v22 = vmul.f32 %v999_v46, %v75_v14 }
  0x8a   :  { %v123_v2 = vmul.f32 %v999_v46, %v90_v21 }
  0x8b   :  { %v1051_v5 = vsub.f32 %v744_v17, %v117_v20  ;;  %v1061_v29 = vsub.f32 %v745_v18, %v118_v22 }
  0x8c   :  { %v1057_v28 = vsub.f32 %v756_v19, %v123_v2 }
  0x8d   :  { %v149_v35 = vmul.f32 %v1051_v5, %v1051_v5  ;;  %v150_v42 = vmul.f32 %v1061_v29, %v1061_v29 }
  0x8e   :  { %v155_v36 = vmul.f32 %v1057_v28, %v1057_v28 }
  0x8f   :  { %v173_v17 = vsel %vm57_vm0, %v149_v35, 0.0  ;;  %v176_v49 = vsel %vm57_vm0, %v150_v42, 0.0 }
  0x90   :  { %v93_v39 = vpop.xlane.xlu0 %92  ;;  %174 = vadd.xlane.f32.xlu1 %v173_v17  ;;  %162 = vadd.xlane.f32.xlu2 %v161_v37  ;;  %v191_v19 = vsel %vm57_vm0, %v155_v36, 0.0  ;;  %v102_v40 = vpop.xlane.xlu1 %101 }
  0x91   :  { %v124_v15 = vmul.f32 %v999_v46, %v93_v39  ;;  %192 = vadd.xlane.f32.xlu0 %v191_v19  ;;  %v105_v18 = vpop.xlane.xlu2 %104  ;;  %v127_v41 = vmul.f32 %v999_v46, %v102_v40 }
  0x92   :  { %v128_v43 = vmul.f32 %v999_v46, %v105_v18 }
  0x93   :  { %v1077_v44 = vsub.f32 %v757_v24, %v124_v15  ;;  %v1085_v47 = vsub.f32 %v764_v25, %v127_v41 }
  0x94   :  { %v1081_v45 = vsub.f32 %v765_v26, %v128_v43 }
  0x95   :  { %v156_v48 = vmul.f32 %v1077_v44, %v1077_v44  ;;  %v159_v55 = vmul.f32 %v1085_v47, %v1085_v47 }
  0x96   :  { %v160_v50 = vmul.f32 %v1081_v45, %v1081_v45 }
  0x97   :  { %v194_v16 = vsel %vm57_vm0, %v156_v48, 0.0  ;;  %v203_v61 = vsel %vm57_vm0, %v159_v55, 0.0 }
  0x98   :  { %195 = vadd.xlane.f32.xlu1 %v194_v16  ;;  %v66_v24 = vpop.xlane.xlu0 %65  ;;  %177 = vadd.xlane.f32.xlu2 %v176_v49  ;;  %v206_v26 = vsel %vm57_vm0, %v160_v50, 0.0  ;;  %v69_v51 = vpop.xlane.xlu1 %68 }
  0x99   :  { %v115_v23 = vmul.f32 %v999_v46, %v66_v24  ;;  %207 = vadd.xlane.f32.xlu0 %v206_v26  ;;  %v78_v25 = vpop.xlane.xlu2 %77  ;;  %v116_v54 = vmul.f32 %v999_v46, %v69_v51 }
  0x9a   :  { %v119_v56 = vmul.f32 %v999_v46, %v78_v25 }
  0x9b   :  { %v1101_v57 = vsub.f32 %v740_v32, %v115_v23  ;;  %v1109_v59 = vsub.f32 %v741_v33, %v116_v54 }
  0x9c   :  { %v1105_v58 = vsub.f32 %v748_v34, %v119_v56 }
  0x9d   :  { %v147_v60 = vmul.f32 %v1101_v57, %v1101_v57  ;;  %v148_v30 = vmul.f32 %v1109_v59, %v1109_v59 }
  0x9e   :  { %v151_v62 = vmul.f32 %v1105_v58, %v1105_v58 }
  0x9f   :  { %v167_v63 = vsel %vm57_vm0, %v147_v60, 0.0  ;;  %v170_v12 = vsel %vm57_vm0, %v148_v30, 0.0 }
  0xa0   :  { %168 = vadd.xlane.f32.xlu1 %v167_v63  ;;  %v81_v32 = vpop.xlane.xlu0 %80  ;;  %204 = vadd.xlane.f32.xlu2 %v203_v61  ;;  %v179_v34 = vsel %vm57_vm0, %v151_v62, 0.0  ;;  %v1162_v62 = vld [vmem:[%s1440_s1] ss:$0 sm:$0xff] }
  0xa1   :  { %v120_v3 = vmul.f32 %v999_v46, %v81_v32  ;;  %180 = vadd.xlane.f32.xlu0 %v179_v34 }
  0xa3   :  { %v1123_v33 = vsub.f32 %v749_v38, %v120_v3 }
  0xa5   :  { %v152_v8 = vmul.f32 %v1123_v33, %v1123_v33 }
  0xa7   :  { %v182_v13 = vsel %vm57_vm0, %v152_v8, 0.0 }
  0xa8   :  { %183 = vadd.xlane.f32.xlu1 %v182_v13  ;;  %171 = vadd.xlane.f32.xlu2 %v170_v12  ;;  %v1180_v12 = vld [vmem:[%s1441_s2] ss:$0 sm:$0xff] }
  0xf3   :  { %v187_v1 = vpop.xlane.xlu1 %186  ;;  %v199_v9 = vpop.xlane.xlu0 %198 }
  0xf4   :  { %v217_v10 = vmul.f32 %v187_v1, %v999_v46  ;;  %v221_v11 = vmul.f32 %v199_v9, %v999_v46 }
  0xf6   :  { %v233_v14 = vadd.f32 1e-05, %v217_v10  ;;  %v237_v20 = vadd.f32 1e-05, %v221_v11  ;;  %v733_v10 = vld [vmem:[%s1443_s3 + $0x8] sm:$0xff] }
  0xf7   :  { %821 = vmatpush.bf16.msra.mxu2 %v733_v10  ;;  %822 = vmatpush.bf16.msra.mxu3 %v733_v10 }
  0xf8   :  { %832 = vrsqrt.f32 %v233_v14  ;;  %vm327_vm2 = vweird.f32 %v233_v14  ;;  %vm367_vm4 = vweird.f32 %v237_v20  ;;  %597 = vmatpush.bf16.msra.mxu0 %v733_v10  ;;  %820 = vmatpush.bf16.msra.mxu1 %v733_v10 }
  0xf9   :  { %834 = vrsqrt.f32 %v237_v20 }
  0xfb   :  { %v202_v31 = vpop.xlane.xlu1 %201  ;;  %v190_v38 = vpop.xlane.xlu2 %189 }
  0xfc   :  { %v222_v21 = vmul.f32 %v202_v31, %v999_v46  ;;  %v166_v22 = vpop.xlane.xlu0 %165  ;;  %v218_v2 = vmul.f32 %v190_v38, %v999_v46 }
  0xfd   :  { %v210_v27 = vmul.f32 %v166_v22, %v999_v46 }
  0xfe   :  { %v833_v35 = vpop.eup %832  ;;  %v1134_v36 = vadd.f32 1e-05, %v222_v21  ;;  %v1136_v17 = vadd.f32 1e-05, %v218_v2 }
  0xff   :  { %v835_v37 = vpop.eup %834  ;;  %v322_v39 = vmul.f32 %v833_v35, %v233_v14  ;;  %v1138_v19 = vadd.f32 1e-05, %v210_v27  ;;  %vm328_vm3 = vweird.f32 %v833_v35 }
 0x100   :  { %v362_v40 = vmul.f32 %v835_v37, %v237_v20  ;;  %836 = vrsqrt.f32 %v1134_v36  ;;  %vm368_vm5 = vweird.f32 %v835_v37  ;;  %vm377_vm7 = vweird.f32 %v1134_v36  ;;  %vm329_vm8 = vmor %vm327_vm2, %vm328_vm3 }
 0x101   :  { %v323_v15 = vmul.f32 %v833_v35, %v322_v39  ;;  %838 = vrsqrt.f32 %v1138_v19  ;;  %vm369_vm9 = vmor %vm367_vm4, %vm368_vm5  ;;  %vm257_vm10 = vweird.f32 %v1138_v19  ;;  %vm337_vm11 = vweird.f32 %v1136_v17 }
 0x102   :  { %v363_v18 = vmul.f32 %v835_v37, %v362_v40  ;;  %840 = vrsqrt.f32 %v1136_v17  ;;  %v732_v40 = vld [vmem:[%s1443_s3] sm:$0xff] }
 0x103   :  { %v324_v41 = vmul.f32 0.5, %v323_v15  ;;  %v175_v42 = vpop.xlane.xlu1 %174  ;;  %v163_v43 = vpop.xlane.xlu2 %162  ;;  %824 = vmatpush.bf16.msra.mxu2 %v732_v40  ;;  %825 = vmatpush.bf16.msra.mxu3 %v732_v40 }
 0x104   :  { %v364_v48 = vmul.f32 0.5, %v363_v18  ;;  %v213_v49 = vmul.f32 %v175_v42, %v999_v46  ;;  %v193_v50 = vpop.xlane.xlu0 %192  ;;  %v209_v16 = vmul.f32 %v163_v43, %v999_v46  ;;  %598 = vmatpush.bf16.msra.mxu0 %v732_v40  ;;  %823 = vmatpush.bf16.msra.mxu1 %v732_v40 }
 0x105   :  { %v325_v24 = vsub.f32 1.5, %v324_v41  ;;  %v219_v26 = vmul.f32 %v193_v50, %v999_v46 }
 0x106   :  { %v1146_v51 = vpop.eup %836  ;;  %v365_v23 = vsub.f32 1.5, %v364_v48  ;;  %v1148_v25 = vadd.f32 1e-05, %v213_v49  ;;  %v1169_v34 = vadd.f32 1e-05, %v209_v16 }
 0x107   :  { %v1150_v54 = vpop.eup %838  ;;  %v326_v55 = vmul.f32 %v833_v35, %v325_v24  ;;  %v372_v56 = vmul.f32 %v1146_v51, %v1134_v36  ;;  %v1155_v60 = vadd.f32 1e-05, %v219_v26  ;;  %vm378_vm12 = vweird.f32 %v1146_v51 }
 0x108   :  { %v1157_v61 = vpop.eup %840  ;;  %v366_v63 = vmul.f32 %v835_v37, %v365_v23  ;;  %v252_v32 = vmul.f32 %v1150_v54, %v1138_v19  ;;  %842 = vrsqrt.f32 %v1148_v25  ;;  %vm258_vm13 = vweird.f32 %v1150_v54  ;;  %vm1213_vm1 = vmor %vm377_vm7, %vm378_vm12 }
 0x109   :  { %v330_v3 = vsel %vm329_vm8, %v833_v35, %v326_v55  ;;  %v373_v30 = vmul.f32 %v1146_v51, %v372_v56  ;;  %v332_v8 = vmul.f32 %v1157_v61, %v1136_v17  ;;  %844 = vrsqrt.f32 %v1155_v60  ;;  %vm259_vm3 = vmor %vm257_vm10, %vm258_vm13 }
 0x10a   :  { %v409_v13 = vmul.f32 %v330_v3, %v1009_v53  ;;  %v370_v1 = vsel %vm369_vm9, %v835_v37, %v366_v63  ;;  %v253_v9 = vmul.f32 %v1150_v54, %v252_v32  ;;  %846 = vrsqrt.f32 %v1169_v34 }
 0x10b   :  { %v413_v11 = vmul.f32 %v370_v1, %v1005_v52  ;;  %v374_v14 = vmul.f32 0.5, %v373_v30  ;;  %v333_v20 = vmul.f32 %v1157_v61, %v332_v8  ;;  %v196_v31 = vpop.xlane.xlu1 %195  ;;  %vm338_vm14 = vweird.f32 %v1157_v61  ;;  %v178_v24 = vpop.xlane.xlu2 %177 }
 0x10c   :  { %v429_v38 = vmul.f32 %v1162_v62, %v409_v13  ;;  %v254_v53 = vmul.f32 0.5, %v253_v9  ;;  %v208_v2 = vpop.xlane.xlu0 %207  ;;  %v220_v39 = vmul.f32 %v196_v31, %v999_v46  ;;  %vm287_vm15 = vweird.f32 %v1148_v25  ;;  %vm339_vm4 = vmor %vm337_vm11, %vm338_vm14 }
 0x10d   :  { %v433_v21 = vmul.f32 %v1162_v62, %v413_v11  ;;  %v375_v22 = vsub.f32 1.5, %v374_v14  ;;  %v334_v52 = vmul.f32 0.5, %v333_v20  ;;  %vm347_vm2 = vweird.f32 %v1155_v60 }
 0x10e   :  { %v1196_v27 = vpop.eup %842  ;;  %v449_v35 = vadd.f32 %v1180_v12, %v429_v38  ;;  %v255_v37 = vsub.f32 1.5, %v254_v53  ;;  %v1219_v50 = vadd.f32 1e-05, %v220_v39  ;;  %v224_v16 = vmul.f32 %v208_v2, %v999_v46 }
 0x10f   :  { %v453_v15 = vadd.f32 %v1180_v12, %v433_v21  ;;  %v376_v18 = vmul.f32 %v1146_v51, %v375_v22  ;;  %v335_v41 = vsub.f32 1.5, %v334_v52  ;;  %v282_v42 = vmul.f32 %v1196_v27, %v1148_v25  ;;  %v1222_v26 = vpop.eup %844 }
 0x110   :  { %v465_v43 = vpack.c.bf16 %v449_v35, %v449_v35  ;;  %v256_v49 = vmul.f32 %v1150_v54, %v255_v37  ;;  %v1233_v63 = vpop.eup %846  ;;  %vm288_vm5 = vweird.f32 %v1196_v27  ;;  %v342_v19 = vmul.f32 %v1222_v26, %v1155_v60 }
 0x111   :  { %v469_v23 = vpack.c.bf16 %v453_v15, %v453_v15  ;;  %v380_v36 = vsel %vm1213_vm1, %v1146_v51, %v376_v18  ;;  %v336_v55 = vmul.f32 %v1157_v61, %v335_v41  ;;  %v283_v56 = vmul.f32 %v1196_v27, %v282_v42  ;;  %vm289_vm9 = vmor %vm287_vm15, %vm288_vm5 }
 0x112   :  { %482 = vst.msk [vmem:[#allocation2 + $0x20] sm:$0xf] %vm473_vm6, %v465_v43  ;;  %v414_v32 = vmul.f32 %v380_v36, %v1023_v4  ;;  %v260_v3 = vsel %vm259_vm3, %v1150_v54, %v256_v49  ;;  %v242_v54 = vmul.f32 %v1233_v63, %v1169_v34  ;;  %v343_v1 = vmul.f32 %v1222_v26, %v342_v19 }
 0x113   :  { %486 = vst.msk [vmem:[#allocation2 + $0x30] sm:$0xf] %vm473_vm6, %v469_v23  ;;  %v402_v51 = vmul.f32 %v260_v3, %v1031_v7  ;;  %v340_v30 = vsel %vm339_vm4, %v1157_v61, %v336_v55  ;;  %v284_v4 = vmul.f32 0.5, %v283_v56  ;;  %v169_v8 = vpop.xlane.xlu1 %168  ;;  %vm348_vm7 = vweird.f32 %v1222_v26  ;;  %v205_v25 = vpop.xlane.xlu2 %204 }
 0x114   :  { %v434_v17 = vmul.f32 %v1162_v62, %v414_v32  ;;  %v410_v13 = vmul.f32 %v340_v30, %v1027_v6  ;;  %v243_v7 = vmul.f32 %v1233_v63, %v242_v54  ;;  %848 = vrsqrt.f32 %v1219_v50  ;;  %v181_v2 = vpop.xlane.xlu0 %180  ;;  %vm349_vm11 = vmor %vm347_vm2, %vm348_vm7 }
 0x115   :  { %v422_v9 = vmul.f32 %v1162_v62, %v402_v51  ;;  %v285_v10 = vsub.f32 1.5, %v284_v4  ;;  %v344_v14 = vmul.f32 0.5, %v343_v1  ;;  %vm248_vm8 = vweird.f32 %v1233_v63 }
 0x116   :  { %v454_v61 = vadd.f32 %v1180_v12, %v434_v17  ;;  %v430_v11 = vmul.f32 %v1162_v62, %v410_v13  ;;  %v244_v31 = vmul.f32 0.5, %v243_v7  ;;  %v1262_v38 = vadd.f32 1e-05, %v224_v16 }
 0x117   :  { %v442_v6 = vadd.f32 %v1180_v12, %v422_v9  ;;  %v286_v20 = vmul.f32 %v1196_v27, %v285_v10  ;;  %v345_v22 = vsub.f32 1.5, %v344_v14  ;;  %v214_v52 = vmul.f32 %v178_v24, %v999_v46 }
 0x118   :  { %v470_v53 = vpack.c.bf16 %v454_v61, %v454_v61  ;;  %v450_v21 = vadd.f32 %v1180_v12, %v430_v11  ;;  %v245_v39 = vsub.f32 1.5, %v244_v31  ;;  %850 = vrsqrt.f32 %v1262_v38 }
 0x119   :  { %v458_v35 = vpack.c.bf16 %v442_v6, %v442_v6  ;;  %v290_v37 = vsel %vm289_vm9, %v1196_v27, %v286_v20  ;;  %v346_v18 = vmul.f32 %v1222_v26, %v345_v22  ;;  %vm247_vm10 = vweird.f32 %v1169_v34 }
 0x11a   :  { %487 = vst.msk [vmem:[#allocation2 + $0x34] sm:$0xf] %vm473_vm6, %v470_v53  ;;  %v466_v40 = vpack.c.bf16 %v450_v21, %v450_v21  ;;  %v405_v15 = vmul.f32 %v290_v37, %v1051_v5  ;;  %v1276_v41 = vpop.eup %848  ;;  %v246_v27 = vmul.f32 %v1233_v63, %v245_v39  ;;  %v1284_v42 = vadd.f32 1e-05, %v214_v52  ;;  %vm249_vm12 = vmor %vm247_vm10, %vm248_vm8 }
 0x11b   :  { %475 = vst.msk [vmem:[#allocation2 + $0x4] sm:$0xf] %vm473_vm6, %v458_v35  ;;  %v211_v5 = vmul.f32 %v169_v8, %v999_v46  ;;  %v215_v43 = vmul.f32 %v181_v2, %v999_v46  ;;  %v350_v48 = vsel %vm349_vm11, %v1222_v26, %v346_v18  ;;  %v352_v60 = vmul.f32 %v1276_v41, %v1219_v50  ;;  %v184_v49 = vpop.xlane.xlu1 %183  ;;  %v172_v31 = vpop.xlane.xlu2 %171 }
 0x11c   :  { %483 = vst.msk [vmem:[#allocation2 + $0x24] sm:$0xf] %vm473_vm6, %v466_v40  ;;  %v425_v34 = vmul.f32 %v1162_v62, %v405_v15  ;;  %v411_v16 = vmul.f32 %v350_v48, %v1057_v28  ;;  %v250_v24 = vsel %vm249_vm12, %v1233_v63, %v246_v27  ;;  %852 = vrsqrt.f32 %v1284_v42 }
 0x11d   :  { %v401_v36 = vmul.f32 %v250_v24, %v1041_v0  ;;  %v353_v55 = vmul.f32 %v1276_v41, %v352_v60  ;;  %v1301_v26 = vadd.f32 1e-05, %v211_v5  ;;  %v1304_v3 = vadd.f32 1e-05, %v215_v43 }
 0x11e   :  { %v445_v23 = vadd.f32 %v1180_v12, %v425_v34  ;;  %v851_v56 = vpop.eup %850  ;;  %v431_v32 = vmul.f32 %v1162_v62, %v411_v16  ;;  %v223_v19 = vmul.f32 %v205_v25, %v999_v46  ;;  %v216_v28 = vmul.f32 %v184_v49, %v999_v46 }
 0x11f   :  { %v421_v51 = vmul.f32 %v1162_v62, %v401_v36  ;;  %v354_v30 = vmul.f32 0.5, %v353_v55  ;;  %v392_v4 = vmul.f32 %v851_v56, %v1262_v38  ;;  %vm358_vm13 = vweird.f32 %v1276_v41 }
 0x120   :  { %v461_v63 = vpack.c.bf16 %v445_v23, %v445_v23  ;;  %v451_v0 = vadd.f32 %v1180_v12, %v431_v32  ;;  %854 = vrsqrt.f32 %v1301_v26  ;;  %vm357_vm14 = vweird.f32 %v1219_v50 }
 0x121   :  { %v730_v54 = vld [vmem:[#allocation2 + $0x30] sm:$0xff]  ;;  %v441_v8 = vadd.f32 %v1180_v12, %v421_v51  ;;  %v355_v17 = vsub.f32 1.5, %v354_v30  ;;  %v393_v13 = vmul.f32 %v851_v56, %v392_v4  ;;  %856 = vrsqrt.f32 %v1304_v3  ;;  %vm359_vm15 = vmor %vm357_vm14, %vm358_vm13 }
 0x122   :  { %478 = vst.msk [vmem:[#allocation2 + $0x10] sm:$0xf] %vm473_vm6, %v461_v63  ;;  %v1316_v1 = vpop.eup %852  ;;  %v467_v9 = vpack.c.bf16 %v451_v0, %v451_v0  ;;  %v1319_v10 = vadd.f32 1e-05, %v223_v19  ;;  %v1321_v7 = vadd.f32 1e-05, %v216_v28  ;;  %722 = vmatmul.msk.bf16.vlgmr.msra.gmra.mxu3 %vm57_vm0, %v730_v54  ;;  %vm397_vm1 = vweird.f32 %v1262_v38 }
 0x123   :  { %v728_v61 = vld [vmem:[#allocation2 + $0x20] sm:$0xff]  ;;  %v457_v11 = vpack.c.bf16 %v441_v8, %v441_v8  ;;  %v356_v14 = vmul.f32 %v1276_v41, %v355_v17  ;;  %v394_v6 = vmul.f32 0.5, %v393_v13  ;;  %v292_v20 = vmul.f32 %v1316_v1, %v1284_v42 }
 0x124   :  { %484 = vst.msk [vmem:[#allocation2 + $0x28] sm:$0xf] %vm473_vm6, %v467_v9  ;;  %vm398_vm2 = vweird.f32 %v851_v56  ;;  %858 = vrsqrt.f32 %v1319_v10  ;;  %720 = vmatmul.msk.bf16.vlgmr.msra.gmra.mxu2 %vm57_vm0, %v728_v61  ;;  %v212_v2 = vmul.f32 %v172_v31, %v999_v46  ;;  %vm297_vm3 = vweird.f32 %v1284_v42 }
 0x125   :  { %474 = vst.msk [vmem:[#allocation2] sm:$0xf] %vm473_vm6, %v457_v11  ;;  %v360_v50 = vsel %vm359_vm15, %v1276_v41, %v356_v14  ;;  %v395_v53 = vsub.f32 1.5, %v394_v6  ;;  %v293_v21 = vmul.f32 %v1316_v1, %v292_v20  ;;  %860 = vrsqrt.f32 %v1321_v7  ;;  %vm399_vm4 = vmor %vm397_vm1, %vm398_vm2 }
 0x126   :  { %v855_v22 = vpop.eup %854  ;;  %v412_v52 = vmul.f32 %v360_v50, %v1077_v44  ;;  %vm307_vm5 = vweird.f32 %v1304_v3  ;;  %v1347_v44 = vadd.f32 1e-05, %v212_v2  ;;  %vm298_vm7 = vweird.f32 %v1316_v1 }
 0x127   :  { %v857_v35 = vpop.eup %856  ;;  %v396_v37 = vmul.f32 %v851_v56, %v395_v53  ;;  %v294_v39 = vmul.f32 0.5, %v293_v21  ;;  %v262_v40 = vmul.f32 %v855_v22, %v1301_v26  ;;  %vm268_vm8 = vweird.f32 %v855_v22  ;;  %vm299_vm9 = vmor %vm297_vm3, %vm298_vm7 }
 0x128   :  { %v432_v15 = vmul.f32 %v1162_v62, %v412_v52  ;;  %v302_v18 = vmul.f32 %v857_v35, %v1304_v3  ;;  %862 = vrsqrt.f32 %v1347_v44  ;;  %vm308_vm10 = vweird.f32 %v857_v35 }
 0x129   :  { %v400_v46 = vsel %vm399_vm4, %v851_v56, %v396_v37  ;;  %v295_v25 = vsub.f32 1.5, %v294_v39  ;;  %v263_v41 = vmul.f32 %v855_v22, %v262_v40  ;;  %vm267_vm11 = vweird.f32 %v1301_v26  ;;  %vm309_vm14 = vmor %vm307_vm5, %vm308_vm10 }
 0x12a   :  { %v1350_v27 = vpop.eup %858  ;;  %v452_v5 = vadd.f32 %v1180_v12, %v432_v15  ;;  %v416_v43 = vmul.f32 %v400_v46, %v1081_v45  ;;  %v303_v34 = vmul.f32 %v857_v35, %v302_v18  ;;  %vm269_vm13 = vmor %vm267_vm11, %vm268_vm8  ;;  %vm387_vm1 = vweird.f32 %v1319_v10 }
 0x12b   :  { %v861_v38 = vpop.eup %860  ;;  %v296_v48 = vmul.f32 %v1316_v1, %v295_v25  ;;  %v264_v60 = vmul.f32 0.5, %v263_v41  ;;  %v382_v49 = vmul.f32 %v1350_v27, %v1319_v10  ;;  %vm388_vm12 = vweird.f32 %v1350_v27 }
 0x12c   :  { %v468_v16 = vpack.c.bf16 %v452_v5, %v452_v5  ;;  %v436_v24 = vmul.f32 %v1162_v62, %v416_v43  ;;  %v304_v23 = vmul.f32 0.5, %v303_v34  ;;  %v312_v45 = vmul.f32 %v861_v38, %v1321_v7  ;;  %v724_v36 = vld [vmem:[#allocation2] sm:$0xff]  ;;  %vm389_vm2 = vmor %vm387_vm1, %vm388_vm12 }
 0x12d   :  { %v300_v55 = vsel %vm299_vm9, %v1316_v1, %v296_v48  ;;  %v265_v56 = vsub.f32 1.5, %v264_v60  ;;  %v383_v32 = vmul.f32 %v1350_v27, %v382_v49  ;;  %716 = vmatmul.msk.bf16.vlgmr.msra.gmra.mxu0 %vm57_vm0, %v724_v36  ;;  %vm318_vm15 = vweird.f32 %v861_v38  ;;  %v829_v49 = vld [vmem:[%s1442_s4] ss:$0 sm:$0xff] }
 0x12e   :  { %485 = vst.msk [vmem:[#allocation2 + $0x2c] sm:$0xf] %vm473_vm6, %v468_v16  ;;  %v456_v19 = vadd.f32 %v1180_v12, %v436_v24  ;;  %v406_v28 = vmul.f32 %v300_v55, %v1061_v29  ;;  %v305_v63 = vsub.f32 1.5, %v304_v23  ;;  %v313_v51 = vmul.f32 %v861_v38, %v312_v45  ;;  %v863_v4 = vpop.eup %862 }
 0x12f   :  { %v266_v42 = vmul.f32 %v855_v22, %v265_v56  ;;  %v384_v30 = vmul.f32 0.5, %v383_v32  ;;  %v272_v26 = vmul.f32 %v863_v4, %v1347_v44  ;;  %vm317_vm3 = vweird.f32 %v1321_v7 }
 0x130   :  { %v472_v0 = vpack.c.bf16 %v456_v19, %v456_v19  ;;  %v426_v54 = vmul.f32 %v1162_v62, %v406_v28  ;;  %v306_v8 = vmul.f32 %v857_v35, %v305_v63  ;;  %v314_v17 = vmul.f32 0.5, %v313_v51  ;;  %vm319_vm4 = vmor %vm317_vm3, %vm318_vm15 }
 0x131   :  { %v270_v13 = vsel %vm269_vm13, %v855_v22, %v266_v42  ;;  %v385_v29 = vsub.f32 1.5, %v384_v30  ;;  %v273_v3 = vmul.f32 %v863_v4, %v272_v26  ;;  %vm278_vm5 = vweird.f32 %v863_v4 }
 0x132   :  { %489 = vst.msk [vmem:[#allocation2 + $0x3c] sm:$0xf] %vm473_vm6, %v472_v0  ;;  %v446_v1 = vadd.f32 %v1180_v12, %v426_v54  ;;  %v403_v9 = vmul.f32 %v270_v13, %v1101_v57  ;;  %v310_v61 = vsel %vm309_vm14, %v857_v35, %v306_v8  ;;  %v315_v11 = vsub.f32 1.5, %v314_v17 }
 0x133   :  { %v407_v14 = vmul.f32 %v310_v61, %v1105_v58  ;;  %v386_v6 = vmul.f32 %v1350_v27, %v385_v29  ;;  %v274_v58 = vmul.f32 0.5, %v273_v3  ;;  %vm277_vm7 = vweird.f32 %v1347_v44 }
 0x134   :  { %v462_v20 = vpack.c.bf16 %v446_v1, %v446_v1  ;;  %v423_v31 = vmul.f32 %v1162_v62, %v403_v9  ;;  %v316_v50 = vmul.f32 %v861_v38, %v315_v11  ;;  %vm279_vm8 = vmor %vm277_vm7, %vm278_vm5 }
 0x135   :  { %v427_v57 = vmul.f32 %v1162_v62, %v407_v14  ;;  %v390_v53 = vsel %vm389_vm2, %v1350_v27, %v386_v6  ;;  %v729_v21 = vld [vmem:[#allocation2 + $0x28] sm:$0xff]  ;;  %v275_v7 = vsub.f32 1.5, %v274_v58 }
 0x136   :  { %479 = vst.msk [vmem:[#allocation2 + $0x14] sm:$0xf] %vm473_vm6, %v462_v20  ;;  %v443_v10 = vadd.f32 %v1180_v12, %v423_v31  ;;  %v415_v22 = vmul.f32 %v390_v53, %v1085_v47  ;;  %v320_v52 = vsel %vm319_vm4, %v861_v38, %v316_v50  ;;  %721 = vmatmul.msk.bf16.gmra.mxu2 %vm57_vm0, %v729_v21 }
 0x137   :  { %v447_v2 = vadd.f32 %v1180_v12, %v427_v57  ;;  %v408_v35 = vmul.f32 %v320_v52, %v1123_v33  ;;  %v276_v18 = vmul.f32 %v863_v4, %v275_v7 }
 0x138   :  { %v459_v37 = vpack.c.bf16 %v443_v10, %v443_v10  ;;  %v435_v39 = vmul.f32 %v1162_v62, %v415_v22 }
 0x139   :  { %v463_v40 = vpack.c.bf16 %v447_v2, %v447_v2  ;;  %v428_v15 = vmul.f32 %v1162_v62, %v408_v35  ;;  %v280_v46 = vsel %vm279_vm8, %v863_v4, %v276_v18 }
 0x13a   :  { %476 = vst.msk [vmem:[#allocation2 + $0x8] sm:$0xf] %vm473_vm6, %v459_v37  ;;  %v455_v47 = vadd.f32 %v1180_v12, %v435_v39  ;;  %v404_v41 = vmul.f32 %v280_v46, %v1109_v59 }
 0x13b   :  { %480 = vst.msk [vmem:[#allocation2 + $0x18] sm:$0xf] %vm473_vm6, %v463_v40  ;;  %v448_v33 = vadd.f32 %v1180_v12, %v428_v15 }
 0x13c   :  { %v471_v25 = vpack.c.bf16 %v455_v47, %v455_v47  ;;  %v424_v43 = vmul.f32 %v1162_v62, %v404_v41 }
 0x13d   :  { %v464_v27 = vpack.c.bf16 %v448_v33, %v448_v33  ;;  %v726_v5 = vld [vmem:[#allocation2 + $0x10] sm:$0xff] }
 0x13e   :  { %488 = vst.msk [vmem:[#allocation2 + $0x38] sm:$0xf] %vm473_vm6, %v471_v25  ;;  %718 = vmatmul.msk.bf16.vlgmr.msra.gmra.mxu1 %vm57_vm0, %v726_v5  ;;  %v444_v44 = vadd.f32 %v1180_v12, %v424_v43 }
 0x13f   :  { %481 = vst.msk [vmem:[#allocation2 + $0x1c] sm:$0xf] %vm473_vm6, %v464_v27 }
 0x140   :  { %v460_v34 = vpack.c.bf16 %v444_v44, %v444_v44 }
 0x142   :  { %477 = vst.msk [vmem:[#allocation2 + $0xc] sm:$0xf] %vm473_vm6, %v460_v34 }
 0x145   :  { %v731_v38 = vld [vmem:[#allocation2 + $0x38] sm:$0xff] }
 0x146   :  { %723 = vmatmul.msk.bf16.gmra.mxu3 %vm57_vm0, %v731_v38  ;;  %v727_v59 = vld [vmem:[#allocation2 + $0x18] sm:$0xff] }
 0x149   :  { %v725_v48 = vld [vmem:[#allocation2 + $0x8] sm:$0xff] }
 0x14a   :  { %717 = vmatmul.msk.bf16.gmra.mxu0 %vm57_vm0, %v725_v48 }
 0x14e   :  { %719 = vmatmul.msk.bf16.gmra.mxu1 %vm57_vm0, %v727_v59 }
 0x1a5   :  { %v630_v60 = vpop.f32.mrf.mxu3 }
 0x1a6   :  { %v631_v24 = vadd.f32 %v829_v49, %v630_v60 }
 0x1a7   :  { %v620_v62 = vpop.f32.mrf.mxu2 }
 0x1a8   :  { %v621_v36 = vadd.f32 %v829_v49, %v620_v62 }
 0x1aa   :  { %v600_v16 = vpop.f32.mrf.mxu0 }
 0x1ab   :  { %v601_v28 = vadd.f32 %v829_v49, %v600_v16 }
 0x1ad   :  { %v632_v12 = vpop.f32.mrf.mxu3 }
 0x1ae   :  { %v633_v23 = vadd.f32 %v829_v49, %v632_v12 }
 0x1af   :  { %v622_v45 = vpop.f32.mrf.mxu2 }
 0x1b0   :  { %v623_v55 = vadd.f32 %v829_v49, %v622_v45  ;;  %v799_v56 = vpack.c.bf16 %v633_v23, %v631_v24 }
 0x1b2   :  { %v789_v32 = vpack.c.bf16 %v623_v55, %v621_v36  ;;  %818 = vst [vmem:[%s1444_s5 + $0x30] sm:$0xff] %v799_v56   ;;  %v602_v19 = vpop.f32.mrf.mxu0 }
 0x1b3   :  { %v603_v63 = vadd.f32 %v829_v49, %v602_v19 }
 0x1b4   :  { %816 = vst [vmem:[%s1444_s5 + $0x20] sm:$0xff] %v789_v32  }
 0x1b5   :  { %v769_v51 = vpack.c.bf16 %v603_v63, %v601_v28 }
 0x1b7   :  { %770 = vst [vmem:[%s1444_s5] sm:$0xff] %v769_v51  }
 0x1b9   :  { %v625_v42 = vpop.f32.mrf.mxu2 }
 0x1ba   :  { %v626_v0 = vadd.f32 %v829_v49, %v625_v42 }
 0x1bb   :  { %v610_v30 = vpop.f32.mrf.mxu1 }
 0x1bc   :  { %v611_v17 = vadd.f32 %v829_v49, %v610_v30 }
 0x1c1   :  { %v627_v4 = vpop.f32.mrf.mxu2 }
 0x1c2   :  { %v628_v54 = vadd.f32 %v829_v49, %v627_v4 }
 0x1c3   :  { %v612_v8 = vpop.f32.mrf.mxu1 }
 0x1c4   :  { %v613_v13 = vadd.f32 %v829_v49, %v612_v8  ;;  %v794_v29 = vpack.c.bf16 %v628_v54, %v626_v0 }
 0x1c6   :  { %v779_v26 = vpack.c.bf16 %v613_v13, %v611_v17  ;;  %817 = vst [vmem:[%s1444_s5 + $0x28] sm:$0xff] %v794_v29  }
 0x1c7   :  { %v605_v9 = vpop.f32.mrf.mxu0 }
 0x1c8   :  { %814 = vst [vmem:[%s1444_s5 + $0x10] sm:$0xff] %v779_v26   ;;  %v606_v3 = vadd.f32 %v829_v49, %v605_v9 }
 0x1c9   :  { %v635_v1 = vpop.f32.mrf.mxu3 }
 0x1ca   :  { %v636_v6 = vadd.f32 %v829_v49, %v635_v1 }
 0x1cb   :  { %v615_v61 = vpop.f32.mrf.mxu1 }
 0x1cc   :  { %v616_v57 = vadd.f32 %v829_v49, %v615_v61 }
 0x1cf   :  { %v607_v14 = vpop.f32.mrf.mxu0 }
 0x1d0   :  { %v608_v31 = vadd.f32 %v829_v49, %v607_v14 }
 0x1d1   :  { %v637_v11 = vpop.f32.mrf.mxu3 }
 0x1d2   :  { %v638_v20 = vadd.f32 %v829_v49, %v637_v11  ;;  %v774_v58 = vpack.c.bf16 %v608_v31, %v606_v3 }
 0x1d3   :  { %v617_v50 = vpop.f32.mrf.mxu1 }
 0x1d4   :  { %v804_v53 = vpack.c.bf16 %v638_v20, %v636_v6  ;;  %v618_v21 = vadd.f32 %v829_v49, %v617_v50  ;;  %813 = vst [vmem:[%s1444_s5 + $0x8] sm:$0xff] %v774_v58  }
 0x1d6   :  { %819 = vst [vmem:[%s1444_s5 + $0x38] sm:$0xff] %v804_v53   ;;  %v784_v10 = vpack.c.bf16 %v618_v21, %v616_v57 }
 0x1d8   :  { %815 = vst [vmem:[%s1444_s5 + $0x18] sm:$0xff] %v784_v10  }

// kernel: vit_classifier_forward.28
= control target key start
LH: loop header
LB: loop body
LE: loop exit
PB: predicated region body
PF: predicated region fallthrough
CT: control target
= control target key end

     0   :  { %s1210_s12 = smov 0   ;;  %s1212_s13 = smov 0   ;;  %s1433_s0 = inlined_call_operand.vmem [shape: bf16[4,64,16], index: 0, kind: input, shape index: {}]   ;;  %s1434_s1 = inlined_call_operand.vmem [shape: bf16[4,64,16], index: 1, kind: input, shape index: {}]   ;;  %s1435_s2 = inlined_call_operand.vmem [shape: bf16[4,64,16], index: 2, kind: input, shape index: {}]   ;;  %s1436_s3 = inlined_call_operand.vmem [shape: bf16[4,64,16], index: 3, kind: output, shape index: {}]  }
   0x1   :  { %s1214_s14 = smov 0  }
   0x2 LB: > { %s32_s15 = sadd.s32 1, %s1181_s13  ;;  %p995_p0 = scmp.ge.s32.totalorder %s1185_s14, 1  ;;  %s1185_s14 = sphi %s1214_s14, %s13_s14   ;;  %s1181_s13 = sphi %s1212_s13, %s1438_s13   ;;  %s1177_s12 = sphi %s1210_s12, %s1437_s12  }
   0x3   : > { %p34_p1 = scmp.ge.s32.totalorder %s32_s15, 4  ;;  %p199_p2 = scmp.lt.s32.totalorder %s1185_s14, 5 }
   0x5   : > { %s1440_s15 = smov (%p34_p1, %s32_s15), 0  ;;  %p200_p3 = pnand %p995_p0, %p199_p2 }
   0x6   : > { %p250_p4 = scmp.lt.s32.totalorder (!%p200_p3), %s1177_s12, 3 }
   0x7   : > { %203 = sbr.rel (%p200_p3) target bundleno = 719 (0x2cf), region = 32 }
   0xc   : > { %s1442_s12 = smov (!%p250_p4, %s1177_s12), 3  ;;  %vm311_vm0 = vcmask 130048   ;;  %vm438_vm1 = vcmask 523264   ;;  %vm294_vm2 = vcmask 7168   ;;  %v1187_v34 = vmov -inf  }
   0xd   : > { %s1228_s16 = sshll.u32 %s1442_s12, 5  ;;  %299 = vst.msk [vmem:[#allocation2 + $0x20] sm:$0xff] %vm294_vm2, %v1187_v34  ;;  %v1188_v49 = vmov 0   ;;  %v1189_v50 = vmov 0.0   ;;  %vm856_vm3 = vcmask 125952  }
   0xe   : > { %s267_s19 = scalar_lea.vmem %s1434_s1, %s1228_s16  ;;  %s257_s22 = scalar_lea.vmem %s1433_s0, %s1228_s16  ;;  %295 = vst.msk [vmem:[#allocation2] sm:$0xff] %vm294_vm2, %v1187_v34  ;;  %1114 = vset.pattern.permute.xlu1 %v1188_v49  ;;  %1112 = vset.pattern.permute.xlu2 %v1188_v49 }
   0xf   : > { %v1053_v0 = vld [vmem:[%s267_s19 + $0x18] sm:$0xff]  ;;  %v1052_v2 = vld [vmem:[%s267_s19 + $0x10] sm:$0xff]  ;;  %v1051_v4 = vld [vmem:[%s267_s19 + $0x8] sm:$0xff]  ;;  %296 = vst.msk [vmem:[#allocation2 + $0x8] sm:$0xff] %vm294_vm2, %v1187_v34  ;;  %1113 = vset.pattern.permute.xlu0 %v1188_v49  ;;  %s277_s25 = scalar_lea.vmem %s1435_s2, %s1228_s16  ;;  %s1406_s28 = scalar_lea.vmem %s1436_s3, %s1228_s16 }
  0x10   : > { %v399_v1 = vsel %vm311_vm0, %v1053_v0, 0  ;;  %v396_v3 = vsel %vm311_vm0, %v1052_v2, 0  ;;  %v393_v5 = vsel %vm311_vm0, %v1051_v4, 0  ;;  %v1059_v6 = vld [vmem:[%s257_s22] sm:$0xff]   ;;  %v1075_v7 = vld [vmem:[%s257_s22 + $0x10] sm:$0xff]   ;;  %v1074_v20 = vld [vmem:[%s257_s22 + $0x8] sm:$0xff]  }
  0x11   : > { %405 = vmatpush.bf16.xpose.msra.mxu0 %v399_v1  ;;  %1077 = vmatpush.bf16.xpose.msra.mxu2 %v399_v1  ;;  %v1050_v8 = vld [vmem:[%s267_s19] sm:$0xff]  ;;  %v1060_v9 = vunpack.c.l.bf16 %v1059_v6  ;;  %v1061_v10 = vunpack.c.h.bf16 %v1059_v6  ;;  %v1068_v11 = vunpack.c.l.bf16 %v1075_v7  ;;  %v1069_v12 = vunpack.c.h.bf16 %v1075_v7  ;;  %v1076_v21 = vld [vmem:[%s257_s22 + $0x18] sm:$0xff]   ;;  %297 = vst.msk [vmem:[#allocation2 + $0x10] sm:$0xff] %vm294_vm2, %v1187_v34 }
  0x12   : > { %v390_v13 = vsel %vm311_vm0, %v1050_v8, 0  ;;  %v1064_v22 = vunpack.c.l.bf16 %v1074_v20  ;;  %v1065_v23 = vunpack.c.h.bf16 %v1074_v20  ;;  %v1072_v24 = vunpack.c.l.bf16 %v1076_v21  ;;  %298 = vst.msk [vmem:[#allocation2 + $0x18] sm:$0xff] %vm294_vm2, %v1187_v34 }
  0x13   : > { %v336_v14 = vmul.f32 0.25, %v1060_v9  ;;  %v337_v15 = vmul.f32 0.25, %v1061_v10  ;;  %v340_v16 = vmul.f32 0.25, %v1068_v11  ;;  %v341_v17 = vmul.f32 0.25, %v1069_v12  ;;  %300 = vst.msk [vmem:[#allocation2 + $0x28] sm:$0xff] %vm294_vm2, %v1187_v34 }
  0x14   : > { %v1073_v25 = vunpack.c.h.bf16 %v1076_v21  ;;  %v338_v26 = vmul.f32 0.25, %v1064_v22  ;;  %v339_v27 = vmul.f32 0.25, %v1065_v23  ;;  %v342_v28 = vmul.f32 0.25, %v1072_v24  ;;  %301 = vst.msk [vmem:[#allocation2 + $0x30] sm:$0xff] %vm294_vm2, %v1187_v34  ;;  %v434_v54 = vld [vmem:[#allocation2 + $0x20] sm:$0xff] }
  0x15   : > { %v344_v18 = vpack.c.bf16 %v337_v15, %v336_v14  ;;  %v346_v19 = vpack.c.bf16 %v341_v17, %v340_v16  ;;  %302 = vst.msk [vmem:[#allocation2 + $0x38] sm:$0xff] %vm294_vm2, %v1187_v34  ;;  %v430_v51 = vld [vmem:[#allocation2] sm:$0xff]  ;;  %v1057_v34 = vld [vmem:[%s277_s25 + $0x18] sm:$0xff] }
  0x16   : > { %v343_v29 = vmul.f32 0.25, %v1073_v25  ;;  %v345_v30 = vpack.c.bf16 %v339_v27, %v338_v26  ;;  %313 = vst.msk [vmem:[#allocation4 + $0x8] sm:$0xff] %vm311_vm0, %v1189_v50  ;;  %v431_v57 = vld [vmem:[#allocation2 + $0x8] sm:$0xff]  ;;  %1081 = vmatpush.bf16.msra.mxu3 %v1057_v34  ;;  %724 = vmatpush.bf16.msra.mxu1 %v1057_v34 }
  0x17   : > { %303 = vst.msk [vmem:[#allocation3] sm:$0xff] %vm294_vm2, %v1189_v50 }
  0x18   : > { %v347_v31 = vpack.c.bf16 %v343_v29, %v342_v28  ;;  %304 = vst.msk [vmem:[#allocation3 + $0x8] sm:$0xff] %vm294_vm2, %v1189_v50  ;;  %v432_v59 = vld [vmem:[#allocation2 + $0x10] sm:$0xff] }
  0x19   : > { %406 = vmatpush.bf16.xpose.msra.mxu0 %v396_v3  ;;  %1078 = vmatpush.bf16.xpose.msra.mxu2 %v396_v3  ;;  %305 = vst.msk [vmem:[#allocation3 + $0x10] sm:$0xff] %vm294_vm2, %v1189_v50 }
  0x1a   : > { %306 = vst.msk [vmem:[#allocation3 + $0x18] sm:$0xff] %vm294_vm2, %v1189_v50  ;;  %v435_v1 = vld [vmem:[#allocation2 + $0x28] sm:$0xff] }
  0x1b   : > { %307 = vst.msk [vmem:[#allocation3 + $0x20] sm:$0xff] %vm294_vm2, %v1189_v50  ;;  %v436_v0 = vld [vmem:[#allocation2 + $0x30] sm:$0xff] }
  0x1c   : > { %308 = vst.msk [vmem:[#allocation3 + $0x28] sm:$0xff] %vm294_vm2, %v1189_v50  ;;  %v1309_v11 = vld [vmem:[#allocation2 + $0x38] sm:$0xff] }
  0x1d   : > { %309 = vst.msk [vmem:[#allocation3 + $0x30] sm:$0xff] %vm294_vm2, %v1189_v50 }
  0x1e   : > { %310 = vst.msk [vmem:[#allocation3 + $0x38] sm:$0xff] %vm294_vm2, %v1189_v50 }
  0x1f   : > { %312 = vst.msk [vmem:[#allocation4] sm:$0xff] %vm311_vm0, %v1189_v50 }
  0x20   : > { %314 = vst.msk [vmem:[#allocation4 + $0x10] sm:$0xff] %vm311_vm0, %v1189_v50 }
  0x21   : > { %407 = vmatpush.bf16.xpose.msra.mxu0 %v393_v5  ;;  %1079 = vmatpush.bf16.xpose.msra.mxu2 %v393_v5  ;;  %315 = vst.msk [vmem:[#allocation4 + $0x18] sm:$0xff] %vm311_vm0, %v1189_v50  ;;  %v433_v5 = vld [vmem:[#allocation2 + $0x18] sm:$0xff] }
  0x22   : > { %316 = vst.msk [vmem:[#allocation4 + $0x20] sm:$0xff] %vm311_vm0, %v1189_v50 }
  0x23   : > { %317 = vst.msk [vmem:[#allocation4 + $0x28] sm:$0xff] %vm311_vm0, %v1189_v50 }
  0x24   : > { %318 = vst.msk [vmem:[#allocation4 + $0x30] sm:$0xff] %vm311_vm0, %v1189_v50 }
  0x25   : > { %319 = vst.msk [vmem:[#allocation4 + $0x38] sm:$0xff] %vm311_vm0, %v1189_v50 }
  0x29   : > { %408 = vmatpush.bf16.xpose.msra.mxu0 %v390_v13  ;;  %1080 = vmatpush.bf16.xpose.msra.mxu2 %v390_v13 }
  0x30   : > { %1020 = vmatmul.msk.bf16.vlgmr.msra.gmra.mxu0 %vm311_vm0, %v344_v18  ;;  %1022 = vmatmul.msk.bf16.vlgmr.msra.gmra.mxu2 %vm311_vm0, %v346_v19 }
  0x40   : > { %1021 = vmatmul.msk.bf16.gmra.mxu0 %vm311_vm0, %v345_v30  ;;  %1023 = vmatmul.msk.bf16.gmra.mxu2 %vm311_vm0, %v347_v31 }
  0xad   : > { %v1246_v32 = vpop.f32.mrf.mxu0 }
  0xae   : > { %v439_v33 = vsel %vm438_vm1, %v1246_v32, -inf }
  0xaf   : > { %440 = vmax.xlane.f32.xlu0 %v439_v33 }
  0xb3   : > { %v1255_v35 = vpop.f32.mrf.mxu2 }
  0xb4   : > { %v451_v36 = vsel %vm438_vm1, %v1255_v35, -inf }
  0xb5   : > { %452 = vmax.xlane.f32.xlu1 %v451_v36  ;;  %v1261_v37 = vpop.f32.mrf.mxu0 }
  0xb6   : > { %v442_v39 = vsel %vm438_vm1, %v1261_v37, -inf }
  0xbb   : > { %v1264_v38 = vpop.f32.mrf.mxu2 }
  0xbc   : > { %v454_v44 = vsel %vm438_vm1, %v1264_v38, -inf }
  0xbd   : > { %443 = vmax.xlane.f32.xlu1 %v442_v39  ;;  %v1268_v40 = vpop.f32.mrf.mxu0  ;;  %v1056_v39 = vld [vmem:[%s277_s25 + $0x10] sm:$0xff] }
  0xbe   : > { %v445_v41 = vsel %vm438_vm1, %v1268_v40, -inf  ;;  %1082 = vmatpush.bf16.msra.mxu3 %v1056_v39  ;;  %725 = vmatpush.bf16.msra.mxu1 %v1056_v39 }
  0xbf   : > { %446 = vmax.xlane.f32.xlu0 %v445_v41  ;;  %v1055_v41 = vld [vmem:[%s277_s25 + $0x8] sm:$0xff] }
  0xc2   : > { %1083 = vmatpush.bf16.msra.mxu3 %v1055_v41  ;;  %726 = vmatpush.bf16.msra.mxu1 %v1055_v41 }
  0xc3   : > { %v1272_v42 = vpop.f32.mrf.mxu2 }
  0xc4   : > { %v457_v43 = vsel %vm438_vm1, %v1272_v42, -inf }
  0xc5   : > { %458 = vmax.xlane.f32.xlu2 %v457_v43  ;;  %455 = vmax.xlane.f32.xlu1 %v454_v44  ;;  %v1278_v45 = vpop.f32.mrf.mxu0 }
  0xc6   : > { %v448_v46 = vsel %vm438_vm1, %v1278_v45, -inf }
  0xc7   : > { %449 = vmax.xlane.f32.xlu0 %v448_v46  ;;  %v1054_v46 = vld [vmem:[%s277_s25] sm:$0xff] }
  0xc8   : > { %1084 = vmatpush.bf16.msra.mxu3 %v1054_v46  ;;  %727 = vmatpush.bf16.msra.mxu1 %v1054_v46  ;;  %v559_v46 = vld [vmem:[#allocation3] sm:$0xff] }
  0xcb   : > { %v1282_v47 = vpop.f32.mrf.mxu2 }
  0xcc   : > { %v460_v48 = vsel %vm438_vm1, %v1282_v47, -inf }
  0xcd   : > { %461 = vmax.xlane.f32.xlu2 %v460_v48 }
 0x122   : > { %v441_v52 = vpop.xlane.xlu0 %440 }
 0x123   : > { %v463_v53 = vmax.f32 %v430_v51, %v441_v52 }
 0x125   : > { %765 = vst.msk [vmem:[#allocation2] sm:$0xff] %vm294_vm2, %v463_v53  ;;  %v471_v17 = vsub.f32 %v430_v51, %v463_v53 }
 0x127   : > { %v479_v19 = vmul.f32 1.442695, %v471_v17 }
 0x128   : > { %v453_v55 = vpop.xlane.xlu1 %452 }
 0x129   : > { %v467_v56 = vmax.f32 %v434_v54, %v453_v55 }
 0x12b   : > { %769 = vst.msk [vmem:[#allocation2 + $0x20] sm:$0xff] %vm294_vm2, %v467_v56  ;;  %517 = vperm.xlu1 %1114, %v467_v56   ;;  %v475_v10 = vsub.f32 %v434_v54, %v467_v56 }
 0x12d   : > { %v487_v15 = vmul.f32 1.442695, %v475_v10 }
 0x130   : > { %v444_v58 = vpop.xlane.xlu1 %443 }
 0x131   : > { %v464_v60 = vmax.f32 %v431_v57, %v444_v58 }
 0x132   : > { %v447_v61 = vpop.xlane.xlu0 %446 }
 0x133   : > { %766 = vst.msk [vmem:[#allocation2 + $0x8] sm:$0xff] %vm294_vm2, %v464_v60  ;;  %v465_v62 = vmax.f32 %v432_v59, %v447_v61  ;;  %v472_v18 = vsub.f32 %v431_v57, %v464_v60 }
 0x135   : > { %v473_v63 = vsub.f32 %v432_v59, %v465_v62  ;;  %767 = vst.msk [vmem:[#allocation2 + $0x10] sm:$0xff] %vm294_vm2, %v465_v62  ;;  %507 = vperm.xlu2 %1112, %v465_v62   ;;  %v481_v20 = vmul.f32 1.442695, %v472_v18 }
 0x137   : > { %v483_v2 = vmul.f32 1.442695, %v473_v63 }
 0x138   : > { %v459_v3 = vpop.xlane.xlu2 %458  ;;  %v456_v4 = vpop.xlane.xlu1 %455 }
 0x139   : > { %v469_v6 = vmax.f32 %v436_v0, %v459_v3  ;;  %v468_v7 = vmax.f32 %v435_v1, %v456_v4  ;;  %1115 = vpow2.f32 %v483_v2 }
 0x13a   : > { %v450_v8 = vpop.xlane.xlu0 %449  ;;  %1117 = vpow2.f32 %v487_v15 }
 0x13b   : > { %771 = vst.msk [vmem:[#allocation2 + $0x30] sm:$0xff] %vm294_vm2, %v469_v6  ;;  %v466_v9 = vmax.f32 %v433_v5, %v450_v8  ;;  %1119 = vpow2.f32 %v479_v19  ;;  %v477_v22 = vsub.f32 %v436_v0, %v469_v6  ;;  %v476_v23 = vsub.f32 %v435_v1, %v468_v7 }
 0x13c   : > { %770 = vst.msk [vmem:[#allocation2 + $0x28] sm:$0xff] %vm294_vm2, %v468_v7  ;;  %1121 = vpow2.f32 %v481_v20 }
 0x13d   : > { %768 = vst.msk [vmem:[#allocation2 + $0x18] sm:$0xff] %vm294_vm2, %v466_v9  ;;  %522 = vperm.xlu2 %1112, %v468_v7   ;;  %512 = vperm.xlu0 %1113, %v466_v9   ;;  %v491_v24 = vmul.f32 1.442695, %v477_v22  ;;  %v489_v26 = vmul.f32 1.442695, %v476_v23  ;;  %v474_v28 = vsub.f32 %v433_v5, %v466_v9 }
 0x13f   : > { %v1314_v14 = vpop.eup %1115  ;;  %1123 = vpow2.f32 %v491_v24  ;;  %v485_v29 = vmul.f32 1.442695, %v474_v28 }
 0x140   : > { %v462_v12 = vpop.xlane.xlu2 %461  ;;  %v1322_v21 = vpop.eup %1117  ;;  %1125 = vpow2.f32 %v489_v26 }
 0x141   : > { %v1312_v13 = vmax.f32 %v1309_v11, %v462_v12  ;;  %v1325_v25 = vpop.eup %1119  ;;  %1127 = vpow2.f32 %v485_v29 }
 0x142   : > { %v1328_v27 = vpop.eup %1121 }
 0x143   : > { %v478_v16 = vsub.f32 %v1309_v11, %v1312_v13  ;;  %772 = vst.msk [vmem:[#allocation2 + $0x38] sm:$0xff] %vm294_vm2, %v1312_v13  ;;  %532 = vperm.xlu1 %1114, %v1312_v13   ;;  %v564_v13 = vld [vmem:[#allocation3 + $0x28] sm:$0xff] }
 0x145   : > { %527 = vperm.xlu2 %1112, %v469_v6   ;;  %636 = vperm.xlu0 %1113, %v1314_v14   ;;  %v1331_v30 = vpop.eup %1123 }
 0x146   : > { %v1334_v31 = vpop.eup %1125 }
 0x147   : > { %v1337_v33 = vpop.eup %1127  ;;  %v572_v28 = vmul.f32 %v1334_v31, %v564_v13 }
 0x14b   : > { %502 = vperm.xlu1 %1114, %v464_v60  }
 0x14d   : > { %497 = vperm.xlu2 %1112, %v463_v53   ;;  %646 = vperm.xlu0 %1113, %v1322_v21  }
 0x153   : > { %626 = vperm.xlu1 %1114, %v1325_v25  }
 0x155   : > { %631 = vperm.xlu2 %1112, %v1328_v27  }
 0x15b   : > { %656 = vperm.xlu1 %1114, %v1331_v30  }
 0x15d   : > { %651 = vperm.xlu2 %1112, %v1334_v31  }
 0x163   : > { %641 = vperm.xlu1 %1114, %v1337_v33  }
 0x18f   : > { %v508_v36 = vpop.permute.xlu2 %507 }
 0x190   : > { %v537_v48 = vsub.f32 %v1268_v40, %v508_v36  ;;  %v561_v36 = vld [vmem:[#allocation3 + $0x10] sm:$0xff] }
 0x191   : > { %v569_v39 = vmul.f32 %v1314_v14, %v561_v36  ;;  %v621_v36 = vld [vmem:[#allocation4 + $0x28] sm:$0xff] }
 0x192   : > { %v547_v50 = vmul.f32 1.442695, %v537_v48  ;;  %v567_v48 = vmul.f32 %v1325_v25, %v559_v46  ;;  %v566_v25 = vld [vmem:[#allocation3 + $0x38] sm:$0xff]  ;;  %v622_v46 = vld [vmem:[#allocation4 + $0x30] sm:$0xff] }
 0x197   : > { %v523_v43 = vpop.permute.xlu2 %522 }
 0x198   : > { %v540_v44 = vsub.f32 %v1264_v38, %v523_v43 }
 0x19a   : > { %v553_v49 = vmul.f32 1.442695, %v540_v44 }
 0x19c   : > { %1129 = vpow2.f32 %v553_v49 }
 0x19d   : > { %1131 = vpow2.f32 %v547_v50  ;;  %v518_v54 = vpop.permute.xlu1 %517 }
 0x19e   : > { %v539_v38 = vsub.f32 %v1255_v35, %v518_v54 }
 0x19f   : > { %v528_v51 = vpop.permute.xlu2 %527 }
 0x1a0   : > { %v551_v59 = vmul.f32 1.442695, %v539_v38  ;;  %v541_v8 = vsub.f32 %v1272_v42, %v528_v51 }
 0x1a2   : > { %v1130_v52 = vpop.eup %1129  ;;  %v555_v10 = vmul.f32 1.442695, %v541_v8 }
 0x1a3   : > { %v590_v53 = vsel %vm438_vm1, %v1130_v52, 0.0  ;;  %v1132_v56 = vpop.eup %1131 }
 0x1a4   : > { %591 = vadd.xlane.f32.xlu1 %v590_v53  ;;  %v581_v40 = vsel %vm438_vm1, %v1132_v56, 0.0 }
 0x1a7   : > { %v498_v55 = vpop.permute.xlu2 %497 }
 0x1a8   : > { %v535_v57 = vsub.f32 %v1246_v32, %v498_v55 }
 0x1aa   : > { %v543_v58 = vmul.f32 1.442695, %v535_v57 }
 0x1ac   : > { %1133 = vpow2.f32 %v543_v58  ;;  %582 = vadd.xlane.f32.xlu1 %v581_v40 }
 0x1ad   : > { %1135 = vpow2.f32 %v551_v59 }
 0x1af   : > { %v513_v60 = vpop.permute.xlu0 %512  ;;  %v632_v31 = vpop.permute.xlu2 %631 }
 0x1b0   : > { %v538_v61 = vsub.f32 %v1278_v45, %v513_v60 }
 0x1b2   : > { %v1134_v62 = vpop.eup %1133  ;;  %v549_v63 = vmul.f32 1.442695, %v538_v61 }
 0x1b3   : > { %v575_v0 = vsel %vm438_vm1, %v1134_v62, 0.0  ;;  %v1136_v35 = vpop.eup %1135 }
 0x1b4   : > { %1137 = vpow2.f32 %v549_v63  ;;  %576 = vadd.xlane.f32.xlu0 %v575_v0  ;;  %v587_v4 = vsel %vm438_vm1, %v1136_v35, 0.0  ;;  %v674_v18 = vpack.c.bf16 %v1130_v52, %v1136_v35  ;;  %v563_v52 = vld [vmem:[#allocation3 + $0x20] sm:$0xff]  ;;  %v618_v63 = vld [vmem:[#allocation4 + $0x10] sm:$0xff] }
 0x1b5   : > { %v533_v1 = vpop.permute.xlu1 %532  ;;  %v571_v53 = vmul.f32 %v1322_v21, %v563_v52  ;;  %v560_v21 = vld [vmem:[#allocation3 + $0x8] sm:$0xff]  ;;  %v623_v52 = vld [vmem:[#allocation4 + $0x38] sm:$0xff] }
 0x1b6   : > { %v542_v32 = vsub.f32 %v1282_v47, %v533_v1  ;;  %v568_v0 = vmul.f32 %v1328_v27, %v560_v21 }
 0x1b7   : > { %v652_v38 = vpop.permute.xlu2 %651 }
 0x1b8   : > { %v557_v2 = vmul.f32 1.442695, %v542_v32 }
 0x1ba   : > { %v1138_v3 = vpop.eup %1137  ;;  %1139 = vpow2.f32 %v557_v2 }
 0x1bb   : > { %v673_v5 = vpack.c.bf16 %v1138_v3, %v1132_v56  ;;  %v584_v22 = vsel %vm438_vm1, %v1138_v3, 0.0 }
 0x1bc   : > { %588 = vadd.xlane.f32.xlu0 %v587_v4 }
 0x1bd   : > { %v503_v6 = vpop.permute.xlu1 %502  ;;  %1041 = vmatmul.msk.bf16.vlgmr.msra.gmra.mxu3 %vm438_vm1, %v673_v5  ;;  %v565_v5 = vld [vmem:[#allocation3 + $0x30] sm:$0xff] }
 0x1be   : > { %v536_v45 = vsub.f32 %v1261_v37, %v503_v6  ;;  %v493_v37 = vmul.f32 1.442695, %v478_v16  ;;  %v637_v16 = vpop.permute.xlu0 %636  ;;  %v616_v6 = vld [vmem:[#allocation4] sm:$0xff] }
 0x1bf   : > { %v666_v35 = vmul.f32 %v637_v16, %v618_v63 }
 0x1c0   : > { %v1140_v7 = vpop.eup %1139  ;;  %v545_v9 = vmul.f32 1.442695, %v536_v45  ;;  %v619_v45 = vld [vmem:[#allocation4 + $0x18] sm:$0xff] }
 0x1c1   : > { %v596_v47 = vsel %vm438_vm1, %v1140_v7, 0.0 }
 0x1c2   : > { %1141 = vpow2.f32 %v545_v9 }
 0x1c3   : > { %1143 = vpow2.f32 %v555_v10 }
 0x1c4   : > { %597 = vadd.xlane.f32.xlu0 %v596_v47  ;;  %1145 = vpow2.f32 %v493_v37  ;;  %v562_v37 = vld [vmem:[#allocation3 + $0x18] sm:$0xff] }
 0x1c5   : > { %v1367_v24 = vpop.permute.xlu1 %626 }
 0x1c6   : > { %v1376_v41 = vpop.permute.xlu0 %646  ;;  %v664_v27 = vmul.f32 %v1367_v24, %v616_v6 }
 0x1c8   : > { %v1142_v12 = vpop.eup %1141 }
 0x1c9   : > { %v578_v15 = vsel %vm438_vm1, %v1142_v12, 0.0  ;;  %v672_v17 = vpack.c.bf16 %v1142_v12, %v1134_v62  ;;  %v1144_v42 = vpop.eup %1143 }
 0x1ca   : > { %579 = vadd.xlane.f32.xlu2 %v578_v15  ;;  %v593_v19 = vsel %vm438_vm1, %v1144_v42, 0.0  ;;  %v1146_v20 = vpop.eup %1145  ;;  %v675_v23 = vpack.c.bf16 %v1140_v7, %v1144_v42  ;;  %v573_v7 = vmul.f32 %v1331_v30, %v565_v5  ;;  %v617_v42 = vld [vmem:[#allocation4 + $0x8] sm:$0xff]  ;;  %v570_v30 = vmul.f32 %v1337_v33, %v562_v37 }
 0x1cb   : > { %1040 = vmatmul.msk.bf16.vlgmr.msra.gmra.mxu1 %vm438_vm1, %v672_v17  ;;  %v574_v58 = vmul.f32 %v1146_v20, %v566_v25 }
 0x1cd   : > { %1042 = vmatmul.msk.bf16.gmra.mxu3 %vm438_vm1, %v674_v18  ;;  %v1369_v26 = vpop.permute.xlu1 %656 }
 0x1d2   : > { %594 = vadd.xlane.f32.xlu2 %v593_v19  ;;  %v620_v19 = vld [vmem:[#allocation4 + $0x20] sm:$0xff] }
 0x1d3   : > { %v668_v13 = vmul.f32 %v1376_v41, %v620_v19 }
 0x1d5   : > { %v1371_v11 = vpop.permute.xlu1 %641 }
 0x1d6   : > { %v667_v47 = vmul.f32 %v1371_v11, %v619_v45  ;;  %v665_v11 = vmul.f32 %v632_v31, %v617_v42 }
 0x1d8   : > { %661 = vperm.xlu0 %1113, %v1146_v20  }
 0x1da   : > { %585 = vadd.xlane.f32.xlu2 %v584_v22 }
 0x1dd   : > { %1043 = vmatmul.msk.bf16.gmra.mxu3 %vm438_vm1, %v675_v23 }
 0x217   : > { %v592_v29 = vpop.xlane.xlu1 %591 }
 0x218   : > { %v604_v34 = vadd.f32 %v592_v29, %v572_v28 }
 0x21a   : > { %613 = vst.msk [vmem:[#allocation3 + $0x28] sm:$0xff] %vm294_vm2, %v604_v34 }
 0x21f   : > { %v583_v43 = vpop.xlane.xlu1 %582 }
 0x220   : > { %v601_v44 = vadd.f32 %v583_v43, %v569_v39  ;;  %v669_v39 = vmul.f32 %v652_v38, %v621_v36 }
 0x221   : > { %v781_v14 = vld [vmem:[#allocation3 + $0x28] sm:$0xff] }
 0x222   : > { %610 = vst.msk [vmem:[#allocation3 + $0x10] sm:$0xff] %vm294_vm2, %v601_v44 }
 0x227   : > { %v577_v49 = vpop.xlane.xlu0 %576 }
 0x228   : > { %v599_v50 = vadd.f32 %v577_v49, %v567_v48 }
 0x229   : > { %v778_v51 = vld [vmem:[#allocation3 + $0x10] sm:$0xff] }
 0x22a   : > { %608 = vst.msk [vmem:[#allocation3] sm:$0xff] %vm294_vm2, %v599_v50  ;;  %1147 = vrcp.f32 %v778_v51  ;;  %v670_v50 = vmul.f32 %v1369_v26, %v622_v46 }
 0x22b   : > { %1149 = vrcp.f32 %v781_v14 }
 0x22f   : > { %v589_v54 = vpop.xlane.xlu0 %588 }
 0x230   : > { %v1148_v55 = vpop.eup %1147  ;;  %v603_v56 = vadd.f32 %v589_v54, %v571_v53 }
 0x231   : > { %812 = vperm.xlu0 %1113, %v1148_v55   ;;  %v776_v57 = vld [vmem:[#allocation3] sm:$0xff]  ;;  %v1150_v40 = vpop.eup %1149 }
 0x232   : > { %612 = vst.msk [vmem:[#allocation3 + $0x20] sm:$0xff] %vm294_vm2, %v603_v56  ;;  %1151 = vrcp.f32 %v776_v57 }
 0x237   : > { %v598_v59 = vpop.xlane.xlu0 %597 }
 0x238   : > { %v1152_v60 = vpop.eup %1151  ;;  %v606_v61 = vadd.f32 %v598_v59, %v574_v58 }
 0x239   : > { %802 = vperm.xlu2 %1112, %v1152_v60   ;;  %827 = vperm.xlu0 %1113, %v1150_v40   ;;  %v780_v62 = vld [vmem:[#allocation3 + $0x20] sm:$0xff] }
 0x23a   : > { %615 = vst.msk [vmem:[#allocation3 + $0x38] sm:$0xff] %vm294_vm2, %v606_v61  ;;  %1153 = vrcp.f32 %v780_v62 }
 0x23d   : > { %v580_v1 = vpop.xlane.xlu2 %579 }
 0x23e   : > { %v600_v32 = vadd.f32 %v580_v1, %v568_v0 }
 0x240   : > { %v1154_v2 = vpop.eup %1153  ;;  %609 = vst.msk [vmem:[#allocation3 + $0x8] sm:$0xff] %vm294_vm2, %v600_v32  ;;  %v734_v3 = vpop.f32.mrf.mxu3 }
 0x241   : > { %v751_v4 = vadd.f32 %v734_v3, %v666_v35  ;;  %822 = vperm.xlu1 %1114, %v1154_v2   ;;  %v783_v22 = vld [vmem:[#allocation3 + $0x38] sm:$0xff] }
 0x243   : > { %759 = vst.msk [vmem:[#allocation4 + $0x10] sm:$0xff] %vm311_vm0, %v751_v4 }
 0x245   : > { %v595_v8 = vpop.xlane.xlu2 %594 }
 0x246   : > { %v605_v9 = vadd.f32 %v595_v8, %v573_v7 }
 0x247   : > { %v777_v10 = vld [vmem:[#allocation3 + $0x8] sm:$0xff] }
 0x248   : > { %614 = vst.msk [vmem:[#allocation3 + $0x30] sm:$0xff] %vm294_vm2, %v605_v9  ;;  %v729_v12 = vpop.f32.mrf.mxu1  ;;  %v736_v15 = vpop.f32.mrf.mxu3  ;;  %1155 = vrcp.f32 %v777_v10 }
 0x249   : > { %v749_v17 = vadd.f32 %v729_v12, %v664_v27  ;;  %v752_v18 = vadd.f32 %v736_v15, %v667_v47  ;;  %1157 = vrcp.f32 %v783_v22 }
 0x24a   : > { %v662_v53 = vpop.permute.xlu0 %661  ;;  %v794_v58 = vld [vmem:[#allocation4 + $0x10] sm:$0xff] }
 0x24b   : > { %757 = vst.msk [vmem:[#allocation4] sm:$0xff] %vm311_vm0, %v749_v17  ;;  %v671_v54 = vmul.f32 %v662_v53, %v623_v52 }
 0x24c   : > { %760 = vst.msk [vmem:[#allocation4 + $0x18] sm:$0xff] %vm311_vm0, %v752_v18 }
 0x24d   : > { %v586_v20 = vpop.xlane.xlu2 %585 }
 0x24e   : > { %v1156_v23 = vpop.eup %1155  ;;  %v602_v24 = vadd.f32 %v586_v20, %v570_v30 }
 0x24f   : > { %807 = vperm.xlu1 %1114, %v1156_v23   ;;  %v1158_v33 = vpop.eup %1157  ;;  %v782_v48 = vld [vmem:[#allocation3 + $0x30] sm:$0xff] }
 0x250   : > { %611 = vst.msk [vmem:[#allocation3 + $0x18] sm:$0xff] %vm294_vm2, %v602_v24  ;;  %v731_v16 = vpop.f32.mrf.mxu1  ;;  %v739_v28 = vpop.f32.mrf.mxu3 }
 0x251   : > { %v750_v29 = vadd.f32 %v731_v16, %v665_v11  ;;  %v753_v34 = vadd.f32 %v739_v28, %v668_v13 }
 0x252   : > { %v792_v57 = vld [vmem:[#allocation4] sm:$0xff] }
 0x253   : > { %758 = vst.msk [vmem:[#allocation4 + $0x8] sm:$0xff] %vm311_vm0, %v750_v29  ;;  %v795_v2 = vld [vmem:[#allocation4 + $0x18] sm:$0xff] }
 0x254   : > { %761 = vst.msk [vmem:[#allocation4 + $0x20] sm:$0xff] %vm311_vm0, %v753_v34 }
 0x257   : > { %837 = vperm.xlu1 %1114, %v1158_v33   ;;  %v779_v43 = vld [vmem:[#allocation3 + $0x18] sm:$0xff] }
 0x258   : > { %v741_v44 = vpop.f32.mrf.mxu3  ;;  %1159 = vrcp.f32 %v779_v43 }
 0x259   : > { %v754_v41 = vadd.f32 %v741_v44, %v669_v39  ;;  %1161 = vrcp.f32 %v782_v48 }
 0x25a   : > { %v793_v6 = vld [vmem:[#allocation4 + $0x8] sm:$0xff] }
 0x25b   : > { %762 = vst.msk [vmem:[#allocation4 + $0x28] sm:$0xff] %vm311_vm0, %v754_v41  ;;  %v796_v0 = vld [vmem:[#allocation4 + $0x20] sm:$0xff] }
 0x25e   : > { %v1160_v49 = vpop.eup %1159 }
 0x25f   : > { %817 = vperm.xlu2 %1112, %v1160_v49   ;;  %v1162_v14 = vpop.eup %1161 }
 0x260   : > { %v744_v51 = vpop.f32.mrf.mxu3 }
 0x261   : > { %v755_v31 = vadd.f32 %v744_v51, %v670_v50 }
 0x262   : > { %v797_v61 = vld [vmem:[#allocation4 + $0x28] sm:$0xff] }
 0x263   : > { %763 = vst.msk [vmem:[#allocation4 + $0x30] sm:$0xff] %vm311_vm0, %v755_v31 }
 0x267   : > { %832 = vperm.xlu2 %1112, %v1162_v14  }
 0x268   : > { %v746_v55 = vpop.f32.mrf.mxu3 }
 0x269   : > { %v756_v56 = vadd.f32 %v746_v55, %v671_v54 }
 0x26a   : > { %v798_v7 = vld [vmem:[#allocation4 + $0x30] sm:$0xff] }
 0x26b   : > { %764 = vst.msk [vmem:[#allocation4 + $0x38] sm:$0xff] %vm311_vm0, %v756_v56 }
 0x272   : > { %v799_v12 = vld [vmem:[#allocation4 + $0x38] sm:$0xff] }
 0x293   : > { %v803_v25 = vpop.permute.xlu2 %802 }
 0x294   : > { %v840_v38 = vmul.f32 %v803_v25, %v792_v57 }
 0x296   : > { %v848_v26 = vpack.c.bf16 %v840_v38, %v840_v38 }
 0x298   : > { %857 = vst.msk [vmem:[%s1406_s28] sm:$0xf] %vm856_vm3, %v848_v26 }
 0x2a3   : > { %v813_v40 = vpop.permute.xlu0 %812 }
 0x2a4   : > { %v842_v59 = vmul.f32 %v813_v40, %v794_v58 }
 0x2a6   : > { %v850_v60 = vpack.c.bf16 %v842_v59, %v842_v59 }
 0x2a8   : > { %859 = vst.msk [vmem:[%s1406_s28 + $0x8] sm:$0xf] %vm856_vm3, %v850_v60 }
 0x2ab   : > { %v828_v21 = vpop.permute.xlu0 %827 }
 0x2ac   : > { %v845_v62 = vmul.f32 %v828_v21, %v797_v61 }
 0x2ae   : > { %v853_v63 = vpack.c.bf16 %v845_v62, %v845_v62 }
 0x2b0   : > { %862 = vst.msk [vmem:[%s1406_s28 + $0x14] sm:$0xf] %vm856_vm3, %v853_v63 }
 0x2b3   : > { %v823_v1 = vpop.permute.xlu1 %822 }
 0x2b4   : > { %v844_v32 = vmul.f32 %v823_v1, %v796_v0 }
 0x2b6   : > { %v852_v35 = vpack.c.bf16 %v844_v32, %v844_v32 }
 0x2b8   : > { %861 = vst.msk [vmem:[%s1406_s28 + $0x10] sm:$0xf] %vm856_vm3, %v852_v35 }
 0x2b9   : > { %v818_v3 = vpop.permute.xlu2 %817 }
 0x2ba   : > { %v843_v4 = vmul.f32 %v818_v3, %v795_v2 }
 0x2bc   : > { %v851_v5 = vpack.c.bf16 %v843_v4, %v843_v4 }
 0x2be   : > { %860 = vst.msk [vmem:[%s1406_s28 + $0xc] sm:$0xf] %vm856_vm3, %v851_v5 }
 0x2c1   : > { %v808_v45 = vpop.permute.xlu1 %807  ;;  %v833_v8 = vpop.permute.xlu2 %832 }
 0x2c2   : > { %v841_v9 = vmul.f32 %v808_v45, %v793_v6  ;;  %v846_v27 = vmul.f32 %v833_v8, %v798_v7 }
 0x2c4   : > { %v849_v47 = vpack.c.bf16 %v841_v9, %v841_v9  ;;  %v854_v10 = vpack.c.bf16 %v846_v27, %v846_v27 }
 0x2c6   : > { %858 = vst.msk [vmem:[%s1406_s28 + $0x4] sm:$0xf] %vm856_vm3, %v849_v47 }
 0x2c7   : > { %863 = vst.msk [vmem:[%s1406_s28 + $0x18] sm:$0xf] %vm856_vm3, %v854_v10 }
 0x2c9   : > { %v838_v15 = vpop.permute.xlu1 %837 }
 0x2ca   : > { %v847_v17 = vmul.f32 %v838_v15, %v799_v12 }
 0x2cc   : > { %v855_v18 = vpack.c.bf16 %v847_v17, %v847_v17 }
 0x2ce   : > { %864 = vst.msk [vmem:[%s1406_s28 + $0x1c] sm:$0xf] %vm856_vm3, %v855_v18 }
 0x2cf PF: > { %s13_s14 = sadd.s32 1, %s1185_s14   ;;  %s1437_s12 = smov %s1181_s13 }
 0x2d0   : > { %p10_p5 = scmp.ge.s32.totalorder %s13_s14, 6   ;;  %s1438_s13 = smov %s1440_s15 }
 0x2d2   :  { %12 = sbr.rel (!%p10_p5) target bundleno = 2 (0x2), region = 76 }

// kernel: vit_classifier_forward.29
= control target key start
LH: loop header
LB: loop body
LE: loop exit
PB: predicated region body
PF: predicated region fallthrough
CT: control target
= control target key end

     0   :  { %s718_s1 = inlined_call_operand.vmem [shape: bf16[128,128], index: 1, kind: input, shape index: {}]   ;;  %s719_s2 = inlined_call_operand.vmem [shape: f32[1,128], index: 2, kind: input, shape index: {}]   ;;  %s720_s0 = inlined_call_operand.vmem [shape: bf16[128,128], index: 0, kind: input, shape index: {}]   ;;  %s721_s3 = inlined_call_operand.vmem [shape: bf16[128,128], index: 3, kind: input, shape index: {}]   ;;  %s722_s4 = inlined_call_operand.vmem [shape: bf16[128,128], index: 4, kind: output, shape index: {}]  }
   0x1   :  { %v464_v0 = vld [vmem:[%s718_s1 + $0x38] sm:$0xff]  ;;  %v463_v1 = vld [vmem:[%s718_s1 + $0x30] sm:$0xff]  ;;  %v462_v2 = vld [vmem:[%s718_s1 + $0x28] sm:$0xff] }
   0x2   :  { %181 = vmatpush.bf16.msra.mxu0 %v464_v0  ;;  %551 = vmatpush.bf16.msra.mxu1 %v464_v0  ;;  %v461_v3 = vld [vmem:[%s718_s1 + $0x20] sm:$0xff]  ;;  %v460_v4 = vld [vmem:[%s718_s1 + $0x18] sm:$0xff]  ;;  %v459_v5 = vld [vmem:[%s718_s1 + $0x10] sm:$0xff] }
   0x3   :  { %552 = vmatpush.bf16.msra.mxu2 %v464_v0  ;;  %553 = vmatpush.bf16.msra.mxu3 %v464_v0  ;;  %v458_v6 = vld [vmem:[%s718_s1 + $0x8] sm:$0xff]  ;;  %v457_v7 = vld [vmem:[%s718_s1] sm:$0xff]  ;;  %v451_v9 = vld [vmem:[%s720_s0 + $0x10] sm:$0xff] }
   0x4   :  { %v449_v8 = vld [vmem:[%s720_s0] sm:$0xff]  ;;  %v455_v11 = vld [vmem:[%s720_s0 + $0x30] sm:$0xff]  ;;  %v450_v12 = vld [vmem:[%s720_s0 + $0x8] sm:$0xff] }
   0x5   :  { %v453_v10 = vld [vmem:[%s720_s0 + $0x20] sm:$0xff]  ;;  %v452_v13 = vld [vmem:[%s720_s0 + $0x18] sm:$0xff]  ;;  %v454_v14 = vld [vmem:[%s720_s0 + $0x28] sm:$0xff] }
   0x6   :  { %182 = vmatpush.bf16.msra.mxu0 %v463_v1  ;;  %554 = vmatpush.bf16.msra.mxu1 %v463_v1  ;;  %v456_v15 = vld [vmem:[%s720_s0 + $0x38] sm:$0xff]  ;;  %v652_v18 = vld [vmem:[%s719_s2] ss:$0 sm:$0xff]  ;;  %v538_v20 = vld [vmem:[%s721_s3 + $0x10] sm:$0xff]  }
   0x7   :  { %555 = vmatpush.bf16.msra.mxu2 %v463_v1  ;;  %556 = vmatpush.bf16.msra.mxu3 %v463_v1  ;;  %v466_v19 = vld [vmem:[%s721_s3] sm:$0xff]   ;;  %v475_v22 = vunpack.c.l.bf16 %v538_v20  ;;  %v476_v28 = vunpack.c.h.bf16 %v538_v20  ;;  %v542_v34 = vld [vmem:[%s721_s3 + $0x30] sm:$0xff]   ;;  %v537_v57 = vld [vmem:[%s721_s3 + $0x8] sm:$0xff]  }
   0x8   :  { %v467_v21 = vunpack.c.l.bf16 %v466_v19  ;;  %v468_v27 = vunpack.c.h.bf16 %v466_v19  ;;  %v540_v33 = vld [vmem:[%s721_s3 + $0x20] sm:$0xff]   ;;  %v491_v40 = vunpack.c.l.bf16 %v542_v34  ;;  %v492_v46 = vunpack.c.h.bf16 %v542_v34  ;;  %v539_v58 = vld [vmem:[%s721_s3 + $0x18] sm:$0xff]  }
   0x9   :  { %v483_v39 = vunpack.c.l.bf16 %v540_v33  ;;  %v484_v45 = vunpack.c.h.bf16 %v540_v33  ;;  %v471_v61 = vunpack.c.l.bf16 %v537_v57  ;;  %v479_v62 = vunpack.c.l.bf16 %v539_v58 }
   0xa   :  { %183 = vmatpush.bf16.msra.mxu0 %v462_v2  ;;  %557 = vmatpush.bf16.msra.mxu1 %v462_v2 }
   0xb   :  { %558 = vmatpush.bf16.msra.mxu2 %v462_v2  ;;  %559 = vmatpush.bf16.msra.mxu3 %v462_v2 }
   0xe   :  { %184 = vmatpush.bf16.msra.mxu0 %v461_v3  ;;  %560 = vmatpush.bf16.msra.mxu1 %v461_v3 }
   0xf   :  { %561 = vmatpush.bf16.msra.mxu2 %v461_v3  ;;  %562 = vmatpush.bf16.msra.mxu3 %v461_v3  ;;  %v472_v3 = vunpack.c.h.bf16 %v537_v57 }
  0x12   :  { %185 = vmatpush.bf16.msra.mxu0 %v460_v4  ;;  %563 = vmatpush.bf16.msra.mxu1 %v460_v4 }
  0x13   :  { %564 = vmatpush.bf16.msra.mxu2 %v460_v4  ;;  %565 = vmatpush.bf16.msra.mxu3 %v460_v4  ;;  %v480_v4 = vunpack.c.h.bf16 %v539_v58 }
  0x16   :  { %186 = vmatpush.bf16.msra.mxu0 %v459_v5  ;;  %566 = vmatpush.bf16.msra.mxu1 %v459_v5 }
  0x17   :  { %567 = vmatpush.bf16.msra.mxu2 %v459_v5  ;;  %568 = vmatpush.bf16.msra.mxu3 %v459_v5 }
  0x1a   :  { %187 = vmatpush.bf16.msra.mxu0 %v458_v6  ;;  %569 = vmatpush.bf16.msra.mxu1 %v458_v6 }
  0x1b   :  { %570 = vmatpush.bf16.msra.mxu2 %v458_v6  ;;  %571 = vmatpush.bf16.msra.mxu3 %v458_v6 }
  0x1e   :  { %188 = vmatpush.bf16.msra.mxu0 %v457_v7  ;;  %572 = vmatpush.bf16.msra.mxu1 %v457_v7 }
  0x1f   :  { %573 = vmatpush.bf16.msra.mxu2 %v457_v7  ;;  %574 = vmatpush.bf16.msra.mxu3 %v457_v7 }
  0x21   :  { %189 = vmatmul.bf16.vlgmr.msra.gmra.mxu0 %v449_v8  ;;  %199 = vmatmul.bf16.vlgmr.msra.gmra.mxu1 %v451_v9  ;;  %v541_v9 = vld [vmem:[%s721_s3 + $0x28] sm:$0xff]  }
  0x22   :  { %209 = vmatmul.bf16.vlgmr.msra.gmra.mxu2 %v453_v10  ;;  %219 = vmatmul.bf16.vlgmr.msra.gmra.mxu3 %v455_v11  ;;  %v543_v10 = vld [vmem:[%s721_s3 + $0x38] sm:$0xff]  }
  0x31   :  { %194 = vmatmul.bf16.gmra.mxu0 %v450_v12  ;;  %204 = vmatmul.bf16.gmra.mxu1 %v452_v13 }
  0x32   :  { %214 = vmatmul.bf16.gmra.mxu2 %v454_v14  ;;  %224 = vmatmul.bf16.gmra.mxu3 %v456_v15  ;;  %v487_v15 = vunpack.c.l.bf16 %v541_v9 }
  0x9e   :  { %v190_v16 = vpop.f32.mrf.mxu0  ;;  %v200_v17 = vpop.f32.mrf.mxu1 }
  0x9f   :  { %v285_v23 = vadd.f32 %v652_v18, %v190_v16  ;;  %v289_v24 = vadd.f32 %v652_v18, %v200_v17  ;;  %v495_v16 = vunpack.c.l.bf16 %v543_v10 }
  0xa1   :  { %v333_v35 = vadd.f32 %v467_v21, %v285_v23  ;;  %v337_v36 = vadd.f32 %v475_v22, %v289_v24  ;;  %v488_v22 = vunpack.c.h.bf16 %v541_v9  ;;  %v496_v23 = vunpack.c.h.bf16 %v543_v10 }
  0xa5   :  { %v210_v25 = vpop.f32.mrf.mxu2  ;;  %v220_v26 = vpop.f32.mrf.mxu3 }
  0xa6   :  { %v192_v29 = vpop.f32.mrf.mxu0  ;;  %v202_v30 = vpop.f32.mrf.mxu1  ;;  %v293_v43 = vadd.f32 %v652_v18, %v210_v25  ;;  %v297_v44 = vadd.f32 %v652_v18, %v220_v26 }
  0xa7   :  { %v286_v31 = vadd.f32 %v652_v18, %v192_v29  ;;  %v290_v32 = vadd.f32 %v652_v18, %v202_v30 }
  0xa8   :  { %v341_v53 = vadd.f32 %v483_v39, %v293_v43  ;;  %v345_v54 = vadd.f32 %v491_v40, %v297_v44 }
  0xa9   :  { %v334_v37 = vadd.f32 %v468_v27, %v286_v31  ;;  %v338_v38 = vadd.f32 %v476_v28, %v290_v32 }
  0xab   :  { %v500_v41 = vpack.c.bf16 %v334_v37, %v333_v35  ;;  %v510_v42 = vpack.c.bf16 %v338_v38, %v337_v36 }
  0xad   :  { %501 = vst [vmem:[%s722_s4] sm:$0xff] %v500_v41   ;;  %v212_v47 = vpop.f32.mrf.mxu2  ;;  %v222_v48 = vpop.f32.mrf.mxu3 }
  0xae   :  { %545 = vst [vmem:[%s722_s4 + $0x10] sm:$0xff] %v510_v42   ;;  %v294_v49 = vadd.f32 %v652_v18, %v212_v47  ;;  %v298_v50 = vadd.f32 %v652_v18, %v222_v48  ;;  %v195_v51 = vpop.f32.mrf.mxu0  ;;  %v205_v52 = vpop.f32.mrf.mxu1 }
  0xaf   :  { %v287_v63 = vadd.f32 %v652_v18, %v195_v51  ;;  %v291_v0 = vadd.f32 %v652_v18, %v205_v52 }
  0xb0   :  { %v342_v55 = vadd.f32 %v484_v45, %v294_v49  ;;  %v346_v56 = vadd.f32 %v492_v46, %v298_v50 }
  0xb1   :  { %v335_v11 = vadd.f32 %v471_v61, %v287_v63  ;;  %v339_v12 = vadd.f32 %v479_v62, %v291_v0 }
  0xb2   :  { %v520_v59 = vpack.c.bf16 %v342_v55, %v341_v53  ;;  %v530_v60 = vpack.c.bf16 %v346_v56, %v345_v54 }
  0xb4   :  { %547 = vst [vmem:[%s722_s4 + $0x20] sm:$0xff] %v520_v59  }
  0xb5   :  { %549 = vst [vmem:[%s722_s4 + $0x30] sm:$0xff] %v530_v60   ;;  %v215_v1 = vpop.f32.mrf.mxu2  ;;  %v225_v2 = vpop.f32.mrf.mxu3 }
  0xb6   :  { %v197_v5 = vpop.f32.mrf.mxu0  ;;  %v207_v6 = vpop.f32.mrf.mxu1  ;;  %v295_v20 = vadd.f32 %v652_v18, %v215_v1  ;;  %v299_v21 = vadd.f32 %v652_v18, %v225_v2 }
  0xb7   :  { %v288_v7 = vadd.f32 %v652_v18, %v197_v5  ;;  %v292_v8 = vadd.f32 %v652_v18, %v207_v6 }
  0xb8   :  { %v343_v28 = vadd.f32 %v487_v15, %v295_v20  ;;  %v347_v29 = vadd.f32 %v495_v16, %v299_v21 }
  0xb9   :  { %v336_v13 = vadd.f32 %v472_v3, %v288_v7  ;;  %v340_v14 = vadd.f32 %v480_v4, %v292_v8 }
  0xbb   :  { %v505_v17 = vpack.c.bf16 %v336_v13, %v335_v11  ;;  %v515_v19 = vpack.c.bf16 %v340_v14, %v339_v12 }
  0xbd   :  { %544 = vst [vmem:[%s722_s4 + $0x8] sm:$0xff] %v505_v17   ;;  %v217_v24 = vpop.f32.mrf.mxu2  ;;  %v227_v25 = vpop.f32.mrf.mxu3 }
  0xbe   :  { %546 = vst [vmem:[%s722_s4 + $0x18] sm:$0xff] %v515_v19   ;;  %v296_v26 = vadd.f32 %v652_v18, %v217_v24  ;;  %v300_v27 = vadd.f32 %v652_v18, %v227_v25 }
  0xc0   :  { %v344_v30 = vadd.f32 %v488_v22, %v296_v26  ;;  %v348_v31 = vadd.f32 %v496_v23, %v300_v27 }
  0xc2   :  { %v525_v32 = vpack.c.bf16 %v344_v30, %v343_v28  ;;  %v535_v33 = vpack.c.bf16 %v348_v31, %v347_v29 }
  0xc4   :  { %548 = vst [vmem:[%s722_s4 + $0x28] sm:$0xff] %v525_v32  }
  0xc5   :  { %550 = vst [vmem:[%s722_s4 + $0x38] sm:$0xff] %v535_v33  }

// kernel: vit_classifier_forward.30
= control target key start
LH: loop header
LB: loop body
LE: loop exit
PB: predicated region body
PF: predicated region fallthrough
CT: control target
= control target key end

     0   :  { %vm57_vm0 = vcmask 261120   ;;  %v1040_v40 = vmov 32.0   ;;  %vm473_vm6 = vcmask 257024   ;;  %s1738_s0 = inlined_call_operand.vmem [shape: bf16[128,32], index: 0, kind: input, shape index: {}]   ;;  %s1739_s1 = inlined_call_operand.vmem [shape: f32[1,32], index: 1, kind: input, shape index: {}]   ;;  %s1740_s2 = inlined_call_operand.vmem [shape: f32[1,32], index: 2, kind: input, shape index: {}]   ;;  %s1741_s4 = inlined_call_operand.vmem [shape: f32[1,128], index: 4, kind: input, shape index: {}]   ;;  %s1742_s3 = inlined_call_operand.vmem [shape: bf16[32,128], index: 3, kind: input, shape index: {}]   ;;  %s1743_s5 = inlined_call_operand.vmem [shape: bf16[128,128], index: 5, kind: output, shape index: {}]  }
   0x1   :  { %v1074_v0 = vld [vmem:[%s1738_s0 + $0x30] sm:$0xff]   ;;  %v1079_v1 = vld [vmem:[%s1738_s0 + $0x20] sm:$0xff]   ;;  %v1118_v16 = vld [vmem:[%s1738_s0 + $0x28] sm:$0xff]   ;;  %974 = vrcp.f32 %v1040_v40 }
   0x2   :  { %v1084_v2 = vld [vmem:[%s1738_s0] sm:$0xff]   ;;  %v904_v3 = vunpack.c.l.bf16 %v1074_v0  ;;  %v896_v4 = vunpack.c.l.bf16 %v1079_v1  ;;  %v905_v9 = vunpack.c.h.bf16 %v1074_v0  ;;  %v897_v10 = vunpack.c.h.bf16 %v1079_v1  ;;  %v1113_v15 = vld [vmem:[%s1738_s0 + $0x10] sm:$0xff]   ;;  %v1135_v23 = vld [vmem:[%s1738_s0 + $0x38] sm:$0xff]  }
   0x3   :  { %v880_v5 = vunpack.c.l.bf16 %v1084_v2  ;;  %v881_v11 = vunpack.c.h.bf16 %v1084_v2  ;;  %v888_v17 = vunpack.c.l.bf16 %v1113_v15  ;;  %v889_v18 = vunpack.c.h.bf16 %v1113_v15  ;;  %v1152_v30 = vld [vmem:[%s1738_s0 + $0x8] sm:$0xff]   ;;  %v1157_v31 = vld [vmem:[%s1738_s0 + $0x18] sm:$0xff]  }
   0x4   :  { %v94_v6 = vsel %vm57_vm0, %v904_v3, 0.0  ;;  %v82_v7 = vsel %vm57_vm0, %v896_v4, 0.0  ;;  %v97_v12 = vsel %vm57_vm0, %v905_v9, 0.0  ;;  %v85_v13 = vsel %vm57_vm0, %v897_v10, 0.0 }
   0x5   :  { %v58_v8 = vsel %vm57_vm0, %v880_v5, 0.0  ;;  %95 = vadd.xlane.f32.xlu1 %v94_v6  ;;  %83 = vadd.xlane.f32.xlu0 %v82_v7  ;;  %v61_v14 = vsel %vm57_vm0, %v881_v11, 0.0  ;;  %v900_v19 = vunpack.c.l.bf16 %v1118_v16  ;;  %v70_v20 = vsel %vm57_vm0, %v888_v17, 0.0 }
   0x6   :  { %59 = vadd.xlane.f32.xlu2 %v58_v8  ;;  %v73_v21 = vsel %vm57_vm0, %v889_v18, 0.0  ;;  %v901_v24 = vunpack.c.h.bf16 %v1118_v16  ;;  %v908_v25 = vunpack.c.l.bf16 %v1135_v23  ;;  %v909_v26 = vunpack.c.h.bf16 %v1135_v23 }
   0x7   :  { %v88_v22 = vsel %vm57_vm0, %v900_v19, 0.0  ;;  %v884_v32 = vunpack.c.l.bf16 %v1152_v30  ;;  %v885_v33 = vunpack.c.h.bf16 %v1152_v30  ;;  %v892_v34 = vunpack.c.l.bf16 %v1157_v31  ;;  %v975_v41 = vpop.eup %974 }
   0x8   :  { %v91_v27 = vsel %vm57_vm0, %v901_v24, 0.0  ;;  %v100_v28 = vsel %vm57_vm0, %v908_v25, 0.0  ;;  %v103_v29 = vsel %vm57_vm0, %v909_v26, 0.0  ;;  %v893_v38 = vunpack.c.h.bf16 %v1157_v31 }
   0x9   :  { %v64_v35 = vsel %vm57_vm0, %v884_v32, 0.0  ;;  %v67_v36 = vsel %vm57_vm0, %v885_v33, 0.0  ;;  %v76_v37 = vsel %vm57_vm0, %v892_v34, 0.0  ;;  %v107_v42 = vmul.f32 32.0, %v975_v41 }
   0xa   :  { %v79_v39 = vsel %vm57_vm0, %v893_v38, 0.0  ;;  %vm111_vm1 = vweird.f32 %v975_v41 }
   0xb   :  { %v108_v43 = vsub.f32 1.0, %v107_v42 }
   0xd   :  { %98 = vadd.xlane.f32.xlu1 %v97_v12  ;;  %86 = vadd.xlane.f32.xlu0 %v85_v13  ;;  %v109_v44 = vmul.f32 %v975_v41, %v108_v43 }
   0xe   :  { %62 = vadd.xlane.f32.xlu2 %v61_v14 }
   0xf   :  { %v110_v45 = vadd.f32 %v975_v41, %v109_v44 }
  0x11   :  { %v1175_v46 = vsel %vm111_vm1, %v975_v41, %v110_v45 }
  0x15   :  { %71 = vadd.xlane.f32.xlu0 %v70_v20  ;;  %74 = vadd.xlane.f32.xlu1 %v73_v21 }
  0x16   :  { %89 = vadd.xlane.f32.xlu2 %v88_v22 }
  0x1d   :  { %92 = vadd.xlane.f32.xlu0 %v91_v27  ;;  %101 = vadd.xlane.f32.xlu1 %v100_v28 }
  0x1e   :  { %104 = vadd.xlane.f32.xlu2 %v103_v29 }
  0x25   :  { %65 = vadd.xlane.f32.xlu0 %v64_v35  ;;  %68 = vadd.xlane.f32.xlu1 %v67_v36 }
  0x26   :  { %77 = vadd.xlane.f32.xlu2 %v76_v37 }
  0x2d   :  { %80 = vadd.xlane.f32.xlu0 %v79_v39 }
  0x78   :  { %v96_v47 = vpop.xlane.xlu1 %95  ;;  %v84_v48 = vpop.xlane.xlu0 %83 }
  0x79   :  { %v125_v49 = vmul.f32 %v1175_v46, %v96_v47  ;;  %v121_v50 = vmul.f32 %v1175_v46, %v84_v48  ;;  %v60_v51 = vpop.xlane.xlu2 %59 }
  0x7b   :  { %v1181_v52 = vsub.f32 %v904_v3, %v125_v49  ;;  %v1185_v53 = vsub.f32 %v896_v4, %v121_v50  ;;  %v113_v3 = vmul.f32 %v1175_v46, %v60_v51 }
  0x7d   :  { %v153_v54 = vmul.f32 %v1185_v53, %v1185_v53  ;;  %v157_v55 = vmul.f32 %v1181_v52, %v1181_v52  ;;  %v1217_v0 = vsub.f32 %v880_v5, %v113_v3 }
  0x7f   :  { %v185_v56 = vsel %vm57_vm0, %v153_v54, 0.0  ;;  %v197_v57 = vsel %vm57_vm0, %v157_v55, 0.0  ;;  %v145_v27 = vmul.f32 %v1217_v0, %v1217_v0 }
  0x80   :  { %v99_v58 = vpop.xlane.xlu1 %98  ;;  %v87_v59 = vpop.xlane.xlu0 %86  ;;  %186 = vadd.xlane.f32.xlu1 %v185_v56  ;;  %198 = vadd.xlane.f32.xlu0 %v197_v57 }
  0x81   :  { %v126_v60 = vmul.f32 %v1175_v46, %v99_v58  ;;  %v122_v61 = vmul.f32 %v1175_v46, %v87_v59  ;;  %v63_v62 = vpop.xlane.xlu2 %62  ;;  %v161_v37 = vsel %vm57_vm0, %v145_v27, 0.0 }
  0x82   :  { %v114_v63 = vmul.f32 %v1175_v46, %v63_v62 }
  0x83   :  { %v1199_v4 = vsub.f32 %v905_v9, %v126_v60  ;;  %v1203_v6 = vsub.f32 %v897_v10, %v122_v61 }
  0x84   :  { %v1207_v7 = vsub.f32 %v881_v11, %v114_v63 }
  0x85   :  { %v158_v8 = vmul.f32 %v1199_v4, %v1199_v4  ;;  %v154_v12 = vmul.f32 %v1203_v6, %v1203_v6 }
  0x86   :  { %v146_v13 = vmul.f32 %v1207_v7, %v1207_v7 }
  0x87   :  { %v200_v1 = vsel %vm57_vm0, %v158_v8, 0.0  ;;  %v188_v9 = vsel %vm57_vm0, %v154_v12, 0.0 }
  0x88   :  { %v72_v10 = vpop.xlane.xlu0 %71  ;;  %201 = vadd.xlane.f32.xlu1 %v200_v1  ;;  %189 = vadd.xlane.f32.xlu2 %v188_v9  ;;  %v164_v11 = vsel %vm57_vm0, %v146_v13, 0.0  ;;  %v75_v14 = vpop.xlane.xlu1 %74 }
  0x89   :  { %v117_v20 = vmul.f32 %v1175_v46, %v72_v10  ;;  %165 = vadd.xlane.f32.xlu0 %v164_v11  ;;  %v90_v21 = vpop.xlane.xlu2 %89  ;;  %v118_v22 = vmul.f32 %v1175_v46, %v75_v14 }
  0x8a   :  { %v123_v2 = vmul.f32 %v1175_v46, %v90_v21 }
  0x8b   :  { %v1227_v5 = vsub.f32 %v888_v17, %v117_v20  ;;  %v1237_v29 = vsub.f32 %v889_v18, %v118_v22 }
  0x8c   :  { %v1233_v28 = vsub.f32 %v900_v19, %v123_v2 }
  0x8d   :  { %v149_v35 = vmul.f32 %v1227_v5, %v1227_v5  ;;  %v150_v42 = vmul.f32 %v1237_v29, %v1237_v29 }
  0x8e   :  { %v155_v36 = vmul.f32 %v1233_v28, %v1233_v28 }
  0x8f   :  { %v173_v17 = vsel %vm57_vm0, %v149_v35, 0.0  ;;  %v176_v49 = vsel %vm57_vm0, %v150_v42, 0.0 }
  0x90   :  { %v93_v39 = vpop.xlane.xlu0 %92  ;;  %174 = vadd.xlane.f32.xlu1 %v173_v17  ;;  %162 = vadd.xlane.f32.xlu2 %v161_v37  ;;  %v191_v19 = vsel %vm57_vm0, %v155_v36, 0.0  ;;  %v102_v40 = vpop.xlane.xlu1 %101 }
  0x91   :  { %v124_v15 = vmul.f32 %v1175_v46, %v93_v39  ;;  %192 = vadd.xlane.f32.xlu0 %v191_v19  ;;  %v105_v18 = vpop.xlane.xlu2 %104  ;;  %v127_v41 = vmul.f32 %v1175_v46, %v102_v40 }
  0x92   :  { %v128_v43 = vmul.f32 %v1175_v46, %v105_v18 }
  0x93   :  { %v1253_v44 = vsub.f32 %v901_v24, %v124_v15  ;;  %v1261_v47 = vsub.f32 %v908_v25, %v127_v41 }
  0x94   :  { %v1257_v45 = vsub.f32 %v909_v26, %v128_v43 }
  0x95   :  { %v156_v48 = vmul.f32 %v1253_v44, %v1253_v44  ;;  %v159_v55 = vmul.f32 %v1261_v47, %v1261_v47 }
  0x96   :  { %v160_v50 = vmul.f32 %v1257_v45, %v1257_v45 }
  0x97   :  { %v194_v16 = vsel %vm57_vm0, %v156_v48, 0.0  ;;  %v203_v61 = vsel %vm57_vm0, %v159_v55, 0.0 }
  0x98   :  { %195 = vadd.xlane.f32.xlu1 %v194_v16  ;;  %v66_v24 = vpop.xlane.xlu0 %65  ;;  %177 = vadd.xlane.f32.xlu2 %v176_v49  ;;  %v206_v26 = vsel %vm57_vm0, %v160_v50, 0.0  ;;  %v69_v51 = vpop.xlane.xlu1 %68 }
  0x99   :  { %v115_v23 = vmul.f32 %v1175_v46, %v66_v24  ;;  %207 = vadd.xlane.f32.xlu0 %v206_v26  ;;  %v78_v25 = vpop.xlane.xlu2 %77  ;;  %v116_v54 = vmul.f32 %v1175_v46, %v69_v51 }
  0x9a   :  { %v119_v56 = vmul.f32 %v1175_v46, %v78_v25 }
  0x9b   :  { %v1277_v57 = vsub.f32 %v884_v32, %v115_v23  ;;  %v1285_v59 = vsub.f32 %v885_v33, %v116_v54 }
  0x9c   :  { %v1281_v58 = vsub.f32 %v892_v34, %v119_v56 }
  0x9d   :  { %v147_v60 = vmul.f32 %v1277_v57, %v1277_v57  ;;  %v148_v30 = vmul.f32 %v1285_v59, %v1285_v59 }
  0x9e   :  { %v151_v62 = vmul.f32 %v1281_v58, %v1281_v58 }
  0x9f   :  { %v167_v63 = vsel %vm57_vm0, %v147_v60, 0.0  ;;  %v170_v12 = vsel %vm57_vm0, %v148_v30, 0.0 }
  0xa0   :  { %168 = vadd.xlane.f32.xlu1 %v167_v63  ;;  %v81_v32 = vpop.xlane.xlu0 %80  ;;  %204 = vadd.xlane.f32.xlu2 %v203_v61  ;;  %v179_v34 = vsel %vm57_vm0, %v151_v62, 0.0  ;;  %v1338_v62 = vld [vmem:[%s1739_s1] ss:$0 sm:$0xff] }
  0xa1   :  { %v120_v3 = vmul.f32 %v1175_v46, %v81_v32  ;;  %180 = vadd.xlane.f32.xlu0 %v179_v34 }
  0xa3   :  { %v1299_v33 = vsub.f32 %v893_v38, %v120_v3 }
  0xa5   :  { %v152_v8 = vmul.f32 %v1299_v33, %v1299_v33 }
  0xa7   :  { %v182_v13 = vsel %vm57_vm0, %v152_v8, 0.0 }
  0xa8   :  { %183 = vadd.xlane.f32.xlu1 %v182_v13  ;;  %171 = vadd.xlane.f32.xlu2 %v170_v12  ;;  %v1356_v12 = vld [vmem:[%s1740_s2] ss:$0 sm:$0xff] }
  0xf3   :  { %v187_v1 = vpop.xlane.xlu1 %186  ;;  %v199_v9 = vpop.xlane.xlu0 %198 }
  0xf4   :  { %v217_v10 = vmul.f32 %v187_v1, %v1175_v46  ;;  %v221_v11 = vmul.f32 %v199_v9, %v1175_v46 }
  0xf6   :  { %v233_v14 = vadd.f32 1e-05, %v217_v10  ;;  %v237_v20 = vadd.f32 1e-05, %v221_v11  ;;  %v877_v10 = vld [vmem:[%s1742_s3 + $0x8] sm:$0xff] }
  0xf7   :  { %965 = vmatpush.bf16.msra.mxu2 %v877_v10  ;;  %966 = vmatpush.bf16.msra.mxu3 %v877_v10 }
  0xf8   :  { %976 = vrsqrt.f32 %v233_v14  ;;  %vm327_vm2 = vweird.f32 %v233_v14  ;;  %vm367_vm4 = vweird.f32 %v237_v20  ;;  %597 = vmatpush.bf16.msra.mxu0 %v877_v10  ;;  %964 = vmatpush.bf16.msra.mxu1 %v877_v10 }
  0xf9   :  { %978 = vrsqrt.f32 %v237_v20 }
  0xfb   :  { %v202_v31 = vpop.xlane.xlu1 %201  ;;  %v190_v38 = vpop.xlane.xlu2 %189 }
  0xfc   :  { %v222_v21 = vmul.f32 %v202_v31, %v1175_v46  ;;  %v166_v22 = vpop.xlane.xlu0 %165  ;;  %v218_v2 = vmul.f32 %v190_v38, %v1175_v46 }
  0xfd   :  { %v210_v27 = vmul.f32 %v166_v22, %v1175_v46 }
  0xfe   :  { %v977_v35 = vpop.eup %976  ;;  %v1310_v36 = vadd.f32 1e-05, %v222_v21  ;;  %v1312_v17 = vadd.f32 1e-05, %v218_v2 }
  0xff   :  { %v979_v37 = vpop.eup %978  ;;  %v322_v39 = vmul.f32 %v977_v35, %v233_v14  ;;  %v1314_v19 = vadd.f32 1e-05, %v210_v27  ;;  %vm328_vm3 = vweird.f32 %v977_v35 }
 0x100   :  { %v362_v40 = vmul.f32 %v979_v37, %v237_v20  ;;  %980 = vrsqrt.f32 %v1310_v36  ;;  %vm368_vm5 = vweird.f32 %v979_v37  ;;  %vm377_vm7 = vweird.f32 %v1310_v36  ;;  %vm329_vm8 = vmor %vm327_vm2, %vm328_vm3 }
 0x101   :  { %v323_v15 = vmul.f32 %v977_v35, %v322_v39  ;;  %982 = vrsqrt.f32 %v1314_v19  ;;  %vm369_vm9 = vmor %vm367_vm4, %vm368_vm5  ;;  %vm257_vm10 = vweird.f32 %v1314_v19  ;;  %vm337_vm11 = vweird.f32 %v1312_v17 }
 0x102   :  { %v363_v18 = vmul.f32 %v979_v37, %v362_v40  ;;  %984 = vrsqrt.f32 %v1312_v17  ;;  %v876_v40 = vld [vmem:[%s1742_s3] sm:$0xff] }
 0x103   :  { %v324_v41 = vmul.f32 0.5, %v323_v15  ;;  %v175_v42 = vpop.xlane.xlu1 %174  ;;  %v163_v43 = vpop.xlane.xlu2 %162  ;;  %968 = vmatpush.bf16.msra.mxu2 %v876_v40  ;;  %969 = vmatpush.bf16.msra.mxu3 %v876_v40 }
 0x104   :  { %v364_v48 = vmul.f32 0.5, %v363_v18  ;;  %v213_v49 = vmul.f32 %v175_v42, %v1175_v46  ;;  %v193_v50 = vpop.xlane.xlu0 %192  ;;  %v209_v16 = vmul.f32 %v163_v43, %v1175_v46  ;;  %598 = vmatpush.bf16.msra.mxu0 %v876_v40  ;;  %967 = vmatpush.bf16.msra.mxu1 %v876_v40 }
 0x105   :  { %v325_v24 = vsub.f32 1.5, %v324_v41  ;;  %v219_v26 = vmul.f32 %v193_v50, %v1175_v46 }
 0x106   :  { %v1322_v51 = vpop.eup %980  ;;  %v365_v23 = vsub.f32 1.5, %v364_v48  ;;  %v1324_v25 = vadd.f32 1e-05, %v213_v49  ;;  %v1345_v34 = vadd.f32 1e-05, %v209_v16 }
 0x107   :  { %v1326_v54 = vpop.eup %982  ;;  %v326_v55 = vmul.f32 %v977_v35, %v325_v24  ;;  %v372_v56 = vmul.f32 %v1322_v51, %v1310_v36  ;;  %v1331_v60 = vadd.f32 1e-05, %v219_v26  ;;  %vm378_vm12 = vweird.f32 %v1322_v51 }
 0x108   :  { %v1333_v61 = vpop.eup %984  ;;  %v366_v63 = vmul.f32 %v979_v37, %v365_v23  ;;  %v252_v32 = vmul.f32 %v1326_v54, %v1314_v19  ;;  %986 = vrsqrt.f32 %v1324_v25  ;;  %vm258_vm13 = vweird.f32 %v1326_v54  ;;  %vm1389_vm1 = vmor %vm377_vm7, %vm378_vm12 }
 0x109   :  { %v330_v3 = vsel %vm329_vm8, %v977_v35, %v326_v55  ;;  %v373_v30 = vmul.f32 %v1322_v51, %v372_v56  ;;  %v332_v8 = vmul.f32 %v1333_v61, %v1312_v17  ;;  %988 = vrsqrt.f32 %v1331_v60  ;;  %vm259_vm3 = vmor %vm257_vm10, %vm258_vm13 }
 0x10a   :  { %v409_v13 = vmul.f32 %v330_v3, %v1185_v53  ;;  %v370_v1 = vsel %vm369_vm9, %v979_v37, %v366_v63  ;;  %v253_v9 = vmul.f32 %v1326_v54, %v252_v32  ;;  %990 = vrsqrt.f32 %v1345_v34 }
 0x10b   :  { %v413_v11 = vmul.f32 %v370_v1, %v1181_v52  ;;  %v374_v14 = vmul.f32 0.5, %v373_v30  ;;  %v333_v20 = vmul.f32 %v1333_v61, %v332_v8  ;;  %v196_v31 = vpop.xlane.xlu1 %195  ;;  %vm338_vm14 = vweird.f32 %v1333_v61  ;;  %v178_v24 = vpop.xlane.xlu2 %177 }
 0x10c   :  { %v429_v38 = vmul.f32 %v1338_v62, %v409_v13  ;;  %v254_v53 = vmul.f32 0.5, %v253_v9  ;;  %v208_v2 = vpop.xlane.xlu0 %207  ;;  %v220_v39 = vmul.f32 %v196_v31, %v1175_v46  ;;  %vm287_vm15 = vweird.f32 %v1324_v25  ;;  %vm339_vm4 = vmor %vm337_vm11, %vm338_vm14 }
 0x10d   :  { %v433_v21 = vmul.f32 %v1338_v62, %v413_v11  ;;  %v375_v22 = vsub.f32 1.5, %v374_v14  ;;  %v334_v52 = vmul.f32 0.5, %v333_v20  ;;  %vm347_vm2 = vweird.f32 %v1331_v60 }
 0x10e   :  { %v1372_v27 = vpop.eup %986  ;;  %v449_v35 = vadd.f32 %v1356_v12, %v429_v38  ;;  %v255_v37 = vsub.f32 1.5, %v254_v53  ;;  %v1395_v50 = vadd.f32 1e-05, %v220_v39  ;;  %v224_v16 = vmul.f32 %v208_v2, %v1175_v46 }
 0x10f   :  { %v453_v15 = vadd.f32 %v1356_v12, %v433_v21  ;;  %v376_v18 = vmul.f32 %v1322_v51, %v375_v22  ;;  %v335_v41 = vsub.f32 1.5, %v334_v52  ;;  %v282_v42 = vmul.f32 %v1372_v27, %v1324_v25  ;;  %v1398_v26 = vpop.eup %988 }
 0x110   :  { %v465_v43 = vpack.c.bf16 %v449_v35, %v449_v35  ;;  %v256_v49 = vmul.f32 %v1326_v54, %v255_v37  ;;  %v1409_v63 = vpop.eup %990  ;;  %vm288_vm5 = vweird.f32 %v1372_v27  ;;  %v342_v19 = vmul.f32 %v1398_v26, %v1331_v60 }
 0x111   :  { %v469_v23 = vpack.c.bf16 %v453_v15, %v453_v15  ;;  %v380_v36 = vsel %vm1389_vm1, %v1322_v51, %v376_v18  ;;  %v336_v55 = vmul.f32 %v1333_v61, %v335_v41  ;;  %v283_v56 = vmul.f32 %v1372_v27, %v282_v42  ;;  %vm289_vm9 = vmor %vm287_vm15, %vm288_vm5 }
 0x112   :  { %482 = vst.msk [vmem:[#allocation2 + $0x20] sm:$0xf] %vm473_vm6, %v465_v43  ;;  %v414_v32 = vmul.f32 %v380_v36, %v1199_v4  ;;  %v260_v3 = vsel %vm259_vm3, %v1326_v54, %v256_v49  ;;  %v242_v54 = vmul.f32 %v1409_v63, %v1345_v34  ;;  %v343_v1 = vmul.f32 %v1398_v26, %v342_v19 }
 0x113   :  { %486 = vst.msk [vmem:[#allocation2 + $0x30] sm:$0xf] %vm473_vm6, %v469_v23  ;;  %v402_v51 = vmul.f32 %v260_v3, %v1207_v7  ;;  %v340_v30 = vsel %vm339_vm4, %v1333_v61, %v336_v55  ;;  %v284_v4 = vmul.f32 0.5, %v283_v56  ;;  %v169_v8 = vpop.xlane.xlu1 %168  ;;  %vm348_vm7 = vweird.f32 %v1398_v26  ;;  %v205_v25 = vpop.xlane.xlu2 %204 }
 0x114   :  { %v434_v17 = vmul.f32 %v1338_v62, %v414_v32  ;;  %v410_v13 = vmul.f32 %v340_v30, %v1203_v6  ;;  %v243_v7 = vmul.f32 %v1409_v63, %v242_v54  ;;  %992 = vrsqrt.f32 %v1395_v50  ;;  %v181_v2 = vpop.xlane.xlu0 %180  ;;  %vm349_vm11 = vmor %vm347_vm2, %vm348_vm7 }
 0x115   :  { %v422_v9 = vmul.f32 %v1338_v62, %v402_v51  ;;  %v285_v10 = vsub.f32 1.5, %v284_v4  ;;  %v344_v14 = vmul.f32 0.5, %v343_v1  ;;  %vm248_vm8 = vweird.f32 %v1409_v63 }
 0x116   :  { %v454_v61 = vadd.f32 %v1356_v12, %v434_v17  ;;  %v430_v11 = vmul.f32 %v1338_v62, %v410_v13  ;;  %v244_v31 = vmul.f32 0.5, %v243_v7  ;;  %v1438_v38 = vadd.f32 1e-05, %v224_v16 }
 0x117   :  { %v442_v6 = vadd.f32 %v1356_v12, %v422_v9  ;;  %v286_v20 = vmul.f32 %v1372_v27, %v285_v10  ;;  %v345_v22 = vsub.f32 1.5, %v344_v14  ;;  %v214_v52 = vmul.f32 %v178_v24, %v1175_v46 }
 0x118   :  { %v470_v53 = vpack.c.bf16 %v454_v61, %v454_v61  ;;  %v450_v21 = vadd.f32 %v1356_v12, %v430_v11  ;;  %v245_v39 = vsub.f32 1.5, %v244_v31  ;;  %994 = vrsqrt.f32 %v1438_v38 }
 0x119   :  { %v458_v35 = vpack.c.bf16 %v442_v6, %v442_v6  ;;  %v290_v37 = vsel %vm289_vm9, %v1372_v27, %v286_v20  ;;  %v346_v18 = vmul.f32 %v1398_v26, %v345_v22  ;;  %vm247_vm10 = vweird.f32 %v1345_v34 }
 0x11a   :  { %487 = vst.msk [vmem:[#allocation2 + $0x34] sm:$0xf] %vm473_vm6, %v470_v53  ;;  %v466_v40 = vpack.c.bf16 %v450_v21, %v450_v21  ;;  %v405_v15 = vmul.f32 %v290_v37, %v1227_v5  ;;  %v1452_v41 = vpop.eup %992  ;;  %v246_v27 = vmul.f32 %v1409_v63, %v245_v39  ;;  %v1460_v42 = vadd.f32 1e-05, %v214_v52  ;;  %vm249_vm12 = vmor %vm247_vm10, %vm248_vm8 }
 0x11b   :  { %475 = vst.msk [vmem:[#allocation2 + $0x4] sm:$0xf] %vm473_vm6, %v458_v35  ;;  %v211_v5 = vmul.f32 %v169_v8, %v1175_v46  ;;  %v215_v43 = vmul.f32 %v181_v2, %v1175_v46  ;;  %v350_v48 = vsel %vm349_vm11, %v1398_v26, %v346_v18  ;;  %v352_v60 = vmul.f32 %v1452_v41, %v1395_v50  ;;  %v184_v49 = vpop.xlane.xlu1 %183  ;;  %v172_v31 = vpop.xlane.xlu2 %171 }
 0x11c   :  { %483 = vst.msk [vmem:[#allocation2 + $0x24] sm:$0xf] %vm473_vm6, %v466_v40  ;;  %v425_v34 = vmul.f32 %v1338_v62, %v405_v15  ;;  %v411_v16 = vmul.f32 %v350_v48, %v1233_v28  ;;  %v250_v24 = vsel %vm249_vm12, %v1409_v63, %v246_v27  ;;  %996 = vrsqrt.f32 %v1460_v42 }
 0x11d   :  { %v401_v36 = vmul.f32 %v250_v24, %v1217_v0  ;;  %v353_v55 = vmul.f32 %v1452_v41, %v352_v60  ;;  %v1477_v26 = vadd.f32 1e-05, %v211_v5  ;;  %v1480_v3 = vadd.f32 1e-05, %v215_v43 }
 0x11e   :  { %v445_v23 = vadd.f32 %v1356_v12, %v425_v34  ;;  %v995_v56 = vpop.eup %994  ;;  %v431_v32 = vmul.f32 %v1338_v62, %v411_v16  ;;  %v223_v19 = vmul.f32 %v205_v25, %v1175_v46  ;;  %v216_v28 = vmul.f32 %v184_v49, %v1175_v46 }
 0x11f   :  { %v421_v51 = vmul.f32 %v1338_v62, %v401_v36  ;;  %v354_v30 = vmul.f32 0.5, %v353_v55  ;;  %v392_v4 = vmul.f32 %v995_v56, %v1438_v38  ;;  %vm358_vm13 = vweird.f32 %v1452_v41 }
 0x120   :  { %v461_v63 = vpack.c.bf16 %v445_v23, %v445_v23  ;;  %v451_v0 = vadd.f32 %v1356_v12, %v431_v32  ;;  %998 = vrsqrt.f32 %v1477_v26  ;;  %vm357_vm14 = vweird.f32 %v1395_v50 }
 0x121   :  { %v874_v54 = vld [vmem:[#allocation2 + $0x30] sm:$0xff]  ;;  %v441_v8 = vadd.f32 %v1356_v12, %v421_v51  ;;  %v355_v17 = vsub.f32 1.5, %v354_v30  ;;  %v393_v13 = vmul.f32 %v995_v56, %v392_v4  ;;  %1000 = vrsqrt.f32 %v1480_v3  ;;  %vm359_vm15 = vmor %vm357_vm14, %vm358_vm13 }
 0x122   :  { %478 = vst.msk [vmem:[#allocation2 + $0x10] sm:$0xf] %vm473_vm6, %v461_v63  ;;  %v1492_v1 = vpop.eup %996  ;;  %v467_v9 = vpack.c.bf16 %v451_v0, %v451_v0  ;;  %v1495_v10 = vadd.f32 1e-05, %v223_v19  ;;  %v1497_v7 = vadd.f32 1e-05, %v216_v28  ;;  %866 = vmatmul.msk.bf16.vlgmr.msra.gmra.mxu3 %vm57_vm0, %v874_v54  ;;  %vm397_vm1 = vweird.f32 %v1438_v38 }
 0x123   :  { %v872_v61 = vld [vmem:[#allocation2 + $0x20] sm:$0xff]  ;;  %v457_v11 = vpack.c.bf16 %v441_v8, %v441_v8  ;;  %v356_v14 = vmul.f32 %v1452_v41, %v355_v17  ;;  %v394_v6 = vmul.f32 0.5, %v393_v13  ;;  %v292_v20 = vmul.f32 %v1492_v1, %v1460_v42 }
 0x124   :  { %484 = vst.msk [vmem:[#allocation2 + $0x28] sm:$0xf] %vm473_vm6, %v467_v9  ;;  %vm398_vm2 = vweird.f32 %v995_v56  ;;  %1002 = vrsqrt.f32 %v1495_v10  ;;  %864 = vmatmul.msk.bf16.vlgmr.msra.gmra.mxu2 %vm57_vm0, %v872_v61  ;;  %v212_v2 = vmul.f32 %v172_v31, %v1175_v46  ;;  %vm297_vm3 = vweird.f32 %v1460_v42 }
 0x125   :  { %474 = vst.msk [vmem:[#allocation2] sm:$0xf] %vm473_vm6, %v457_v11  ;;  %v360_v50 = vsel %vm359_vm15, %v1452_v41, %v356_v14  ;;  %v395_v53 = vsub.f32 1.5, %v394_v6  ;;  %v293_v21 = vmul.f32 %v1492_v1, %v292_v20  ;;  %1004 = vrsqrt.f32 %v1497_v7  ;;  %vm399_vm4 = vmor %vm397_vm1, %vm398_vm2 }
 0x126   :  { %v999_v22 = vpop.eup %998  ;;  %v412_v52 = vmul.f32 %v360_v50, %v1253_v44  ;;  %vm307_vm5 = vweird.f32 %v1480_v3  ;;  %v1523_v44 = vadd.f32 1e-05, %v212_v2  ;;  %vm298_vm7 = vweird.f32 %v1492_v1 }
 0x127   :  { %v1001_v35 = vpop.eup %1000  ;;  %v396_v37 = vmul.f32 %v995_v56, %v395_v53  ;;  %v294_v39 = vmul.f32 0.5, %v293_v21  ;;  %v262_v40 = vmul.f32 %v999_v22, %v1477_v26  ;;  %vm268_vm8 = vweird.f32 %v999_v22  ;;  %vm299_vm9 = vmor %vm297_vm3, %vm298_vm7 }
 0x128   :  { %v432_v15 = vmul.f32 %v1338_v62, %v412_v52  ;;  %v302_v18 = vmul.f32 %v1001_v35, %v1480_v3  ;;  %1006 = vrsqrt.f32 %v1523_v44  ;;  %vm308_vm10 = vweird.f32 %v1001_v35 }
 0x129   :  { %v400_v46 = vsel %vm399_vm4, %v995_v56, %v396_v37  ;;  %v295_v25 = vsub.f32 1.5, %v294_v39  ;;  %v263_v41 = vmul.f32 %v999_v22, %v262_v40  ;;  %vm267_vm11 = vweird.f32 %v1477_v26  ;;  %vm309_vm14 = vmor %vm307_vm5, %vm308_vm10 }
 0x12a   :  { %v1526_v27 = vpop.eup %1002  ;;  %v452_v5 = vadd.f32 %v1356_v12, %v432_v15  ;;  %v416_v43 = vmul.f32 %v400_v46, %v1257_v45  ;;  %v303_v34 = vmul.f32 %v1001_v35, %v302_v18  ;;  %vm269_vm13 = vmor %vm267_vm11, %vm268_vm8  ;;  %vm387_vm1 = vweird.f32 %v1495_v10 }
 0x12b   :  { %v1005_v38 = vpop.eup %1004  ;;  %v296_v48 = vmul.f32 %v1492_v1, %v295_v25  ;;  %v264_v60 = vmul.f32 0.5, %v263_v41  ;;  %v382_v49 = vmul.f32 %v1526_v27, %v1495_v10  ;;  %vm388_vm12 = vweird.f32 %v1526_v27 }
 0x12c   :  { %v468_v16 = vpack.c.bf16 %v452_v5, %v452_v5  ;;  %v436_v24 = vmul.f32 %v1338_v62, %v416_v43  ;;  %v304_v23 = vmul.f32 0.5, %v303_v34  ;;  %v312_v45 = vmul.f32 %v1005_v38, %v1497_v7  ;;  %v868_v36 = vld [vmem:[#allocation2] sm:$0xff]  ;;  %vm389_vm2 = vmor %vm387_vm1, %vm388_vm12 }
 0x12d   :  { %v300_v55 = vsel %vm299_vm9, %v1492_v1, %v296_v48  ;;  %v265_v56 = vsub.f32 1.5, %v264_v60  ;;  %v383_v32 = vmul.f32 %v1526_v27, %v382_v49  ;;  %860 = vmatmul.msk.bf16.vlgmr.msra.gmra.mxu0 %vm57_vm0, %v868_v36  ;;  %vm318_vm15 = vweird.f32 %v1005_v38 }
 0x12e   :  { %485 = vst.msk [vmem:[#allocation2 + $0x2c] sm:$0xf] %vm473_vm6, %v468_v16  ;;  %v456_v19 = vadd.f32 %v1356_v12, %v436_v24  ;;  %v406_v28 = vmul.f32 %v300_v55, %v1237_v29  ;;  %v305_v63 = vsub.f32 1.5, %v304_v23  ;;  %v313_v51 = vmul.f32 %v1005_v38, %v312_v45  ;;  %v1007_v4 = vpop.eup %1006 }
 0x12f   :  { %v266_v42 = vmul.f32 %v999_v22, %v265_v56  ;;  %v384_v30 = vmul.f32 0.5, %v383_v32  ;;  %v272_v26 = vmul.f32 %v1007_v4, %v1523_v44  ;;  %vm317_vm3 = vweird.f32 %v1497_v7 }
 0x130   :  { %v472_v0 = vpack.c.bf16 %v456_v19, %v456_v19  ;;  %v426_v54 = vmul.f32 %v1338_v62, %v406_v28  ;;  %v306_v8 = vmul.f32 %v1001_v35, %v305_v63  ;;  %v314_v17 = vmul.f32 0.5, %v313_v51  ;;  %vm319_vm4 = vmor %vm317_vm3, %vm318_vm15 }
 0x131   :  { %v270_v13 = vsel %vm269_vm13, %v999_v22, %v266_v42  ;;  %v385_v29 = vsub.f32 1.5, %v384_v30  ;;  %v273_v3 = vmul.f32 %v1007_v4, %v272_v26  ;;  %vm278_vm5 = vweird.f32 %v1007_v4 }
 0x132   :  { %489 = vst.msk [vmem:[#allocation2 + $0x3c] sm:$0xf] %vm473_vm6, %v472_v0  ;;  %v446_v1 = vadd.f32 %v1356_v12, %v426_v54  ;;  %v403_v9 = vmul.f32 %v270_v13, %v1277_v57  ;;  %v310_v61 = vsel %vm309_vm14, %v1001_v35, %v306_v8  ;;  %v315_v11 = vsub.f32 1.5, %v314_v17 }
 0x133   :  { %v407_v14 = vmul.f32 %v310_v61, %v1281_v58  ;;  %v386_v6 = vmul.f32 %v1526_v27, %v385_v29  ;;  %v274_v58 = vmul.f32 0.5, %v273_v3  ;;  %vm277_vm7 = vweird.f32 %v1523_v44 }
 0x134   :  { %v462_v20 = vpack.c.bf16 %v446_v1, %v446_v1  ;;  %v423_v31 = vmul.f32 %v1338_v62, %v403_v9  ;;  %v316_v50 = vmul.f32 %v1005_v38, %v315_v11  ;;  %vm279_vm8 = vmor %vm277_vm7, %vm278_vm5 }
 0x135   :  { %v427_v57 = vmul.f32 %v1338_v62, %v407_v14  ;;  %v390_v53 = vsel %vm389_vm2, %v1526_v27, %v386_v6  ;;  %v873_v21 = vld [vmem:[#allocation2 + $0x28] sm:$0xff]  ;;  %v275_v7 = vsub.f32 1.5, %v274_v58 }
 0x136   :  { %479 = vst.msk [vmem:[#allocation2 + $0x14] sm:$0xf] %vm473_vm6, %v462_v20  ;;  %v443_v10 = vadd.f32 %v1356_v12, %v423_v31  ;;  %v415_v22 = vmul.f32 %v390_v53, %v1261_v47  ;;  %v320_v52 = vsel %vm319_vm4, %v1005_v38, %v316_v50  ;;  %865 = vmatmul.msk.bf16.gmra.mxu2 %vm57_vm0, %v873_v21 }
 0x137   :  { %v447_v2 = vadd.f32 %v1356_v12, %v427_v57  ;;  %v408_v35 = vmul.f32 %v320_v52, %v1299_v33  ;;  %v276_v18 = vmul.f32 %v1007_v4, %v275_v7 }
 0x138   :  { %v459_v37 = vpack.c.bf16 %v443_v10, %v443_v10  ;;  %v435_v39 = vmul.f32 %v1338_v62, %v415_v22 }
 0x139   :  { %v463_v40 = vpack.c.bf16 %v447_v2, %v447_v2  ;;  %v428_v15 = vmul.f32 %v1338_v62, %v408_v35  ;;  %v280_v46 = vsel %vm279_vm8, %v1007_v4, %v276_v18 }
 0x13a   :  { %476 = vst.msk [vmem:[#allocation2 + $0x8] sm:$0xf] %vm473_vm6, %v459_v37  ;;  %v455_v47 = vadd.f32 %v1356_v12, %v435_v39  ;;  %v404_v41 = vmul.f32 %v280_v46, %v1285_v59 }
 0x13b   :  { %480 = vst.msk [vmem:[#allocation2 + $0x18] sm:$0xf] %vm473_vm6, %v463_v40  ;;  %v448_v33 = vadd.f32 %v1356_v12, %v428_v15 }
 0x13c   :  { %v471_v25 = vpack.c.bf16 %v455_v47, %v455_v47  ;;  %v424_v43 = vmul.f32 %v1338_v62, %v404_v41  ;;  %v1591_v62 = vld [vmem:[%s1741_s4] ss:$0 sm:$0xff] }
 0x13d   :  { %v464_v27 = vpack.c.bf16 %v448_v33, %v448_v33  ;;  %v870_v5 = vld [vmem:[#allocation2 + $0x10] sm:$0xff] }
 0x13e   :  { %488 = vst.msk [vmem:[#allocation2 + $0x38] sm:$0xf] %vm473_vm6, %v471_v25  ;;  %862 = vmatmul.msk.bf16.vlgmr.msra.gmra.mxu1 %vm57_vm0, %v870_v5  ;;  %v444_v44 = vadd.f32 %v1356_v12, %v424_v43 }
 0x13f   :  { %481 = vst.msk [vmem:[#allocation2 + $0x1c] sm:$0xf] %vm473_vm6, %v464_v27 }
 0x140   :  { %v460_v34 = vpack.c.bf16 %v444_v44, %v444_v44 }
 0x142   :  { %477 = vst.msk [vmem:[#allocation2 + $0xc] sm:$0xf] %vm473_vm6, %v460_v34 }
 0x145   :  { %v875_v38 = vld [vmem:[#allocation2 + $0x38] sm:$0xff] }
 0x146   :  { %867 = vmatmul.msk.bf16.gmra.mxu3 %vm57_vm0, %v875_v38  ;;  %v871_v59 = vld [vmem:[#allocation2 + $0x18] sm:$0xff] }
 0x149   :  { %v869_v48 = vld [vmem:[#allocation2 + $0x8] sm:$0xff] }
 0x14a   :  { %861 = vmatmul.msk.bf16.gmra.mxu0 %vm57_vm0, %v869_v48 }
 0x14e   :  { %863 = vmatmul.msk.bf16.gmra.mxu1 %vm57_vm0, %v871_v59 }
 0x1a5   :  { %v630_v60 = vpop.f32.mrf.mxu3 }
 0x1a6   :  { %v1594_v12 = vadd.f32 %v1591_v62, %v630_v60 }
 0x1a7   :  { %v620_v49 = vpop.f32.mrf.mxu2 }
 0x1a8   :  { %v1597_v16 = vadd.f32 %v1591_v62, %v620_v49  ;;  %v652_v24 = vmul.f32 %v1594_v12, %v1594_v12 }
 0x1aa   :  { %v648_v23 = vmul.f32 %v1597_v16, %v1597_v16  ;;  %v668_v45 = vmul.f32 %v652_v24, %v1594_v12  ;;  %v600_v36 = vpop.f32.mrf.mxu0 }
 0x1ab   :  { %v1606_v32 = vadd.f32 %v1591_v62, %v600_v36 }
 0x1ac   :  { %v664_v55 = vmul.f32 %v648_v23, %v1597_v16  ;;  %v684_v56 = vmul.f32 0.044715, %v668_v45 }
 0x1ad   :  { %v632_v19 = vpop.f32.mrf.mxu3  ;;  %v640_v51 = vmul.f32 %v1606_v32, %v1606_v32 }
 0x1ae   :  { %v680_v28 = vmul.f32 0.044715, %v664_v55  ;;  %v700_v63 = vadd.f32 %v684_v56, %v1594_v12  ;;  %v1612_v42 = vadd.f32 %v1591_v62, %v632_v19 }
 0x1af   :  { %v622_v30 = vpop.f32.mrf.mxu2  ;;  %v656_v0 = vmul.f32 %v640_v51, %v1606_v32 }
 0x1b0   :  { %v696_v4 = vadd.f32 %v680_v28, %v1597_v16  ;;  %v1617_v54 = vadd.f32 %v1591_v62, %v622_v30  ;;  %v716_v8 = vmul.f32 0.7978846, %v700_v63  ;;  %v653_v17 = vmul.f32 %v1612_v42, %v1612_v42 }
 0x1b1   :  { %v672_v29 = vmul.f32 0.044715, %v656_v0 }
 0x1b2   :  { %v712_v13 = vmul.f32 0.7978846, %v696_v4  ;;  %v649_v26 = vmul.f32 %v1617_v54, %v1617_v54  ;;  %v669_v1 = vmul.f32 %v653_v17, %v1612_v42  ;;  %v602_v9 = vpop.f32.mrf.mxu0  ;;  %1008 = vtanh.f32 %v716_v8 }
 0x1b3   :  { %v688_v61 = vadd.f32 %v672_v29, %v1606_v32  ;;  %v1627_v14 = vadd.f32 %v1591_v62, %v602_v9 }
 0x1b4   :  { %v665_v11 = vmul.f32 %v649_v26, %v1617_v54  ;;  %v685_v6 = vmul.f32 0.044715, %v669_v1  ;;  %1010 = vtanh.f32 %v712_v13 }
 0x1b5   :  { %v704_v3 = vmul.f32 0.7978846, %v688_v61  ;;  %v641_v31 = vmul.f32 %v1627_v14, %v1627_v14 }
 0x1b6   :  { %v681_v20 = vmul.f32 0.044715, %v665_v11  ;;  %v701_v50 = vadd.f32 %v685_v6, %v1612_v42 }
 0x1b7   :  { %v657_v53 = vmul.f32 %v641_v31, %v1627_v14  ;;  %1012 = vtanh.f32 %v704_v3 }
 0x1b8   :  { %v697_v57 = vadd.f32 %v681_v20, %v1617_v54  ;;  %v717_v58 = vmul.f32 0.7978846, %v701_v50  ;;  %v1009_v52 = vpop.eup %1008 }
 0x1b9   :  { %v673_v10 = vmul.f32 0.044715, %v657_v53  ;;  %v625_v22 = vpop.f32.mrf.mxu2  ;;  %v748_v15 = vadd.f32 1.0, %v1009_v52 }
 0x1ba   :  { %v713_v21 = vmul.f32 0.7978846, %v697_v57  ;;  %1014 = vtanh.f32 %v717_v58  ;;  %v1635_v2 = vadd.f32 %v1591_v62, %v625_v22  ;;  %v1011_v35 = vpop.eup %1010 }
 0x1bb   :  { %v689_v7 = vadd.f32 %v673_v10, %v1627_v14  ;;  %v610_v37 = vpop.f32.mrf.mxu1  ;;  %v744_v33 = vadd.f32 1.0, %v1011_v35  ;;  %v764_v44 = vmul.f32 0.5, %v748_v15 }
 0x1bc   :  { %1016 = vtanh.f32 %v713_v21  ;;  %v1639_v39 = vadd.f32 %v1591_v62, %v610_v37  ;;  %v650_v40 = vmul.f32 %v1635_v2, %v1635_v2 }
 0x1bd   :  { %v705_v18 = vmul.f32 0.7978846, %v689_v7  ;;  %v1013_v47 = vpop.eup %1012  ;;  %v760_v59 = vmul.f32 0.5, %v744_v33  ;;  %v780_v51 = vmul.f32 %v764_v44, %v1594_v12 }
 0x1be   :  { %v644_v46 = vmul.f32 %v1639_v39, %v1639_v39  ;;  %v666_v25 = vmul.f32 %v650_v40, %v1635_v2  ;;  %v736_v34 = vadd.f32 1.0, %v1013_v47 }
 0x1bf   :  { %1018 = vtanh.f32 %v705_v18  ;;  %v776_v8 = vmul.f32 %v760_v59, %v1597_v16 }
 0x1c0   :  { %v1015_v41 = vpop.eup %1014  ;;  %v660_v27 = vmul.f32 %v644_v46, %v1639_v39  ;;  %v682_v5 = vmul.f32 0.044715, %v666_v25  ;;  %v752_v30 = vmul.f32 0.5, %v736_v34 }
 0x1c1   :  { %v749_v38 = vadd.f32 1.0, %v1015_v41  ;;  %v627_v48 = vpop.f32.mrf.mxu2 }
 0x1c2   :  { %v1017_v43 = vpop.eup %1016  ;;  %v676_v49 = vmul.f32 0.044715, %v660_v27  ;;  %v698_v24 = vadd.f32 %v682_v5, %v1635_v2  ;;  %v1649_v36 = vadd.f32 %v1591_v62, %v627_v48 }
 0x1c3   :  { %v745_v60 = vadd.f32 1.0, %v1017_v43  ;;  %v765_v23 = vmul.f32 0.5, %v749_v38  ;;  %v612_v45 = vpop.f32.mrf.mxu1 }
 0x1c4   :  { %v692_v56 = vadd.f32 %v676_v49, %v1639_v39  ;;  %v714_v19 = vmul.f32 0.7978846, %v698_v24  ;;  %v1653_v28 = vadd.f32 %v1591_v62, %v612_v45  ;;  %v651_v0 = vmul.f32 %v1649_v36, %v1649_v36 }
 0x1c5   :  { %v761_v55 = vmul.f32 0.5, %v745_v60  ;;  %v1019_v63 = vpop.eup %1018  ;;  %v781_v4 = vmul.f32 %v765_v23, %v1612_v42  ;;  %v768_v42 = vmul.f32 %v752_v30, %v1606_v32 }
 0x1c6   :  { %v737_v13 = vadd.f32 1.0, %v1019_v63  ;;  %v708_v29 = vmul.f32 0.7978846, %v692_v56  ;;  %v645_v1 = vmul.f32 %v1653_v28, %v1653_v28  ;;  %v667_v9 = vmul.f32 %v651_v0, %v1649_v36 }
 0x1c7   :  { %v777_v17 = vmul.f32 %v761_v55, %v1617_v54  ;;  %v943_v26 = vpack.c.bf16 %v781_v4, %v780_v51  ;;  %1020 = vtanh.f32 %v714_v19  ;;  %v605_v6 = vpop.f32.mrf.mxu0 }
 0x1c8   :  { %v753_v12 = vmul.f32 0.5, %v737_v13  ;;  %v661_v16 = vmul.f32 %v645_v1, %v1653_v28  ;;  %v683_v54 = vmul.f32 0.044715, %v667_v9  ;;  %1022 = vtanh.f32 %v708_v29 }
 0x1c9   :  { %v933_v61 = vpack.c.bf16 %v777_v17, %v776_v8  ;;  %962 = vst [vmem:[%s1743_s5 + $0x30] sm:$0xff] %v943_v26   ;;  %v635_v11 = vpop.f32.mrf.mxu3  ;;  %v1677_v32 = vadd.f32 %v1591_v62, %v605_v6 }
 0x1ca   :  { %v769_v3 = vmul.f32 %v753_v12, %v1627_v14  ;;  %v1674_v20 = vadd.f32 %v1591_v62, %v635_v11  ;;  %v677_v31 = vmul.f32 0.044715, %v661_v16  ;;  %v699_v50 = vadd.f32 %v683_v54, %v1649_v36 }
 0x1cb   :  { %960 = vst [vmem:[%s1743_s5 + $0x20] sm:$0xff] %v933_v61   ;;  %v615_v57 = vpop.f32.mrf.mxu1  ;;  %v642_v21 = vmul.f32 %v1677_v32, %v1677_v32 }
 0x1cc   :  { %v913_v53 = vpack.c.bf16 %v769_v3, %v768_v42  ;;  %v654_v58 = vmul.f32 %v1674_v20, %v1674_v20  ;;  %v1685_v14 = vadd.f32 %v1591_v62, %v615_v57  ;;  %v693_v10 = vadd.f32 %v677_v31, %v1653_v28 }
 0x1cd   :  { %v715_v22 = vmul.f32 0.7978846, %v699_v50  ;;  %v1021_v52 = vpop.eup %1020  ;;  %v658_v7 = vmul.f32 %v642_v21, %v1677_v32 }
 0x1ce   :  { %914 = vst [vmem:[%s1743_s5] sm:$0xff] %v913_v53   ;;  %v670_v35 = vmul.f32 %v654_v58, %v1674_v20  ;;  %v646_v37 = vmul.f32 %v1685_v14, %v1685_v14  ;;  %v709_v40 = vmul.f32 0.7978846, %v693_v10  ;;  %v1023_v15 = vpop.eup %1022  ;;  %v746_v46 = vadd.f32 1.0, %v1021_v52 }
 0x1cf   :  { %1024 = vtanh.f32 %v715_v22  ;;  %v674_v47 = vmul.f32 0.044715, %v658_v7  ;;  %v607_v41 = vpop.f32.mrf.mxu0  ;;  %v740_v34 = vadd.f32 1.0, %v1023_v15 }
 0x1d0   :  { %v686_v18 = vmul.f32 0.044715, %v670_v35  ;;  %v662_v33 = vmul.f32 %v646_v37, %v1685_v14  ;;  %1026 = vtanh.f32 %v709_v40  ;;  %v1702_v38 = vadd.f32 %v1591_v62, %v607_v41 }
 0x1d1   :  { %v637_v25 = vpop.f32.mrf.mxu3  ;;  %v690_v5 = vadd.f32 %v674_v47, %v1677_v32  ;;  %v762_v56 = vmul.f32 0.5, %v746_v46  ;;  %v756_v30 = vmul.f32 0.5, %v740_v34 }
 0x1d2   :  { %v702_v27 = vadd.f32 %v686_v18, %v1674_v20  ;;  %v678_v43 = vmul.f32 0.044715, %v662_v33  ;;  %v1699_v44 = vadd.f32 %v1591_v62, %v637_v25  ;;  %v643_v45 = vmul.f32 %v1702_v38, %v1702_v38 }
 0x1d3   :  { %v617_v48 = vpop.f32.mrf.mxu1  ;;  %v706_v23 = vmul.f32 0.7978846, %v690_v5  ;;  %v778_v9 = vmul.f32 %v762_v56, %v1635_v2  ;;  %v772_v54 = vmul.f32 %v756_v30, %v1639_v39 }
 0x1d4   :  { %v718_v59 = vmul.f32 0.7978846, %v702_v27  ;;  %v694_v60 = vadd.f32 %v678_v43, %v1685_v14  ;;  %v655_v49 = vmul.f32 %v1699_v44, %v1699_v44  ;;  %v618_v55 = vadd.f32 %v1591_v62, %v617_v48 }
 0x1d5   :  { %v1025_v24 = vpop.eup %1024  ;;  %v659_v0 = vmul.f32 %v643_v45, %v1702_v38 }
 0x1d6   :  { %v747_v19 = vadd.f32 1.0, %v1025_v24  ;;  %v671_v63 = vmul.f32 %v655_v49, %v1699_v44  ;;  %v1027_v51 = vpop.eup %1026  ;;  %v710_v4 = vmul.f32 0.7978846, %v694_v60  ;;  %v647_v8 = vmul.f32 %v618_v55, %v618_v55 }
 0x1d7   :  { %v741_v17 = vadd.f32 1.0, %v1027_v51  ;;  %1028 = vtanh.f32 %v718_v59  ;;  %v675_v26 = vmul.f32 0.044715, %v659_v0 }
 0x1d8   :  { %v763_v13 = vmul.f32 0.5, %v747_v19  ;;  %v687_v29 = vmul.f32 0.044715, %v671_v63  ;;  %1030 = vtanh.f32 %v706_v23  ;;  %v663_v1 = vmul.f32 %v647_v8, %v618_v55 }
 0x1d9   :  { %v757_v62 = vmul.f32 0.5, %v741_v17  ;;  %1032 = vtanh.f32 %v710_v4  ;;  %v691_v42 = vadd.f32 %v675_v26, %v1702_v38 }
 0x1da   :  { %v779_v61 = vmul.f32 %v763_v13, %v1649_v36  ;;  %v703_v12 = vadd.f32 %v687_v29, %v1699_v44  ;;  %v679_v16 = vmul.f32 0.044715, %v663_v1 }
 0x1db   :  { %v773_v11 = vmul.f32 %v757_v62, %v1653_v28  ;;  %v707_v31 = vmul.f32 0.7978846, %v691_v42 }
 0x1dc   :  { %v938_v6 = vpack.c.bf16 %v779_v61, %v778_v9  ;;  %v719_v3 = vmul.f32 0.7978846, %v703_v12  ;;  %v695_v50 = vadd.f32 %v679_v16, %v618_v55 }
 0x1dd   :  { %v1029_v57 = vpop.eup %1028  ;;  %v923_v53 = vpack.c.bf16 %v773_v11, %v772_v54 }
 0x1de   :  { %961 = vst [vmem:[%s1743_s5 + $0x28] sm:$0xff] %v938_v6   ;;  %1034 = vtanh.f32 %v719_v3  ;;  %v1031_v2 = vpop.eup %1030  ;;  %v711_v36 = vmul.f32 0.7978846, %v695_v50  ;;  %v750_v28 = vadd.f32 1.0, %v1029_v57 }
 0x1df   :  { %1036 = vtanh.f32 %v707_v31  ;;  %958 = vst [vmem:[%s1743_s5 + $0x10] sm:$0xff] %v923_v53   ;;  %v1033_v39 = vpop.eup %1032  ;;  %v738_v58 = vadd.f32 1.0, %v1031_v2 }
 0x1e0   :  { %1038 = vtanh.f32 %v711_v36  ;;  %v742_v10 = vadd.f32 1.0, %v1033_v39  ;;  %v766_v52 = vmul.f32 0.5, %v750_v28 }
 0x1e1   :  { %v754_v7 = vmul.f32 0.5, %v738_v58 }
 0x1e2   :  { %v758_v18 = vmul.f32 0.5, %v742_v10  ;;  %v782_v46 = vmul.f32 %v766_v52, %v1674_v20 }
 0x1e3   :  { %v770_v41 = vmul.f32 %v754_v7, %v1677_v32 }
 0x1e4   :  { %v1035_v21 = vpop.eup %1034  ;;  %v774_v34 = vmul.f32 %v758_v18, %v1685_v14 }
 0x1e5   :  { %v1037_v22 = vpop.eup %1036  ;;  %v751_v35 = vadd.f32 1.0, %v1035_v21 }
 0x1e6   :  { %v739_v37 = vadd.f32 1.0, %v1037_v22  ;;  %v1039_v40 = vpop.eup %1038 }
 0x1e7   :  { %v767_v15 = vmul.f32 0.5, %v751_v35  ;;  %v743_v33 = vadd.f32 1.0, %v1039_v40 }
 0x1e8   :  { %v755_v47 = vmul.f32 0.5, %v739_v37 }
 0x1e9   :  { %v783_v25 = vmul.f32 %v767_v15, %v1699_v44  ;;  %v759_v5 = vmul.f32 0.5, %v743_v33 }
 0x1ea   :  { %v771_v27 = vmul.f32 %v755_v47, %v1702_v38 }
 0x1eb   :  { %v948_v43 = vpack.c.bf16 %v783_v25, %v782_v46  ;;  %v775_v59 = vmul.f32 %v759_v5, %v618_v55 }
 0x1ec   :  { %v918_v48 = vpack.c.bf16 %v771_v27, %v770_v41 }
 0x1ed   :  { %963 = vst [vmem:[%s1743_s5 + $0x38] sm:$0xff] %v948_v43   ;;  %v928_v20 = vpack.c.bf16 %v775_v59, %v774_v34 }
 0x1ee   :  { %957 = vst [vmem:[%s1743_s5 + $0x8] sm:$0xff] %v918_v48  }
 0x1ef   :  { %959 = vst [vmem:[%s1743_s5 + $0x18] sm:$0xff] %v928_v20  }

// kernel: vit_classifier_forward.37
= control target key start
LH: loop header
LB: loop body
LE: loop exit
PB: predicated region body
PF: predicated region fallthrough
CT: control target
= control target key end

     0   :  { %v269_v39 = vmov 2048.0   ;;  %s470_s0 = inlined_call_operand.vmem [shape: bf16[8,2048], index: 0, kind: input, shape index: {}]   ;;  %s471_s1 = inlined_call_operand.vmem [shape: f32[1,2048], index: 1, kind: input, shape index: {}]   ;;  %s472_s2 = inlined_call_operand.vmem [shape: f32[1,2048], index: 2, kind: input, shape index: {}]   ;;  %s473_s3 = inlined_call_operand.vmem [shape: bf16[8,2048], index: 3, kind: output, shape index: {}]  }
   0x1   :  { %v14_v0 = vld [vmem:[%s470_s0] sm:$0xff]  ;;  %v15_v1 = vld [vmem:[%s470_s0 + $0x8] sm:$0xff]  ;;  %v16_v5 = vld [vmem:[%s470_s0 + $0x10] sm:$0xff]  ;;  %265 = vrcp.f32 %v269_v39 }
   0x2   :  { %v22_v2 = vunpack.c.l.bf16 %v14_v0  ;;  %v23_v3 = vunpack.c.h.bf16 %v14_v0  ;;  %v24_v4 = vunpack.c.l.bf16 %v15_v1  ;;  %v25_v6 = vunpack.c.h.bf16 %v15_v1  ;;  %v17_v10 = vld [vmem:[%s470_s0 + $0x18] sm:$0xff]  ;;  %v18_v15 = vld [vmem:[%s470_s0 + $0x20] sm:$0xff]  ;;  %v19_v20 = vld [vmem:[%s470_s0 + $0x28] sm:$0xff] }
   0x3   :  { %v26_v8 = vunpack.c.l.bf16 %v16_v5  ;;  %v27_v11 = vunpack.c.h.bf16 %v16_v5  ;;  %v28_v13 = vunpack.c.l.bf16 %v17_v10  ;;  %v29_v16 = vunpack.c.h.bf16 %v17_v10  ;;  %v20_v25 = vld [vmem:[%s470_s0 + $0x30] sm:$0xff]  ;;  %v21_v30 = vld [vmem:[%s470_s0 + $0x38] sm:$0xff] }
   0x4   :  { %v38_v7 = vadd.f32 %v23_v3, %v22_v2  ;;  %v30_v18 = vunpack.c.l.bf16 %v18_v15  ;;  %v31_v21 = vunpack.c.h.bf16 %v18_v15  ;;  %v32_v23 = vunpack.c.l.bf16 %v19_v20 }
   0x5   :  { %v33_v26 = vunpack.c.h.bf16 %v19_v20  ;;  %v34_v28 = vunpack.c.l.bf16 %v20_v25  ;;  %v35_v31 = vunpack.c.h.bf16 %v20_v25  ;;  %v36_v33 = vunpack.c.l.bf16 %v21_v30 }
   0x6   :  { %v39_v9 = vadd.f32 %v38_v7, %v24_v4  ;;  %v37_v35 = vunpack.c.h.bf16 %v21_v30 }
   0x7   :  { %v266_v40 = vpop.eup %265 }
   0x8   :  { %v40_v12 = vadd.f32 %v39_v9, %v25_v6  ;;  %v56_v41 = vmul.f32 2048.0, %v266_v40  ;;  %vm60_vm0 = vweird.f32 %v266_v40 }
   0xa   :  { %v41_v14 = vadd.f32 %v40_v12, %v26_v8  ;;  %v57_v42 = vsub.f32 1.0, %v56_v41 }
   0xc   :  { %v42_v17 = vadd.f32 %v41_v14, %v27_v11  ;;  %v58_v43 = vmul.f32 %v266_v40, %v57_v42 }
   0xe   :  { %v43_v19 = vadd.f32 %v42_v17, %v28_v13  ;;  %v59_v44 = vadd.f32 %v266_v40, %v58_v43 }
  0x10   :  { %v44_v22 = vadd.f32 %v43_v19, %v29_v16  ;;  %v61_v45 = vsel %vm60_vm0, %v266_v40, %v59_v44  ;;  %v397_v44 = vld [vmem:[%s472_s2] sm:$0xff] }
  0x12   :  { %v45_v24 = vadd.f32 %v44_v22, %v30_v18 }
  0x14   :  { %v46_v27 = vadd.f32 %v45_v24, %v31_v21 }
  0x16   :  { %v47_v29 = vadd.f32 %v46_v27, %v32_v23 }
  0x18   :  { %v48_v32 = vadd.f32 %v47_v29, %v33_v26 }
  0x1a   :  { %v49_v34 = vadd.f32 %v48_v32, %v34_v28 }
  0x1c   :  { %v50_v36 = vadd.f32 %v49_v34, %v35_v31  ;;  %v381_v34 = vld [vmem:[%s471_s1] sm:$0xff] }
  0x1d   :  { %v145_v39 = vperm.slane %v381_v34, 1  ;;  %v146_v40 = vperm.slane %v381_v34, 2  ;;  %v147_v41 = vperm.slane %v381_v34, 3  ;;  %v148_v42 = vperm.slane %v381_v34, 4 }
  0x1e   :  { %v51_v37 = vadd.f32 %v50_v36, %v36_v33  ;;  %v386_v36 = vld [vmem:[%s471_s1 + $0x8] sm:$0xff]  ;;  %v149_v43 = vperm.slane %v381_v34, 5 }
  0x20   :  { %v52_v38 = vadd.f32 %v51_v37, %v37_v35 }
  0x22   :  { %53 = vadd.xlane.f32.xlu0 %v52_v38  ;;  %v144_v38 = vperm.slane %v381_v34, 0 }
  0x95   :  { %v54_v46 = vpop.xlane.xlu0 %53 }
  0x96   :  { %v62_v47 = vmul.f32 %v61_v45, %v54_v46  ;;  %v150_v46 = vperm.slane %v381_v34, 6 }
  0x98   :  { %v314_v48 = vsub.f32 %v22_v2, %v62_v47  ;;  %v316_v49 = vsub.f32 %v23_v3, %v62_v47  ;;  %v318_v50 = vsub.f32 %v24_v4, %v62_v47  ;;  %v324_v53 = vsub.f32 %v25_v6, %v62_v47 }
  0x99   :  { %v326_v54 = vsub.f32 %v26_v8, %v62_v47  ;;  %v330_v57 = vsub.f32 %v27_v11, %v62_v47  ;;  %v334_v60 = vsub.f32 %v28_v13, %v62_v47  ;;  %v338_v63 = vsub.f32 %v29_v16, %v62_v47 }
  0x9a   :  { %v79_v51 = vmul.f32 %v314_v48, %v314_v48  ;;  %v80_v52 = vmul.f32 %v316_v49, %v316_v49  ;;  %v81_v55 = vmul.f32 %v318_v50, %v318_v50  ;;  %v82_v58 = vmul.f32 %v324_v53, %v324_v53 }
  0x9b   :  { %v83_v61 = vmul.f32 %v326_v54, %v326_v54  ;;  %v84_v0 = vmul.f32 %v330_v57, %v330_v57  ;;  %v342_v2 = vsub.f32 %v30_v18, %v62_v47  ;;  %v85_v3 = vmul.f32 %v334_v60, %v334_v60 }
  0x9c   :  { %v95_v56 = vadd.f32 %v80_v52, %v79_v51  ;;  %v346_v5 = vsub.f32 %v31_v21, %v62_v47  ;;  %v86_v6 = vmul.f32 %v338_v63, %v338_v63  ;;  %v350_v8 = vsub.f32 %v32_v23, %v62_v47 }
  0x9d   :  { %v87_v9 = vmul.f32 %v342_v2, %v342_v2  ;;  %v354_v11 = vsub.f32 %v33_v26, %v62_v47  ;;  %v358_v14 = vsub.f32 %v34_v28, %v62_v47  ;;  %v362_v17 = vsub.f32 %v35_v31, %v62_v47 }
  0x9e   :  { %v96_v59 = vadd.f32 %v95_v56, %v81_v55  ;;  %v88_v12 = vmul.f32 %v346_v5, %v346_v5  ;;  %v89_v15 = vmul.f32 %v350_v8, %v350_v8  ;;  %v366_v20 = vsub.f32 %v36_v33, %v62_v47 }
  0x9f   :  { %v90_v18 = vmul.f32 %v354_v11, %v354_v11  ;;  %v91_v21 = vmul.f32 %v358_v14, %v358_v14  ;;  %v370_v23 = vsub.f32 %v37_v35, %v62_v47  ;;  %v92_v24 = vmul.f32 %v362_v17, %v362_v17 }
  0xa0   :  { %v97_v62 = vadd.f32 %v96_v59, %v82_v58  ;;  %v93_v26 = vmul.f32 %v366_v20, %v366_v20  ;;  %v151_v47 = vperm.slane %v381_v34, 7  ;;  %v152_v51 = vperm.slane %v386_v36, 0 }
  0xa1   :  { %v94_v28 = vmul.f32 %v370_v23, %v370_v23  ;;  %v153_v52 = vperm.slane %v386_v36, 1  ;;  %v154_v55 = vperm.slane %v386_v36, 2  ;;  %v155_v56 = vperm.slane %v386_v36, 3 }
  0xa2   :  { %v98_v1 = vadd.f32 %v97_v62, %v83_v61  ;;  %v156_v58 = vperm.slane %v386_v36, 4  ;;  %v157_v61 = vperm.slane %v386_v36, 5  ;;  %v158_v62 = vperm.slane %v386_v36, 6 }
  0xa4   :  { %v99_v4 = vadd.f32 %v98_v1, %v84_v0  ;;  %v159_v0 = vperm.slane %v386_v36, 7  ;;  %v412_v1 = vld [vmem:[%s472_s2 + $0x8] sm:$0xff] }
  0xa6   :  { %v100_v7 = vadd.f32 %v99_v4, %v85_v3  ;;  %v196_v3 = vperm.slane %v397_v44, 0  ;;  %v197_v4 = vperm.slane %v397_v44, 1 }
  0xa8   :  { %v101_v10 = vadd.f32 %v100_v7, %v86_v6  ;;  %v198_v6 = vperm.slane %v397_v44, 2 }
  0xaa   :  { %v102_v13 = vadd.f32 %v101_v10, %v87_v9  ;;  %v199_v9 = vperm.slane %v397_v44, 3  ;;  %v200_v10 = vperm.slane %v397_v44, 4 }
  0xac   :  { %v103_v16 = vadd.f32 %v102_v13, %v88_v12  ;;  %v201_v12 = vperm.slane %v397_v44, 5  ;;  %v202_v13 = vperm.slane %v397_v44, 6 }
  0xae   :  { %v104_v19 = vadd.f32 %v103_v16, %v89_v15  ;;  %v203_v15 = vperm.slane %v397_v44, 7  ;;  %v204_v16 = vperm.slane %v412_v1, 0 }
  0xb0   :  { %v105_v22 = vadd.f32 %v104_v19, %v90_v18  ;;  %v205_v19 = vperm.slane %v412_v1, 1 }
  0xb2   :  { %v106_v25 = vadd.f32 %v105_v22, %v91_v21  ;;  %v206_v21 = vperm.slane %v412_v1, 2  ;;  %v207_v22 = vperm.slane %v412_v1, 3 }
  0xb4   :  { %v107_v27 = vadd.f32 %v106_v25, %v92_v24  ;;  %v208_v24 = vperm.slane %v412_v1, 4  ;;  %v209_v25 = vperm.slane %v412_v1, 5 }
  0xb6   :  { %v108_v29 = vadd.f32 %v107_v27, %v93_v26  ;;  %v210_v26 = vperm.slane %v412_v1, 6  ;;  %v211_v27 = vperm.slane %v412_v1, 7 }
  0xb8   :  { %v109_v30 = vadd.f32 %v108_v29, %v94_v28 }
  0xba   :  { %110 = vadd.xlane.f32.xlu0 %v109_v30 }
 0x12d   :  { %v111_v31 = vpop.xlane.xlu0 %110 }
 0x12e   :  { %v112_v32 = vmul.f32 %v111_v31, %v61_v45 }
 0x130   :  { %v113_v33 = vadd.f32 1e-05, %v112_v32 }
 0x132   :  { %267 = vrsqrt.f32 %v113_v33  ;;  %vm120_vm2 = vweird.f32 %v113_v33 }
 0x138   :  { %v268_v35 = vpop.eup %267 }
 0x139   :  { %v115_v37 = vmul.f32 %v268_v35, %v113_v33  ;;  %vm121_vm1 = vweird.f32 %v268_v35 }
 0x13a   :  { %vm122_vm3 = vmor %vm120_vm2, %vm121_vm1 }
 0x13b   :  { %v116_v45 = vmul.f32 %v268_v35, %v115_v37 }
 0x13d   :  { %v117_v59 = vmul.f32 0.5, %v116_v45 }
 0x13f   :  { %v118_v7 = vsub.f32 1.5, %v117_v59 }
 0x141   :  { %v119_v18 = vmul.f32 %v268_v35, %v118_v7 }
 0x143   :  { %v123_v28 = vsel %vm122_vm3, %v268_v35, %v119_v18 }
 0x144   :  { %v124_v29 = vmul.f32 %v123_v28, %v314_v48  ;;  %v125_v30 = vmul.f32 %v123_v28, %v316_v49  ;;  %v126_v31 = vmul.f32 %v123_v28, %v318_v50  ;;  %v127_v32 = vmul.f32 %v123_v28, %v324_v53 }
 0x145   :  { %v128_v33 = vmul.f32 %v123_v28, %v326_v54  ;;  %v129_v34 = vmul.f32 %v123_v28, %v330_v57  ;;  %v130_v36 = vmul.f32 %v123_v28, %v334_v60  ;;  %v131_v37 = vmul.f32 %v123_v28, %v338_v63 }
 0x146   :  { %v132_v44 = vmul.f32 %v123_v28, %v342_v2  ;;  %v133_v35 = vmul.f32 %v123_v28, %v346_v5  ;;  %v134_v48 = vmul.f32 %v123_v28, %v350_v8  ;;  %v135_v49 = vmul.f32 %v123_v28, %v354_v11 }
 0x147   :  { %v136_v50 = vmul.f32 %v123_v28, %v358_v14  ;;  %v137_v53 = vmul.f32 %v123_v28, %v362_v17  ;;  %v138_v54 = vmul.f32 %v123_v28, %v366_v20  ;;  %v139_v57 = vmul.f32 %v123_v28, %v370_v23 }
 0x148   :  { %v176_v45 = vmul.f32 %v144_v38, %v124_v29  ;;  %v177_v60 = vmul.f32 %v145_v39, %v125_v30  ;;  %v178_v59 = vmul.f32 %v146_v40, %v126_v31  ;;  %v179_v63 = vmul.f32 %v147_v41, %v127_v32 }
 0x149   :  { %v180_v1 = vmul.f32 %v148_v42, %v128_v33  ;;  %v181_v2 = vmul.f32 %v149_v43, %v129_v34  ;;  %v182_v7 = vmul.f32 %v150_v46, %v130_v36  ;;  %v183_v5 = vmul.f32 %v151_v47, %v131_v37 }
 0x14a   :  { %v184_v18 = vmul.f32 %v152_v51, %v132_v44  ;;  %v185_v8 = vmul.f32 %v153_v52, %v133_v35  ;;  %v186_v11 = vmul.f32 %v154_v55, %v134_v48  ;;  %v187_v14 = vmul.f32 %v155_v56, %v135_v49 }
 0x14b   :  { %v188_v17 = vmul.f32 %v156_v58, %v136_v50  ;;  %v189_v20 = vmul.f32 %v157_v61, %v137_v53  ;;  %v190_v23 = vmul.f32 %v158_v62, %v138_v54  ;;  %v191_v28 = vmul.f32 %v159_v0, %v139_v57 }
 0x14c   :  { %v228_v29 = vadd.f32 %v196_v3, %v176_v45  ;;  %v229_v38 = vadd.f32 %v197_v4, %v177_v60  ;;  %v230_v30 = vadd.f32 %v198_v6, %v178_v59  ;;  %v231_v39 = vadd.f32 %v199_v9, %v179_v63 }
 0x14d   :  { %v232_v31 = vadd.f32 %v200_v10, %v180_v1  ;;  %v233_v40 = vadd.f32 %v201_v12, %v181_v2  ;;  %v234_v32 = vadd.f32 %v202_v13, %v182_v7  ;;  %v235_v41 = vadd.f32 %v203_v15, %v183_v5 }
 0x14e   :  { %v236_v42 = vadd.f32 %v204_v16, %v184_v18  ;;  %v237_v43 = vadd.f32 %v205_v19, %v185_v8  ;;  %v238_v46 = vadd.f32 %v206_v21, %v186_v11  ;;  %v239_v47 = vadd.f32 %v207_v22, %v187_v14 }
 0x14f   :  { %v240_v51 = vadd.f32 %v208_v24, %v188_v17  ;;  %v241_v52 = vadd.f32 %v209_v25, %v189_v20  ;;  %v244_v55 = vpack.c.bf16 %v229_v38, %v228_v29  ;;  %v245_v56 = vpack.c.bf16 %v231_v39, %v230_v30 }
 0x150   :  { %v246_v58 = vpack.c.bf16 %v233_v40, %v232_v31  ;;  %v242_v61 = vadd.f32 %v210_v26, %v190_v23  ;;  %v243_v62 = vadd.f32 %v211_v27, %v191_v28  ;;  %v247_v0 = vpack.c.bf16 %v235_v41, %v234_v32 }
 0x151   :  { %v248_v3 = vpack.c.bf16 %v237_v43, %v236_v42  ;;  %252 = vst [vmem:[%s473_s3] sm:$0xff] %v244_v55  ;;  %v249_v4 = vpack.c.bf16 %v239_v47, %v238_v46  ;;  %v250_v6 = vpack.c.bf16 %v241_v52, %v240_v51 }
 0x152   :  { %253 = vst [vmem:[%s473_s3 + $0x8] sm:$0xff] %v245_v56  ;;  %v251_v9 = vpack.c.bf16 %v243_v62, %v242_v61 }
 0x153   :  { %254 = vst [vmem:[%s473_s3 + $0x10] sm:$0xff] %v246_v58 }
 0x154   :  { %255 = vst [vmem:[%s473_s3 + $0x18] sm:$0xff] %v247_v0 }
 0x155   :  { %256 = vst [vmem:[%s473_s3 + $0x20] sm:$0xff] %v248_v3 }
 0x156   :  { %257 = vst [vmem:[%s473_s3 + $0x28] sm:$0xff] %v249_v4 }
 0x157   :  { %258 = vst [vmem:[%s473_s3 + $0x30] sm:$0xff] %v250_v6 }
 0x158   :  { %259 = vst [vmem:[%s473_s3 + $0x38] sm:$0xff] %v251_v9 }

// kernel: vit_classifier_forward.40
= control target key start
LH: loop header
LB: loop body
LE: loop exit
PB: predicated region body
PF: predicated region fallthrough
CT: control target
= control target key end

     0   :  { %s594_s9 = smov 0   ;;  %s708_s0 = inlined_call_operand.vmem [shape: bf16[2,64,8], index: 0, kind: input, shape index: {}]   ;;  %s709_s1 = inlined_call_operand.vmem [shape: bf16[2,64,32], index: 1, kind: input, shape index: {}]   ;;  %s710_s2 = inlined_call_operand.vmem [shape: bf16[2,8,32], index: 2, kind: output, shape index: {}]  }
   0x1 LB: > { %s468_s10 = sadd.s32 4294967295, %s577_s9   ;;  %p472_p0 = scmp.ge.s32.totalorder %s577_s9, 1  ;;  %s577_s9 = sphi %s594_s9, %s12_s9  }
   0x2   : > { %p122_p1 = scmp.lt.s32.totalorder %s577_s9, 3 }
   0x4   : > { %p123_p2 = pnand %p472_p0, %p122_p1 }
   0x5   : > { %p148_p3 = scmp.lt.s32.totalorder (!%p123_p2), %s468_s10, 1 }
   0x6   : > { %126 = sbr.rel (%p123_p2) target bundleno = 355 (0x163), region = 28 }
   0xb   : > { %s720_s10 = smov (!%p148_p3, %s468_s10), 1 }
   0xc   : > { %s505_s11 = sshll.u32 %s720_s10, 5  ;;  %s477_s18 = sshll.u32 %s720_s10, 2 }
   0xd   : > { %s610_s14 = scalar_lea.vmem %s708_s0, %s505_s11  ;;  %s675_s17 = scalar_lea.vmem %s709_s1, %s505_s11 }
   0xe   : > { %v512_v0 = vld [vmem:[%s610_s14] sm:$0xff]   ;;  %v527_v1 = vld [vmem:[%s610_s14 + $0x8] sm:$0xff]   ;;  %v528_v10 = vld [vmem:[%s610_s14 + $0x10] sm:$0xff]   ;;  %s161_s21 = scalar_lea.vmem %s710_s2, %s477_s18 }
   0xf   : > { %v513_v2 = vunpack.c.l.bf16 %v512_v0  ;;  %v514_v3 = vunpack.c.h.bf16 %v512_v0  ;;  %v517_v4 = vunpack.c.l.bf16 %v527_v1  ;;  %v518_v5 = vunpack.c.h.bf16 %v527_v1  ;;  %v529_v40 = vld [vmem:[%s610_s14 + $0x18] sm:$0xff]  }
  0x10   : > { %v521_v11 = vunpack.c.l.bf16 %v528_v10  ;;  %v522_v12 = vunpack.c.h.bf16 %v528_v10  ;;  %v525_v52 = vunpack.c.l.bf16 %v529_v40  ;;  %v526_v54 = vunpack.c.h.bf16 %v529_v40 }
  0x11   : > { %v478_v6 = vmul.f32 -1.442695, %v513_v2  ;;  %v479_v7 = vmul.f32 -1.442695, %v514_v3  ;;  %v480_v8 = vmul.f32 -1.442695, %v517_v4 }
  0x12   : > { %v481_v9 = vmul.f32 -1.442695, %v518_v5  ;;  %v482_v16 = vmul.f32 -1.442695, %v521_v11  ;;  %v483_v19 = vmul.f32 -1.442695, %v522_v12 }
  0x13   : > { %539 = vpow2.f32 %v478_v6  ;;  %v484_v61 = vmul.f32 -1.442695, %v525_v52  ;;  %v485_v62 = vmul.f32 -1.442695, %v526_v54 }
  0x14   : > { %541 = vpow2.f32 %v479_v7 }
  0x15   : > { %543 = vpow2.f32 %v480_v8 }
  0x16   : > { %545 = vpow2.f32 %v481_v9 }
  0x19   : > { %v540_v13 = vpop.eup %539 }
  0x1a   : > { %v542_v14 = vpop.eup %541  ;;  %v203_v15 = vadd.f32 1.0, %v540_v13 }
  0x1b   : > { %v544_v17 = vpop.eup %543  ;;  %v204_v18 = vadd.f32 1.0, %v542_v14 }
  0x1c   : > { %v546_v20 = vpop.eup %545  ;;  %547 = vrcp.f32 %v203_v15  ;;  %v615_v21 = vadd.f32 1.0, %v544_v17  ;;  %v220_v26 = vand.u32 2147483647, %v203_v15  ;;  %vm216_vm0 = vweird.f32 %v203_v15 }
  0x1d   : > { %549 = vrcp.f32 %v204_v18  ;;  %v617_v22 = vadd.f32 1.0, %v546_v20  ;;  %v222_v28 = vand.u32 2147483648, %v203_v15  ;;  %v235_v32 = vand.u32 2147483647, %v204_v18 }
  0x1e   : > { %551 = vpow2.f32 %v482_v16  ;;  %v237_v33 = vand.u32 2147483648, %v204_v18  ;;  %vm231_vm2 = vweird.f32 %v204_v18  ;;  %vm623_vm4 = vcmp.eq.f32.partialorder %v220_v26, 8.507059e+37 }
  0x1f   : > { %553 = vpow2.f32 %v483_v19  ;;  %v223_v42 = vor.u32 1.1754944e-38, %v222_v28  ;;  %vm236_vm7 = vcmp.eq.f32.partialorder %v235_v32, 8.507059e+37  ;;  %vm246_vm8 = vweird.f32 %v615_v21 }
  0x20   : > { %555 = vrcp.f32 %v615_v21  ;;  %v238_v47 = vor.u32 1.1754944e-38, %v237_v33  ;;  %v250_v63 = vand.u32 2147483647, %v615_v21  ;;  %vm261_vm10 = vweird.f32 %v617_v22 }
  0x21   : > { %557 = vrcp.f32 %v617_v22  ;;  %v252_v0 = vand.u32 2147483648, %v615_v21  ;;  %v265_v1 = vand.u32 2147483647, %v617_v22  ;;  %v267_v2 = vand.u32 2147483648, %v617_v22 }
  0x22   : > { %v548_v23 = vpop.eup %547  ;;  %vm251_vm14 = vcmp.eq.f32.partialorder %v250_v63, 8.507059e+37 }
  0x23   : > { %v550_v24 = vpop.eup %549  ;;  %v212_v25 = vmul.f32 %v548_v23, %v203_v15  ;;  %vm217_vm1 = vweird.f32 %v548_v23  ;;  %v253_v8 = vor.u32 1.1754944e-38, %v252_v0  ;;  %vm266_vm15 = vcmp.eq.f32.partialorder %v265_v1, 8.507059e+37 }
  0x24   : > { %v552_v27 = vpop.eup %551  ;;  %v227_v29 = vmul.f32 %v550_v24, %v204_v18  ;;  %vm232_vm3 = vweird.f32 %v550_v24  ;;  %vm631_vm5 = vmor %vm216_vm0, %vm217_vm1  ;;  %v268_v9 = vor.u32 1.1754944e-38, %v267_v2 }
  0x25   : > { %v554_v30 = vpop.eup %553  ;;  %v213_v31 = vsub.f32 1.0, %v212_v25  ;;  %v636_v45 = vadd.f32 1.0, %v552_v27  ;;  %vm233_vm6 = vmor %vm231_vm2, %vm232_vm3  ;;  %v510_v25 = vld [vmem:[%s675_s17 + $0x18] sm:$0xff] }
  0x26   : > { %v621_v34 = vpop.eup %555  ;;  %v228_v35 = vsub.f32 1.0, %v227_v29  ;;  %v638_v48 = vadd.f32 1.0, %v554_v30  ;;  %391 = vmatpush.bf16.msra.mxu0 %v510_v25 }
  0x27   : > { %v558_v36 = vpop.eup %557  ;;  %v214_v37 = vmul.f32 %v548_v23, %v213_v31  ;;  %v242_v39 = vmul.f32 %v621_v34, %v615_v21  ;;  %559 = vrcp.f32 %v636_v45  ;;  %vm247_vm9 = vweird.f32 %v621_v34 }
  0x28   : > { %v229_v43 = vmul.f32 %v550_v24, %v228_v35  ;;  %v257_v44 = vmul.f32 %v558_v36, %v617_v22  ;;  %561 = vrcp.f32 %v638_v48  ;;  %vm262_vm11 = vweird.f32 %v558_v36  ;;  %vm655_vm12 = vmor %vm246_vm8, %vm247_vm9 }
  0x29   : > { %v215_v46 = vadd.f32 %v548_v23, %v214_v37  ;;  %v243_v50 = vsub.f32 1.0, %v242_v39  ;;  %563 = vpow2.f32 %v484_v61  ;;  %vm263_vm13 = vmor %vm261_vm10, %vm262_vm11  ;;  %vm276_vm0 = vweird.f32 %v636_v45 }
  0x2a   : > { %v230_v49 = vadd.f32 %v550_v24, %v229_v43  ;;  %v258_v51 = vsub.f32 1.0, %v257_v44  ;;  %565 = vpow2.f32 %v485_v62  ;;  %vm291_vm2 = vweird.f32 %v638_v48 }
  0x2b   : > { %v219_v53 = vsel %vm631_vm5, %v548_v23, %v215_v46  ;;  %v244_v59 = vmul.f32 %v621_v34, %v243_v50  ;;  %v280_v26 = vand.u32 2147483647, %v636_v45  ;;  %v282_v27 = vand.u32 2147483648, %v636_v45 }
  0x2c   : > { %v224_v55 = vsel %vm623_vm4, %v223_v42, %v219_v53  ;;  %v234_v56 = vsel %vm233_vm6, %v550_v24, %v230_v49  ;;  %v259_v60 = vmul.f32 %v558_v36, %v258_v51  ;;  %v295_v28 = vand.u32 2147483647, %v638_v48  ;;  %v508_v42 = vld [vmem:[%s675_s17 + $0x8] sm:$0xff] }
  0x2d   : > { %v239_v57 = vsel %vm236_vm7, %v238_v47, %v234_v56  ;;  %v560_v3 = vpop.eup %559  ;;  %v245_v4 = vadd.f32 %v621_v34, %v244_v59  ;;  %v297_v29 = vand.u32 2147483648, %v638_v48  ;;  %vm281_vm6 = vcmp.eq.f32.partialorder %v280_v26, 8.507059e+37  ;;  %v507_v47 = vld [vmem:[%s675_s17] sm:$0xff] }
  0x2e   : > { %v331_v58 = vpack.c.bf16 %v239_v57, %v224_v55  ;;  %v260_v6 = vadd.f32 %v558_v36, %v259_v60  ;;  %v562_v7 = vpop.eup %561  ;;  %v272_v13 = vmul.f32 %v560_v3, %v636_v45  ;;  %vm277_vm1 = vweird.f32 %v560_v3 }
  0x2f   : > { %v564_v10 = vpop.eup %563  ;;  %v249_v11 = vsel %vm655_vm12, %v621_v34, %v245_v4  ;;  %v287_v14 = vmul.f32 %v562_v7, %v638_v48  ;;  %vm292_vm3 = vweird.f32 %v562_v7  ;;  %vm684_vm4 = vmor %vm276_vm0, %vm277_vm1  ;;  %v509_v34 = vld [vmem:[%s675_s17 + $0x10] sm:$0xff]  ;;  %vm296_vm7 = vcmp.eq.f32.partialorder %v295_v28, 8.507059e+37 }
  0x30   : > { %343 = vxpose.xlu0.c.b16.start [1/4] (short) (narrow) %v331_v58, 16  ;;  %v264_v12 = vsel %vm263_vm13, %v558_v36, %v260_v6  ;;  %v566_v15 = vpop.eup %565  ;;  %v664_v16 = vadd.f32 1.0, %v564_v10  ;;  %v254_v17 = vsel %vm251_vm14, %v253_v8, %v249_v11  ;;  %v273_v20 = vsub.f32 1.0, %v272_v13  ;;  %vm293_vm5 = vmor %vm291_vm2, %vm292_vm3  ;;  %392 = vmatpush.bf16.msra.mxu0 %v509_v34 }
  0x31   : > { %v269_v18 = vsel %vm266_vm15, %v268_v9, %v264_v12  ;;  %v666_v19 = vadd.f32 1.0, %v566_v15  ;;  %v288_v21 = vsub.f32 1.0, %v287_v14  ;;  %v283_v36 = vor.u32 1.1754944e-38, %v282_v27 }
  0x32   : > { %v332_v22 = vpack.c.bf16 %v269_v18, %v254_v17  ;;  %567 = vrcp.f32 %v664_v16  ;;  %v274_v23 = vmul.f32 %v560_v3, %v273_v20  ;;  %v298_v37 = vor.u32 1.1754944e-38, %v297_v29 }
  0x33   : > { %569 = vrcp.f32 %v666_v19  ;;  %v289_v24 = vmul.f32 %v562_v7, %v288_v21  ;;  %vm306_vm8 = vweird.f32 %v664_v16  ;;  %vm321_vm10 = vweird.f32 %v666_v19 }
  0x34   : > { %v275_v31 = vadd.f32 %v560_v3, %v274_v23  ;;  %393 = vmatpush.bf16.msra.mxu0 %v508_v42  ;;  %v312_v51 = vand.u32 2147483648, %v664_v16  ;;  %v327_v52 = vand.u32 2147483648, %v666_v19  ;;  %v310_v54 = vand.u32 2147483647, %v664_v16 }
  0x35   : > { %v290_v33 = vadd.f32 %v562_v7, %v289_v24  ;;  %v325_v56 = vand.u32 2147483647, %v666_v19  ;;  %vm383_vm0 = vcmask 523264   ;;  %vm401_vm1 = vcmask 257024  }
  0x36   : > { %v279_v38 = vsel %vm684_vm4, %v560_v3, %v275_v31  ;;  %v313_v57 = vor.u32 1.1754944e-38, %v312_v51  ;;  %v328_v58 = vor.u32 1.1754944e-38, %v327_v52  ;;  %vm311_vm14 = vcmp.eq.f32.partialorder %v310_v54, 8.507059e+37 }
  0x37   : > { %v294_v39 = vsel %vm293_vm5, %v562_v7, %v290_v33  ;;  %v284_v43 = vsel %vm281_vm6, %v283_v36, %v279_v38  ;;  %vm326_vm15 = vcmp.eq.f32.partialorder %v325_v56, 8.507059e+37 }
  0x38   : > { %v568_v30 = vpop.eup %567  ;;  %v299_v44 = vsel %vm296_vm7, %v298_v37, %v294_v39  ;;  %394 = vmatpush.bf16.msra.mxu0 %v507_v47 }
  0x39   : > { %v570_v35 = vpop.eup %569  ;;  %v302_v40 = vmul.f32 %v568_v30, %v664_v16  ;;  %v333_v48 = vpack.c.bf16 %v299_v44, %v284_v43  ;;  %vm307_vm9 = vweird.f32 %v568_v30 }
  0x3a   : > { %v317_v41 = vmul.f32 %v570_v35, %v666_v19  ;;  %vm322_vm11 = vweird.f32 %v570_v35  ;;  %vm308_vm12 = vmor %vm306_vm8, %vm307_vm9 }
  0x3b   : > { %v303_v45 = vsub.f32 1.0, %v302_v40  ;;  %vm323_vm13 = vmor %vm321_vm10, %vm322_vm11 }
  0x3c   : > { %v318_v46 = vsub.f32 1.0, %v317_v41 }
  0x3d   : > { %v304_v49 = vmul.f32 %v568_v30, %v303_v45 }
  0x3e   : > { %v319_v50 = vmul.f32 %v570_v35, %v318_v46 }
  0x3f   : > { %v305_v53 = vadd.f32 %v568_v30, %v304_v49 }
  0x40   : > { %344 = vxpose.xlu0.c.b16.cont [2/4] (short) (narrow) %v332_v22, 16  ;;  %v320_v55 = vadd.f32 %v570_v35, %v319_v50 }
  0x41   : > { %v309_v59 = vsel %vm308_vm12, %v568_v30, %v305_v53 }
  0x42   : > { %v324_v60 = vsel %vm323_vm13, %v570_v35, %v320_v55  ;;  %v314_v61 = vsel %vm311_vm14, %v313_v57, %v309_v59 }
  0x43   : > { %v329_v62 = vsel %vm326_vm15, %v328_v58, %v324_v60 }
  0x44   : > { %v334_v63 = vpack.c.bf16 %v329_v62, %v314_v61 }
  0x50   : > { %345 = vxpose.xlu0.c.b16.cont [3/4] (short) (narrow) %v333_v48, 16 }
  0x60   : > { %346 = vxpose.xlu0.c.b16.end [4/4] (short) (narrow) %v334_v63, 16 }
  0xdc   : > { %v351_v0 = vpop.trf.xlu0 }
  0xdd   : > { %502 = vmatmul.msk.bf16.vlgmr.msra.gmra.mxu0 %vm383_vm0, %v351_v0 }
 0x15a   : > { %v396_v1 = vpop.f32.mrf.mxu0 }
 0x15b   : > { %v400_v2 = vpack.c.bf16 %v396_v1, %v396_v1 }
 0x15d   : > { %402 = vst.msk [vmem:[%s161_s21] sm:$0xf] %vm401_vm1, %v400_v2 }
 0x162   : > { %v398_v3 = vpop.f32.mrf.mxu0 }
 0x163 PF: > { %s12_s9 = sadd.s32 1, %s577_s9  }
 0x164   : > { %p9_p4 = scmp.ge.s32.totalorder %s12_s9, 4  }
 0x166   :  { %11 = sbr.rel (!%p9_p4) target bundleno = 1 (0x1), region = 61 }

// kernel: vit_classifier_forward.41
= control target key start
LH: loop header
LB: loop body
LE: loop exit
PB: predicated region body
PF: predicated region fallthrough
CT: control target
= control target key end

     0   :  { %vm29_vm0 = vcmask 261120   ;;  %v186_v5 = vmov 32.0   ;;  %vm95_vm6 = vcmask 257024   ;;  %s243_s0 = inlined_call_operand.vmem [shape: bf16[16,32], index: 0, kind: input, shape index: {}]   ;;  %s244_s1 = inlined_call_operand.vmem [shape: f32[1,32], index: 1, kind: input, shape index: {}]   ;;  %s245_s2 = inlined_call_operand.vmem [shape: f32[1,32], index: 2, kind: input, shape index: {}]   ;;  %s246_s4 = inlined_call_operand.vmem [shape: f32[1,128], index: 4, kind: input, shape index: {}]   ;;  %s247_s3 = inlined_call_operand.vmem [shape: bf16[32,128], index: 3, kind: input, shape index: {}]   ;;  %s248_s5 = inlined_call_operand.vmem [shape: bf16[16,128], index: 5, kind: output, shape index: {}]  }
   0x1   :  { %v168_v0 = vld [vmem:[%s243_s0] sm:$0xff]   ;;  %180 = vrcp.f32 %v186_v5  ;;  %v166_v25 = vld [vmem:[%s247_s3 + $0x8] sm:$0xff] }
   0x2   :  { %v169_v1 = vunpack.c.l.bf16 %v168_v0  ;;  %v170_v3 = vunpack.c.h.bf16 %v168_v0  ;;  %135 = vmatpush.bf16.msra.mxu0 %v166_v25  ;;  %v165_v28 = vld [vmem:[%s247_s3] sm:$0xff] }
   0x3   :  { %v177_v38 = vld [vmem:[%s244_s1] ss:$0 sm:$0xff] }
   0x4   :  { %v30_v2 = vsel %vm29_vm0, %v169_v1, 0.0  ;;  %v33_v4 = vsel %vm29_vm0, %v170_v3, 0.0  ;;  %v178_v41 = vld [vmem:[%s245_s2] ss:$0 sm:$0xff] }
   0x5   :  { %31 = vadd.xlane.f32.xlu0 %v30_v2  ;;  %v179_v56 = vld [vmem:[%s246_s4] ss:$0 sm:$0xff] }
   0x6   :  { %136 = vmatpush.bf16.msra.mxu0 %v165_v28 }
   0x7   :  { %v181_v6 = vpop.eup %180 }
   0x8   :  { %v37_v7 = vmul.f32 32.0, %v181_v6  ;;  %vm41_vm1 = vweird.f32 %v181_v6 }
   0xa   :  { %v38_v8 = vsub.f32 1.0, %v37_v7 }
   0xc   :  { %v39_v9 = vmul.f32 %v181_v6, %v38_v8 }
   0xd   :  { %34 = vadd.xlane.f32.xlu0 %v33_v4 }
   0xe   :  { %v40_v10 = vadd.f32 %v181_v6, %v39_v9 }
  0x10   :  { %v42_v11 = vsel %vm41_vm1, %v181_v6, %v40_v10 }
  0x78   :  { %v32_v12 = vpop.xlane.xlu0 %31 }
  0x79   :  { %v43_v13 = vmul.f32 %v42_v11, %v32_v12 }
  0x7b   :  { %v45_v14 = vsub.f32 %v169_v1, %v43_v13 }
  0x7d   :  { %v47_v15 = vmul.f32 %v45_v14, %v45_v14 }
  0x7f   :  { %v49_v16 = vsel %vm29_vm0, %v47_v15, 0.0 }
  0x80   :  { %50 = vadd.xlane.f32.xlu1 %v49_v16  ;;  %v35_v17 = vpop.xlane.xlu0 %34 }
  0x81   :  { %v44_v18 = vmul.f32 %v42_v11, %v35_v17 }
  0x83   :  { %v46_v19 = vsub.f32 %v170_v3, %v44_v18 }
  0x85   :  { %v48_v20 = vmul.f32 %v46_v19, %v46_v19 }
  0x87   :  { %v52_v21 = vsel %vm29_vm0, %v48_v20, 0.0 }
  0x88   :  { %53 = vadd.xlane.f32.xlu1 %v52_v21 }
  0xf3   :  { %v51_v22 = vpop.xlane.xlu1 %50 }
  0xf4   :  { %v55_v23 = vmul.f32 %v51_v22, %v42_v11 }
  0xf6   :  { %v57_v24 = vadd.f32 1e-05, %v55_v23 }
  0xf8   :  { %182 = vrsqrt.f32 %v57_v24  ;;  %vm65_vm3 = vweird.f32 %v57_v24 }
  0xfb   :  { %v54_v26 = vpop.xlane.xlu1 %53 }
  0xfc   :  { %v56_v27 = vmul.f32 %v54_v26, %v42_v11 }
  0xfe   :  { %v183_v29 = vpop.eup %182  ;;  %v58_v30 = vadd.f32 1e-05, %v56_v27 }
  0xff   :  { %v60_v31 = vmul.f32 %v183_v29, %v57_v24  ;;  %vm66_vm2 = vweird.f32 %v183_v29 }
 0x100   :  { %184 = vrsqrt.f32 %v58_v30  ;;  %vm67_vm4 = vmor %vm65_vm3, %vm66_vm2  ;;  %vm75_vm7 = vweird.f32 %v58_v30 }
 0x101   :  { %v61_v32 = vmul.f32 %v183_v29, %v60_v31 }
 0x103   :  { %v62_v33 = vmul.f32 0.5, %v61_v32 }
 0x105   :  { %v63_v34 = vsub.f32 1.5, %v62_v33 }
 0x106   :  { %v185_v35 = vpop.eup %184 }
 0x107   :  { %v64_v36 = vmul.f32 %v183_v29, %v63_v34  ;;  %v70_v37 = vmul.f32 %v185_v35, %v58_v30  ;;  %vm76_vm5 = vweird.f32 %v185_v35 }
 0x108   :  { %vm77_vm8 = vmor %vm75_vm7, %vm76_vm5 }
 0x109   :  { %v68_v39 = vsel %vm67_vm4, %v183_v29, %v64_v36  ;;  %v71_v40 = vmul.f32 %v185_v35, %v70_v37 }
 0x10a   :  { %v79_v42 = vmul.f32 %v68_v39, %v45_v14 }
 0x10b   :  { %v72_v43 = vmul.f32 0.5, %v71_v40 }
 0x10c   :  { %v85_v44 = vmul.f32 %v177_v38, %v79_v42 }
 0x10d   :  { %v73_v45 = vsub.f32 1.5, %v72_v43 }
 0x10e   :  { %v91_v46 = vadd.f32 %v178_v41, %v85_v44 }
 0x10f   :  { %v74_v47 = vmul.f32 %v185_v35, %v73_v45 }
 0x110   :  { %v93_v48 = vpack.c.bf16 %v91_v46, %v91_v46 }
 0x111   :  { %v78_v49 = vsel %vm77_vm8, %v185_v35, %v74_v47 }
 0x112   :  { %96 = vst.msk [vmem:[#allocation2] sm:$0xf] %vm95_vm6, %v93_v48  ;;  %v80_v50 = vmul.f32 %v78_v49, %v46_v19 }
 0x114   :  { %v86_v51 = vmul.f32 %v177_v38, %v80_v50 }
 0x116   :  { %v92_v52 = vadd.f32 %v178_v41, %v86_v51 }
 0x118   :  { %v94_v53 = vpack.c.bf16 %v92_v52, %v92_v52 }
 0x11a   :  { %97 = vst.msk [vmem:[#allocation2 + $0x4] sm:$0xf] %vm95_vm6, %v94_v53 }
 0x121   :  { %v164_v54 = vld [vmem:[#allocation2] sm:$0xff] }
 0x122   :  { %163 = vmatmul.msk.bf16.vlgmr.msra.gmra.mxu0 %vm29_vm0, %v164_v54 }
 0x19f   :  { %v138_v55 = vpop.f32.mrf.mxu0 }
 0x1a0   :  { %v139_v58 = vadd.f32 %v179_v56, %v138_v55 }
 0x1a7   :  { %v140_v57 = vpop.f32.mrf.mxu0 }
 0x1a8   :  { %v141_v59 = vadd.f32 %v179_v56, %v140_v57 }
 0x1aa   :  { %v174_v60 = vpack.c.bf16 %v141_v59, %v139_v58 }
 0x1ac   :  { %175 = vst [vmem:[%s248_s5] sm:$0xff] %v174_v60  }

// kernel: vit_classifier_forward.39
= control target key start
LH: loop header
LB: loop body
LE: loop exit
PB: predicated region body
PF: predicated region fallthrough
CT: control target
= control target key end

     0   :  { %s1634_s9 = smov 0   ;;  %s2070_s0 = inlined_call_operand.vmem [shape: bf16[2,10,10,8], index: 0, kind: input, shape index: {}]   ;;  %s2071_s1 = inlined_call_operand.vmem [shape: bf16[9,8,8], index: 1, kind: input, shape index: {}]   ;;  %s2072_s2 = inlined_call_operand.vmem [shape: bf16[2,8,8,8], index: 2, kind: output, shape index: {}]  }
   0x1 LB: > { %s1396_s10 = sadd.s32 4294967295, %s1617_s9   ;;  %p1400_p0 = scmp.ge.s32.totalorder %s1617_s9, 1  ;;  %s1617_s9 = sphi %s1634_s9, %s12_s9  }
   0x2   : > { %p112_p1 = scmp.lt.s32.totalorder %s1617_s9, 3 }
   0x4   : > { %p113_p2 = pnand %p1400_p0, %p112_p1 }
   0x5   : > { %p134_p3 = scmp.lt.s32.totalorder (!%p113_p2), %s1396_s10, 1 }
   0x6   : > { %116 = sbr.rel (%p113_p2) target bundleno = 315 (0x13b), region = 28 }
   0xb   : > { %v1404_v0 = vld [vmem:[%s2071_s1 + $0x4] sm:$0xf]  ;;  %vm304_vm0 = vcmask 1043456   ;;  %v1437_v2 = vld [vmem:[%s2071_s1 + $0x8] sm:$0xf]  ;;  %s2078_s10 = smov (!%p134_p3, %s1396_s10), 1 }
   0xc   : > { %v306_v1 = vsel %vm304_vm0, %v1404_v0, 0  ;;  %v487_v3 = vsel %vm304_vm0, %v1437_v2, 0  ;;  %s1602_s15 = smul.u32 80, %s2078_s10  ;;  %v1450_v4 = vld [vmem:[%s2071_s1 + $0xc] sm:$0xf]  ;;  %vm291_vm3 = vcmask 64512  }
   0xd   : > { %1599 = vmatpush.bf16.msra.mxu1 %v306_v1  ;;  %1600 = vmatpush.bf16.msra.mxu2 %v306_v1  ;;  %v153_v5 = vld [vmem:[%s2071_s1] sm:$0xf]  ;;  %v570_v6 = vsel %vm304_vm0, %v1450_v4, 0  ;;  %v1487_v8 = vld [vmem:[%s2071_s1 + $0x10] sm:$0xf]  ;;  %vm425_vm5 = vcmask 1042432  }
   0xe   : > { %1601 = vmatpush.bf16.msra.mxu3 %v306_v1  ;;  %315 = vmatpush.bf16.msra.mxu0 %v306_v1  ;;  %v370_v7 = vsel %vm304_vm0, %v153_v5, 0  ;;  %s1667_s24 = scalar_lea.vmem %s2070_s0, %s1602_s15  ;;  %vm162_vm1 = vsmask.f32 3328  ;;  %vm163_vm2 = vsmask.f32 7440  ;;  %v764_v9 = vsel %vm304_vm0, %v1487_v8, 0 }
   0xf   : > { %v147_v10 = vld [vmem:[%s1667_s24 + $0x10] sm:$0xf]  ;;  %v148_v11 = vld [vmem:[%s1667_s24 + $0x18] sm:$0xf]  ;;  %v1673_v12 = vld [vmem:[%s1667_s24 + $0x14] sm:$0x1] }
  0x10   : > { %v1676_v13 = vld [vmem:[%s1667_s24 + $0x1c] sm:$0x1]  ;;  %v194_v14 = vshrl.u32 %v147_v10, 16  ;;  %v197_v15 = vshll.u32 %v147_v10, 16  ;;  %v203_v16 = vshll.u32 %v1673_v12, 16  ;;  %v208_v17 = vshrl.u32 %v148_v11, 16  ;;  %vm1692_vm4 = vmor %vm162_vm1, %vm163_vm2 }
  0x11   : > { %496 = vmatpush.bf16.msrb.mxu2 %v487_v3  ;;  %379 = vmatpush.bf16.msrb.mxu1 %v370_v7  ;;  %v211_v18 = vshll.u32 %v148_v11, 16  ;;  %v217_v19 = vshll.u32 %v1676_v13, 16  ;;  %v149_v20 = vld [vmem:[%s1667_s24 + $0x20] sm:$0xf]  ;;  %v150_v21 = vld [vmem:[%s1667_s24 + $0x28] sm:$0xf] }
  0x12   : > { %579 = vmatpush.bf16.msrb.mxu3 %v570_v6  ;;  %773 = vmatpush.bf16.msrb.mxu0 %v764_v9  ;;  %v196_v22 = vrot.slane %v194_v14, 4  ;;  %v199_v23 = vrot.slane %v197_v15, 5  ;;  %v205_v24 = vrot.slane %v203_v16, 5  ;;  %v210_v25 = vrot.slane %v208_v17, 4  ;;  %v1683_v26 = vld [vmem:[%s1667_s24 + $0x24] sm:$0x1] }
  0x13   : > { %v213_v27 = vrot.slane %v211_v18, 5  ;;  %v219_v28 = vrot.slane %v217_v19, 5  ;;  %v1686_v29 = vld [vmem:[%s1667_s24 + $0x2c] sm:$0x1]  ;;  %v222_v30 = vshrl.u32 %v149_v20, 16  ;;  %v225_v31 = vshll.u32 %v149_v20, 16 }
  0x14   : > { %v200_v32 = vor.u32 %v199_v23, %v196_v22  ;;  %v231_v33 = vshll.u32 %v1683_v26, 16  ;;  %v236_v34 = vshrl.u32 %v150_v21, 16  ;;  %v239_v35 = vshll.u32 %v150_v21, 16  ;;  %v151_v36 = vld [vmem:[%s1667_s24 + $0x30] sm:$0xf]  ;;  %s1586_s5 = sshll.u32 %s2078_s10, 5 }
  0x15   : > { %v214_v38 = vor.u32 %v213_v27, %v210_v25  ;;  %v224_v39 = vrot.slane %v222_v30, 4  ;;  %v227_v40 = vrot.slane %v225_v31, 5  ;;  %v245_v41 = vshll.u32 %v1686_v29, 16  ;;  %v1698_v46 = vld [vmem:[%s1667_s24 + $0x34] sm:$0x1]  ;;  %s2029_s8 = scalar_lea.vmem %s2072_s2, %s1586_s5 }
  0x16   : > { %v201_v42 = vrot.slane %v200_v32, 4  ;;  %v233_v43 = vrot.slane %v231_v33, 5  ;;  %v238_v44 = vrot.slane %v236_v34, 4  ;;  %v241_v45 = vrot.slane %v239_v35, 5  ;;  %v152_v53 = vld [vmem:[%s1667_s24 + $0x38] sm:$0xf] }
  0x17   : > { %v215_v47 = vrot.slane %v214_v38, 4  ;;  %v228_v48 = vor.u32 %v227_v40, %v224_v39  ;;  %v247_v49 = vrot.slane %v245_v41, 5  ;;  %v250_v50 = vshrl.u32 %v151_v36, 16  ;;  %v1704_v54 = vld [vmem:[%s1667_s24 + $0x3c] sm:$0x1] }
  0x18   : > { %vm426_vm6 = vcmask 1046532   ;;  %v206_v51 = vsel %vm1692_vm4, %v201_v42, %v205_v24  ;;  %v242_v52 = vor.u32 %v241_v45, %v238_v44  ;;  %v253_v55 = vshll.u32 %v151_v36, 16  ;;  %v145_v1 = vld [vmem:[%s1667_s24] sm:$0xf]  ;;  %v154_v6 = vld [vmem:[%s1667_s24 + $0x4] sm:$0x1] }
  0x19   : > { %v259_v56 = vshll.u32 %v1698_v46, 16  ;;  %v220_v57 = vsel %vm1692_vm4, %v215_v47, %v219_v28  ;;  %v281_v58 = vunpack.c.l.b16 %v206_v51  ;;  %v229_v59 = vrot.slane %v228_v48, 4  ;;  %v146_v11 = vld [vmem:[%s1667_s24 + $0x8] sm:$0xf]  ;;  %v155_v24 = vld [vmem:[%s1667_s24 + $0xc] sm:$0x1]  ;;  %vm1726_vm7 = vmor %vm425_vm5, %vm426_vm6 }
  0x1a   : > { %v252_v60 = vrot.slane %v250_v50, 4  ;;  %v282_v61 = vunpack.c.l.b16 %v220_v57  ;;  %v243_v62 = vrot.slane %v242_v52, 4  ;;  %v255_v63 = vrot.slane %v253_v55, 5  ;;  %v401_v33 = vld [vmem:[%s1667_s24] sm:$0xe] }
  0x1b   : > { %v261_v0 = vrot.slane %v259_v56, 5  ;;  %v234_v2 = vsel %vm1692_vm4, %v229_v59, %v233_v43  ;;  %v264_v3 = vshrl.u32 %v152_v53, 16  ;;  %v267_v4 = vshll.u32 %v152_v53, 16  ;;  %v402_v39 = vld [vmem:[%s1667_s24 + $0x8] sm:$0xe] }
  0x1c   : > { %v273_v5 = vshll.u32 %v1704_v54, 16  ;;  %v288_v7 = vpack.c.b16 %v282_v61, %v281_v58  ;;  %v248_v8 = vsel %vm1692_vm4, %v243_v62, %v247_v49  ;;  %v283_v9 = vunpack.c.l.b16 %v234_v2  ;;  %v1521_v45 = vld [vmem:[%s2071_s1 + $0x18] sm:$0xf]  ;;  %v1471_v55 = vld [vmem:[%s1667_s24 + $0x8] sm:$0xf] }
  0x1d   : > { %v256_v10 = vor.u32 %v255_v63, %v252_v60  ;;  %v284_v14 = vunpack.c.l.b16 %v248_v8  ;;  %v266_v15 = vrot.slane %v264_v3, 4  ;;  %v269_v16 = vrot.slane %v267_v4, 5  ;;  %v1473_v59 = vld [vmem:[%s1667_s24 + $0x10] sm:$0xf]  ;;  %v1745_v63 = vld [vmem:[%s1667_s24 + $0xc] sm:$0x1] }
  0x1e   : > { %v275_v17 = vrot.slane %v273_v5, 5  ;;  %1406 = vmatmul.msk.bf16.vlgmr.msra.gmra.mxu1 %vm291_vm3, %v288_v7  ;;  %v166_v19 = vshrl.u32 %v145_v1, 16  ;;  %v169_v20 = vshll.u32 %v145_v1, 16  ;;  %v175_v21 = vshll.u32 %v154_v6, 16  ;;  %v1411_v3 = vld [vmem:[%s1667_s24] sm:$0xf] }
  0x1f   : > { %v257_v18 = vrot.slane %v256_v10, 4  ;;  %v289_v22 = vpack.c.b16 %v284_v14, %v283_v9  ;;  %v270_v23 = vor.u32 %v269_v16, %v266_v15  ;;  %v180_v25 = vshrl.u32 %v146_v11, 16  ;;  %v1587_v4 = vld [vmem:[%s1667_s24 + $0x4] sm:$0xf0]  ;;  %v1508_v14 = vld [vmem:[%s2071_s1 + $0x14] sm:$0xf] }
  0x20   : > { %v183_v27 = vshll.u32 %v146_v11, 16  ;;  %v168_v30 = vrot.slane %v166_v19, 4  ;;  %v171_v31 = vrot.slane %v169_v20, 5  ;;  %v177_v32 = vrot.slane %v175_v21, 5  ;;  %v1558_v11 = vld [vmem:[%s2071_s1 + $0x1c] sm:$0xf] }
  0x21   : > { %v262_v28 = vsel %vm1692_vm4, %v257_v18, %v261_v0  ;;  %1407 = vmatmul.msk.bf16.vlgmr.msra.gmra.mxu2 %vm291_vm3, %v289_v22  ;;  %v271_v34 = vrot.slane %v270_v23, 4  ;;  %v182_v36 = vrot.slane %v180_v25, 4  ;;  %v189_v41 = vshll.u32 %v155_v24, 16  ;;  %v1748_v0 = vld [vmem:[%s1667_s24 + $0x14] sm:$0x1] }
  0x22   : > { %v285_v35 = vunpack.c.l.b16 %v262_v28  ;;  %v185_v38 = vrot.slane %v183_v27, 5  ;;  %v172_v40 = vor.u32 %v171_v31, %v168_v30  ;;  %v430_v42 = vrot.slane %v154_v6, 5  ;;  %v1579_v19 = vld [vmem:[%s2071_s1 + $0x20] sm:$0xf] }
  0x23   : > { %v434_v43 = vrot.slane %v155_v24, 5  ;;  %v276_v47 = vsel %vm1692_vm4, %v271_v34, %v275_v17  ;;  %v1429_v49 = vrot.slane %v401_v33, 9  ;;  %v191_v52 = vrot.slane %v189_v41, 5  ;;  %v1477_v41 = vld [vmem:[%s1667_s24 + $0x20] sm:$0xf] }
  0x24   : > { %v186_v48 = vor.u32 %v185_v38, %v182_v36  ;;  %v286_v50 = vunpack.c.l.b16 %v276_v47  ;;  %v173_v51 = vrot.slane %v172_v40, 4  ;;  %v1430_v53 = vrot.slane %v402_v39, 9  ;;  %v1475_v38 = vld [vmem:[%s1667_s24 + $0x18] sm:$0xf]  ;;  %v1591_v47 = vld [vmem:[%s1667_s24 + $0xc] sm:$0xf0] }
  0x25   : > { %v431_v57 = vsel %vm1726_vm7, %v1429_v49, %v430_v42  ;;  %v969_v58 = vsel %vm304_vm0, %v1521_v45, 0  ;;  %v626_v6 = vshrl.u32 %v1471_v55, 16  ;;  %v629_v9 = vshll.u32 %v1471_v55, 16  ;;  %v404_v40 = vld [vmem:[%s1667_s24 + $0x18] sm:$0xe] }
  0x26   : > { %v187_v56 = vrot.slane %v186_v48, 4  ;;  %v290_v60 = vpack.c.b16 %v286_v50, %v285_v35  ;;  %v178_v61 = vsel %vm1692_vm4, %v173_v51, %v177_v32  ;;  %v435_v62 = vsel %vm1726_vm7, %v1430_v53, %v434_v43  ;;  %978 = vmatpush.bf16.msra.mxu2 %v969_v58  ;;  %v403_v35 = vld [vmem:[%s1667_s24 + $0x10] sm:$0xe]  ;;  %v1453_v45 = vld [vmem:[%s1667_s24 + $0x8] sm:$0xf] }
  0x27   : > { %v279_v2 = vunpack.c.l.b16 %v178_v61  ;;  %v462_v5 = vunpack.c.l.b16 %v431_v57  ;;  %v463_v8 = vunpack.c.l.b16 %v435_v62  ;;  %v640_v10 = vshrl.u32 %v1473_v59, 16 }
  0x28   : > { %v192_v1 = vsel %vm1692_vm4, %v187_v56, %v191_v52  ;;  %1408 = vmatmul.msk.bf16.vlgmr.msra.gmra.mxu3 %vm291_vm3, %v290_v60  ;;  %v628_v15 = vrot.slane %v626_v6, 4  ;;  %v635_v16 = vshll.u32 %v1745_v63, 16  ;;  %v643_v17 = vshll.u32 %v1473_v59, 16  ;;  %v1787_v60 = vld [vmem:[%s1667_s24 + $0x1c] sm:$0x1] }
  0x29   : > { %v280_v7 = vunpack.c.l.b16 %v192_v1  ;;  %v649_v18 = vshll.u32 %v1748_v0, 16  ;;  %v1412_v21 = vor.u32 %v1587_v4, %v1411_v3  ;;  %v631_v22 = vrot.slane %v629_v9, 5  ;;  %v1792_v4 = vld [vmem:[%s1667_s24 + $0x24] sm:$0x1] }
  0x2a   : > { %v642_v23 = vrot.slane %v640_v10, 4  ;;  %v645_v24 = vrot.slane %v643_v17, 5  ;;  %v1163_v27 = vsel %vm304_vm0, %v1558_v11, 0  ;;  %v886_v28 = vsel %vm304_vm0, %v1508_v14, 0  ;;  %v1479_v17 = vld [vmem:[%s1667_s24 + $0x28] sm:$0xf] }
  0x2b   : > { %v287_v20 = vpack.c.b16 %v280_v7, %v279_v2  ;;  %v632_v25 = vor.u32 %v631_v22, %v628_v15  ;;  %v1285_v30 = vsel %vm304_vm0, %v1579_v19, 0  ;;  %v470_v31 = vpack.c.b16 %v463_v8, %v462_v5  ;;  %1172 = vmatpush.bf16.msra.mxu3 %v1163_v27  ;;  %895 = vmatpush.bf16.msra.mxu1 %v886_v28  ;;  %v1588_v5 = vld [vmem:[%s1667_s24 + $0x14] sm:$0xf0]  ;;  %v1481_v22 = vld [vmem:[%s1667_s24 + $0x30] sm:$0xf] }
  0x2c   : > { %v637_v32 = vrot.slane %v635_v16, 5  ;;  %v646_v33 = vor.u32 %v645_v24, %v642_v23  ;;  %v651_v34 = vrot.slane %v649_v18, 5  ;;  %v1431_v42 = vrot.slane %v403_v35, 9  ;;  %v405_v23 = vld [vmem:[%s1667_s24 + $0x20] sm:$0xe] }
  0x2d   : > { %1405 = vmatmul.msk.bf16.vlgmr.msra.gmra.mxu0 %vm291_vm3, %v287_v20  ;;  %v633_v36 = vrot.slane %v632_v25, 4  ;;  %v438_v43 = vrot.slane %v1673_v12, 5  ;;  %v654_v50 = vshrl.u32 %v1475_v38, 16  ;;  %v657_v51 = vshll.u32 %v1475_v38, 16  ;;  %v406_v24 = vld [vmem:[%s1667_s24 + $0x28] sm:$0xe] }
  0x2e   : > { %1425 = vmatmul.msk.bf16.vlgmr.msrb.gmra.mxu1 %vm291_vm3, %v1412_v21  ;;  %1294 = vmatpush.bf16.msra.mxu0 %v1285_v30  ;;  %v647_v39 = vrot.slane %v646_v33, 4  ;;  %v1432_v52 = vrot.slane %v404_v40, 9  ;;  %v442_v53 = vrot.slane %v1676_v13, 5  ;;  %v668_v12 = vshrl.u32 %v1477_v41, 16  ;;  %v1415_v13 = vld [vmem:[%s1667_s24 + $0x10] sm:$0xf] }
  0x2f   : > { %v638_v48 = vsel %vm1692_vm4, %v633_v36, %v637_v32  ;;  %v671_v55 = vshll.u32 %v1477_v41, 16  ;;  %v1454_v56 = vor.u32 %v1591_v47, %v1453_v45  ;;  %v439_v59 = vsel %vm1726_vm7, %v1431_v42, %v438_v43  ;;  %v1457_v28 = vld [vmem:[%s1667_s24 + $0x18] sm:$0xf]  ;;  %v1592_v30 = vld [vmem:[%s1667_s24 + $0x1c] sm:$0xf0] }
  0x30   : > { %v652_v49 = vsel %vm1692_vm4, %v647_v39, %v651_v34  ;;  %v739_v57 = vunpack.c.l.b16 %v638_v48  ;;  %v656_v61 = vrot.slane %v654_v50, 4  ;;  %v659_v62 = vrot.slane %v657_v51, 5  ;;  %v1815_v47 = vld [vmem:[%s1667_s24 + $0x2c] sm:$0x1] }
  0x31   : > { %1438 = vmatmul.msk.bf16.vlgmr.msrb.gmra.mxu2 %vm291_vm3, %v470_v31  ;;  %v740_v58 = vunpack.c.l.b16 %v652_v49  ;;  %v670_v1 = vrot.slane %v668_v12, 4  ;;  %v673_v2 = vrot.slane %v671_v55, 5  ;;  %v443_v3 = vsel %vm1726_vm7, %v1432_v52, %v442_v53  ;;  %v1419_v52 = vld [vmem:[%s1667_s24 + $0x20] sm:$0xf] }
  0x32   : > { %v464_v7 = vunpack.c.l.b16 %v439_v59  ;;  %v663_v8 = vshll.u32 %v1787_v60, 16  ;;  %v465_v9 = vunpack.c.l.b16 %v443_v3  ;;  %v660_v10 = vor.u32 %v659_v62, %v656_v61 }
  0x33   : > { %v747_v6 = vpack.c.b16 %v740_v58, %v739_v57  ;;  %v674_v11 = vor.u32 %v673_v2, %v670_v1  ;;  %v677_v14 = vshll.u32 %v1792_v4, 16  ;;  %v1416_v15 = vor.u32 %v1588_v5, %v1415_v13  ;;  %v407_v2 = vld [vmem:[%s1667_s24 + $0x30] sm:$0xe] }
  0x34   : > { %v665_v16 = vrot.slane %v663_v8, 5  ;;  %v471_v18 = vpack.c.b16 %v465_v9, %v464_v7  ;;  %v661_v19 = vrot.slane %v660_v10, 4  ;;  %v682_v25 = vshrl.u32 %v1479_v17, 16  ;;  %v1483_v7 = vld [vmem:[%s1667_s24 + $0x38] sm:$0xf] }
  0x35   : > { %v675_v20 = vrot.slane %v674_v11, 4  ;;  %v679_v21 = vrot.slane %v677_v14, 5  ;;  %v685_v27 = vshll.u32 %v1479_v17, 16  ;;  %v696_v33 = vshrl.u32 %v1481_v22, 16  ;;  %v1485_v8 = vld [vmem:[%s1667_s24 + $0x40] sm:$0xf] }
  0x36   : > { %v666_v31 = vsel %vm1692_vm4, %v661_v19, %v665_v16  ;;  %v699_v34 = vshll.u32 %v1481_v22, 16  ;;  %v1433_v35 = vrot.slane %v405_v23, 9  ;;  %v446_v36 = vrot.slane %v1683_v26, 5  ;;  %v1822_v26 = vld [vmem:[%s1667_s24 + $0x34] sm:$0x1] }
  0x37   : > { %v680_v32 = vsel %vm1692_vm4, %v675_v20, %v679_v21  ;;  %v1434_v38 = vrot.slane %v406_v24, 9  ;;  %v450_v39 = vrot.slane %v1686_v29, 5  ;;  %v684_v40 = vrot.slane %v682_v25, 4  ;;  %v1589_v29 = vld [vmem:[%s1667_s24 + $0x24] sm:$0xf0] }
  0x38   : > { %1467 = vmatmul.msk.bf16.vlgmr.msrb.gmra.mxu3 %vm291_vm3, %v1454_v56  ;;  %v687_v41 = vrot.slane %v685_v27, 5  ;;  %v1458_v42 = vor.u32 %v1592_v30, %v1457_v28  ;;  %v741_v43 = vunpack.c.l.b16 %v666_v31  ;;  %v742_v45 = vunpack.c.l.b16 %v680_v32  ;;  %v1461_v9 = vld [vmem:[%s1667_s24 + $0x28] sm:$0xf]  ;;  %v1593_v14 = vld [vmem:[%s1667_s24 + $0x2c] sm:$0xf0] }
  0x39   : > { %v698_v48 = vrot.slane %v696_v33, 4  ;;  %v701_v49 = vrot.slane %v699_v34, 5  ;;  %v447_v50 = vsel %vm1726_vm7, %v1433_v35, %v446_v36  ;;  %v451_v51 = vsel %vm1726_vm7, %v1434_v38, %v450_v39  ;;  %v1849_v27 = vld [vmem:[%s1667_s24 + $0x3c] sm:$0x1]  ;;  %v1852_v28 = vld [vmem:[%s1667_s24 + $0x44] sm:$0x1] }
  0x3a   : > { %v688_v53 = vor.u32 %v687_v41, %v684_v40  ;;  %v691_v12 = vshll.u32 %v1815_v47, 16  ;;  %v748_v55 = vpack.c.b16 %v742_v45, %v741_v43  ;;  %v466_v56 = vunpack.c.l.b16 %v447_v50  ;;  %v1423_v34 = vld [vmem:[%s1667_s24 + $0x30] sm:$0xf]  ;;  %v1590_v35 = vld [vmem:[%s1667_s24 + $0x34] sm:$0xf0] }
  0x3b   : > { %v467_v57 = vunpack.c.l.b16 %v451_v51  ;;  %v702_v58 = vor.u32 %v701_v49, %v698_v48  ;;  %v705_v59 = vshll.u32 %v1822_v26, 16  ;;  %v1420_v61 = vor.u32 %v1589_v29, %v1419_v52  ;;  %v1544_v49 = vld [vmem:[%s1667_s24 + $0x18] sm:$0xf] }
  0x3c   : > { %v689_v62 = vrot.slane %v688_v53, 4  ;;  %v693_v1 = vrot.slane %v691_v12, 5  ;;  %v454_v11 = vrot.slane %v1698_v46, 5  ;;  %v458_v17 = vrot.slane %v1704_v54, 5  ;;  %v1492_v12 = vld [vmem:[%s1667_s24 + $0x8] sm:$0xe] }
  0x3d   : > { %1488 = vmatmul.msk.bf16.vlgmr.msrb.gmra.mxu0 %vm291_vm3, %v747_v6  ;;  %v472_v3 = vpack.c.b16 %v467_v57, %v466_v56  ;;  %v703_v13 = vrot.slane %v702_v58, 4  ;;  %v707_v5 = vrot.slane %v705_v59, 5  ;;  %v408_v6 = vld [vmem:[%s1667_s24 + $0x38] sm:$0xe]  ;;  %v713_v20 = vshll.u32 %v1483_v7, 16 }
  0x3e   : > { %1426 = vmatmul.msk.bf16.gmra.mxu1 %vm291_vm3, %v1416_v15  ;;  %v694_v10 = vsel %vm1692_vm4, %v689_v62, %v693_v1  ;;  %v1435_v15 = vrot.slane %v407_v2, 9  ;;  %v1436_v16 = vrot.slane %v408_v6, 9  ;;  %v724_v21 = vshrl.u32 %v1485_v8, 16  ;;  %v1465_v6 = vld [vmem:[%s1667_s24 + $0x38] sm:$0xf] }
  0x3f   : > { %v708_v19 = vsel %vm1692_vm4, %v703_v13, %v707_v5  ;;  %v727_v22 = vshll.u32 %v1485_v8, 16  ;;  %v1462_v23 = vor.u32 %v1593_v14, %v1461_v9  ;;  %v743_v46 = vunpack.c.l.b16 %v694_v10  ;;  %v1543_v5 = vld [vmem:[%s1667_s24 + $0x14] sm:$0x1] }
  0x40   : > { %v744_v24 = vunpack.c.l.b16 %v708_v19  ;;  %v455_v25 = vsel %vm1726_vm7, %v1435_v15, %v454_v11  ;;  %v459_v54 = vsel %vm1726_vm7, %v1436_v16, %v458_v17  ;;  %v715_v31 = vrot.slane %v713_v20, 5 }
  0x41   : > { %1439 = vmatmul.msk.bf16.gmra.mxu2 %vm291_vm3, %v471_v18  ;;  %v710_v18 = vshrl.u32 %v1483_v7, 16  ;;  %v726_v32 = vrot.slane %v724_v21, 4  ;;  %v729_v33 = vrot.slane %v727_v22, 5  ;;  %v468_v36 = vunpack.c.l.b16 %v455_v25  ;;  %v1594_v7 = vld [vmem:[%s1667_s24 + $0x3c] sm:$0xf0] }
  0x42   : > { %v749_v38 = vpack.c.b16 %v744_v24, %v743_v46  ;;  %v469_v39 = vunpack.c.l.b16 %v459_v54  ;;  %v719_v40 = vshll.u32 %v1849_v27, 16  ;;  %v733_v41 = vshll.u32 %v1852_v28, 16  ;;  %v1524_v54 = vld [vmem:[%s1667_s24 + $0x10] sm:$0xf] }
  0x43   : > { %v712_v30 = vrot.slane %v710_v18, 4  ;;  %v730_v45 = vor.u32 %v729_v33, %v726_v32  ;;  %v1424_v48 = vor.u32 %v1590_v35, %v1423_v34  ;;  %v1039_v58 = vshrl.u32 %v1544_v49, 16  ;;  %v1595_v32 = vld [vmem:[%s1667_s24 + $0x14] sm:$0xf0]  ;;  %v1546_v35 = vld [vmem:[%s1667_s24 + $0x20] sm:$0xf] }
  0x44   : > { %v473_v52 = vpack.c.b16 %v469_v39, %v468_v36  ;;  %v721_v29 = vrot.slane %v719_v40, 5  ;;  %v735_v53 = vrot.slane %v733_v41, 5  ;;  %v1042_v59 = vshll.u32 %v1544_v49, 16 }
  0x45   : > { %v716_v43 = vor.u32 %v715_v31, %v712_v30  ;;  %v731_v57 = vrot.slane %v730_v45, 4  ;;  %v833_v62 = vrot.slane %v1748_v0, 5  ;;  %v1500_v1 = vrot.slane %v1492_v12, 9  ;;  %v1545_v0 = vld [vmem:[%s1667_s24 + $0x1c] sm:$0x1] }
  0x46   : > { %v1044_v10 = vrot.slane %v1042_v59, 5  ;;  %v1034_v16 = vshll.u32 %v1543_v5, 16  ;;  %v1466_v17 = vor.u32 %v1594_v7, %v1465_v6  ;;  %v1048_v21 = vshll.u32 %v1545_v0, 16  ;;  %v1563_v30 = vld [vmem:[%s1667_s24 + $0x10] sm:$0xe] }
  0x47   : > { %v717_v56 = vrot.slane %v716_v43, 4  ;;  %v736_v9 = vsel %vm1692_vm4, %v731_v57, %v735_v53  ;;  %v1564_v31 = vld [vmem:[%s1667_s24 + $0x18] sm:$0xe]  ;;  %v1571_v40 = vrot.slane %v1563_v30, 9  ;;  %v1228_v41 = vrot.slane %v1543_v5, 5 }
  0x48   : > { %1468 = vmatmul.msk.bf16.gmra.mxu3 %vm291_vm3, %v1458_v42  ;;  %v1542_v42 = vld [vmem:[%s1667_s24 + $0x10] sm:$0xf]  ;;  %v746_v19 = vunpack.c.l.b16 %v736_v9  ;;  %v1036_v24 = vrot.slane %v1034_v16, 5  ;;  %v1050_v34 = vrot.slane %v1048_v21, 5  ;;  %v1525_v43 = vor.u32 %v1595_v32, %v1524_v54  ;;  %v1494_v45 = vld [vmem:[%s1667_s24 + $0x18] sm:$0xe] }
  0x49   : > { %v1025_v50 = vshrl.u32 %v1542_v42, 16  ;;  %v1028_v51 = vshll.u32 %v1542_v42, 16  ;;  %v722_v8 = vsel %vm1692_vm4, %v717_v56, %v721_v29  ;;  %v1572_v42 = vrot.slane %v1564_v31, 9  ;;  %v1549_v6 = vld [vmem:[%s1667_s24 + $0x2c] sm:$0x1] }
  0x4a   : > { %v745_v18 = vunpack.c.l.b16 %v722_v8  ;;  %v1053_v49 = vshrl.u32 %v1546_v35, 16  ;;  %v837_v56 = vrot.slane %v1787_v60, 5  ;;  %v1528_v16 = vld [vmem:[%s1667_s24 + $0x20] sm:$0xf]  ;;  %v1550_v21 = vld [vmem:[%s1667_s24 + $0x30] sm:$0xf] }
  0x4b   : > { %v1030_v13 = vrot.slane %v1028_v51, 5  ;;  %v1552_v54 = vld [vmem:[%s1667_s24 + $0x38] sm:$0xf]  ;;  %v1081_v31 = vshrl.u32 %v1550_v21, 16  ;;  %v1084_v32 = vshll.u32 %v1550_v21, 16  ;;  %vm1332_vm8 = vcmask 60416  }
  0x4c   : > { %v750_v25 = vpack.c.b16 %v746_v19, %v745_v18 }
  0x4d   : > { %1489 = vmatmul.msk.bf16.gmra.mxu0 %vm291_vm3, %v748_v55  ;;  %v1493_v55 = vld [vmem:[%s1667_s24 + $0x10] sm:$0xe] }
  0x4e   : > { %1427 = vmatmul.msk.bf16.gmra.mxu1 %vm291_vm3, %v1420_v61  ;;  %v829_v61 = vrot.slane %v1745_v63, 5  ;;  %v1501_v2 = vrot.slane %v1493_v55, 9  ;;  %v1041_v63 = vrot.slane %v1039_v58, 4  ;;  %v1502_v55 = vrot.slane %v1494_v45, 9 }
  0x4f   : > { %v841_v58 = vrot.slane %v1792_v4, 5  ;;  %v845_v45 = vrot.slane %v1815_v47, 5  ;;  %v1553_v47 = vld [vmem:[%s1667_s24 + $0x3c] sm:$0x1] }
  0x50   : > { %v830_v11 = vsel %vm1726_vm7, %v1500_v1, %v829_v61  ;;  %v834_v14 = vsel %vm1726_vm7, %v1501_v2, %v833_v62  ;;  %v1045_v20 = vor.u32 %v1044_v10, %v1041_v63  ;;  %v1229_v61 = vsel %vm1726_vm7, %v1571_v40, %v1228_v41 }
  0x51   : > { %1440 = vmatmul.msk.bf16.gmra.mxu2 %vm291_vm3, %v472_v3  ;;  %v1027_v3 = vrot.slane %v1025_v50, 4  ;;  %v861_v22 = vunpack.c.l.b16 %v830_v11  ;;  %v1056_v50 = vshll.u32 %v1546_v35, 16  ;;  %v1055_v62 = vrot.slane %v1053_v49, 4 }
  0x52   : > { %v1046_v33 = vrot.slane %v1045_v20, 4  ;;  %v1260_v60 = vunpack.c.l.b16 %v1229_v61  ;;  %v838_v4 = vsel %vm1726_vm7, %v1502_v55, %v837_v56  ;;  %v1076_v11 = vshll.u32 %v1549_v6, 16  ;;  %v1565_v20 = vld [vmem:[%s1667_s24 + $0x20] sm:$0xe] }
  0x53   : > { %v1031_v15 = vor.u32 %v1030_v13, %v1027_v3  ;;  %v1058_v1 = vrot.slane %v1056_v50, 5  ;;  %v1547_v3 = vld [vmem:[%s1667_s24 + $0x24] sm:$0x1]  ;;  %v1573_v30 = vrot.slane %v1565_v20, 9  ;;  %v1240_v41 = vrot.slane %v1549_v6, 5 }
  0x54   : > { %v1051_v51 = vsel %vm1692_vm4, %v1046_v33, %v1050_v34  ;;  %v1062_v10 = vshll.u32 %v1547_v3, 16  ;;  %v1236_v35 = vrot.slane %v1547_v3, 5 }
  0x55   : > { %v1032_v46 = vrot.slane %v1031_v15, 4  ;;  %v1139_v59 = vunpack.c.l.b16 %v1051_v51  ;;  %v1059_v63 = vor.u32 %v1058_v1, %v1055_v62  ;;  %v1083_v51 = vrot.slane %v1081_v31, 4 }
  0x56   : > { %v1064_v19 = vrot.slane %v1062_v10, 5  ;;  %v1237_v55 = vsel %vm1726_vm7, %v1573_v30, %v1236_v35  ;;  %v1568_v10 = vld [vmem:[%s1667_s24 + $0x38] sm:$0xe]  ;;  %v1248_v30 = vrot.slane %v1553_v47, 5  ;;  %v853_v35 = vrot.slane %v1849_v27, 5 }
  0x57   : > { %v1037_v39 = vsel %vm1692_vm4, %v1032_v46, %v1036_v24  ;;  %v1060_v18 = vrot.slane %v1059_v63, 4  ;;  %v1078_v46 = vrot.slane %v1076_v11, 5  ;;  %v1566_v24 = vld [vmem:[%s1667_s24 + $0x28] sm:$0xe]  ;;  %v1567_v63 = vld [vmem:[%s1667_s24 + $0x30] sm:$0xe] }
  0x58   : > { %1469 = vmatmul.msk.bf16.gmra.mxu3 %vm291_vm3, %v1462_v23  ;;  %v862_v23 = vunpack.c.l.b16 %v834_v14  ;;  %v1138_v12 = vunpack.c.l.b16 %v1037_v39  ;;  %v863_v14 = vunpack.c.l.b16 %v838_v4  ;;  %v1497_v39 = vld [vmem:[%s1667_s24 + $0x30] sm:$0xe]  ;;  %v1576_v21 = vrot.slane %v1568_v10, 9 }
  0x59   : > { %v1065_v34 = vsel %vm1692_vm4, %v1060_v18, %v1064_v19  ;;  %v1505_v50 = vrot.slane %v1497_v39, 9  ;;  %v1575_v19 = vrot.slane %v1567_v63, 9 }
  0x5a   : > { %v869_v36 = vpack.c.b16 %v862_v23, %v861_v22  ;;  %v1146_v8 = vpack.c.b16 %v1139_v59, %v1138_v12  ;;  %v1596_v22 = vld [vmem:[%s1667_s24 + $0x24] sm:$0xf0]  ;;  %v1551_v12 = vld [vmem:[%s1667_s24 + $0x34] sm:$0x1] }
  0x5b   : > { %v1529_v33 = vor.u32 %v1596_v22, %v1528_v16  ;;  %v1090_v62 = vshll.u32 %v1551_v12, 16  ;;  %v1244_v20 = vrot.slane %v1551_v12, 5 }
  0x5d   : > { %1490 = vmatmul.msk.bf16.gmra.mxu0 %vm291_vm3, %v749_v38  ;;  %v1548_v38 = vld [vmem:[%s1667_s24 + $0x28] sm:$0xf] }
  0x5e   : > { %1428 = vmatmul.msk.bf16.gmra.mxu1 %vm291_vm3, %v1424_v48  ;;  %v1495_v48 = vld [vmem:[%s1667_s24 + $0x20] sm:$0xe]  ;;  %v1067_v29 = vshrl.u32 %v1548_v38, 16  ;;  %v1070_v53 = vshll.u32 %v1548_v38, 16  ;;  %v1496_v38 = vld [vmem:[%s1667_s24 + $0x28] sm:$0xe] }
  0x5f   : > { %v1503_v57 = vrot.slane %v1495_v48, 9  ;;  %v849_v48 = vrot.slane %v1822_v26, 5  ;;  %v1504_v49 = vrot.slane %v1496_v38, 9  ;;  %v857_v38 = vrot.slane %v1852_v28, 5 }
  0x60   : > { %v1069_v13 = vrot.slane %v1067_v29, 4  ;;  %v1072_v5 = vrot.slane %v1070_v53, 5  ;;  %v1140_v29 = vunpack.c.l.b16 %v1065_v34 }
  0x61   : > { %1441 = vmatmul.msk.bf16.gmra.mxu2 %vm291_vm3, %v473_v52  ;;  %v1232_v52 = vrot.slane %v1545_v0, 5  ;;  %v842_v7 = vsel %vm1726_vm7, %v1503_v57, %v841_v58  ;;  %v846_v26 = vsel %vm1726_vm7, %v1504_v49, %v845_v45  ;;  %v850_v59 = vsel %vm1726_vm7, %v1505_v50, %v849_v48  ;;  %v1555_v45 = vld [vmem:[%s1667_s24 + $0x44] sm:$0x1]  ;;  %v1557_v50 = vld [vmem:[%s1667_s24 + $0x4c] sm:$0x1] }
  0x62   : > { %v1073_v0 = vor.u32 %v1072_v5, %v1069_v13  ;;  %v864_v15 = vunpack.c.l.b16 %v842_v7  ;;  %v1104_v5 = vshll.u32 %v1553_v47, 16  ;;  %v865_v6 = vunpack.c.l.b16 %v846_v26 }
  0x63   : > { %v1233_v2 = vsel %vm1726_vm7, %v1572_v42, %v1232_v52  ;;  %v1095_v42 = vshrl.u32 %v1552_v54, 16  ;;  %v1086_v52 = vrot.slane %v1084_v32, 5  ;;  %v1092_v7 = vrot.slane %v1090_v62, 5 }
  0x64   : > { %v1261_v9 = vunpack.c.l.b16 %v1233_v2  ;;  %v1074_v23 = vrot.slane %v1073_v0, 4  ;;  %v1262_v2 = vunpack.c.l.b16 %v1237_v55  ;;  %v1597_v0 = vld [vmem:[%s1667_s24 + $0x34] sm:$0xf0]  ;;  %v1118_v12 = vshll.u32 %v1555_v45, 16 }
  0x65   : > { %v1097_v57 = vrot.slane %v1095_v42, 4  ;;  %v1087_v61 = vor.u32 %v1086_v52, %v1083_v51  ;;  %v1256_v10 = vrot.slane %v1557_v50, 5 }
  0x66   : > { %v1079_v40 = vsel %vm1692_vm4, %v1074_v23, %v1078_v46  ;;  %v1498_v23 = vld [vmem:[%s1667_s24 + $0x38] sm:$0xe]  ;;  %v1499_v46 = vld [vmem:[%s1667_s24 + $0x40] sm:$0xe] }
  0x67   : > { %v1141_v53 = vunpack.c.l.b16 %v1079_v40  ;;  %v1088_v4 = vrot.slane %v1087_v61, 4  ;;  %v1506_v34 = vrot.slane %v1498_v23, 9  ;;  %v1245_v40 = vsel %vm1726_vm7, %v1575_v19, %v1244_v20 }
  0x68   : > { %1470 = vmatmul.msk.bf16.gmra.mxu3 %vm291_vm3, %v1466_v17  ;;  %v1268_v17 = vpack.c.b16 %v1261_v9, %v1260_v60  ;;  %v866_v60 = vunpack.c.l.b16 %v850_v59  ;;  %v1532_v9 = vld [vmem:[%s1667_s24 + $0x30] sm:$0xf]  ;;  %v1264_v51 = vunpack.c.l.b16 %v1245_v40  ;;  %v1120_v59 = vrot.slane %v1118_v12, 5 }
  0x69   : > { %v1147_v1 = vpack.c.b16 %v1141_v53, %v1140_v29  ;;  %v1093_v18 = vsel %vm1692_vm4, %v1088_v4, %v1092_v7  ;;  %v1533_v22 = vor.u32 %v1597_v0, %v1532_v9  ;;  %v854_v27 = vsel %vm1726_vm7, %v1506_v34, %v853_v35 }
  0x6a   : > { %v871_v16 = vpack.c.b16 %v866_v60, %v865_v6  ;;  %v1252_v7 = vrot.slane %v1555_v45, 5 }
  0x6d   : > { %1491 = vmatmul.msk.bf16.gmra.mxu0 %vm291_vm3, %v750_v25  ;;  %v870_v25 = vpack.c.b16 %v864_v15, %v863_v14  ;;  %v1106_v14 = vrot.slane %v1104_v5, 5  ;;  %v1554_v15 = vld [vmem:[%s1667_s24 + $0x40] sm:$0xf]  ;;  %v1570_v5 = vld [vmem:[%s1667_s24 + $0x48] sm:$0xe] }
  0x6e   : > { %1509 = vmatmul.msk.bf16.vlgmr.msra.gmra.mxu1 %vm291_vm3, %v869_v36  ;;  %v1574_v36 = vrot.slane %v1566_v24, 9  ;;  %v1109_v24 = vshrl.u32 %v1554_v15, 16  ;;  %v1578_v63 = vrot.slane %v1570_v5, 9 }
  0x70   : > { %v1241_v56 = vsel %vm1726_vm7, %v1574_v36, %v1240_v41  ;;  %v1507_v36 = vrot.slane %v1499_v46, 9  ;;  %v1111_v41 = vrot.slane %v1109_v24, 4 }
  0x71   : > { %1538 = vmatmul.msk.bf16.vlgmr.msra.gmra.mxu2 %vm291_vm3, %v1525_v43  ;;  %v1098_v43 = vshll.u32 %v1552_v54, 16  ;;  %v1263_v3 = vunpack.c.l.b16 %v1241_v56  ;;  %v1132_v56 = vshll.u32 %v1557_v50, 16 }
  0x72   : > { %v858_v28 = vsel %vm1726_vm7, %v1507_v36, %v857_v38 }
  0x73   : > { %v1100_v58 = vrot.slane %v1098_v43, 5  ;;  %v1249_v43 = vsel %vm1726_vm7, %v1576_v21, %v1248_v30  ;;  %v1134_v62 = vrot.slane %v1132_v56, 5 }
  0x74   : > { %v1265_v29 = vunpack.c.l.b16 %v1249_v43 }
  0x75   : > { %v1101_v13 = vor.u32 %v1100_v58, %v1097_v57  ;;  %v867_v57 = vunpack.c.l.b16 %v854_v27  ;;  %v868_v58 = vunpack.c.l.b16 %v858_v28 }
  0x76   : > { %v1270_v47 = vpack.c.b16 %v1265_v29, %v1264_v51 }
  0x77   : > { %v1102_v11 = vrot.slane %v1101_v13, 4  ;;  %v1598_v13 = vld [vmem:[%s1667_s24 + $0x44] sm:$0xf0] }
  0x78   : > { %1559 = vmatmul.msk.bf16.vlgmr.msra.gmra.mxu3 %vm291_vm3, %v1146_v8  ;;  %v1269_v8 = vpack.c.b16 %v1263_v3, %v1262_v2  ;;  %v872_v2 = vpack.c.b16 %v868_v58, %v867_v57  ;;  %v1536_v3 = vld [vmem:[%s1667_s24 + $0x40] sm:$0xf] }
  0x79   : > { %v1107_v54 = vsel %vm1692_vm4, %v1102_v11, %v1106_v14 }
  0x7a   : > { %v1143_v39 = vunpack.c.l.b16 %v1107_v54 }
  0x7d   : > { %1580 = vmatmul.msk.bf16.vlgmr.msra.gmra.mxu0 %vm291_vm3, %v1268_v17  ;;  %v1556_v17 = vld [vmem:[%s1667_s24 + $0x48] sm:$0xf] }
  0x7e   : > { %1510 = vmatmul.msk.bf16.gmra.mxu1 %vm291_vm3, %v870_v25  ;;  %v1112_v25 = vshll.u32 %v1554_v15, 16  ;;  %v1123_v31 = vshrl.u32 %v1556_v17, 16  ;;  %v1126_v32 = vshll.u32 %v1556_v17, 16  ;;  %v1257_v15 = vsel %vm1726_vm7, %v1578_v63, %v1256_v10 }
  0x7f   : > { %v1267_v37 = vunpack.c.l.b16 %v1257_v15 }
  0x80   : > { %v1114_v42 = vrot.slane %v1112_v25, 5  ;;  %v1125_v48 = vrot.slane %v1123_v31, 4  ;;  %v1128_v49 = vrot.slane %v1126_v32, 5 }
  0x81   : > { %1539 = vmatmul.msk.bf16.gmra.mxu2 %vm291_vm3, %v1529_v33  ;;  %v1142_v33 = vunpack.c.l.b16 %v1093_v18 }
  0x82   : > { %v1115_v53 = vor.u32 %v1114_v42, %v1111_v41  ;;  %v1129_v55 = vor.u32 %v1128_v49, %v1125_v48 }
  0x83   : > { %v1148_v52 = vpack.c.b16 %v1143_v39, %v1142_v33 }
  0x84   : > { %v1116_v26 = vrot.slane %v1115_v53, 4  ;;  %v1130_v61 = vrot.slane %v1129_v55, 4 }
  0x86   : > { %v1121_v60 = vsel %vm1692_vm4, %v1116_v26, %v1120_v59  ;;  %v1135_v9 = vsel %vm1692_vm4, %v1130_v61, %v1134_v62 }
  0x87   : > { %v1144_v0 = vunpack.c.l.b16 %v1121_v60  ;;  %v1145_v11 = vunpack.c.l.b16 %v1135_v9 }
  0x88   : > { %1560 = vmatmul.msk.bf16.gmra.mxu3 %vm291_vm3, %v1147_v1  ;;  %v1569_v1 = vld [vmem:[%s1667_s24 + $0x40] sm:$0xe] }
  0x89   : > { %v1577_v4 = vrot.slane %v1569_v1, 9  ;;  %v1149_v17 = vpack.c.b16 %v1145_v11, %v1144_v0 }
  0x8b   : > { %v1253_v14 = vsel %vm1726_vm7, %v1577_v4, %v1252_v7 }
  0x8c   : > { %v1266_v18 = vunpack.c.l.b16 %v1253_v14 }
  0x8d   : > { %1581 = vmatmul.msk.bf16.gmra.mxu0 %vm291_vm3, %v1269_v8  ;;  %v1537_v8 = vor.u32 %v1598_v13, %v1536_v3 }
  0x8e   : > { %1511 = vmatmul.msk.bf16.gmra.mxu1 %vm291_vm3, %v871_v16  ;;  %v1271_v20 = vpack.c.b16 %v1267_v37, %v1266_v18 }
  0x91   : > { %1540 = vmatmul.msk.bf16.gmra.mxu2 %vm291_vm3, %v1533_v22 }
  0x98   : > { %1561 = vmatmul.msk.bf16.gmra.mxu3 %vm291_vm3, %v1148_v52 }
  0x9b   : > { %v1969_v6 = vpop.f32.mrf.mxu1 }
  0x9d   : > { %1582 = vmatmul.msk.bf16.gmra.mxu0 %vm291_vm3, %v1270_v47 }
  0x9e   : > { %1512 = vmatmul.msk.bf16.gmra.mxu1 %vm291_vm3, %v872_v2 }
  0xa1   : > { %1541 = vmatmul.msk.bf16.gmra.mxu2 %vm291_vm3, %v1537_v8 }
  0xa3   : > { %v1982_v16 = vpop.f32.mrf.mxu1 }
  0xa4   : > { %v1984_v19 = vpop.f32.mrf.mxu2 }
  0xa8   : > { %1562 = vmatmul.msk.bf16.gmra.mxu3 %vm291_vm3, %v1149_v17 }
  0xaa   : > { %v317_v21 = vpop.f32.mrf.mxu0 }
  0xab   : > { %v1987_v22 = vpop.f32.mrf.mxu3  ;;  %v381_v23 = vpop.f32.mrf.mxu1 }
  0xac   : > { %v1990_v46 = vpop.f32.mrf.mxu2  ;;  %v382_v56 = vadd.f32 %v381_v23, %v317_v21 }
  0xad   : > { %1583 = vmatmul.msk.bf16.gmra.mxu0 %vm291_vm3, %v1271_v20 }
  0xb2   : > { %v319_v44 = vpop.f32.mrf.mxu0 }
  0xb3   : > { %v1992_v24 = vpop.f32.mrf.mxu3  ;;  %v383_v25 = vpop.f32.mrf.mxu1 }
  0xb4   : > { %v498_v54 = vpop.f32.mrf.mxu2  ;;  %v384_v62 = vadd.f32 %v383_v25, %v319_v44 }
  0xb5   : > { %v518_v47 = vadd.f32 %v498_v54, %v382_v56 }
  0xba   : > { %v775_v30 = vpop.f32.mrf.mxu0 }
  0xbb   : > { %v581_v31 = vpop.f32.mrf.mxu3  ;;  %v386_v32 = vpop.f32.mrf.mxu1 }
  0xbc   : > { %v500_v33 = vpop.f32.mrf.mxu2  ;;  %v601_v59 = vadd.f32 %v581_v31, %v518_v47  ;;  %v387_v9 = vadd.f32 %v386_v32, %v1969_v6 }
  0xbd   : > { %v519_v3 = vadd.f32 %v500_v33, %v384_v62 }
  0xbe   : > { %v795_v13 = vadd.f32 %v775_v30, %v601_v59 }
  0xc2   : > { %v777_v34 = vpop.f32.mrf.mxu0 }
  0xc3   : > { %v583_v35 = vpop.f32.mrf.mxu3  ;;  %v388_v36 = vpop.f32.mrf.mxu1 }
  0xc4   : > { %v503_v38 = vpop.f32.mrf.mxu2  ;;  %v602_v4 = vadd.f32 %v583_v35, %v519_v3  ;;  %v389_v23 = vadd.f32 %v388_v36, %v1982_v16 }
  0xc5   : > { %v520_v0 = vadd.f32 %v503_v38, %v387_v9 }
  0xc6   : > { %v796_v14 = vadd.f32 %v777_v34, %v602_v4 }
  0xca   : > { %v780_v39 = vpop.f32.mrf.mxu0 }
  0xcb   : > { %v586_v40 = vpop.f32.mrf.mxu3  ;;  %v391_v41 = vpop.f32.mrf.mxu1 }
  0xcc   : > { %v505_v42 = vpop.f32.mrf.mxu2  ;;  %v603_v37 = vadd.f32 %v586_v40, %v520_v0 }
  0xcd   : > { %v521_v54 = vadd.f32 %v505_v42, %v389_v23 }
  0xce   : > { %v797_v31 = vadd.f32 %v780_v39, %v603_v37 }
  0xd2   : > { %v1994_v43 = vpop.f32.mrf.mxu0 }
  0xd3   : > { %v588_v45 = vpop.f32.mrf.mxu3  ;;  %v1996_v48 = vpop.f32.mrf.mxu1 }
  0xd4   : > { %v508_v49 = vpop.f32.mrf.mxu2  ;;  %v604_v35 = vadd.f32 %v588_v45, %v521_v54 }
  0xd6   : > { %v798_v59 = vadd.f32 %v1994_v43, %v604_v35 }
  0xda   : > { %v1998_v50 = vpop.f32.mrf.mxu0 }
  0xdb   : > { %v2000_v51 = vpop.f32.mrf.mxu3  ;;  %v2002_v27 = vpop.f32.mrf.mxu1 }
  0xdc   : > { %v2004_v28 = vpop.f32.mrf.mxu2 }
  0xe2   : > { %v2006_v52 = vpop.f32.mrf.mxu0 }
  0xe3   : > { %v2008_v29 = vpop.f32.mrf.mxu3  ;;  %v2010_v53 = vpop.f32.mrf.mxu1 }
  0xe4   : > { %v2012_v12 = vpop.f32.mrf.mxu2 }
  0xea   : > { %v2014_v55 = vpop.f32.mrf.mxu0 }
  0xeb   : > { %v2016_v57 = vpop.f32.mrf.mxu3  ;;  %v897_v58 = vpop.f32.mrf.mxu1 }
  0xec   : > { %v2018_v26 = vpop.f32.mrf.mxu2  ;;  %v917_v60 = vadd.f32 %v897_v58, %v795_v13  ;;  %v392_v58 = vadd.f32 %v391_v41, %v1984_v19  ;;  %v394_v19 = vadd.f32 %v1996_v48, %v1990_v46  ;;  %v397_v46 = vadd.f32 %v2002_v27, %v1987_v22 }
  0xed   : > { %v399_v22 = vadd.f32 %v2010_v53, %v1992_v24 }
  0xee   : > { %v522_v36 = vadd.f32 %v508_v49, %v392_v58  ;;  %v523_v49 = vadd.f32 %v2004_v28, %v394_v19  ;;  %v524_v28 = vadd.f32 %v2012_v12, %v397_v46 }
  0xef   : > { %v525_v12 = vadd.f32 %v2018_v26, %v399_v22 }
  0xf0   : > { %v605_v3 = vadd.f32 %v2000_v51, %v522_v36  ;;  %v606_v51 = vadd.f32 %v2008_v29, %v523_v49  ;;  %v607_v29 = vadd.f32 %v2016_v57, %v524_v28 }
  0xf2   : > { %v2020_v61 = vpop.f32.mrf.mxu0  ;;  %v799_v43 = vadd.f32 %v1998_v50, %v605_v3  ;;  %v800_v50 = vadd.f32 %v2006_v52, %v606_v51  ;;  %v801_v52 = vadd.f32 %v2014_v55, %v607_v29 }
  0xf3   : > { %v2022_v1 = vpop.f32.mrf.mxu3  ;;  %v899_v2 = vpop.f32.mrf.mxu1 }
  0xf4   : > { %v980_v5 = vpop.f32.mrf.mxu2  ;;  %v918_v18 = vadd.f32 %v899_v2, %v796_v14 }
  0xf5   : > { %v1000_v7 = vadd.f32 %v980_v5, %v917_v60 }
  0xfa   : > { %v1296_v8 = vpop.f32.mrf.mxu0 }
  0xfb   : > { %v1174_v63 = vpop.f32.mrf.mxu3  ;;  %v902_v10 = vpop.f32.mrf.mxu1 }
  0xfc   : > { %v1194_v11 = vadd.f32 %v1174_v63, %v1000_v7  ;;  %v982_v15 = vpop.f32.mrf.mxu2  ;;  %v919_v34 = vadd.f32 %v902_v10, %v797_v31 }
  0xfd   : > { %v1001_v21 = vadd.f32 %v982_v15, %v918_v18 }
  0xfe   : > { %v1316_v17 = vadd.f32 %v1296_v8, %v1194_v11 }
 0x100   : > { %v1324_v20 = vpack.c.bf16 %v1316_v17, %v1316_v17 }
 0x102   : > { %v1298_v6 = vpop.f32.mrf.mxu0  ;;  %1333 = vst.msk [vmem:[%s2029_s8] sm:$0xf] %vm1332_vm8, %v1324_v20 }
 0x103   : > { %v1176_v44 = vpop.f32.mrf.mxu3  ;;  %v904_v25 = vpop.f32.mrf.mxu1 }
 0x104   : > { %v1195_v30 = vadd.f32 %v1176_v44, %v1001_v21  ;;  %v985_v32 = vpop.f32.mrf.mxu2  ;;  %v920_v2 = vadd.f32 %v904_v25, %v798_v59  ;;  %v608_v25 = vadd.f32 %v2022_v1, %v525_v12 }
 0x105   : > { %v1002_v56 = vadd.f32 %v985_v32, %v919_v34 }
 0x106   : > { %v1317_v33 = vadd.f32 %v1298_v6, %v1195_v30  ;;  %v802_v26 = vadd.f32 %v2020_v61, %v608_v25 }
 0x108   : > { %v1325_v38 = vpack.c.bf16 %v1317_v33, %v1317_v33 }
 0x10a   : > { %v1301_v40 = vpop.f32.mrf.mxu0  ;;  %1334 = vst.msk [vmem:[%s2029_s8 + $0x4] sm:$0xf] %vm1332_vm8, %v1325_v38 }
 0x10b   : > { %v1179_v16 = vpop.f32.mrf.mxu3  ;;  %v907_v62 = vpop.f32.mrf.mxu1 }
 0x10c   : > { %v1196_v47 = vadd.f32 %v1179_v16, %v1002_v56  ;;  %v987_v42 = vpop.f32.mrf.mxu2  ;;  %v921_v8 = vadd.f32 %v907_v62, %v799_v43 }
 0x10d   : > { %v1003_v13 = vadd.f32 %v987_v42, %v920_v2 }
 0x10e   : > { %v1318_v39 = vadd.f32 %v1301_v40, %v1196_v47 }
 0x110   : > { %v1326_v45 = vpack.c.bf16 %v1318_v39, %v1318_v39 }
 0x112   : > { %v1303_v5 = vpop.f32.mrf.mxu0  ;;  %1335 = vst.msk [vmem:[%s2029_s8 + $0x8] sm:$0xf] %vm1332_vm8, %v1326_v45 }
 0x113   : > { %v1181_v41 = vpop.f32.mrf.mxu3  ;;  %v909_v9 = vpop.f32.mrf.mxu1 }
 0x114   : > { %v1197_v60 = vadd.f32 %v1181_v41, %v1003_v13  ;;  %v990_v4 = vpop.f32.mrf.mxu2  ;;  %v922_v17 = vadd.f32 %v909_v9, %v800_v50 }
 0x115   : > { %v1004_v10 = vadd.f32 %v990_v4, %v921_v8 }
 0x116   : > { %v1319_v7 = vadd.f32 %v1303_v5, %v1197_v60 }
 0x118   : > { %v1327_v63 = vpack.c.bf16 %v1319_v7, %v1319_v7 }
 0x11a   : > { %v1306_v0 = vpop.f32.mrf.mxu0  ;;  %1336 = vst.msk [vmem:[%s2029_s8 + $0xc] sm:$0xf] %vm1332_vm8, %v1327_v63 }
 0x11b   : > { %v1184_v48 = vpop.f32.mrf.mxu3  ;;  %v912_v20 = vpop.f32.mrf.mxu1 }
 0x11c   : > { %v1198_v11 = vadd.f32 %v1184_v48, %v1004_v10  ;;  %v992_v14 = vpop.f32.mrf.mxu2  ;;  %v923_v57 = vadd.f32 %v912_v20, %v801_v52 }
 0x11d   : > { %v1005_v37 = vadd.f32 %v992_v14, %v922_v17 }
 0x11e   : > { %v1320_v15 = vadd.f32 %v1306_v0, %v1198_v11 }
 0x120   : > { %v1328_v18 = vpack.c.bf16 %v1320_v15, %v1320_v15 }
 0x122   : > { %v1308_v21 = vpop.f32.mrf.mxu0  ;;  %1337 = vst.msk [vmem:[%s2029_s8 + $0x10] sm:$0xf] %vm1332_vm8, %v1328_v18 }
 0x123   : > { %v1186_v27 = vpop.f32.mrf.mxu3  ;;  %v914_v31 = vpop.f32.mrf.mxu1 }
 0x124   : > { %v1199_v6 = vadd.f32 %v1186_v27, %v1005_v37  ;;  %v995_v23 = vpop.f32.mrf.mxu2  ;;  %v924_v55 = vadd.f32 %v914_v31, %v802_v26 }
 0x125   : > { %v1006_v30 = vadd.f32 %v995_v23, %v923_v57 }
 0x126   : > { %v1321_v44 = vadd.f32 %v1308_v21, %v1199_v6 }
 0x128   : > { %v1329_v54 = vpack.c.bf16 %v1321_v44, %v1321_v44 }
 0x12a   : > { %1338 = vst.msk [vmem:[%s2029_s8 + $0x14] sm:$0xf] %vm1332_vm8, %v1329_v54  ;;  %v1311_v24 = vpop.f32.mrf.mxu0 }
 0x12b   : > { %v1189_v53 = vpop.f32.mrf.mxu3 }
 0x12c   : > { %v1200_v32 = vadd.f32 %v1189_v53, %v1006_v30  ;;  %v997_v33 = vpop.f32.mrf.mxu2 }
 0x12d   : > { %v1007_v38 = vadd.f32 %v997_v33, %v924_v55 }
 0x12e   : > { %v1322_v34 = vadd.f32 %v1311_v24, %v1200_v32 }
 0x130   : > { %v1330_v35 = vpack.c.bf16 %v1322_v34, %v1322_v34 }
 0x132   : > { %1339 = vst.msk [vmem:[%s2029_s8 + $0x18] sm:$0xf] %vm1332_vm8, %v1330_v35  ;;  %v1313_v40 = vpop.f32.mrf.mxu0 }
 0x133   : > { %v1191_v56 = vpop.f32.mrf.mxu3 }
 0x134   : > { %v1201_v1 = vadd.f32 %v1191_v56, %v1007_v38 }
 0x136   : > { %v1323_v58 = vadd.f32 %v1313_v40, %v1201_v1 }
 0x138   : > { %v1331_v16 = vpack.c.bf16 %v1323_v58, %v1323_v58 }
 0x13a   : > { %1340 = vst.msk [vmem:[%s2029_s8 + $0x1c] sm:$0xf] %vm1332_vm8, %v1331_v16 }
 0x13b PF: > { %s12_s9 = sadd.s32 1, %s1617_s9  }
 0x13c   : > { %p9_p4 = scmp.ge.s32.totalorder %s12_s9, 4  }
 0x13e   :  { %11 = sbr.rel (!%p9_p4) target bundleno = 1 (0x1), region = 68 }

// kernel: vit_classifier_forward.38
= control target key start
LH: loop header
LB: loop body
LE: loop exit
PB: predicated region body
PF: predicated region fallthrough
CT: control target
= control target key end

     0   :  { %s1858_s9 = smov 0   ;;  %s2312_s0 = inlined_call_operand.vmem [shape: bf16[2,10,10,32], index: 0, kind: input, shape index: {}]   ;;  %s2313_s1 = inlined_call_operand.vmem [shape: bf16[9,32,8], index: 1, kind: input, shape index: {}]   ;;  %s2314_s2 = inlined_call_operand.vmem [shape: bf16[2,8,8,8], index: 2, kind: output, shape index: {}]  }
   0x1 LB: > { %s1503_s10 = sadd.s32 4294967295, %s1841_s9   ;;  %p1507_p0 = scmp.ge.s32.totalorder %s1841_s9, 1  ;;  %s1841_s9 = sphi %s1858_s9, %s12_s9  }
   0x2   : > { %p112_p1 = scmp.lt.s32.totalorder %s1841_s9, 3 }
   0x4   : > { %p113_p2 = pnand %p1507_p0, %p112_p1 }
   0x5   : > { %p134_p3 = scmp.lt.s32.totalorder (!%p113_p2), %s1503_s10, 1 }
   0x6   : > { %116 = sbr.rel (%p113_p2) target bundleno = 315 (0x13b), region = 28 }
   0xb   : > { %v1797_v0 = vld [vmem:[%s2313_s1 + $0x18] sm:$0xff]  ;;  %v1796_v1 = vld [vmem:[%s2313_s1 + $0x10] sm:$0xff]  ;;  %s2320_s10 = smov (!%p134_p3, %s1503_s10), 1  ;;  %v1799_v2 = vld [vmem:[%s2313_s1 + $0x28] sm:$0xff]  ;;  %vm165_vm0 = vsmask.f32 3328 }
   0xc   : > { %1820 = vmatpush.bf16.msra.mxu1 %v1797_v0  ;;  %1821 = vmatpush.bf16.msra.mxu2 %v1797_v0  ;;  %s1826_s15 = smul.u32 80, %s2320_s10  ;;  %v1805_v3 = vld [vmem:[%s2313_s1 + $0x38] sm:$0xff]  ;;  %v1795_v4 = vld [vmem:[%s2313_s1 + $0x8] sm:$0xff]  ;;  %vm166_vm1 = vsmask.f32 7440  ;;  %v1798_v6 = vld [vmem:[%s2313_s1 + $0x20] sm:$0xff] }
   0xd   : > { %1822 = vmatpush.bf16.msra.mxu3 %v1797_v0  ;;  %328 = vmatpush.bf16.msra.mxu0 %v1797_v0  ;;  %v1807_v5 = vld [vmem:[%s2313_s1 + $0x48] sm:$0xff]  ;;  %v1804_v7 = vld [vmem:[%s2313_s1 + $0x30] sm:$0xff]  ;;  %v1794_v11 = vld [vmem:[%s2313_s1] sm:$0xff]  ;;  %vm309_vm2 = vcmask 261120   ;;  %vm448_vm4 = vcmask 1042432   ;;  %vm449_vm5 = vcmask 1046532  }
   0xe   : > { %s1890_s26 = scalar_lea.vmem %s2312_s0, %s1826_s15  ;;  %v1806_v12 = vld [vmem:[%s2313_s1 + $0x40] sm:$0xff]  ;;  %vm1926_vm3 = vmor %vm165_vm0, %vm166_vm1  ;;  %s1789_s25 = sshll.u32 %s2320_s10, 5  ;;  %vm1439_vm7 = vcmask 60416  }
   0xf   : > { %v147_v8 = vld [vmem:[%s1890_s26 + $0x10] sm:$0xf]  ;;  %v148_v9 = vld [vmem:[%s1890_s26 + $0x18] sm:$0xf]  ;;  %v1901_v10 = vld [vmem:[%s1890_s26 + $0x14] sm:$0x1]  ;;  %s2271_s28 = scalar_lea.vmem %s2314_s2, %s1789_s25 }
  0x10   : > { %1823 = vmatpush.bf16.msra.mxu1 %v1796_v1  ;;  %1824 = vmatpush.bf16.msra.mxu2 %v1796_v1  ;;  %v1910_v13 = vld [vmem:[%s1890_s26 + $0x1c] sm:$0x1]  ;;  %v197_v14 = vshrl.u32 %v147_v8, 16  ;;  %v200_v15 = vshll.u32 %v147_v8, 16  ;;  %v206_v16 = vshll.u32 %v1901_v10, 16  ;;  %v211_v17 = vshrl.u32 %v148_v9, 16  ;;  %vm1966_vm6 = vmor %vm448_vm4, %vm449_vm5 }
  0x11   : > { %1825 = vmatpush.bf16.msra.mxu3 %v1796_v1  ;;  %329 = vmatpush.bf16.msra.mxu0 %v1796_v1  ;;  %v214_v18 = vshll.u32 %v148_v9, 16  ;;  %v220_v19 = vshll.u32 %v1910_v13, 16  ;;  %v149_v20 = vld [vmem:[%s1890_s26 + $0x20] sm:$0xf]  ;;  %v150_v21 = vld [vmem:[%s1890_s26 + $0x28] sm:$0xf] }
  0x12   : > { %v199_v22 = vrot.slane %v197_v14, 4  ;;  %v202_v23 = vrot.slane %v200_v15, 5  ;;  %v208_v24 = vrot.slane %v206_v16, 5  ;;  %v213_v25 = vrot.slane %v211_v17, 4  ;;  %v1917_v26 = vld [vmem:[%s1890_s26 + $0x24] sm:$0x1] }
  0x13   : > { %v216_v27 = vrot.slane %v214_v18, 5  ;;  %v222_v28 = vrot.slane %v220_v19, 5  ;;  %v1920_v29 = vld [vmem:[%s1890_s26 + $0x2c] sm:$0x1]  ;;  %v225_v30 = vshrl.u32 %v149_v20, 16  ;;  %v228_v31 = vshll.u32 %v149_v20, 16 }
  0x14   : > { %530 = vmatpush.bf16.msrb.mxu2 %v1799_v2  ;;  %401 = vmatpush.bf16.msrb.mxu1 %v1795_v4  ;;  %v203_v32 = vor.u32 %v202_v23, %v199_v22  ;;  %v234_v33 = vshll.u32 %v1917_v26, 16  ;;  %v239_v34 = vshrl.u32 %v150_v21, 16  ;;  %v242_v35 = vshll.u32 %v150_v21, 16  ;;  %v151_v36 = vld [vmem:[%s1890_s26 + $0x30] sm:$0xf]  ;;  %v1815_v22 = vld [vmem:[%s2313_s1 + $0x68] sm:$0xff] }
  0x15   : > { %625 = vmatpush.bf16.msrb.mxu3 %v1805_v3  ;;  %831 = vmatpush.bf16.msrb.mxu0 %v1807_v5  ;;  %v217_v38 = vor.u32 %v216_v27, %v213_v25  ;;  %v227_v39 = vrot.slane %v225_v30, 4  ;;  %v230_v40 = vrot.slane %v228_v31, 5  ;;  %v248_v41 = vshll.u32 %v1920_v29, 16  ;;  %v1932_v46 = vld [vmem:[%s1890_s26 + $0x34] sm:$0x1] }
  0x16   : > { %v204_v42 = vrot.slane %v203_v32, 4  ;;  %v236_v43 = vrot.slane %v234_v33, 5  ;;  %v241_v44 = vrot.slane %v239_v34, 4  ;;  %v244_v45 = vrot.slane %v242_v35, 5  ;;  %v152_v53 = vld [vmem:[%s1890_s26 + $0x38] sm:$0xf] }
  0x17   : > { %v218_v47 = vrot.slane %v217_v38, 4  ;;  %v231_v48 = vor.u32 %v230_v40, %v227_v39  ;;  %v250_v49 = vrot.slane %v248_v41, 5  ;;  %v253_v50 = vshrl.u32 %v151_v36, 16  ;;  %v1938_v54 = vld [vmem:[%s1890_s26 + $0x3c] sm:$0x1] }
  0x18   : > { %531 = vmatpush.bf16.msrb.mxu2 %v1798_v6  ;;  %402 = vmatpush.bf16.msrb.mxu1 %v1794_v11  ;;  %v209_v51 = vsel %vm1926_vm3, %v204_v42, %v208_v24  ;;  %v245_v52 = vor.u32 %v244_v45, %v241_v44  ;;  %v256_v55 = vshll.u32 %v151_v36, 16  ;;  %v262_v56 = vshll.u32 %v1932_v46, 16  ;;  %v145_v1 = vld [vmem:[%s1890_s26] sm:$0xf]  ;;  %v157_v6 = vld [vmem:[%s1890_s26 + $0x4] sm:$0x1] }
  0x19   : > { %626 = vmatpush.bf16.msrb.mxu3 %v1804_v7  ;;  %832 = vmatpush.bf16.msrb.mxu0 %v1806_v12  ;;  %v223_v57 = vsel %vm1926_vm3, %v218_v47, %v222_v28  ;;  %v287_v58 = vunpack.c.l.b16 %v209_v51  ;;  %v232_v59 = vrot.slane %v231_v48, 4  ;;  %v255_v60 = vrot.slane %v253_v50, 4  ;;  %v146_v12 = vld [vmem:[%s1890_s26 + $0x8] sm:$0xf]  ;;  %v158_v25 = vld [vmem:[%s1890_s26 + $0xc] sm:$0x1] }
  0x1a   : > { %v288_v61 = vunpack.c.l.b16 %v223_v57  ;;  %v246_v62 = vrot.slane %v245_v52, 4  ;;  %v258_v63 = vrot.slane %v256_v55, 5  ;;  %v264_v0 = vrot.slane %v262_v56, 5  ;;  %v424_v34 = vld [vmem:[%s1890_s26] sm:$0xe]  ;;  %v1809_v35 = vld [vmem:[%s2313_s1 + $0x58] sm:$0xff] }
  0x1b   : > { %v237_v2 = vsel %vm1926_vm3, %v232_v59, %v236_v43  ;;  %v267_v3 = vshrl.u32 %v152_v53, 16  ;;  %v270_v4 = vshll.u32 %v152_v53, 16  ;;  %v276_v5 = vshll.u32 %v1938_v54, 16  ;;  %v425_v41 = vld [vmem:[%s1890_s26 + $0x8] sm:$0xe] }
  0x1c   : > { %v294_v7 = vpack.c.b16 %v288_v61, %v287_v58  ;;  %v251_v8 = vsel %vm1926_vm3, %v246_v62, %v250_v49  ;;  %v289_v9 = vunpack.c.l.b16 %v237_v2  ;;  %v259_v11 = vor.u32 %v258_v63, %v255_v60  ;;  %v1619_v48 = vld [vmem:[%s1890_s26 + $0x8] sm:$0xf]  ;;  %v1621_v59 = vld [vmem:[%s1890_s26 + $0x10] sm:$0xf]  ;;  %v1817_v61 = vld [vmem:[%s2313_s1 + $0x78] sm:$0xff] }
  0x1d   : > { %v290_v14 = vunpack.c.l.b16 %v251_v8  ;;  %v269_v15 = vrot.slane %v267_v3, 4  ;;  %v272_v16 = vrot.slane %v270_v4, 5  ;;  %v278_v17 = vrot.slane %v276_v5, 5  ;;  %v1987_v2 = vld [vmem:[%s1890_s26 + $0x14] sm:$0x1] }
  0x1e   : > { %1524 = vmatmul.msk.bf16.vlgmr.msra.gmra.mxu1 %vm309_vm2, %v294_v7  ;;  %v260_v18 = vrot.slane %v259_v11, 4  ;;  %v169_v19 = vshrl.u32 %v145_v1, 16  ;;  %v172_v20 = vshll.u32 %v145_v1, 16  ;;  %v178_v21 = vshll.u32 %v157_v6, 16  ;;  %v1984_v1 = vld [vmem:[%s1890_s26 + $0xc] sm:$0x1] }
  0x1f   : > { %v295_v23 = vpack.c.b16 %v290_v14, %v289_v9  ;;  %v273_v24 = vor.u32 %v272_v16, %v269_v15  ;;  %v183_v27 = vshrl.u32 %v146_v12, 16  ;;  %v186_v28 = vshll.u32 %v146_v12, 16  ;;  %965 = vmatpush.bf16.msra.mxu1 %v1809_v35  ;;  %v1529_v5 = vld [vmem:[%s1890_s26] sm:$0xf] }
  0x20   : > { %v265_v30 = vsel %vm1926_vm3, %v260_v18, %v264_v0  ;;  %v171_v31 = vrot.slane %v169_v19, 4  ;;  %v174_v32 = vrot.slane %v172_v20, 5  ;;  %v180_v33 = vrot.slane %v178_v21, 5  ;;  %v1819_v18 = vld [vmem:[%s2313_s1 + $0x88] sm:$0xff] }
  0x21   : > { %1525 = vmatmul.msk.bf16.vlgmr.msra.gmra.mxu2 %vm309_vm2, %v295_v23  ;;  %v274_v36 = vrot.slane %v273_v24, 4  ;;  %v291_v38 = vunpack.c.l.b16 %v265_v30  ;;  %v185_v39 = vrot.slane %v183_v27, 4  ;;  %v188_v40 = vrot.slane %v186_v28, 5 }
  0x22   : > { %v175_v42 = vor.u32 %v174_v32, %v171_v31  ;;  %v192_v43 = vshll.u32 %v158_v25, 16  ;;  %v453_v44 = vrot.slane %v157_v6, 5  ;;  %v457_v45 = vrot.slane %v158_v25, 5  ;;  %1060 = vmatpush.bf16.msra.mxu2 %v1815_v22  ;;  %v1790_v6 = vld [vmem:[%s1890_s26 + $0x4] sm:$0xf0] }
  0x23   : > { %v279_v49 = vsel %vm1926_vm3, %v274_v36, %v278_v17  ;;  %v189_v50 = vor.u32 %v188_v40, %v185_v39  ;;  %v1555_v51 = vrot.slane %v424_v34, 9  ;;  %v1556_v56 = vrot.slane %v425_v41, 9  ;;  %v426_v31 = vld [vmem:[%s1890_s26 + $0x10] sm:$0xe]  ;;  %v1623_v32 = vld [vmem:[%s1890_s26 + $0x18] sm:$0xf] }
  0x24   : > { %v292_v52 = vunpack.c.l.b16 %v279_v49  ;;  %v176_v53 = vrot.slane %v175_v42, 4  ;;  %v194_v55 = vrot.slane %v192_v43, 5  ;;  %v673_v60 = vshrl.u32 %v1619_v48, 16  ;;  %v1625_v34 = vld [vmem:[%s1890_s26 + $0x20] sm:$0xf] }
  0x25   : > { %v190_v57 = vrot.slane %v189_v50, 4  ;;  %v454_v58 = vsel %vm1966_vm6, %v1555_v51, %v453_v44  ;;  %v458_v0 = vsel %vm1966_vm6, %v1556_v56, %v457_v45  ;;  %v676_v11 = vshll.u32 %v1619_v48, 16  ;;  %v427_v36 = vld [vmem:[%s1890_s26 + $0x18] sm:$0xe]  ;;  %v1593_v42 = vld [vmem:[%s1890_s26 + $0x8] sm:$0xf] }
  0x26   : > { %v296_v62 = vpack.c.b16 %v292_v52, %v291_v38  ;;  %v181_v63 = vsel %vm1926_vm3, %v176_v53, %v180_v33  ;;  %v488_v7 = vunpack.c.l.b16 %v454_v58  ;;  %v675_v9 = vrot.slane %v673_v60, 4  ;;  %v1800_v43 = vld [vmem:[%s1890_s26 + $0xc] sm:$0xf0]  ;;  %v2017_v56 = vld [vmem:[%s1890_s26 + $0x1c] sm:$0x1] }
  0x27   : > { %v195_v3 = vsel %vm1926_vm3, %v190_v57, %v194_v55  ;;  %v285_v4 = vunpack.c.l.b16 %v181_v63  ;;  %v687_v12 = vshrl.u32 %v1621_v59, 16  ;;  %v489_v14 = vunpack.c.l.b16 %v458_v0  ;;  %v1533_v63 = vld [vmem:[%s1890_s26 + $0x10] sm:$0xf] }
  0x28   : > { %1526 = vmatmul.msk.bf16.vlgmr.msra.gmra.mxu3 %vm309_vm2, %v296_v62  ;;  %v286_v8 = vunpack.c.l.b16 %v195_v3  ;;  %v682_v15 = vshll.u32 %v1984_v1, 16  ;;  %v690_v16 = vshll.u32 %v1621_v59, 16  ;;  %v696_v17 = vshll.u32 %v1987_v2, 16  ;;  %v2022_v62 = vld [vmem:[%s1890_s26 + $0x24] sm:$0x1] }
  0x29   : > { %1266 = vmatpush.bf16.msra.mxu3 %v1817_v61  ;;  %v1530_v20 = vor.u32 %v1790_v6, %v1529_v5  ;;  %v678_v21 = vrot.slane %v676_v11, 5  ;;  %v689_v22 = vrot.slane %v687_v12, 4  ;;  %v496_v25 = vpack.c.b16 %v489_v14, %v488_v7  ;;  %v1814_v5 = vld [vmem:[%s2313_s1 + $0x60] sm:$0xff]  ;;  %v1627_v12 = vld [vmem:[%s1890_s26 + $0x28] sm:$0xf] }
  0x2a   : > { %v293_v19 = vpack.c.b16 %v286_v8, %v285_v4  ;;  %v692_v23 = vrot.slane %v690_v16, 5  ;;  %v684_v27 = vrot.slane %v682_v15, 5  ;;  %v698_v30 = vrot.slane %v696_v17, 5  ;;  %1061 = vmatpush.bf16.msra.mxu2 %v1814_v5  ;;  %v1816_v15 = vld [vmem:[%s2313_s1 + $0x70] sm:$0xff]  ;;  %v1818_v17 = vld [vmem:[%s2313_s1 + $0x80] sm:$0xff] }
  0x2b   : > { %v679_v24 = vor.u32 %v678_v21, %v675_v9  ;;  %v1557_v38 = vrot.slane %v426_v31, 9  ;;  %v461_v39 = vrot.slane %v1901_v10, 5  ;;  %v701_v40 = vshrl.u32 %v1623_v32, 16  ;;  %v1808_v16 = vld [vmem:[%s2313_s1 + $0x50] sm:$0xff] }
  0x2c   : > { %1523 = vmatmul.msk.bf16.vlgmr.msra.gmra.mxu0 %vm309_vm2, %v293_v19  ;;  %v693_v28 = vor.u32 %v692_v23, %v689_v22  ;;  %v704_v41 = vshll.u32 %v1623_v32, 16  ;;  %v715_v48 = vshrl.u32 %v1625_v34, 16  ;;  %v718_v49 = vshll.u32 %v1625_v34, 16  ;;  %v1629_v22 = vld [vmem:[%s1890_s26 + $0x30] sm:$0xf]  ;;  %966 = vmatpush.bf16.msra.mxu1 %v1808_v16 }
  0x2d   : > { %1400 = vmatpush.bf16.msra.mxu0 %v1819_v18  ;;  %v680_v33 = vrot.slane %v679_v24, 4  ;;  %v1558_v50 = vrot.slane %v427_v36, 9  ;;  %v465_v10 = vrot.slane %v1910_v13, 5  ;;  %v1594_v51 = vor.u32 %v1800_v43, %v1593_v42  ;;  %v1791_v13 = vld [vmem:[%s1890_s26 + $0x14] sm:$0xf0]  ;;  %1267 = vmatpush.bf16.msra.mxu3 %v1816_v15 }
  0x2e   : > { %1551 = vmatmul.msk.bf16.vlgmr.msrb.gmra.mxu1 %vm309_vm2, %v1530_v20  ;;  %v694_v35 = vrot.slane %v693_v28, 4  ;;  %v462_v55 = vsel %vm1966_vm6, %v1557_v38, %v461_v39  ;;  %v703_v57 = vrot.slane %v701_v40, 4  ;;  %v706_v58 = vrot.slane %v704_v41, 5  ;;  %v428_v23 = vld [vmem:[%s1890_s26 + $0x20] sm:$0xe] }
  0x2f   : > { %v685_v44 = vsel %vm1926_vm3, %v680_v33, %v684_v27  ;;  %v717_v59 = vrot.slane %v715_v48, 4  ;;  %v720_v60 = vrot.slane %v718_v49, 5  ;;  %v466_v61 = vsel %vm1966_vm6, %v1558_v50, %v465_v10  ;;  %v429_v24 = vld [vmem:[%s1890_s26 + $0x28] sm:$0xe]  ;;  %v1597_v28 = vld [vmem:[%s1890_s26 + $0x18] sm:$0xf] }
  0x30   : > { %v699_v45 = vsel %vm1926_vm3, %v694_v35, %v698_v30  ;;  %v789_v52 = vunpack.c.l.b16 %v685_v44  ;;  %v490_v3 = vunpack.c.l.b16 %v462_v55  ;;  %v710_v4 = vshll.u32 %v2017_v56, 16  ;;  %v1801_v30 = vld [vmem:[%s1890_s26 + $0x1c] sm:$0xf0] }
  0x31   : > { %1575 = vmatmul.msk.bf16.vlgmr.msrb.gmra.mxu2 %vm309_vm2, %v496_v25  ;;  %v790_v53 = vunpack.c.l.b16 %v699_v45  ;;  %v491_v6 = vunpack.c.l.b16 %v466_v61  ;;  %v707_v7 = vor.u32 %v706_v58, %v703_v57  ;;  %v721_v8 = vor.u32 %v720_v60, %v717_v59  ;;  %1401 = vmatpush.bf16.msra.mxu0 %v1818_v17  ;;  %v2057_v45 = vld [vmem:[%s1890_s26 + $0x2c] sm:$0x1] }
  0x32   : > { %v724_v9 = vshll.u32 %v2022_v62, 16  ;;  %v1534_v11 = vor.u32 %v1791_v13, %v1533_v63  ;;  %v712_v14 = vrot.slane %v710_v4, 5  ;;  %v729_v25 = vshrl.u32 %v1627_v12, 16 }
  0x33   : > { %v797_v0 = vpack.c.b16 %v790_v53, %v789_v52  ;;  %v497_v18 = vpack.c.b16 %v491_v6, %v490_v3  ;;  %v708_v19 = vrot.slane %v707_v7, 4  ;;  %v722_v20 = vrot.slane %v721_v8, 4  ;;  %v431_v6 = vld [vmem:[%s1890_s26 + $0x38] sm:$0xe]  ;;  %v1633_v8 = vld [vmem:[%s1890_s26 + $0x40] sm:$0xf] }
  0x34   : > { %v726_v21 = vrot.slane %v724_v9, 5  ;;  %v732_v27 = vshll.u32 %v1627_v12, 16  ;;  %v743_v33 = vshrl.u32 %v1629_v22, 16  ;;  %v746_v34 = vshll.u32 %v1629_v22, 16  ;;  %v1631_v7 = vld [vmem:[%s1890_s26 + $0x38] sm:$0xf] }
  0x35   : > { %v713_v31 = vsel %vm1926_vm3, %v708_v19, %v712_v14  ;;  %v1559_v35 = vrot.slane %v428_v23, 9  ;;  %v469_v36 = vrot.slane %v1917_v26, 5  ;;  %v1560_v38 = vrot.slane %v429_v24, 9  ;;  %v2064_v26 = vld [vmem:[%s1890_s26 + $0x34] sm:$0x1] }
  0x36   : > { %v727_v32 = vsel %vm1926_vm3, %v722_v20, %v726_v21  ;;  %v473_v39 = vrot.slane %v1920_v29, 5  ;;  %v731_v40 = vrot.slane %v729_v25, 4  ;;  %v734_v41 = vrot.slane %v732_v27, 5  ;;  %v1792_v29 = vld [vmem:[%s1890_s26 + $0x24] sm:$0xf0] }
  0x37   : > { %v1598_v42 = vor.u32 %v1801_v30, %v1597_v28  ;;  %v791_v43 = vunpack.c.l.b16 %v713_v31  ;;  %v792_v44 = vunpack.c.l.b16 %v727_v32  ;;  %v745_v48 = vrot.slane %v743_v33, 4  ;;  %v1601_v9 = vld [vmem:[%s1890_s26 + $0x28] sm:$0xf]  ;;  %v1802_v14 = vld [vmem:[%s1890_s26 + $0x2c] sm:$0xf0] }
  0x38   : > { %1615 = vmatmul.msk.bf16.vlgmr.msrb.gmra.mxu3 %vm309_vm2, %v1594_v51  ;;  %v748_v49 = vrot.slane %v746_v34, 5  ;;  %v470_v50 = vsel %vm1966_vm6, %v1559_v35, %v469_v36  ;;  %v474_v10 = vsel %vm1966_vm6, %v1560_v38, %v473_v39  ;;  %v1537_v51 = vld [vmem:[%s1890_s26 + $0x20] sm:$0xf]  ;;  %v735_v52 = vor.u32 %v734_v41, %v731_v40  ;;  %v2091_v27 = vld [vmem:[%s1890_s26 + $0x3c] sm:$0x1] }
  0x39   : > { %v738_v53 = vshll.u32 %v2057_v45, 16  ;;  %v798_v55 = vpack.c.b16 %v792_v44, %v791_v43  ;;  %v492_v57 = vunpack.c.l.b16 %v470_v50  ;;  %v493_v58 = vunpack.c.l.b16 %v474_v10  ;;  %v2094_v28 = vld [vmem:[%s1890_s26 + $0x44] sm:$0x1]  ;;  %v1541_v34 = vld [vmem:[%s1890_s26 + $0x30] sm:$0xf] }
  0x3a   : > { %v749_v59 = vor.u32 %v748_v49, %v745_v48  ;;  %v752_v60 = vshll.u32 %v2064_v26, 16  ;;  %v1538_v61 = vor.u32 %v1792_v29, %v1537_v51  ;;  %v736_v63 = vrot.slane %v735_v52, 4  ;;  %v1793_v35 = vld [vmem:[%s1890_s26 + $0x34] sm:$0xf0] }
  0x3b   : > { %v740_v13 = vrot.slane %v738_v53, 5  ;;  %v498_v3 = vpack.c.b16 %v493_v58, %v492_v57  ;;  %v477_v12 = vrot.slane %v1932_v46, 5  ;;  %v1562_v16 = vrot.slane %v431_v6, 9  ;;  %v1725_v49 = vld [vmem:[%s1890_s26 + $0x18] sm:$0xf] }
  0x3c   : > { %1647 = vmatmul.msk.bf16.vlgmr.msrb.gmra.mxu0 %vm309_vm2, %v797_v0  ;;  %v430_v0 = vld [vmem:[%s1890_s26 + $0x30] sm:$0xe]  ;;  %v750_v4 = vrot.slane %v749_v59, 4  ;;  %v754_v5 = vrot.slane %v752_v60, 5  ;;  %v481_v17 = vrot.slane %v1938_v54, 5  ;;  %v760_v20 = vshll.u32 %v1631_v7, 16 }
  0x3d   : > { %v1561_v15 = vrot.slane %v430_v0, 9  ;;  %v771_v21 = vshrl.u32 %v1633_v8, 16  ;;  %v774_v22 = vshll.u32 %v1633_v8, 16  ;;  %v1602_v23 = vor.u32 %v1802_v14, %v1601_v9  ;;  %v1651_v53 = vld [vmem:[%s1890_s26 + $0x8] sm:$0xe] }
  0x3e   : > { %1552 = vmatmul.msk.bf16.gmra.mxu1 %vm309_vm2, %v1534_v11  ;;  %v741_v11 = vsel %vm1926_vm3, %v736_v63, %v740_v13  ;;  %v755_v19 = vsel %vm1926_vm3, %v750_v4, %v754_v5  ;;  %v482_v54 = vsel %vm1966_vm6, %v1562_v16, %v481_v17  ;;  %v762_v31 = vrot.slane %v760_v20, 5  ;;  %v1724_v5 = vld [vmem:[%s1890_s26 + $0x14] sm:$0x1]  ;;  %v1605_v6 = vld [vmem:[%s1890_s26 + $0x38] sm:$0xf] }
  0x3f   : > { %v793_v46 = vunpack.c.l.b16 %v741_v11  ;;  %v794_v24 = vunpack.c.l.b16 %v755_v19  ;;  %v478_v25 = vsel %vm1966_vm6, %v1561_v15, %v477_v12  ;;  %v773_v32 = vrot.slane %v771_v21, 4 }
  0x40   : > { %v776_v33 = vrot.slane %v774_v22, 5  ;;  %v494_v36 = vunpack.c.l.b16 %v478_v25  ;;  %v495_v39 = vunpack.c.l.b16 %v482_v54  ;;  %v766_v40 = vshll.u32 %v2091_v27, 16  ;;  %v1697_v54 = vld [vmem:[%s1890_s26 + $0x10] sm:$0xf] }
  0x41   : > { %1576 = vmatmul.msk.bf16.gmra.mxu2 %vm309_vm2, %v497_v18  ;;  %v757_v18 = vshrl.u32 %v1631_v7, 16  ;;  %v799_v38 = vpack.c.b16 %v794_v24, %v793_v46  ;;  %v780_v41 = vshll.u32 %v2094_v28, 16  ;;  %v1542_v48 = vor.u32 %v1793_v35, %v1541_v34  ;;  %v1803_v7 = vld [vmem:[%s1890_s26 + $0x3c] sm:$0xf0] }
  0x42   : > { %v777_v44 = vor.u32 %v776_v33, %v773_v32  ;;  %v499_v51 = vpack.c.b16 %v495_v39, %v494_v36  ;;  %v768_v29 = vrot.slane %v766_v40, 5  ;;  %v1122_v59 = vshrl.u32 %v1725_v49, 16  ;;  %v1810_v32 = vld [vmem:[%s1890_s26 + $0x14] sm:$0xf0]  ;;  %v1727_v35 = vld [vmem:[%s1890_s26 + $0x20] sm:$0xf] }
  0x43   : > { %v759_v30 = vrot.slane %v757_v18, 4  ;;  %v782_v52 = vrot.slane %v780_v41, 5  ;;  %v1125_v60 = vshll.u32 %v1725_v49, 16  ;;  %v892_v63 = vrot.slane %v1987_v2, 5  ;;  %v1726_v2 = vld [vmem:[%s1890_s26 + $0x1c] sm:$0x1] }
  0x44   : > { %v778_v58 = vrot.slane %v777_v44, 4  ;;  %v1659_v13 = vrot.slane %v1651_v53, 9  ;;  %v1117_v16 = vshll.u32 %v1724_v5, 16  ;;  %v1606_v17 = vor.u32 %v1803_v7, %v1605_v6  ;;  %v1653_v44 = vld [vmem:[%s1890_s26 + $0x18] sm:$0xe] }
  0x45   : > { %v763_v43 = vor.u32 %v762_v31, %v759_v30  ;;  %v1127_v11 = vrot.slane %v1125_v60, 5  ;;  %v1131_v21 = vshll.u32 %v1726_v2, 16  ;;  %v1755_v30 = vld [vmem:[%s1890_s26 + $0x10] sm:$0xe]  ;;  %v1756_v31 = vld [vmem:[%s1890_s26 + $0x18] sm:$0xe] }
  0x46   : > { %v783_v9 = vsel %vm1926_vm3, %v778_v58, %v782_v52  ;;  %v1119_v24 = vrot.slane %v1117_v16, 5  ;;  %v1763_v40 = vrot.slane %v1755_v30, 9  ;;  %v1323_v41 = vrot.slane %v1724_v5, 5  ;;  %v1730_v6 = vld [vmem:[%s1890_s26 + $0x2c] sm:$0x1] }
  0x47   : > { %v764_v57 = vrot.slane %v763_v43, 4  ;;  %v796_v19 = vunpack.c.l.b16 %v783_v9  ;;  %v1133_v34 = vrot.slane %v1131_v21, 5  ;;  %v1698_v43 = vor.u32 %v1810_v32, %v1697_v54  ;;  %v1701_v16 = vld [vmem:[%s1890_s26 + $0x20] sm:$0xf]  ;;  %v1731_v21 = vld [vmem:[%s1890_s26 + $0x30] sm:$0xf] }
  0x48   : > { %1616 = vmatmul.msk.bf16.gmra.mxu3 %vm309_vm2, %v1598_v42  ;;  %v1723_v42 = vld [vmem:[%s1890_s26 + $0x10] sm:$0xf]  ;;  %v1136_v49 = vshrl.u32 %v1727_v35, 16  ;;  %v1733_v54 = vld [vmem:[%s1890_s26 + $0x38] sm:$0xf]  ;;  %v1167_v32 = vshll.u32 %v1731_v21, 16 }
  0x49   : > { %v1108_v50 = vshrl.u32 %v1723_v42, 16  ;;  %v1111_v10 = vshll.u32 %v1723_v42, 16  ;;  %v769_v8 = vsel %vm1926_vm3, %v764_v57, %v768_v29  ;;  %v1764_v42 = vrot.slane %v1756_v31, 9 }
  0x4a   : > { %v795_v18 = vunpack.c.l.b16 %v769_v8  ;;  %v896_v57 = vrot.slane %v2017_v56, 5  ;;  %v1164_v31 = vshrl.u32 %v1731_v21, 16 }
  0x4b   : > { %v1113_v4 = vrot.slane %v1111_v10, 5 }
  0x4c   : > { %1648 = vmatmul.msk.bf16.gmra.mxu0 %vm309_vm2, %v798_v55  ;;  %v1652_v55 = vld [vmem:[%s1890_s26 + $0x10] sm:$0xe]  ;;  %v800_v25 = vpack.c.b16 %v796_v19, %v795_v18 }
  0x4d   : > { %v1660_v0 = vrot.slane %v1652_v55, 9  ;;  %v1661_v55 = vrot.slane %v1653_v44, 9  ;;  %v904_v44 = vrot.slane %v2057_v45, 5  ;;  %v1734_v45 = vld [vmem:[%s1890_s26 + $0x3c] sm:$0x1] }
  0x4e   : > { %1553 = vmatmul.msk.bf16.gmra.mxu1 %vm309_vm2, %v1538_v61  ;;  %v888_v61 = vrot.slane %v1984_v1, 5  ;;  %v1124_v1 = vrot.slane %v1122_v59, 4  ;;  %v900_v59 = vrot.slane %v2022_v62, 5 }
  0x4f   : > { %v893_v14 = vsel %vm1966_vm6, %v1660_v0, %v892_v63  ;;  %v1138_v63 = vrot.slane %v1136_v49, 4  ;;  %v897_v62 = vsel %vm1966_vm6, %v1661_v55, %v896_v57 }
  0x50   : > { %v889_v12 = vsel %vm1966_vm6, %v1659_v13, %v888_v61  ;;  %v1128_v20 = vor.u32 %v1127_v11, %v1124_v1  ;;  %v1324_v61 = vsel %vm1966_vm6, %v1763_v40, %v1323_v41  ;;  %v1335_v41 = vrot.slane %v1730_v6, 5 }
  0x51   : > { %1577 = vmatmul.msk.bf16.gmra.mxu2 %vm309_vm2, %v498_v3  ;;  %v1110_v3 = vrot.slane %v1108_v50, 4  ;;  %v923_v22 = vunpack.c.l.b16 %v889_v12  ;;  %v1139_v50 = vshll.u32 %v1727_v35, 16  ;;  %v1358_v56 = vunpack.c.l.b16 %v1324_v61 }
  0x52   : > { %v1129_v33 = vrot.slane %v1128_v20, 4  ;;  %v1159_v12 = vshll.u32 %v1730_v6, 16  ;;  %v1757_v20 = vld [vmem:[%s1890_s26 + $0x20] sm:$0xe] }
  0x53   : > { %v1114_v15 = vor.u32 %v1113_v4, %v1110_v3  ;;  %v1141_v13 = vrot.slane %v1139_v50, 5  ;;  %v1728_v3 = vld [vmem:[%s1890_s26 + $0x24] sm:$0x1]  ;;  %v1765_v30 = vrot.slane %v1757_v20, 9 }
  0x54   : > { %v1134_v10 = vsel %vm1926_vm3, %v1129_v33, %v1133_v34  ;;  %v1145_v11 = vshll.u32 %v1728_v3, 16  ;;  %v1331_v35 = vrot.slane %v1728_v3, 5 }
  0x55   : > { %v1115_v46 = vrot.slane %v1114_v15, 4  ;;  %v1225_v60 = vunpack.c.l.b16 %v1134_v10  ;;  %v1142_v1 = vor.u32 %v1141_v13, %v1138_v63  ;;  %v1166_v10 = vrot.slane %v1164_v31, 4 }
  0x56   : > { %v1147_v19 = vrot.slane %v1145_v11, 5  ;;  %v1332_v55 = vsel %vm1966_vm6, %v1765_v30, %v1331_v35  ;;  %v1760_v11 = vld [vmem:[%s1890_s26 + $0x38] sm:$0xe]  ;;  %v1343_v30 = vrot.slane %v1734_v45, 5  ;;  %v912_v35 = vrot.slane %v2091_v27, 5 }
  0x57   : > { %v1120_v39 = vsel %vm1926_vm3, %v1115_v46, %v1119_v24  ;;  %v1143_v18 = vrot.slane %v1142_v1, 4  ;;  %v1161_v46 = vrot.slane %v1159_v12, 5  ;;  %v1758_v24 = vld [vmem:[%s1890_s26 + $0x28] sm:$0xe]  ;;  %v1759_v1 = vld [vmem:[%s1890_s26 + $0x30] sm:$0xe] }
  0x58   : > { %1617 = vmatmul.msk.bf16.gmra.mxu3 %vm309_vm2, %v1602_v23  ;;  %v924_v23 = vunpack.c.l.b16 %v893_v14  ;;  %v1224_v53 = vunpack.c.l.b16 %v1120_v39  ;;  %v925_v14 = vunpack.c.l.b16 %v897_v62  ;;  %v1656_v39 = vld [vmem:[%s1890_s26 + $0x30] sm:$0xe]  ;;  %v1768_v21 = vrot.slane %v1760_v11, 9 }
  0x59   : > { %v1148_v34 = vsel %vm1926_vm3, %v1143_v18, %v1147_v19  ;;  %v1664_v50 = vrot.slane %v1656_v39, 9  ;;  %v1767_v19 = vrot.slane %v1759_v1, 9 }
  0x5a   : > { %v931_v36 = vpack.c.b16 %v924_v23, %v923_v22  ;;  %v1232_v8 = vpack.c.b16 %v1225_v60, %v1224_v53  ;;  %v1811_v22 = vld [vmem:[%s1890_s26 + $0x24] sm:$0xf0]  ;;  %v1732_v53 = vld [vmem:[%s1890_s26 + $0x34] sm:$0x1] }
  0x5b   : > { %v1702_v33 = vor.u32 %v1811_v22, %v1701_v16  ;;  %v1173_v63 = vshll.u32 %v1732_v53, 16  ;;  %v1339_v20 = vrot.slane %v1732_v53, 5 }
  0x5c   : > { %1649 = vmatmul.msk.bf16.gmra.mxu0 %vm309_vm2, %v799_v38  ;;  %v1729_v38 = vld [vmem:[%s1890_s26 + $0x28] sm:$0xf] }
  0x5d   : > { %v1150_v29 = vshrl.u32 %v1729_v38, 16  ;;  %v1153_v52 = vshll.u32 %v1729_v38, 16  ;;  %v1655_v38 = vld [vmem:[%s1890_s26 + $0x28] sm:$0xe] }
  0x5e   : > { %1554 = vmatmul.msk.bf16.gmra.mxu1 %vm309_vm2, %v1542_v48  ;;  %v1654_v48 = vld [vmem:[%s1890_s26 + $0x20] sm:$0xe]  ;;  %v1663_v49 = vrot.slane %v1655_v38, 9  ;;  %v916_v38 = vrot.slane %v2094_v28, 5 }
  0x5f   : > { %v1662_v58 = vrot.slane %v1654_v48, 9  ;;  %v1152_v4 = vrot.slane %v1150_v29, 4  ;;  %v1155_v5 = vrot.slane %v1153_v52, 5  ;;  %v908_v48 = vrot.slane %v2064_v26, 5 }
  0x60   : > { %v1226_v29 = vunpack.c.l.b16 %v1148_v34  ;;  %v905_v26 = vsel %vm1966_vm6, %v1663_v49, %v904_v44  ;;  %v1736_v44 = vld [vmem:[%s1890_s26 + $0x44] sm:$0x1] }
  0x61   : > { %1578 = vmatmul.msk.bf16.gmra.mxu2 %vm309_vm2, %v499_v51  ;;  %v1327_v51 = vrot.slane %v1726_v2, 5  ;;  %v901_v7 = vsel %vm1966_vm6, %v1662_v58, %v900_v59  ;;  %v1156_v2 = vor.u32 %v1155_v5, %v1152_v4  ;;  %v909_v60 = vsel %vm1966_vm6, %v1664_v50, %v908_v48  ;;  %v1738_v50 = vld [vmem:[%s1890_s26 + $0x4c] sm:$0x1] }
  0x62   : > { %v926_v15 = vunpack.c.l.b16 %v901_v7  ;;  %v1187_v5 = vshll.u32 %v1734_v45, 16  ;;  %v927_v6 = vunpack.c.l.b16 %v905_v26  ;;  %v1175_v7 = vrot.slane %v1173_v63, 5 }
  0x63   : > { %v1328_v0 = vsel %vm1966_vm6, %v1764_v42, %v1327_v51  ;;  %v1157_v23 = vrot.slane %v1156_v2, 4  ;;  %v1178_v42 = vshrl.u32 %v1733_v54, 16  ;;  %v1169_v51 = vrot.slane %v1167_v32, 5  ;;  %v1812_v2 = vld [vmem:[%s1890_s26 + $0x34] sm:$0xf0] }
  0x64   : > { %v1359_v9 = vunpack.c.l.b16 %v1328_v0  ;;  %v1360_v0 = vunpack.c.l.b16 %v1332_v55  ;;  %v1201_v53 = vshll.u32 %v1736_v44, 16  ;;  %v1351_v11 = vrot.slane %v1738_v50, 5 }
  0x65   : > { %v1162_v40 = vsel %vm1926_vm3, %v1157_v23, %v1161_v46  ;;  %v1180_v58 = vrot.slane %v1178_v42, 4  ;;  %v1170_v61 = vor.u32 %v1169_v51, %v1166_v10  ;;  %v1657_v23 = vld [vmem:[%s1890_s26 + $0x38] sm:$0xe]  ;;  %v1658_v46 = vld [vmem:[%s1890_s26 + $0x40] sm:$0xe] }
  0x66   : > { %v1227_v52 = vunpack.c.l.b16 %v1162_v40  ;;  %v1665_v34 = vrot.slane %v1657_v23, 9  ;;  %v1340_v40 = vsel %vm1966_vm6, %v1767_v19, %v1339_v20 }
  0x67   : > { %v1171_v62 = vrot.slane %v1170_v61, 4  ;;  %v1362_v10 = vunpack.c.l.b16 %v1340_v40 }
  0x68   : > { %1618 = vmatmul.msk.bf16.gmra.mxu3 %vm309_vm2, %v1606_v17  ;;  %v1366_v17 = vpack.c.b16 %v1359_v9, %v1358_v56  ;;  %v1233_v13 = vpack.c.b16 %v1227_v52, %v1226_v29  ;;  %v928_v56 = vunpack.c.l.b16 %v909_v60  ;;  %v1705_v9 = vld [vmem:[%s1890_s26 + $0x30] sm:$0xf]  ;;  %v913_v27 = vsel %vm1966_vm6, %v1665_v34, %v912_v35 }
  0x69   : > { %v1176_v18 = vsel %vm1926_vm3, %v1171_v62, %v1175_v7  ;;  %v1706_v22 = vor.u32 %v1812_v2, %v1705_v9  ;;  %v1203_v60 = vrot.slane %v1201_v53, 5  ;;  %v1347_v7 = vrot.slane %v1736_v44, 5 }
  0x6a   : > { %v933_v16 = vpack.c.b16 %v928_v56, %v927_v6 }
  0x6c   : > { %1650 = vmatmul.msk.bf16.gmra.mxu0 %vm309_vm2, %v800_v25  ;;  %v932_v25 = vpack.c.b16 %v926_v15, %v925_v14  ;;  %v1189_v14 = vrot.slane %v1187_v5, 5  ;;  %v1735_v15 = vld [vmem:[%s1890_s26 + $0x40] sm:$0xf]  ;;  %v1762_v5 = vld [vmem:[%s1890_s26 + $0x48] sm:$0xe] }
  0x6d   : > { %v1770_v1 = vrot.slane %v1762_v5, 9 }
  0x6e   : > { %1679 = vmatmul.msk.bf16.vlgmr.msra.gmra.mxu1 %vm309_vm2, %v931_v36  ;;  %v1766_v36 = vrot.slane %v1758_v24, 9  ;;  %v1192_v24 = vshrl.u32 %v1735_v15, 16 }
  0x70   : > { %v1336_v57 = vsel %vm1966_vm6, %v1766_v36, %v1335_v41  ;;  %v1666_v36 = vrot.slane %v1658_v46, 9  ;;  %v1194_v41 = vrot.slane %v1192_v24, 4 }
  0x71   : > { %1719 = vmatmul.msk.bf16.vlgmr.msra.gmra.mxu2 %vm309_vm2, %v1698_v43  ;;  %v1181_v43 = vshll.u32 %v1733_v54, 16  ;;  %v1361_v3 = vunpack.c.l.b16 %v1336_v57  ;;  %v1215_v57 = vshll.u32 %v1738_v50, 16 }
  0x72   : > { %v917_v28 = vsel %vm1966_vm6, %v1666_v36, %v916_v38 }
  0x73   : > { %v1183_v59 = vrot.slane %v1181_v43, 5  ;;  %v1344_v43 = vsel %vm1966_vm6, %v1768_v21, %v1343_v30  ;;  %v1217_v63 = vrot.slane %v1215_v57, 5 }
  0x74   : > { %v1363_v29 = vunpack.c.l.b16 %v1344_v43 }
  0x75   : > { %v1184_v4 = vor.u32 %v1183_v59, %v1180_v58  ;;  %v929_v58 = vunpack.c.l.b16 %v913_v27  ;;  %v930_v59 = vunpack.c.l.b16 %v917_v28 }
  0x76   : > { %v1368_v45 = vpack.c.b16 %v1363_v29, %v1362_v10 }
  0x77   : > { %v1185_v12 = vrot.slane %v1184_v4, 4  ;;  %v1813_v4 = vld [vmem:[%s1890_s26 + $0x44] sm:$0xf0] }
  0x78   : > { %1751 = vmatmul.msk.bf16.vlgmr.msra.gmra.mxu3 %vm309_vm2, %v1232_v8  ;;  %v1367_v8 = vpack.c.b16 %v1361_v3, %v1360_v0  ;;  %v934_v0 = vpack.c.b16 %v930_v59, %v929_v58  ;;  %v1709_v3 = vld [vmem:[%s1890_s26 + $0x40] sm:$0xf] }
  0x79   : > { %v1190_v54 = vsel %vm1926_vm3, %v1185_v12, %v1189_v14 }
  0x7a   : > { %v1229_v39 = vunpack.c.l.b16 %v1190_v54 }
  0x7c   : > { %1783 = vmatmul.msk.bf16.vlgmr.msra.gmra.mxu0 %vm309_vm2, %v1366_v17  ;;  %v1737_v17 = vld [vmem:[%s1890_s26 + $0x48] sm:$0xf] }
  0x7d   : > { %v1206_v31 = vshrl.u32 %v1737_v17, 16  ;;  %v1209_v32 = vshll.u32 %v1737_v17, 16 }
  0x7e   : > { %1680 = vmatmul.msk.bf16.gmra.mxu1 %vm309_vm2, %v932_v25  ;;  %v1195_v25 = vshll.u32 %v1735_v15, 16  ;;  %v1352_v15 = vsel %vm1966_vm6, %v1770_v1, %v1351_v11 }
  0x7f   : > { %v1208_v48 = vrot.slane %v1206_v31, 4  ;;  %v1211_v49 = vrot.slane %v1209_v32, 5  ;;  %v1365_v37 = vunpack.c.l.b16 %v1352_v15 }
  0x80   : > { %v1197_v42 = vrot.slane %v1195_v25, 5 }
  0x81   : > { %1720 = vmatmul.msk.bf16.gmra.mxu2 %vm309_vm2, %v1702_v33  ;;  %v1228_v33 = vunpack.c.l.b16 %v1176_v18  ;;  %v1212_v55 = vor.u32 %v1211_v49, %v1208_v48 }
  0x82   : > { %v1198_v52 = vor.u32 %v1197_v42, %v1194_v41 }
  0x83   : > { %v1234_v51 = vpack.c.b16 %v1229_v39, %v1228_v33  ;;  %v1213_v61 = vrot.slane %v1212_v55, 4 }
  0x84   : > { %v1199_v26 = vrot.slane %v1198_v52, 4 }
  0x85   : > { %v1218_v9 = vsel %vm1926_vm3, %v1213_v61, %v1217_v63 }
  0x86   : > { %v1204_v56 = vsel %vm1926_vm3, %v1199_v26, %v1203_v60  ;;  %v1231_v12 = vunpack.c.l.b16 %v1218_v9 }
  0x87   : > { %v1230_v2 = vunpack.c.l.b16 %v1204_v56 }
  0x88   : > { %1752 = vmatmul.msk.bf16.gmra.mxu3 %vm309_vm2, %v1233_v13  ;;  %v1761_v13 = vld [vmem:[%s1890_s26 + $0x40] sm:$0xe] }
  0x89   : > { %v1769_v62 = vrot.slane %v1761_v13, 9  ;;  %v1235_v17 = vpack.c.b16 %v1231_v12, %v1230_v2 }
  0x8b   : > { %v1348_v14 = vsel %vm1966_vm6, %v1769_v62, %v1347_v7 }
  0x8c   : > { %1784 = vmatmul.msk.bf16.gmra.mxu0 %vm309_vm2, %v1367_v8  ;;  %v1710_v8 = vor.u32 %v1813_v4, %v1709_v3  ;;  %v1364_v18 = vunpack.c.l.b16 %v1348_v14 }
  0x8e   : > { %1681 = vmatmul.msk.bf16.gmra.mxu1 %vm309_vm2, %v933_v16  ;;  %v1369_v20 = vpack.c.b16 %v1365_v37, %v1364_v18 }
  0x91   : > { %1721 = vmatmul.msk.bf16.gmra.mxu2 %vm309_vm2, %v1706_v22 }
  0x98   : > { %1753 = vmatmul.msk.bf16.gmra.mxu3 %vm309_vm2, %v1234_v51 }
  0x9b   : > { %v2211_v6 = vpop.f32.mrf.mxu1 }
  0x9c   : > { %1785 = vmatmul.msk.bf16.gmra.mxu0 %vm309_vm2, %v1368_v45 }
  0x9e   : > { %1682 = vmatmul.msk.bf16.gmra.mxu1 %vm309_vm2, %v934_v0 }
  0xa1   : > { %1722 = vmatmul.msk.bf16.gmra.mxu2 %vm309_vm2, %v1710_v8 }
  0xa3   : > { %v2224_v16 = vpop.f32.mrf.mxu1 }
  0xa4   : > { %v2226_v19 = vpop.f32.mrf.mxu2 }
  0xa8   : > { %1754 = vmatmul.msk.bf16.gmra.mxu3 %vm309_vm2, %v1235_v17 }
  0xa9   : > { %v331_v21 = vpop.f32.mrf.mxu0 }
  0xab   : > { %v2229_v22 = vpop.f32.mrf.mxu3  ;;  %v404_v23 = vpop.f32.mrf.mxu1 }
  0xac   : > { %1786 = vmatmul.msk.bf16.gmra.mxu0 %vm309_vm2, %v1369_v20  ;;  %v2232_v46 = vpop.f32.mrf.mxu2  ;;  %v405_v57 = vadd.f32 %v404_v23, %v331_v21 }
  0xb1   : > { %v333_v47 = vpop.f32.mrf.mxu0 }
  0xb3   : > { %v2234_v24 = vpop.f32.mrf.mxu3  ;;  %v406_v25 = vpop.f32.mrf.mxu1 }
  0xb4   : > { %v533_v54 = vpop.f32.mrf.mxu2  ;;  %v407_v63 = vadd.f32 %v406_v25, %v333_v47 }
  0xb5   : > { %v553_v45 = vadd.f32 %v533_v54, %v405_v57 }
  0xb9   : > { %v834_v30 = vpop.f32.mrf.mxu0 }
  0xbb   : > { %v628_v31 = vpop.f32.mrf.mxu3  ;;  %v409_v32 = vpop.f32.mrf.mxu1 }
  0xbc   : > { %v535_v33 = vpop.f32.mrf.mxu2  ;;  %v648_v60 = vadd.f32 %v628_v31, %v553_v45  ;;  %v410_v9 = vadd.f32 %v409_v32, %v2211_v6 }
  0xbd   : > { %v554_v3 = vadd.f32 %v535_v33, %v407_v63 }
  0xbe   : > { %v854_v4 = vadd.f32 %v834_v30, %v648_v60 }
  0xc1   : > { %v836_v34 = vpop.f32.mrf.mxu0 }
  0xc3   : > { %v630_v35 = vpop.f32.mrf.mxu3  ;;  %v411_v36 = vpop.f32.mrf.mxu1 }
  0xc4   : > { %v538_v38 = vpop.f32.mrf.mxu2  ;;  %v649_v62 = vadd.f32 %v630_v35, %v554_v3  ;;  %v412_v23 = vadd.f32 %v411_v36, %v2224_v16 }
  0xc5   : > { %v555_v2 = vadd.f32 %v538_v38, %v410_v9 }
  0xc6   : > { %v855_v14 = vadd.f32 %v836_v34, %v649_v62 }
  0xc9   : > { %v839_v39 = vpop.f32.mrf.mxu0 }
  0xcb   : > { %v633_v40 = vpop.f32.mrf.mxu3  ;;  %v414_v41 = vpop.f32.mrf.mxu1 }
  0xcc   : > { %v540_v42 = vpop.f32.mrf.mxu2  ;;  %v650_v37 = vadd.f32 %v633_v40, %v555_v2 }
  0xcd   : > { %v556_v54 = vadd.f32 %v540_v42, %v412_v23 }
  0xce   : > { %v856_v31 = vadd.f32 %v839_v39, %v650_v37 }
  0xd1   : > { %v2236_v43 = vpop.f32.mrf.mxu0 }
  0xd3   : > { %v635_v44 = vpop.f32.mrf.mxu3  ;;  %v2238_v48 = vpop.f32.mrf.mxu1 }
  0xd4   : > { %v543_v49 = vpop.f32.mrf.mxu2  ;;  %v651_v35 = vadd.f32 %v635_v44, %v556_v54 }
  0xd6   : > { %v857_v60 = vadd.f32 %v2236_v43, %v651_v35 }
  0xd9   : > { %v2240_v50 = vpop.f32.mrf.mxu0 }
  0xdb   : > { %v2242_v10 = vpop.f32.mrf.mxu3  ;;  %v2244_v27 = vpop.f32.mrf.mxu1 }
  0xdc   : > { %v2246_v28 = vpop.f32.mrf.mxu2 }
  0xe1   : > { %v2248_v51 = vpop.f32.mrf.mxu0 }
  0xe3   : > { %v2250_v29 = vpop.f32.mrf.mxu3  ;;  %v2252_v52 = vpop.f32.mrf.mxu1 }
  0xe4   : > { %v2254_v53 = vpop.f32.mrf.mxu2 }
  0xe9   : > { %v2256_v55 = vpop.f32.mrf.mxu0 }
  0xeb   : > { %v2258_v58 = vpop.f32.mrf.mxu3  ;;  %v968_v59 = vpop.f32.mrf.mxu1 }
  0xec   : > { %v2260_v26 = vpop.f32.mrf.mxu2  ;;  %v988_v56 = vadd.f32 %v968_v59, %v854_v4  ;;  %v415_v59 = vadd.f32 %v414_v41, %v2226_v19  ;;  %v417_v19 = vadd.f32 %v2238_v48, %v2232_v46  ;;  %v420_v46 = vadd.f32 %v2244_v27, %v2229_v22 }
  0xed   : > { %v422_v22 = vadd.f32 %v2252_v52, %v2234_v24 }
  0xee   : > { %v557_v36 = vadd.f32 %v543_v49, %v415_v59  ;;  %v558_v49 = vadd.f32 %v2246_v28, %v417_v19  ;;  %v559_v28 = vadd.f32 %v2254_v53, %v420_v46 }
  0xef   : > { %v560_v53 = vadd.f32 %v2260_v26, %v422_v22 }
  0xf0   : > { %v652_v3 = vadd.f32 %v2242_v10, %v557_v36  ;;  %v653_v10 = vadd.f32 %v2250_v29, %v558_v49  ;;  %v654_v29 = vadd.f32 %v2258_v58, %v559_v28 }
  0xf1   : > { %v2262_v61 = vpop.f32.mrf.mxu0 }
  0xf2   : > { %v858_v43 = vadd.f32 %v2240_v50, %v652_v3  ;;  %v859_v50 = vadd.f32 %v2248_v51, %v653_v10  ;;  %v860_v51 = vadd.f32 %v2256_v55, %v654_v29 }
  0xf3   : > { %v2264_v13 = vpop.f32.mrf.mxu3  ;;  %v970_v0 = vpop.f32.mrf.mxu1 }
  0xf4   : > { %v1063_v5 = vpop.f32.mrf.mxu2  ;;  %v989_v18 = vadd.f32 %v970_v0, %v855_v14 }
  0xf5   : > { %v1083_v7 = vadd.f32 %v1063_v5, %v988_v56 }
  0xf9   : > { %v1403_v8 = vpop.f32.mrf.mxu0 }
  0xfb   : > { %v1269_v1 = vpop.f32.mrf.mxu3  ;;  %v973_v11 = vpop.f32.mrf.mxu1 }
  0xfc   : > { %v1289_v12 = vadd.f32 %v1269_v1, %v1083_v7  ;;  %v1065_v15 = vpop.f32.mrf.mxu2  ;;  %v990_v34 = vadd.f32 %v973_v11, %v856_v31 }
  0xfd   : > { %v1084_v21 = vadd.f32 %v1065_v15, %v989_v18 }
  0xfe   : > { %v1423_v17 = vadd.f32 %v1403_v8, %v1289_v12 }
 0x100   : > { %v1431_v20 = vpack.c.bf16 %v1423_v17, %v1423_v17 }
 0x101   : > { %v1405_v6 = vpop.f32.mrf.mxu0 }
 0x102   : > { %1440 = vst.msk [vmem:[%s2271_s28] sm:$0xf] %vm1439_vm7, %v1431_v20 }
 0x103   : > { %v1271_v47 = vpop.f32.mrf.mxu3  ;;  %v975_v25 = vpop.f32.mrf.mxu1 }
 0x104   : > { %v1290_v30 = vadd.f32 %v1271_v47, %v1084_v21  ;;  %v1068_v32 = vpop.f32.mrf.mxu2  ;;  %v991_v0 = vadd.f32 %v975_v25, %v857_v60  ;;  %v655_v25 = vadd.f32 %v2264_v13, %v560_v53 }
 0x105   : > { %v1085_v57 = vadd.f32 %v1068_v32, %v990_v34 }
 0x106   : > { %v1424_v33 = vadd.f32 %v1405_v6, %v1290_v30  ;;  %v861_v26 = vadd.f32 %v2262_v61, %v655_v25 }
 0x108   : > { %v1432_v38 = vpack.c.bf16 %v1424_v33, %v1424_v33 }
 0x109   : > { %v1408_v40 = vpop.f32.mrf.mxu0 }
 0x10a   : > { %1441 = vst.msk [vmem:[%s2271_s28 + $0x4] sm:$0xf] %vm1439_vm7, %v1432_v38 }
 0x10b   : > { %v1274_v16 = vpop.f32.mrf.mxu3  ;;  %v978_v63 = vpop.f32.mrf.mxu1 }
 0x10c   : > { %v1291_v45 = vadd.f32 %v1274_v16, %v1085_v57  ;;  %v1070_v42 = vpop.f32.mrf.mxu2  ;;  %v992_v8 = vadd.f32 %v978_v63, %v858_v43 }
 0x10d   : > { %v1086_v4 = vadd.f32 %v1070_v42, %v991_v0 }
 0x10e   : > { %v1425_v39 = vadd.f32 %v1408_v40, %v1291_v45 }
 0x110   : > { %v1433_v44 = vpack.c.bf16 %v1425_v39, %v1425_v39 }
 0x111   : > { %v1410_v5 = vpop.f32.mrf.mxu0 }
 0x112   : > { %1442 = vst.msk [vmem:[%s2271_s28 + $0x8] sm:$0xf] %vm1439_vm7, %v1433_v44 }
 0x113   : > { %v1276_v41 = vpop.f32.mrf.mxu3  ;;  %v980_v9 = vpop.f32.mrf.mxu1 }
 0x114   : > { %v1292_v56 = vadd.f32 %v1276_v41, %v1086_v4  ;;  %v1073_v62 = vpop.f32.mrf.mxu2  ;;  %v993_v17 = vadd.f32 %v980_v9, %v859_v50 }
 0x115   : > { %v1087_v11 = vadd.f32 %v1073_v62, %v992_v8 }
 0x116   : > { %v1426_v7 = vadd.f32 %v1410_v5, %v1292_v56 }
 0x118   : > { %v1434_v1 = vpack.c.bf16 %v1426_v7, %v1426_v7 }
 0x119   : > { %v1413_v2 = vpop.f32.mrf.mxu0 }
 0x11a   : > { %1443 = vst.msk [vmem:[%s2271_s28 + $0xc] sm:$0xf] %vm1439_vm7, %v1434_v1 }
 0x11b   : > { %v1279_v48 = vpop.f32.mrf.mxu3  ;;  %v983_v20 = vpop.f32.mrf.mxu1 }
 0x11c   : > { %v1293_v12 = vadd.f32 %v1279_v48, %v1087_v11  ;;  %v1075_v14 = vpop.f32.mrf.mxu2  ;;  %v994_v58 = vadd.f32 %v983_v20, %v860_v51 }
 0x11d   : > { %v1088_v37 = vadd.f32 %v1075_v14, %v993_v17 }
 0x11e   : > { %v1427_v15 = vadd.f32 %v1413_v2, %v1293_v12 }
 0x120   : > { %v1435_v18 = vpack.c.bf16 %v1427_v15, %v1427_v15 }
 0x121   : > { %v1415_v21 = vpop.f32.mrf.mxu0 }
 0x122   : > { %1444 = vst.msk [vmem:[%s2271_s28 + $0x10] sm:$0xf] %vm1439_vm7, %v1435_v18 }
 0x123   : > { %v1281_v27 = vpop.f32.mrf.mxu3  ;;  %v985_v31 = vpop.f32.mrf.mxu1 }
 0x124   : > { %v1294_v6 = vadd.f32 %v1281_v27, %v1088_v37  ;;  %v1078_v23 = vpop.f32.mrf.mxu2  ;;  %v995_v55 = vadd.f32 %v985_v31, %v861_v26 }
 0x125   : > { %v1089_v30 = vadd.f32 %v1078_v23, %v994_v58 }
 0x126   : > { %v1428_v47 = vadd.f32 %v1415_v21, %v1294_v6 }
 0x128   : > { %v1436_v54 = vpack.c.bf16 %v1428_v47, %v1428_v47 }
 0x129   : > { %v1418_v24 = vpop.f32.mrf.mxu0 }
 0x12a   : > { %1445 = vst.msk [vmem:[%s2271_s28 + $0x14] sm:$0xf] %vm1439_vm7, %v1436_v54 }
 0x12b   : > { %v1284_v52 = vpop.f32.mrf.mxu3 }
 0x12c   : > { %v1295_v32 = vadd.f32 %v1284_v52, %v1089_v30  ;;  %v1080_v33 = vpop.f32.mrf.mxu2 }
 0x12d   : > { %v1090_v38 = vadd.f32 %v1080_v33, %v995_v55 }
 0x12e   : > { %v1429_v34 = vadd.f32 %v1418_v24, %v1295_v32 }
 0x130   : > { %v1437_v35 = vpack.c.bf16 %v1429_v34, %v1429_v34 }
 0x131   : > { %v1420_v40 = vpop.f32.mrf.mxu0 }
 0x132   : > { %1446 = vst.msk [vmem:[%s2271_s28 + $0x18] sm:$0xf] %vm1439_vm7, %v1437_v35 }
 0x133   : > { %v1286_v57 = vpop.f32.mrf.mxu3 }
 0x134   : > { %v1296_v13 = vadd.f32 %v1286_v57, %v1090_v38 }
 0x136   : > { %v1430_v59 = vadd.f32 %v1420_v40, %v1296_v13 }
 0x138   : > { %v1438_v16 = vpack.c.bf16 %v1430_v59, %v1430_v59 }
 0x13a   : > { %1447 = vst.msk [vmem:[%s2271_s28 + $0x1c] sm:$0xf] %vm1439_vm7, %v1438_v16 }
 0x13b PF: > { %s12_s9 = sadd.s32 1, %s1841_s9  }
 0x13c   : > { %p9_p4 = scmp.ge.s32.totalorder %s12_s9, 4  }
 0x13e   :  { %11 = sbr.rel (!%p9_p4) target bundleno = 1 (0x1), region = 68 }

// kernel: vit_classifier_forward.42
= control target key start
LH: loop header
LB: loop body
LE: loop exit
PB: predicated region body
PF: predicated region fallthrough
CT: control target
= control target key end

     0   :  { %s570_s12 = smov 0   ;;  %s572_s13 = smov 0   ;;  %s626_s0 = inlined_call_operand.vmem [shape: bf16[4,8,16], index: 0, kind: input, shape index: {}]   ;;  %s627_s1 = inlined_call_operand.vmem [shape: bf16[4,8,16], index: 1, kind: input, shape index: {}]   ;;  %s628_s2 = inlined_call_operand.vmem [shape: bf16[4,8,16], index: 2, kind: input, shape index: {}]   ;;  %s629_s3 = inlined_call_operand.vmem [shape: bf16[4,8,16], index: 3, kind: output, shape index: {}]  }
   0x1   :  { %s574_s14 = smov 0  }
   0x2 LB: > { %s32_s15 = sadd.s32 1, %s541_s13  ;;  %p478_p0 = scmp.ge.s32.totalorder %s545_s14, 1  ;;  %s545_s14 = sphi %s574_s14, %s13_s14   ;;  %s541_s13 = sphi %s572_s13, %s631_s13   ;;  %s537_s12 = sphi %s570_s12, %s630_s12  }
   0x3   : > { %p34_p1 = scmp.ge.s32.totalorder %s32_s15, 4  ;;  %p190_p2 = scmp.lt.s32.totalorder %s545_s14, 5 }
   0x5   : > { %s633_s15 = smov (%p34_p1, %s32_s15), 0  ;;  %p191_p3 = pnand %p478_p0, %p190_p2 }
   0x6   : > { %p232_p4 = scmp.lt.s32.totalorder (!%p191_p3), %s537_s12, 3 }
   0x7   : > { %194 = sbr.rel (%p191_p3) target bundleno = 625 (0x271), region = 32 }
   0xc   : > { %vm265_vm0 = vcmask 7168   ;;  %v547_v0 = vmov 0.0   ;;  %vm268_vm1 = vcmask 130048   ;;  %s635_s12 = smov (!%p232_p4, %s537_s12), 3  ;;  %v548_v7 = vmov -inf  }
   0xd   : > { %267 = vst.msk [vmem:[#allocation3] sm:$0xff] %vm265_vm0, %v547_v0  ;;  %s590_s16 = sshll.u32 %s635_s12, 2  ;;  %vm296_vm2 = vcmask 64512   ;;  %v549_v11 = vmov 0   ;;  %vm332_vm3 = vcmask 1043456   ;;  %vm365_vm4 = vcmask 125952  }
   0xe   : > { %269 = vst.msk [vmem:[#allocation4] sm:$0xff] %vm268_vm1, %v547_v0  ;;  %s245_s19 = scalar_lea.vmem %s627_s1, %s590_s16  ;;  %s238_s22 = scalar_lea.vmem %s626_s0, %s590_s16  ;;  %514 = vset.pattern.permute.xlu0 %v549_v11  ;;  %515 = vset.pattern.permute.xlu1 %v549_v11 }
   0xf   : > { %v274_v1 = vld [vmem:[%s245_s19] sm:$0xf]  ;;  %266 = vst.msk [vmem:[#allocation2] sm:$0xff] %vm265_vm0, %v548_v7  ;;  %516 = vset.pattern.permute.xlu2 %v549_v11  ;;  %s252_s25 = scalar_lea.vmem %s628_s2, %s590_s16  ;;  %s259_s28 = scalar_lea.vmem %s629_s3, %s590_s16 }
  0x10   : > { %v270_v2 = vld [vmem:[%s238_s22] sm:$0xf]  ;;  %v280_v3 = vsel %vm268_vm1, %v274_v1, 0 }
  0x11   : > { %v271_v4 = vunpack.c.l.bf16 %v270_v2  ;;  %289 = vmatpush.bf16.xpose.msra.mxu0 %v280_v3  ;;  %v328_v16 = vld [vmem:[%s252_s25] sm:$0xf] }
  0x12   : > { %v334_v17 = vsel %vm332_vm3, %v328_v16, 0 }
  0x13   : > { %v272_v5 = vmul.f32 0.25, %v271_v4  ;;  %343 = vmatpush.bf16.msra.mxu1 %v334_v17 }
  0x14   : > { %v312_v26 = vld [vmem:[#allocation3] sm:$0xff] }
  0x15   : > { %v273_v6 = vpack.c.bf16 %v272_v5, %v272_v5  ;;  %v320_v34 = vld [vmem:[#allocation4] sm:$0xff] }
  0x16   : > { %v295_v12 = vld [vmem:[#allocation2] sm:$0xff] }
  0x18   : > { %483 = vmatmul.msk.bf16.vlgmr.msra.gmra.mxu0 %vm268_vm1, %v273_v6 }
  0x95   : > { %v291_v8 = vpop.f32.mrf.mxu0 }
  0x96   : > { %v297_v9 = vsel %vm296_vm2, %v291_v8, -inf }
  0x97   : > { %298 = vmax.xlane.f32.xlu0 %v297_v9 }
  0x9d   : > { %v293_v10 = vpop.f32.mrf.mxu0 }
 0x10a   : > { %v299_v13 = vpop.xlane.xlu0 %298 }
 0x10b   : > { %v300_v14 = vmax.f32 %v295_v12, %v299_v13 }
 0x10d   : > { %v301_v15 = vsub.f32 %v295_v12, %v300_v14  ;;  %351 = vst.msk [vmem:[#allocation2] sm:$0xff] %vm265_vm0, %v300_v14  ;;  %306 = vperm.xlu0 %514, %v300_v14  }
 0x10f   : > { %v302_v24 = vmul.f32 1.442695, %v301_v15 }
 0x17f   : > { %v307_v18 = vpop.permute.xlu0 %306 }
 0x180   : > { %v309_v19 = vsub.f32 %v291_v8, %v307_v18 }
 0x182   : > { %v310_v20 = vmul.f32 1.442695, %v309_v19 }
 0x184   : > { %517 = vpow2.f32 %v310_v20 }
 0x185   : > { %519 = vpow2.f32 %v302_v24 }
 0x18a   : > { %v518_v21 = vpop.eup %517 }
 0x18b   : > { %v314_v22 = vsel %vm296_vm2, %v518_v21, 0.0  ;;  %v327_v23 = vpack.c.bf16 %v518_v21, %v518_v21  ;;  %v520_v25 = vpop.eup %519 }
 0x18c   : > { %315 = vadd.xlane.f32.xlu1 %v314_v22  ;;  %v313_v27 = vmul.f32 %v520_v25, %v312_v26 }
 0x18d   : > { %484 = vmatmul.msk.bf16.vlgmr.msra.gmra.mxu1 %vm296_vm2, %v327_v23 }
 0x1a5   : > { %323 = vperm.xlu1 %515, %v520_v25  }
 0x1ff   : > { %v316_v28 = vpop.xlane.xlu1 %315 }
 0x200   : > { %v317_v29 = vadd.f32 %v316_v28, %v313_v27 }
 0x202   : > { %319 = vst.msk [vmem:[#allocation3] sm:$0xff] %vm265_vm0, %v317_v29 }
 0x209   : > { %v355_v30 = vld [vmem:[#allocation3] sm:$0xff] }
 0x20a   : > { %v345_v31 = vpop.f32.mrf.mxu1  ;;  %521 = vrcp.f32 %v355_v30 }
 0x210   : > { %v522_v32 = vpop.eup %521 }
 0x211   : > { %360 = vperm.xlu2 %516, %v522_v32  }
 0x212   : > { %v347_v33 = vpop.f32.mrf.mxu1 }
 0x217   : > { %v324_v35 = vpop.permute.xlu1 %323 }
 0x218   : > { %v326_v36 = vmul.f32 %v324_v35, %v320_v34 }
 0x21a   : > { %v349_v37 = vadd.f32 %v345_v31, %v326_v36 }
 0x21c   : > { %350 = vst.msk [vmem:[#allocation4] sm:$0xff] %vm268_vm1, %v349_v37 }
 0x223   : > { %v357_v38 = vld [vmem:[#allocation4] sm:$0xff] }
 0x26b   : > { %v361_v39 = vpop.permute.xlu2 %360 }
 0x26c   : > { %v363_v40 = vmul.f32 %v361_v39, %v357_v38 }
 0x26e   : > { %v364_v41 = vpack.c.bf16 %v363_v40, %v363_v40 }
 0x270   : > { %366 = vst.msk [vmem:[%s259_s28] sm:$0xf] %vm365_vm4, %v364_v41 }
 0x271 PF: > { %s13_s14 = sadd.s32 1, %s545_s14   ;;  %s630_s12 = smov %s541_s13 }
 0x272   : > { %p10_p5 = scmp.ge.s32.totalorder %s13_s14, 6   ;;  %s631_s13 = smov %s633_s15 }
 0x274   :  { %12 = sbr.rel (!%p10_p5) target bundleno = 2 (0x2), region = 76 }

// kernel: vit_classifier_forward.43
= control target key start
LH: loop header
LB: loop body
LE: loop exit
PB: predicated region body
PF: predicated region fallthrough
CT: control target
= control target key end

     0   :  { %s256_s1 = inlined_call_operand.vmem [shape: bf16[128,128], index: 1, kind: input, shape index: {}]   ;;  %s257_s2 = inlined_call_operand.vmem [shape: f32[1,128], index: 2, kind: input, shape index: {}]   ;;  %s258_s0 = inlined_call_operand.vmem [shape: bf16[16,128], index: 0, kind: input, shape index: {}]   ;;  %s259_s3 = inlined_call_operand.vmem [shape: bf16[16,128], index: 3, kind: input, shape index: {}]   ;;  %s260_s4 = inlined_call_operand.vmem [shape: bf16[16,128], index: 4, kind: output, shape index: {}]  }
   0x1   :  { %v184_v0 = vld [vmem:[%s256_s1 + $0x38] sm:$0xff]  ;;  %v183_v1 = vld [vmem:[%s256_s1 + $0x30] sm:$0xff]  ;;  %v182_v2 = vld [vmem:[%s256_s1 + $0x28] sm:$0xff] }
   0x2   :  { %97 = vmatpush.bf16.msra.mxu0 %v184_v0  ;;  %v181_v3 = vld [vmem:[%s256_s1 + $0x20] sm:$0xff]  ;;  %v180_v4 = vld [vmem:[%s256_s1 + $0x18] sm:$0xff]  ;;  %v179_v5 = vld [vmem:[%s256_s1 + $0x10] sm:$0xff] }
   0x3   :  { %v178_v6 = vld [vmem:[%s256_s1 + $0x8] sm:$0xff]  ;;  %v177_v7 = vld [vmem:[%s256_s1] sm:$0xff] }
   0x4   :  { %v176_v8 = vld [vmem:[%s258_s0] sm:$0xff] }
   0x5   :  { %v194_v10 = vld [vmem:[%s257_s2] ss:$0 sm:$0xff] }
   0x6   :  { %98 = vmatpush.bf16.msra.mxu0 %v183_v1  ;;  %v186_v11 = vld [vmem:[%s259_s3] sm:$0xff]  }
   0x7   :  { %v187_v13 = vunpack.c.l.bf16 %v186_v11  ;;  %v188_v14 = vunpack.c.h.bf16 %v186_v11 }
   0xa   :  { %99 = vmatpush.bf16.msra.mxu0 %v182_v2 }
   0xe   :  { %100 = vmatpush.bf16.msra.mxu0 %v181_v3 }
  0x12   :  { %101 = vmatpush.bf16.msra.mxu0 %v180_v4 }
  0x16   :  { %102 = vmatpush.bf16.msra.mxu0 %v179_v5 }
  0x1a   :  { %103 = vmatpush.bf16.msra.mxu0 %v178_v6 }
  0x1e   :  { %104 = vmatpush.bf16.msra.mxu0 %v177_v7 }
  0x21   :  { %105 = vmatmul.bf16.vlgmr.msra.gmra.mxu0 %v176_v8 }
  0x9e   :  { %v106_v9 = vpop.f32.mrf.mxu0 }
  0x9f   :  { %v124_v12 = vadd.f32 %v194_v10, %v106_v9 }
  0xa1   :  { %v130_v17 = vadd.f32 %v187_v13, %v124_v12 }
  0xa6   :  { %v108_v15 = vpop.f32.mrf.mxu0 }
  0xa7   :  { %v125_v16 = vadd.f32 %v194_v10, %v108_v15 }
  0xa9   :  { %v131_v18 = vadd.f32 %v188_v14, %v125_v16 }
  0xab   :  { %v192_v19 = vpack.c.bf16 %v131_v18, %v130_v17 }
  0xad   :  { %193 = vst [vmem:[%s260_s4] sm:$0xff] %v192_v19  }

// kernel: vit_classifier_forward.44
= control target key start
LH: loop header
LB: loop body
LE: loop exit
PB: predicated region body
PF: predicated region fallthrough
CT: control target
= control target key end

     0   :  { %vm29_vm0 = vcmask 261120   ;;  %v208_v5 = vmov 32.0   ;;  %vm95_vm6 = vcmask 257024   ;;  %s265_s0 = inlined_call_operand.vmem [shape: bf16[16,32], index: 0, kind: input, shape index: {}]   ;;  %s266_s1 = inlined_call_operand.vmem [shape: f32[1,32], index: 1, kind: input, shape index: {}]   ;;  %s267_s2 = inlined_call_operand.vmem [shape: f32[1,32], index: 2, kind: input, shape index: {}]   ;;  %s268_s4 = inlined_call_operand.vmem [shape: f32[1,128], index: 4, kind: input, shape index: {}]   ;;  %s269_s3 = inlined_call_operand.vmem [shape: bf16[32,128], index: 3, kind: input, shape index: {}]   ;;  %s270_s5 = inlined_call_operand.vmem [shape: bf16[16,128], index: 5, kind: output, shape index: {}]  }
   0x1   :  { %v186_v0 = vld [vmem:[%s265_s0] sm:$0xff]   ;;  %198 = vrcp.f32 %v208_v5  ;;  %v184_v25 = vld [vmem:[%s269_s3 + $0x8] sm:$0xff] }
   0x2   :  { %v187_v1 = vunpack.c.l.bf16 %v186_v0  ;;  %v188_v3 = vunpack.c.h.bf16 %v186_v0  ;;  %135 = vmatpush.bf16.msra.mxu0 %v184_v25  ;;  %v183_v28 = vld [vmem:[%s269_s3] sm:$0xff] }
   0x3   :  { %v195_v38 = vld [vmem:[%s266_s1] ss:$0 sm:$0xff] }
   0x4   :  { %v30_v2 = vsel %vm29_vm0, %v187_v1, 0.0  ;;  %v33_v4 = vsel %vm29_vm0, %v188_v3, 0.0  ;;  %v196_v41 = vld [vmem:[%s267_s2] ss:$0 sm:$0xff] }
   0x5   :  { %31 = vadd.xlane.f32.xlu0 %v30_v2  ;;  %v197_v55 = vld [vmem:[%s268_s4] ss:$0 sm:$0xff] }
   0x6   :  { %136 = vmatpush.bf16.msra.mxu0 %v183_v28 }
   0x7   :  { %v199_v6 = vpop.eup %198 }
   0x8   :  { %v37_v7 = vmul.f32 32.0, %v199_v6  ;;  %vm41_vm1 = vweird.f32 %v199_v6 }
   0xa   :  { %v38_v8 = vsub.f32 1.0, %v37_v7 }
   0xc   :  { %v39_v9 = vmul.f32 %v199_v6, %v38_v8 }
   0xd   :  { %34 = vadd.xlane.f32.xlu0 %v33_v4 }
   0xe   :  { %v40_v10 = vadd.f32 %v199_v6, %v39_v9 }
  0x10   :  { %v42_v11 = vsel %vm41_vm1, %v199_v6, %v40_v10 }
  0x78   :  { %v32_v12 = vpop.xlane.xlu0 %31 }
  0x79   :  { %v43_v13 = vmul.f32 %v42_v11, %v32_v12 }
  0x7b   :  { %v45_v14 = vsub.f32 %v187_v1, %v43_v13 }
  0x7d   :  { %v47_v15 = vmul.f32 %v45_v14, %v45_v14 }
  0x7f   :  { %v49_v16 = vsel %vm29_vm0, %v47_v15, 0.0 }
  0x80   :  { %50 = vadd.xlane.f32.xlu1 %v49_v16  ;;  %v35_v17 = vpop.xlane.xlu0 %34 }
  0x81   :  { %v44_v18 = vmul.f32 %v42_v11, %v35_v17 }
  0x83   :  { %v46_v19 = vsub.f32 %v188_v3, %v44_v18 }
  0x85   :  { %v48_v20 = vmul.f32 %v46_v19, %v46_v19 }
  0x87   :  { %v52_v21 = vsel %vm29_vm0, %v48_v20, 0.0 }
  0x88   :  { %53 = vadd.xlane.f32.xlu1 %v52_v21 }
  0xf3   :  { %v51_v22 = vpop.xlane.xlu1 %50 }
  0xf4   :  { %v55_v23 = vmul.f32 %v51_v22, %v42_v11 }
  0xf6   :  { %v57_v24 = vadd.f32 1e-05, %v55_v23 }
  0xf8   :  { %200 = vrsqrt.f32 %v57_v24  ;;  %vm65_vm3 = vweird.f32 %v57_v24 }
  0xfb   :  { %v54_v26 = vpop.xlane.xlu1 %53 }
  0xfc   :  { %v56_v27 = vmul.f32 %v54_v26, %v42_v11 }
  0xfe   :  { %v201_v29 = vpop.eup %200  ;;  %v58_v30 = vadd.f32 1e-05, %v56_v27 }
  0xff   :  { %v60_v31 = vmul.f32 %v201_v29, %v57_v24  ;;  %vm66_vm2 = vweird.f32 %v201_v29 }
 0x100   :  { %202 = vrsqrt.f32 %v58_v30  ;;  %vm67_vm4 = vmor %vm65_vm3, %vm66_vm2  ;;  %vm75_vm7 = vweird.f32 %v58_v30 }
 0x101   :  { %v61_v32 = vmul.f32 %v201_v29, %v60_v31 }
 0x103   :  { %v62_v33 = vmul.f32 0.5, %v61_v32 }
 0x105   :  { %v63_v34 = vsub.f32 1.5, %v62_v33 }
 0x106   :  { %v203_v35 = vpop.eup %202 }
 0x107   :  { %v64_v36 = vmul.f32 %v201_v29, %v63_v34  ;;  %v70_v37 = vmul.f32 %v203_v35, %v58_v30  ;;  %vm76_vm5 = vweird.f32 %v203_v35 }
 0x108   :  { %vm77_vm8 = vmor %vm75_vm7, %vm76_vm5 }
 0x109   :  { %v68_v39 = vsel %vm67_vm4, %v201_v29, %v64_v36  ;;  %v71_v40 = vmul.f32 %v203_v35, %v70_v37 }
 0x10a   :  { %v79_v42 = vmul.f32 %v68_v39, %v45_v14 }
 0x10b   :  { %v72_v43 = vmul.f32 0.5, %v71_v40 }
 0x10c   :  { %v85_v44 = vmul.f32 %v195_v38, %v79_v42 }
 0x10d   :  { %v73_v45 = vsub.f32 1.5, %v72_v43 }
 0x10e   :  { %v91_v46 = vadd.f32 %v196_v41, %v85_v44 }
 0x10f   :  { %v74_v47 = vmul.f32 %v203_v35, %v73_v45 }
 0x110   :  { %v93_v48 = vpack.c.bf16 %v91_v46, %v91_v46 }
 0x111   :  { %v78_v49 = vsel %vm77_vm8, %v203_v35, %v74_v47 }
 0x112   :  { %96 = vst.msk [vmem:[#allocation2] sm:$0xf] %vm95_vm6, %v93_v48  ;;  %v80_v50 = vmul.f32 %v78_v49, %v46_v19 }
 0x114   :  { %v86_v51 = vmul.f32 %v195_v38, %v80_v50 }
 0x116   :  { %v92_v52 = vadd.f32 %v196_v41, %v86_v51 }
 0x118   :  { %v94_v53 = vpack.c.bf16 %v92_v52, %v92_v52 }
 0x11a   :  { %97 = vst.msk [vmem:[#allocation2 + $0x4] sm:$0xf] %vm95_vm6, %v94_v53 }
 0x121   :  { %v182_v54 = vld [vmem:[#allocation2] sm:$0xff] }
 0x122   :  { %181 = vmatmul.msk.bf16.vlgmr.msra.gmra.mxu0 %vm29_vm0, %v182_v54 }
 0x19f   :  { %v138_v56 = vpop.f32.mrf.mxu0 }
 0x1a0   :  { %v139_v57 = vadd.f32 %v197_v55, %v138_v56 }
 0x1a2   :  { %v143_v58 = vmul.f32 %v139_v57, %v139_v57 }
 0x1a4   :  { %v145_v59 = vmul.f32 %v143_v58, %v139_v57 }
 0x1a6   :  { %v147_v60 = vmul.f32 0.044715, %v145_v59 }
 0x1a7   :  { %v140_v61 = vpop.f32.mrf.mxu0 }
 0x1a8   :  { %v149_v62 = vadd.f32 %v147_v60, %v139_v57  ;;  %v141_v63 = vadd.f32 %v197_v55, %v140_v61 }
 0x1aa   :  { %v151_v0 = vmul.f32 0.7978846, %v149_v62  ;;  %v144_v1 = vmul.f32 %v141_v63, %v141_v63 }
 0x1ac   :  { %v146_v2 = vmul.f32 %v144_v1, %v141_v63  ;;  %204 = vtanh.f32 %v151_v0 }
 0x1ae   :  { %v148_v3 = vmul.f32 0.044715, %v146_v2 }
 0x1b0   :  { %v150_v4 = vadd.f32 %v148_v3, %v141_v63 }
 0x1b2   :  { %v152_v5 = vmul.f32 0.7978846, %v150_v4  ;;  %v205_v6 = vpop.eup %204 }
 0x1b3   :  { %v155_v7 = vadd.f32 1.0, %v205_v6 }
 0x1b4   :  { %206 = vtanh.f32 %v152_v5 }
 0x1b5   :  { %v157_v9 = vmul.f32 0.5, %v155_v7 }
 0x1b7   :  { %v159_v12 = vmul.f32 %v157_v9, %v139_v57 }
 0x1ba   :  { %v207_v8 = vpop.eup %206 }
 0x1bb   :  { %v156_v10 = vadd.f32 1.0, %v207_v8 }
 0x1bd   :  { %v158_v11 = vmul.f32 0.5, %v156_v10 }
 0x1bf   :  { %v160_v13 = vmul.f32 %v158_v11, %v141_v63 }
 0x1c1   :  { %v192_v14 = vpack.c.bf16 %v160_v13, %v159_v12 }
 0x1c3   :  { %193 = vst [vmem:[%s270_s5] sm:$0xff] %v192_v14  }

// kernel: vit_classifier_forward.51
= control target key start
LH: loop header
LB: loop body
LE: loop exit
PB: predicated region body
PF: predicated region fallthrough
CT: control target
= control target key end

     0   :  { %vm26_vm0 = vcmask 261120   ;;  %s280_s0 = inlined_call_operand.vmem [shape: bf16[2,8,32], index: 0, kind: input, shape index: {}]   ;;  %s281_s1 = inlined_call_operand.vmem [shape: f32[1,32], index: 1, kind: input, shape index: {}]   ;;  %s282_s2 = inlined_call_operand.vmem [shape: f32[1,32], index: 2, kind: input, shape index: {}]   ;;  %s283_s3 = inlined_call_operand.vmem [shape: bf16[32,128], index: 3, kind: input, shape index: {}]   ;;  %s284_s4 = inlined_call_operand.vmem [shape: f32[1,128], index: 4, kind: input, shape index: {}]   ;;  %s285_s5 = inlined_call_operand.hbm [shape: f32[2,128], index: 5, kind: output, shape index: {}]  }
   0x1   :  { %v180_v0 = vld [vmem:[%s280_s0] sm:$0xff]  }
   0x2   :  { %v181_v1 = vunpack.c.l.bf16 %v180_v0 }
   0x3   :  { %10 = vsyncpa [#allocation3], 0  ;;  %v182_v3 = vunpack.c.h.bf16 %v180_v0  ;;  %v220_v5 = vmov 32.0   ;;  %v178_v25 = vld [vmem:[%s283_s3 + $0x8] sm:$0xff]  ;;  %v177_v26 = vld [vmem:[%s283_s3] sm:$0xff]  ;;  %vm120_vm8 = vcmask 1041409  }
   0x4   :  { %v27_v2 = vsel %vm26_vm0, %v181_v1, 0.0  ;;  %188 = vrcp.f32 %v220_v5  ;;  %144 = vmatpush.bf16.msra.mxu0 %v178_v25  ;;  %v185_v38 = vld [vmem:[%s281_s1] ss:$0 sm:$0xff]  ;;  %s221_s26 = smov [#allocation2]   ;;  %s159_s30 = sshll.u32 %s285_s5, 4  ;;  %s160_s30 = int_to_ptr.hbm [resolvable:$true] %s159_s30 }
   0x5   :  { %28 = vadd.xlane.f32.xlu0 %v27_v2  ;;  %v30_v4 = vsel %vm26_vm0, %v182_v3, 0.0  ;;  %v186_v41 = vld [vmem:[%s282_s2] ss:$0 sm:$0xff]  ;;  %s157_s27 = sshll.u32 %s221_s26, 4  ;;  %s158_s27 = int_to_ptr.vmem [resolvable:$true] %s157_s27 }
   0x8   :  { %145 = vmatpush.bf16.msra.mxu0 %v177_v26 }
   0xa   :  { %v189_v6 = vpop.eup %188 }
   0xb   :  { %v34_v7 = vmul.f32 32.0, %v189_v6  ;;  %vm38_vm1 = vweird.f32 %v189_v6 }
   0xd   :  { %31 = vadd.xlane.f32.xlu0 %v30_v4  ;;  %v35_v8 = vsub.f32 1.0, %v34_v7 }
   0xf   :  { %v36_v9 = vmul.f32 %v189_v6, %v35_v8 }
  0x11   :  { %v37_v10 = vadd.f32 %v189_v6, %v36_v9 }
  0x13   :  { %v39_v11 = vsel %vm38_vm1, %v189_v6, %v37_v10  ;;  %v187_v10 = vld [vmem:[%s284_s4] ss:$0 sm:$0xff] }
  0x78   :  { %v29_v12 = vpop.xlane.xlu0 %28 }
  0x79   :  { %v40_v13 = vmul.f32 %v39_v11, %v29_v12 }
  0x7b   :  { %v42_v14 = vsub.f32 %v181_v1, %v40_v13 }
  0x7d   :  { %v44_v15 = vmul.f32 %v42_v14, %v42_v14 }
  0x7f   :  { %v46_v16 = vsel %vm26_vm0, %v44_v15, 0.0 }
  0x80   :  { %47 = vadd.xlane.f32.xlu1 %v46_v16  ;;  %v32_v17 = vpop.xlane.xlu0 %31 }
  0x81   :  { %v41_v18 = vmul.f32 %v39_v11, %v32_v17 }
  0x83   :  { %v43_v19 = vsub.f32 %v182_v3, %v41_v18 }
  0x85   :  { %v45_v20 = vmul.f32 %v43_v19, %v43_v19 }
  0x87   :  { %v49_v21 = vsel %vm26_vm0, %v45_v20, 0.0 }
  0x88   :  { %50 = vadd.xlane.f32.xlu1 %v49_v21 }
  0xf3   :  { %v48_v22 = vpop.xlane.xlu1 %47 }
  0xf4   :  { %v52_v23 = vmul.f32 %v48_v22, %v39_v11 }
  0xf6   :  { %v54_v24 = vadd.f32 1e-05, %v52_v23 }
  0xf8   :  { %190 = vrsqrt.f32 %v54_v24  ;;  %vm62_vm3 = vweird.f32 %v54_v24 }
  0xfb   :  { %v51_v27 = vpop.xlane.xlu1 %50 }
  0xfc   :  { %v53_v28 = vmul.f32 %v51_v27, %v39_v11 }
  0xfe   :  { %v191_v29 = vpop.eup %190  ;;  %v55_v30 = vadd.f32 1e-05, %v53_v28 }
  0xff   :  { %v57_v31 = vmul.f32 %v191_v29, %v54_v24  ;;  %vm63_vm2 = vweird.f32 %v191_v29 }
 0x100   :  { %192 = vrsqrt.f32 %v55_v30  ;;  %vm64_vm4 = vmor %vm62_vm3, %vm63_vm2  ;;  %vm72_vm6 = vweird.f32 %v55_v30 }
 0x101   :  { %v58_v32 = vmul.f32 %v191_v29, %v57_v31 }
 0x103   :  { %v59_v33 = vmul.f32 0.5, %v58_v32 }
 0x105   :  { %v60_v34 = vsub.f32 1.5, %v59_v33 }
 0x106   :  { %v193_v35 = vpop.eup %192 }
 0x107   :  { %v61_v36 = vmul.f32 %v191_v29, %v60_v34  ;;  %v67_v37 = vmul.f32 %v193_v35, %v55_v30  ;;  %vm73_vm5 = vweird.f32 %v193_v35 }
 0x108   :  { %vm74_vm7 = vmor %vm72_vm6, %vm73_vm5 }
 0x109   :  { %v65_v39 = vsel %vm64_vm4, %v191_v29, %v61_v36  ;;  %v68_v40 = vmul.f32 %v193_v35, %v67_v37 }
 0x10a   :  { %v76_v42 = vmul.f32 %v65_v39, %v42_v14 }
 0x10b   :  { %v69_v43 = vmul.f32 0.5, %v68_v40 }
 0x10c   :  { %v82_v44 = vmul.f32 %v185_v38, %v76_v42 }
 0x10d   :  { %v70_v45 = vsub.f32 1.5, %v69_v43 }
 0x10e   :  { %v88_v46 = vadd.f32 %v186_v41, %v82_v44 }
 0x10f   :  { %v71_v47 = vmul.f32 %v193_v35, %v70_v45 }
 0x110   :  { %v90_v48 = vsel %vm26_vm0, %v88_v46, 0.0 }
 0x111   :  { %v75_v49 = vsel %vm74_vm7, %v193_v35, %v71_v47  ;;  %v91_v50 = vrot.slane %v90_v48, 4 }
 0x112   :  { %v77_v51 = vmul.f32 %v75_v49, %v43_v19 }
 0x113   :  { %v92_v52 = vadd.f32 %v91_v50, %v90_v48 }
 0x114   :  { %v83_v53 = vmul.f32 %v185_v38, %v77_v51 }
 0x115   :  { %v93_v54 = vrot.slane %v92_v52, 2 }
 0x116   :  { %v89_v55 = vadd.f32 %v186_v41, %v83_v53 }
 0x117   :  { %v94_v56 = vadd.f32 %v93_v54, %v92_v52 }
 0x118   :  { %v97_v57 = vsel %vm26_vm0, %v89_v55, 0.0 }
 0x119   :  { %v95_v58 = vrot.slane %v94_v56, 1  ;;  %v98_v59 = vrot.slane %v97_v57, 4 }
 0x11b   :  { %v99_v60 = vadd.f32 %v98_v59, %v97_v57  ;;  %v96_v61 = vadd.f32 %v95_v58, %v94_v56 }
 0x11d   :  { %v100_v62 = vrot.slane %v99_v60, 2  ;;  %v104_v1 = vmul.f32 0.125, %v96_v61 }
 0x11f   :  { %v101_v63 = vadd.f32 %v100_v62, %v99_v60  ;;  %v106_v4 = vpack.c.bf16 %v104_v1, %v104_v1 }
 0x121   :  { %v102_v0 = vrot.slane %v101_v63, 1  ;;  %v118_v6 = vunpack.c.l.b16 %v106_v4 }
 0x123   :  { %v103_v2 = vadd.f32 %v102_v0, %v101_v63 }
 0x125   :  { %v105_v3 = vmul.f32 0.125, %v103_v2 }
 0x127   :  { %v107_v5 = vpack.c.bf16 %v105_v3, %v105_v3 }
 0x129   :  { %v119_v7 = vunpack.c.l.b16 %v107_v5 }
 0x12b   :  { %v121_v8 = vsel %vm120_vm8, %v119_v7, %v118_v6 }
 0x12c   :  { %v122_v9 = vpack.c.b16 %v121_v8, %v121_v8 }
 0x12e   :  { %176 = vmatmul.msk.bf16.vlgmr.msra.gmra.mxu0 %vm26_vm0, %v122_v9 }
 0x1ab   :  { %v147_v11 = vpop.f32.mrf.mxu0 }
 0x1ac   :  { %v148_v12 = vadd.f32 %v187_v10, %v147_v11 }
 0x1ae   :  { %151 = vst [vmem:[#allocation2] sm:$0x3] %v148_v12 }
 0x1af   :  { %162 = dma.vmem_to_hbm [thread:$0]  %s158_s27, 32, %s160_s30, [#allocation3]  }
 0x1b3   :  { %v149_v13 = vpop.f32.mrf.mxu0 }
 0x1b4   :  { %218 = dma.done.wait [#allocation3], 32  }
 0x1b5   :  { %219 = vsyncadd [#allocation3], 4294967264 }
 0x1b6   :  { %167 = vsyncpa [#allocation3], 1 }

</bundles_post_ra>
